<compile_context>
chip_gen: v7x
topology: tpu7x:2x2x1
jax: 0.10.0
libtpu: 0.0.40
codegen_flags: <defaults>
</compile_context>

<pallas_src>
import functools

import jax
import jax.numpy as jnp
from jax import lax
from jax.experimental import pallas as pl
from jax.experimental.pallas import tpu as pltpu

BN_EPS = 1e-5
LN_EPS = 1e-6
COMPUTE_DTYPE = jnp.bfloat16          # MXU input dtype (accumulation stays f32)
_VMEM_LIMIT = 32 * 1024 * 1024        # safe on v5e/v6e (128 MiB) and v7x (64 MiB)


def _cparams():
    return pltpu.CompilerParams(
        dimension_semantics=("parallel",),
        vmem_limit_bytes=_VMEM_LIMIT,
    )


def _pick_tile(m, row_bytes, budget=8 << 20):
    """Largest row tile dividing m whose (double-buffered) footprint fits budget."""
    cap = max(8, budget // max(2 * row_bytes, 1))
    for t in (1024, 512, 256, 128, 64, 32, 16, 8):
        if t <= m and t <= cap and m % t == 0:
            return t
    return m


def _elu(a):
    # exp is clamped so the discarded branch never produces inf (review note).
    return jnp.where(a > 0, a, jnp.exp(jnp.minimum(a, 0.0)) - 1.0)


# --------------------------- Pallas kernels ---------------------------------

def _matmul_kernel(x_ref, w_ref, b_ref, o_ref, *, act):
    acc = jnp.dot(x_ref[...], w_ref[...], preferred_element_type=jnp.float32)
    acc = acc + b_ref[...]
    if act == "elu":
        acc = _elu(acc)
    o_ref[...] = acc.astype(o_ref.dtype)


def _matmul_res_kernel(x_ref, w_ref, b_ref, r_ref, o_ref):
    # matmul + bias + fused residual add (saves an extra HBM round-trip).
    acc = jnp.dot(x_ref[...], w_ref[...], preferred_element_type=jnp.float32)
    acc = acc + b_ref[...] + r_ref[...].astype(jnp.float32)
    o_ref[...] = acc.astype(o_ref.dtype)


def matmul_bias(x, w, b, *, act="none", residual=None, out_dtype=None):
    m, k = x.shape
    k2, n = w.shape
    assert k == k2
    out_dtype = out_dtype or x.dtype
    row_bytes = (k * x.dtype.itemsize + n * jnp.dtype(out_dtype).itemsize
                 + (n * residual.dtype.itemsize if residual is not None else 0))
    tm = _pick_tile(m, row_bytes)
    b2 = b.reshape(1, n).astype(jnp.float32)
    if residual is None:
        kern = functools.partial(_matmul_kernel, act=act)
        return pl.pallas_call(
            kern,
            out_shape=jax.ShapeDtypeStruct((m, n), out_dtype),
            grid=(m // tm,),
            in_specs=[pl.BlockSpec((tm, k), lambda i: (i, 0)),
                      pl.BlockSpec((k, n), lambda i: (0, 0)),
                      pl.BlockSpec((1, n), lambda i: (0, 0))],
            out_specs=pl.BlockSpec((tm, n), lambda i: (i, 0)),
            compiler_params=_cparams(),
        )(x, w, b2)
    assert act == "none"
    return pl.pallas_call(
        _matmul_res_kernel,
        out_shape=jax.ShapeDtypeStruct((m, n), out_dtype),
        grid=(m // tm,),
        in_specs=[pl.BlockSpec((tm, k), lambda i: (i, 0)),
                  pl.BlockSpec((k, n), lambda i: (0, 0)),
                  pl.BlockSpec((1, n), lambda i: (0, 0)),
                  pl.BlockSpec((tm, n), lambda i: (i, 0))],
        out_specs=pl.BlockSpec((tm, n), lambda i: (i, 0)),
        compiler_params=_cparams(),
    )(x, w, b2, residual)


def _layernorm_kernel(x_ref, g_ref, b_ref, o_ref):
    x = x_ref[...].astype(jnp.float32)
    mu = jnp.mean(x, axis=-1, keepdims=True)
    xc = x - mu
    var = jnp.mean(xc * xc, axis=-1, keepdims=True)
    xn = xc * lax.rsqrt(var + LN_EPS) * g_ref[...] + b_ref[...]
    o_ref[...] = xn.astype(o_ref.dtype)


def layernorm(x, g, b, out_dtype=None):
    m, c = x.shape
    out_dtype = out_dtype or x.dtype
    tm = _pick_tile(m, c * 8)
    return pl.pallas_call(
        _layernorm_kernel,
        out_shape=jax.ShapeDtypeStruct((m, c), out_dtype),
        grid=(m // tm,),
        in_specs=[pl.BlockSpec((tm, c), lambda i: (i, 0)),
                  pl.BlockSpec((1, c), lambda i: (0, 0)),
                  pl.BlockSpec((1, c), lambda i: (0, 0))],
        out_specs=pl.BlockSpec((tm, c), lambda i: (i, 0)),
        compiler_params=_cparams(),
    )(x, g.reshape(1, c).astype(jnp.float32), b.reshape(1, c).astype(jnp.float32))


def _ln_matmul_kernel(x_ref, g_ref, bln_ref, w_ref, b_ref, o_ref, *, act):
    # LayerNorm fused into the consumer matmul (LN math in f32, MXU in bf16).
    x = x_ref[...].astype(jnp.float32)
    mu = jnp.mean(x, axis=-1, keepdims=True)
    xc = x - mu
    var = jnp.mean(xc * xc, axis=-1, keepdims=True)
    xn = xc * lax.rsqrt(var + LN_EPS) * g_ref[...] + bln_ref[...]
    acc = jnp.dot(xn.astype(w_ref.dtype), w_ref[...],
                  preferred_element_type=jnp.float32)
    acc = acc + b_ref[...]
    if act == "elu":
        acc = _elu(acc)
    o_ref[...] = acc.astype(o_ref.dtype)


def ln_matmul_bias(x, g, bln, w, b, *, act="none", out_dtype=None):
    m, c = x.shape
    c2, n = w.shape
    assert c == c2
    out_dtype = out_dtype or x.dtype
    row_bytes = c * x.dtype.itemsize + n * jnp.dtype(out_dtype).itemsize
    tm = _pick_tile(m, row_bytes)
    kern = functools.partial(_ln_matmul_kernel, act=act)
    return pl.pallas_call(
        kern,
        out_shape=jax.ShapeDtypeStruct((m, n), out_dtype),
        grid=(m // tm,),
        in_specs=[pl.BlockSpec((tm, c), lambda i: (i, 0)),
                  pl.BlockSpec((1, c), lambda i: (0, 0)),
                  pl.BlockSpec((1, c), lambda i: (0, 0)),
                  pl.BlockSpec((c, n), lambda i: (0, 0)),
                  pl.BlockSpec((1, n), lambda i: (0, 0))],
        out_specs=pl.BlockSpec((tm, n), lambda i: (i, 0)),
        compiler_params=_cparams(),
    )(x, g.reshape(1, c).astype(jnp.float32), bln.reshape(1, c).astype(jnp.float32),
      w, b.reshape(1, n).astype(jnp.float32))


def _dwconv3d_bn_elu_kernel(x_ref, w_ref, s_ref, b_ref, o_ref):
    # x_ref: (1, T+2, 6, 6, FF) zero-padded window of ONE batch element.
    # 27 shifted views are formed in-VMEM -> no 27x HBM im2col blow-up.
    t, hh, ww = o_ref.shape[1], o_ref.shape[2], o_ref.shape[3]
    w = w_ref[...].astype(jnp.float32)                 # (27, FF)
    acc = None
    idx = 0
    for kt in range(3):
        for kh in range(3):
            for kw in range(3):
                tap = x_ref[0, kt:kt + t, kh:kh + hh, kw:kw + ww, :].astype(jnp.float32)
                tap = tap * w[idx:idx + 1]             # depthwise multiply
                acc = tap if acc is None else acc + tap
                idx += 1
    acc = acc * s_ref[...] + b_ref[...]                # folded eval BatchNorm3d
    o_ref[0] = _elu(acc).astype(o_ref.dtype)


def dwconv3d_bn_elu(y5, w27, scale, bias, out_dtype):
    """Depthwise 3x3x3 conv (pad=1) + folded BN + ELU on (B, T, 4, 4, FF)."""
    bsz, t, h, wsp, ff = y5.shape
    ypad = jnp.pad(y5, ((0, 0), (1, 1), (1, 1), (1, 1), (0, 0)))
    # TODO(synk): tile the T axis with halo exchange for very long clips; one
    # padded window per batch element is fine for PhysFormer-scale T.
    return pl.pallas_call(
        _dwconv3d_bn_elu_kernel,
        out_shape=jax.ShapeDtypeStruct((bsz, t, h, wsp, ff), out_dtype),
        grid=(bsz,),
        in_specs=[pl.BlockSpec((1, t + 2, h + 2, wsp + 2, ff),
                               lambda i: (i, 0, 0, 0, 0)),
                  pl.BlockSpec((27, ff), lambda i: (0, 0)),
                  pl.BlockSpec((1, ff), lambda i: (0, 0)),
                  pl.BlockSpec((1, ff), lambda i: (0, 0))],
        out_specs=pl.BlockSpec((1, t, h, wsp, ff), lambda i: (i, 0, 0, 0, 0)),
        compiler_params=_cparams(),
    )(ypad, w27, scale.reshape(1, ff).astype(jnp.float32),
      bias.reshape(1, ff).astype(jnp.float32))


def _attention_kernel(q_ref, k_ref, v_ref, o_ref):
    # q already carries the 1/gra_sharp scale (folded into the Q weights).
    q, k, v = q_ref[0], k_ref[0], v_ref[0]             # (H, P, Wd) bf16
    s = jnp.einsum("hqd,hkd->hqk", q, k, preferred_element_type=jnp.float32)
    m = jnp.max(s, axis=-1, keepdims=True)
    e = jnp.exp(s - m)
    p = e * pl.reciprocal(jnp.sum(e, axis=-1, keepdims=True), approx=True)
    h = jnp.einsum("hqk,hkd->hqd", p.astype(v.dtype), v,
                   preferred_element_type=jnp.float32)
    o_ref[0] = h.astype(o_ref.dtype)


def _attention_scores_kernel(q_ref, k_ref, v_ref, o_ref, s_ref):
    q, k, v = q_ref[0], k_ref[0], v_ref[0]
    s = jnp.einsum("hqd,hkd->hqk", q, k, preferred_element_type=jnp.float32)
    m = jnp.max(s, axis=-1, keepdims=True)
    e = jnp.exp(s - m)
    p = e * pl.reciprocal(jnp.sum(e, axis=-1, keepdims=True), approx=True)
    h = jnp.einsum("hqk,hkd->hqd", p.astype(v.dtype), v,
                   preferred_element_type=jnp.float32)
    o_ref[0] = h.astype(o_ref.dtype)
    s_ref[0] = p.astype(s_ref.dtype)


def attention(q, k, v, *, return_scores):
    """q, k, v: (B, H, P, Wd).  All heads of one batch element per grid step;
    the P*P probability matrix is only written when return_scores=True."""
    b, hh, p, wd = q.shape
    qkv_spec = pl.BlockSpec((1, hh, p, wd), lambda i: (i, 0, 0, 0))
    if not return_scores:
        out = pl.pallas_call(
            _attention_kernel,
            out_shape=jax.ShapeDtypeStruct((b, hh, p, wd), q.dtype),
            grid=(b,),
            in_specs=[qkv_spec, qkv_spec, qkv_spec],
            out_specs=qkv_spec,
            compiler_params=_cparams(),
        )(q, k, v)
        return out, None
    out, scores = pl.pallas_call(
        _attention_scores_kernel,
        out_shape=(jax.ShapeDtypeStruct((b, hh, p, wd), q.dtype),
                   jax.ShapeDtypeStruct((b, hh, p, p), jnp.float32)),
        grid=(b,),
        in_specs=[qkv_spec, qkv_spec, qkv_spec],
        out_specs=(qkv_spec,
                   pl.BlockSpec((1, hh, p, p), lambda i: (i, 0, 0, 0))),
        compiler_params=_cparams(),
    )(q, k, v)
    return out, scores


# --------------------------- JAX glue ----------------------------------------

def im2col3d_concat(x5):
    """(B, T, H, W, C) -> (B*T*H*W, 27*C); tap order (kt, kh, kw, ci), pad=1.
    Channel-axis concat -> matmul layout in one pass (no stack + transpose)."""
    b, t, h, w, c = x5.shape
    xp = jnp.pad(x5, ((0, 0), (1, 1), (1, 1), (1, 1), (0, 0)))
    cols = [xp[:, kt:kt + t, kh:kh + h, kw:kw + w, :]
            for kt in range(3) for kh in range(3) for kw in range(3)]
    return jnp.concatenate(cols, axis=-1).reshape(b * t * h * w, 27 * c)


def bn_fold(bn):
    scale = bn['gamma'] / jnp.sqrt(bn['var'] + BN_EPS)
    bias = bn['beta'] - scale * bn['mean']
    return scale, bias


def fold_cdc_weight(conv_w, theta):
    """CDC_T (Co, Ci, 3, 3, 3) weight -> (27*Ci, Co) matmul matrix.  The
    theta * 1x1x1(kernel_diff) term is folded into the centre tap (identical
    to the PyTorch out_normal - theta*out_diff formulation)."""
    co, ci = conv_w.shape[:2]
    kdiff = conv_w[:, :, 0].sum((-1, -2)) + conv_w[:, :, 2].sum((-1, -2))   # (Co, Ci)
    w_mod = conv_w.at[:, :, 1, 1, 1].add(-theta * kdiff)
    return jnp.transpose(w_mod, (2, 3, 4, 1, 0)).reshape(27 * ci, co)


def block_forward(x, p, gra_sharp, theta, num_heads, return_scores):
    B, P, C = x.shape
    T = P // 16
    N = B * P
    H = num_heads
    Wd = C // H
    x2 = x.reshape(N, C)

    # ---- fused QKV weight prep (eval-mode constant folding) ----------------
    sq, bq = bn_fold(p['q_bn'])
    sk, bk = bn_fold(p['k_bn'])
    inv_g = 1.0 / gra_sharp
    wq = fold_cdc_weight(p['q_w'], theta) * sq[None, :] * inv_g     # 1/gra_sharp folded
    wk = fold_cdc_weight(p['k_w'], theta) * sk[None, :]
    wv = jnp.zeros((27 * C, C), jnp.float32).at[13 * C:14 * C, :].set(p['v_w'])
    w_qkv = jnp.concatenate([wq, wk, wv], axis=1).astype(COMPUTE_DTYPE)  # (27C, 3C)
    b_qkv = jnp.concatenate([bq * inv_g, bk, jnp.zeros((C,), jnp.float32)])

    # ---- attention branch ---------------------------------------------------
    xn = layernorm(x2, p['ln1_g'], p['ln1_b'], out_dtype=COMPUTE_DTYPE)
    xcol = im2col3d_concat(xn.reshape(B, T, 4, 4, C))               # (N, 27C) bf16
    qkv = matmul_bias(xcol, w_qkv, b_qkv, out_dtype=COMPUTE_DTYPE)  # (N, 3C)

    def to_heads(t2):
        return t2.reshape(B, P, H, Wd).transpose(0, 2, 1, 3)        # (B, H, P, Wd)

    q = to_heads(qkv[:, :C])
    k = to_heads(qkv[:, C:2 * C])
    v = to_heads(qkv[:, 2 * C:])

    h, scores = attention(q, k, v, return_scores=return_scores)
    h = h.transpose(0, 2, 1, 3).reshape(N, C)

    # proj + residual 1 (fused in-kernel)
    x2 = matmul_bias(h, p['proj_w'].astype(COMPUTE_DTYPE), p['proj_b'],
                     residual=x2, out_dtype=jnp.float32)

    # ---- position-wise feed-forward (ST) branch -----------------------------
    s1, b1 = bn_fold(p['fc1_bn'])
    y = ln_matmul_bias(x2, p['ln2_g'], p['ln2_b'],
                       (p['fc1_w'] * s1[None, :]).astype(COMPUTE_DTYPE), b1,
                       act="elu", out_dtype=jnp.float32)            # LN2 fused into fc1
    FF = y.shape[-1]
    s2, b2 = bn_fold(p['st_bn'])
    y = dwconv3d_bn_elu(y.reshape(B, T, 4, 4, FF), p['st_w'], s2, b2,
                        out_dtype=COMPUTE_DTYPE).reshape(N, FF)
    s3, b3 = bn_fold(p['fc2_bn'])
    # fc2 + residual 2 (fused in-kernel)
    x2 = matmul_bias(y, (p['fc2_w'] * s3[None, :]).astype(COMPUTE_DTYPE), b3,
                     residual=x2, out_dtype=jnp.float32)
    # TODO(synk): nn.Dropout layers are identity here (inference / eval mode).
    return x2.reshape(B, P, C), scores


def transformer_forward(x, params, gra_sharp, theta, num_heads):
    scores = None
    n_layers = len(params)
    for li, p in enumerate(params):
        x, s = block_forward(x, p, gra_sharp, theta, num_heads,
                             return_scores=(li == n_layers - 1))
        if s is not None:
            scores = s
    return x, scores


# --------------------------- deterministic params ----------------------------

def init_bn(key, c):
    k1, k2, k3, k4 = jax.random.split(key, 4)
    return dict(
        gamma=1.0 + 0.1 * jax.random.normal(k1, (c,), jnp.float32),
        beta=0.1 * jax.random.normal(k2, (c,), jnp.float32),
        mean=0.1 * jax.random.normal(k3, (c,), jnp.float32),
        var=1.0 + 0.1 * jax.random.uniform(k4, (c,), jnp.float32),
    )


def init_block(key, dim, ff_dim):
    ks = jax.random.split(key, 16)
    s = 0.05
    return dict(
        ln1_g=jnp.ones((dim,), jnp.float32),
        ln1_b=jnp.zeros((dim,), jnp.float32),
        # CDC_T conv weights in PyTorch layout (Cout, Cin, kt, kh, kw)
        q_w=s * jax.random.normal(ks[0], (dim, dim, 3, 3, 3), jnp.float32),
        q_bn=init_bn(ks[1], dim),
        k_w=s * jax.random.normal(ks[2], (dim, dim, 3, 3, 3), jnp.float32),
        k_bn=init_bn(ks[3], dim),
        # 1x1x1 conv / linear weights stored directly in (Cin, Cout) matmul layout
        v_w=s * jax.random.normal(ks[4], (dim, dim), jnp.float32),
        proj_w=s * jax.random.normal(ks[5], (dim, dim), jnp.float32),
        proj_b=s * jax.random.normal(ks[6], (dim,), jnp.float32),
        ln2_g=1.0 + 0.1 * jax.random.normal(ks[7], (dim,), jnp.float32),
        ln2_b=0.1 * jax.random.normal(ks[8], (dim,), jnp.float32),
        fc1_w=s * jax.random.normal(ks[9], (dim, ff_dim), jnp.float32),
        fc1_bn=init_bn(ks[10], ff_dim),
        # depthwise 3x3x3 weights as (27 taps, C); tap order (kt, kh, kw)
        st_w=s * jax.random.normal(ks[11], (27, ff_dim), jnp.float32),
        st_bn=init_bn(ks[12], ff_dim),
        fc2_w=s * jax.random.normal(ks[13], (ff_dim, dim), jnp.float32),
        fc2_bn=init_bn(ks[14], dim),
    )


# ------------------------------ main ------------------------------------------

if __name__ == "__main__":
    key = jax.random.PRNGKey(0)
    num_layers, dim, num_heads, ff_dim = 2, 32, 4, 64
    theta = 0.7
    gra_sharp = 2.0
    B, T = 2, 4
    P = T * 16                      # seq len must be a multiple of 16 (T x 4 x 4)

    kx, kp = jax.random.split(key)
    x = jax.random.normal(kx, (B, P, dim), jnp.float32)
    params = [init_block(jax.random.fold_in(kp, l), dim, ff_dim)
              for l in range(num_layers)]

    fwd = jax.jit(transformer_forward, static_argnums=(4,))
    out, score = fwd(x, params, gra_sharp, theta, num_heads)
    jax.block_until_ready((out, score))

    assert out.shape == (B, P, dim), out.shape
    assert score.shape == (B, num_heads, P, P), score.shape
    assert bool(jnp.all(jnp.isfinite(out)))
    assert bool(jnp.all(jnp.isfinite(score)))
    # softmax rows should sum to ~1 (approx reciprocal -> loose tolerance)
    assert bool(jnp.all(jnp.abs(jnp.sum(score, axis=-1) - 1.0) < 2e-2))
    print("KERNEL_OK")
</pallas_src>

<mosaic_0001>
module attributes {stable_mosaic.version = 11 : i64} {
  func.func @_layernorm_kernel(%arg0: i32, %arg1: memref<128x32xf32, #tpu.memory_space<vmem>>, %arg2: memref<1x32xf32, #tpu.memory_space<vmem>>, %arg3: memref<1x32xf32, #tpu.memory_space<vmem>>, %arg4: memref<128x32xbf16, #tpu.memory_space<vmem>>) attributes {dimension_semantics = [#tpu.dimension_semantics<parallel>], iteration_bounds = array<i64: 1>, scalar_prefetch = 0 : i64, scratch_operands = 0 : i64, tpu.core_type = #tpu.core_type<tc>, window_params = [{transform_indices = @transform_0, window_bounds = array<i64: 128, 32>}, {pipeline_mode = #tpu.pipeline_mode<synchronous>, transform_indices = @transform_1, window_bounds = array<i64: 1, 32>}, {pipeline_mode = #tpu.pipeline_mode<synchronous>, transform_indices = @transform_2, window_bounds = array<i64: 1, 32>}, {transform_indices = @transform_3, window_bounds = array<i64: 128, 32>}]} {
    %c0 = arith.constant 0 : index
    %c0_0 = arith.constant 0 : index
    %0 = vector.load %arg1[%c0, %c0_0] : memref<128x32xf32, #tpu.memory_space<vmem>>, vector<128x32xf32>
    %cst = arith.constant dense<0.000000e+00> : vector<128xf32>
    %1 = vector.multi_reduction <add>, %0, %cst [1] : vector<128x32xf32> to vector<128xf32>
    %2 = vector.shape_cast %1 : vector<128xf32> to vector<128x1xf32>
    %cst_1 = arith.constant 3.200000e+01 : f32
    %3 = vector.broadcast %cst_1 : f32 to vector<128x1xf32>
    %4 = arith.divf %2, %3 : vector<128x1xf32>
    %5 = vector.broadcast %4 : vector<128x1xf32> to vector<128x32xf32>
    %6 = arith.subf %0, %5 : vector<128x32xf32>
    %7 = arith.mulf %6, %6 : vector<128x32xf32>
    %cst_2 = arith.constant dense<0.000000e+00> : vector<128xf32>
    %8 = vector.multi_reduction <add>, %7, %cst_2 [1] : vector<128x32xf32> to vector<128xf32>
    %9 = vector.shape_cast %8 : vector<128xf32> to vector<128x1xf32>
    %cst_3 = arith.constant 3.200000e+01 : f32
    %10 = vector.broadcast %cst_3 : f32 to vector<128x1xf32>
    %11 = arith.divf %9, %10 : vector<128x1xf32>
    %cst_4 = arith.constant 9.99999997E-7 : f32
    %12 = vector.broadcast %cst_4 : f32 to vector<128x1xf32>
    %13 = arith.addf %11, %12 : vector<128x1xf32>
    %14 = math.rsqrt %13 : vector<128x1xf32>
    %15 = vector.broadcast %14 : vector<128x1xf32> to vector<128x32xf32>
    %16 = arith.mulf %6, %15 : vector<128x32xf32>
    %c0_5 = arith.constant 0 : index
    %c0_6 = arith.constant 0 : index
    %17 = vector.load %arg2[%c0_5, %c0_6] : memref<1x32xf32, #tpu.memory_space<vmem>>, vector<1x32xf32>
    %18 = vector.broadcast %17 : vector<1x32xf32> to vector<128x32xf32>
    %19 = arith.mulf %16, %18 : vector<128x32xf32>
    %c0_7 = arith.constant 0 : index
    %c0_8 = arith.constant 0 : index
    %20 = vector.load %arg3[%c0_7, %c0_8] : memref<1x32xf32, #tpu.memory_space<vmem>>, vector<1x32xf32>
    %21 = vector.broadcast %20 : vector<1x32xf32> to vector<128x32xf32>
    %22 = arith.addf %19, %21 : vector<128x32xf32>
    %23 = arith.truncf %22 : vector<128x32xf32> to vector<128x32xbf16>
    %c0_9 = arith.constant 0 : index
    %c0_10 = arith.constant 0 : index
    %24 = vector.load %arg4[%c0_9, %c0_10] : memref<128x32xbf16, #tpu.memory_space<vmem>>, vector<128x32xbf16>
    tpu.vector_store %arg4[%c0_9, %c0_10], %23 {strides = array<i32>} : memref<128x32xbf16, #tpu.memory_space<vmem>>, vector<128x32xbf16>,
    return
  }
  func.func @transform_0(%arg0: i32) -> (i32, i32) {
    %c0_i32 = arith.constant 0 : i32
    %c0_i32_0 = arith.constant 0 : i32
    return %arg0, %c0_i32 : i32, i32
  }
  func.func @transform_1(%arg0: i32) -> (i32, i32) {
    %c0_i32 = arith.constant 0 : i32
    %c0_i32_0 = arith.constant 0 : i32
    %c0_i32_1 = arith.constant 0 : i32
    return %c0_i32, %c0_i32_0 : i32, i32
  }
  func.func @transform_2(%arg0: i32) -> (i32, i32) {
    %c0_i32 = arith.constant 0 : i32
    %c0_i32_0 = arith.constant 0 : i32
    %c0_i32_1 = arith.constant 0 : i32
    return %c0_i32, %c0_i32_0 : i32, i32
  }
  func.func @transform_3(%arg0: i32) -> (i32, i32) {
    %c0_i32 = arith.constant 0 : i32
    %c0_i32_0 = arith.constant 0 : i32
    return %arg0, %c0_i32 : i32, i32
  }
}

module attributes {stable_mosaic.version = 11 : i64} {
  func.func @_matmul_kernel(%arg0: i32, %arg1: memref<128x864xbf16, #tpu.memory_space<vmem>>, %arg2: memref<864x96xbf16, #tpu.memory_space<vmem>>, %arg3: memref<1x96xf32, #tpu.memory_space<vmem>>, %arg4: memref<128x96xbf16, #tpu.memory_space<vmem>>) attributes {dimension_semantics = [#tpu.dimension_semantics<parallel>], iteration_bounds = array<i64: 1>, scalar_prefetch = 0 : i64, scratch_operands = 0 : i64, tpu.core_type = #tpu.core_type<tc>, window_params = [{transform_indices = @transform_0, window_bounds = array<i64: 128, 864>}, {pipeline_mode = #tpu.pipeline_mode<synchronous>, transform_indices = @transform_1, window_bounds = array<i64: 864, 96>}, {pipeline_mode = #tpu.pipeline_mode<synchronous>, transform_indices = @transform_2, window_bounds = array<i64: 1, 96>}, {transform_indices = @transform_3, window_bounds = array<i64: 128, 96>}]} {
    %c0 = arith.constant 0 : index
    %c0_0 = arith.constant 0 : index
    %0 = vector.load %arg1[%c0, %c0_0] : memref<128x864xbf16, #tpu.memory_space<vmem>>, vector<128x864xbf16>
    %c0_1 = arith.constant 0 : index
    %c0_2 = arith.constant 0 : index
    %1 = vector.load %arg2[%c0_1, %c0_2] : memref<864x96xbf16, #tpu.memory_space<vmem>>, vector<864x96xbf16>
    %cst = arith.constant dense<0.000000e+00> : vector<128x96xf32>
    %2 = tpu.matmul %0, %1, %cst {dimension_numbers = #tpu.dot_dimension_numbers<[1], [0], [0], [1], [0, 0, 1, 1], [], []>} : vector<128x864xbf16>, vector<864x96xbf16>, vector<128x96xf32> -> vector<128x96xf32>
    %c0_3 = arith.constant 0 : index
    %c0_4 = arith.constant 0 : index
    %3 = vector.load %arg3[%c0_3, %c0_4] : memref<1x96xf32, #tpu.memory_space<vmem>>, vector<1x96xf32>
    %4 = vector.broadcast %3 : vector<1x96xf32> to vector<128x96xf32>
    %5 = arith.addf %2, %4 : vector<128x96xf32>
    %6 = arith.truncf %5 : vector<128x96xf32> to vector<128x96xbf16>
    %c0_5 = arith.constant 0 : index
    %c0_6 = arith.constant 0 : index
    %7 = vector.load %arg4[%c0_5, %c0_6] : memref<128x96xbf16, #tpu.memory_space<vmem>>, vector<128x96xbf16>
    tpu.vector_store %arg4[%c0_5, %c0_6], %6 {strides = array<i32>} : memref<128x96xbf16, #tpu.memory_space<vmem>>, vector<128x96xbf16>,
    return
  }
  func.func @transform_0(%arg0: i32) -> (i32, i32) {
    %c0_i32 = arith.constant 0 : i32
    %c0_i32_0 = arith.constant 0 : i32
    return %arg0, %c0_i32 : i32, i32
  }
  func.func @transform_1(%arg0: i32) -> (i32, i32) {
    %c0_i32 = arith.constant 0 : i32
    %c0_i32_0 = arith.constant 0 : i32
    %c0_i32_1 = arith.constant 0 : i32
    return %c0_i32, %c0_i32_0 : i32, i32
  }
  func.func @transform_2(%arg0: i32) -> (i32, i32) {
    %c0_i32 = arith.constant 0 : i32
    %c0_i32_0 = arith.constant 0 : i32
    %c0_i32_1 = arith.constant 0 : i32
    return %c0_i32, %c0_i32_0 : i32, i32
  }
  func.func @transform_3(%arg0: i32) -> (i32, i32) {
    %c0_i32 = arith.constant 0 : i32
    %c0_i32_0 = arith.constant 0 : i32
    return %arg0, %c0_i32 : i32, i32
  }
}

module attributes {stable_mosaic.version = 11 : i64} {
  func.func @_attention_kernel(%arg0: i32, %arg1: memref<1x4x64x8xbf16, #tpu.memory_space<vmem>>, %arg2: memref<1x4x64x8xbf16, #tpu.memory_space<vmem>>, %arg3: memref<1x4x64x8xbf16, #tpu.memory_space<vmem>>, %arg4: memref<1x4x64x8xbf16, #tpu.memory_space<vmem>>) attributes {dimension_semantics = [#tpu.dimension_semantics<parallel>], iteration_bounds = array<i64: 2>, scalar_prefetch = 0 : i64, scratch_operands = 0 : i64, tpu.core_type = #tpu.core_type<tc>, window_params = [{transform_indices = @transform_0, window_bounds = array<i64: 1, 4, 64, 8>}, {transform_indices = @transform_1, window_bounds = array<i64: 1, 4, 64, 8>}, {transform_indices = @transform_2, window_bounds = array<i64: 1, 4, 64, 8>}, {transform_indices = @transform_3, window_bounds = array<i64: 1, 4, 64, 8>}]} {
    %c0 = arith.constant 0 : index
    %c0_0 = arith.constant 0 : index
    %c0_1 = arith.constant 0 : index
    %c0_2 = arith.constant 0 : index
    %0 = vector.load %arg1[%c0, %c0_0, %c0_1, %c0_2] : memref<1x4x64x8xbf16, #tpu.memory_space<vmem>>, vector<1x4x64x8xbf16>
    %1 = vector.shape_cast %0 : vector<1x4x64x8xbf16> to vector<4x64x8xbf16>
    %c0_3 = arith.constant 0 : index
    %c0_4 = arith.constant 0 : index
    %c0_5 = arith.constant 0 : index
    %c0_6 = arith.constant 0 : index
    %2 = vector.load %arg2[%c0_3, %c0_4, %c0_5, %c0_6] : memref<1x4x64x8xbf16, #tpu.memory_space<vmem>>, vector<1x4x64x8xbf16>
    %3 = vector.shape_cast %2 : vector<1x4x64x8xbf16> to vector<4x64x8xbf16>
    %c0_7 = arith.constant 0 : index
    %c0_8 = arith.constant 0 : index
    %c0_9 = arith.constant 0 : index
    %c0_10 = arith.constant 0 : index
    %4 = vector.load %arg3[%c0_7, %c0_8, %c0_9, %c0_10] : memref<1x4x64x8xbf16, #tpu.memory_space<vmem>>, vector<1x4x64x8xbf16>
    %5 = vector.shape_cast %4 : vector<1x4x64x8xbf16> to vector<4x64x8xbf16>
    "tpu.trace_start"() <{level = 10 : i32, message = "hqd,hkd->hqk"}> : () -> ()
    %cst = arith.constant dense<0.000000e+00> : vector<4x64x64xf32>
    %6 = tpu.matmul %1, %3, %cst {dimension_numbers = #tpu.dot_dimension_numbers<[2], [2], [1], [1], [0, 0, 0, 1, 1, 1], [0], [0]>} : vector<4x64x8xbf16>, vector<4x64x8xbf16>, vector<4x64x64xf32> -> vector<4x64x64xf32>
    "tpu.trace_stop"() : () -> ()
    %cst_11 = arith.constant dense<0xFF800000> : vector<4x64xf32>
    %7 = vector.multi_reduction <maximumf>, %6, %cst_11 [2] : vector<4x64x64xf32> to vector<4x64xf32>
    %8 = vector.shape_cast %7 : vector<4x64xf32> to vector<4x64x1xf32>
    %9 = vector.broadcast %8 : vector<4x64x1xf32> to vector<4x64x64xf32>
    %10 = arith.subf %6, %9 : vector<4x64x64xf32>
    %11 = math.exp %10 : vector<4x64x64xf32>
    %cst_12 = arith.constant dense<0.000000e+00> : vector<4x64xf32>
    %12 = vector.multi_reduction <add>, %11, %cst_12 [2] : vector<4x64x64xf32> to vector<4x64xf32>
    %13 = vector.shape_cast %12 : vector<4x64xf32> to vector<4x64x1xf32>
    %14 = tpu.reciprocal %13 {approx = true} : vector<4x64x1xf32> -> vector<4x64x1xf32>
    %15 = vector.broadcast %14 : vector<4x64x1xf32> to vector<4x64x64xf32>
    %16 = arith.mulf %11, %15 : vector<4x64x64xf32>
    %17 = arith.truncf %16 : vector<4x64x64xf32> to vector<4x64x64xbf16>
    "tpu.trace_start"() <{level = 10 : i32, message = "hqk,hkd->hqd"}> : () -> ()
    %cst_13 = arith.constant dense<0.000000e+00> : vector<4x64x8xf32>
    %18 = tpu.matmul %17, %5, %cst_13 {dimension_numbers = #tpu.dot_dimension_numbers<[2], [1], [1], [2], [0, 0, 0, 1, 1, 2], [0], [0]>} : vector<4x64x64xbf16>, vector<4x64x8xbf16>, vector<4x64x8xf32> -> vector<4x64x8xf32>
    "tpu.trace_stop"() : () -> ()
    %19 = arith.truncf %18 : vector<4x64x8xf32> to vector<4x64x8xbf16>
    %c0_14 = arith.constant 0 : index
    %c0_15 = arith.constant 0 : index
    %c0_16 = arith.constant 0 : index
    %c0_17 = arith.constant 0 : index
    %20 = vector.load %arg4[%c0_14, %c0_15, %c0_16, %c0_17] : memref<1x4x64x8xbf16, #tpu.memory_space<vmem>>, vector<1x4x64x8xbf16>
    %21 = vector.shape_cast %20 : vector<1x4x64x8xbf16> to vector<4x64x8xbf16>
    %22 = vector.shape_cast %19 : vector<4x64x8xbf16> to vector<1x4x64x8xbf16>
    tpu.vector_store %arg4[%c0_14, %c0_15, %c0_16, %c0_17], %22 {strides = array<i32>} : memref<1x4x64x8xbf16, #tpu.memory_space<vmem>>, vector<1x4x64x8xbf16>,
    return
  }
  func.func @transform_0(%arg0: i32) -> (i32, i32, i32, i32) {
    %c0_i32 = arith.constant 0 : i32
    %c0_i32_0 = arith.constant 0 : i32
    %c0_i32_1 = arith.constant 0 : i32
    %c0_i32_2 = arith.constant 0 : i32
    return %arg0, %c0_i32, %c0_i32_0, %c0_i32_1 : i32, i32, i32, i32
  }
  func.func @transform_1(%arg0: i32) -> (i32, i32, i32, i32) {
    %c0_i32 = arith.constant 0 : i32
    %c0_i32_0 = arith.constant 0 : i32
    %c0_i32_1 = arith.constant 0 : i32
    %c0_i32_2 = arith.constant 0 : i32
    return %arg0, %c0_i32, %c0_i32_0, %c0_i32_1 : i32, i32, i32, i32
  }
  func.func @transform_2(%arg0: i32) -> (i32, i32, i32, i32) {
    %c0_i32 = arith.constant 0 : i32
    %c0_i32_0 = arith.constant 0 : i32
    %c0_i32_1 = arith.constant 0 : i32
    %c0_i32_2 = arith.constant 0 : i32
    return %arg0, %c0_i32, %c0_i32_0, %c0_i32_1 : i32, i32, i32, i32
  }
  func.func @transform_3(%arg0: i32) -> (i32, i32, i32, i32) {
    %c0_i32 = arith.constant 0 : i32
    %c0_i32_0 = arith.constant 0 : i32
    %c0_i32_1 = arith.constant 0 : i32
    %c0_i32_2 = arith.constant 0 : i32
    return %arg0, %c0_i32, %c0_i32_0, %c0_i32_1 : i32, i32, i32, i32
  }
}

module attributes {stable_mosaic.version = 11 : i64} {
  func.func @_ln_matmul_kernel(%arg0: i32, %arg1: memref<128x32xf32, #tpu.memory_space<vmem>>, %arg2: memref<1x32xf32, #tpu.memory_space<vmem>>, %arg3: memref<1x32xf32, #tpu.memory_space<vmem>>, %arg4: memref<32x64xbf16, #tpu.memory_space<vmem>>, %arg5: memref<1x64xf32, #tpu.memory_space<vmem>>, %arg6: memref<128x64xf32, #tpu.memory_space<vmem>>) attributes {dimension_semantics = [#tpu.dimension_semantics<parallel>], iteration_bounds = array<i64: 1>, scalar_prefetch = 0 : i64, scratch_operands = 0 : i64, tpu.core_type = #tpu.core_type<tc>, window_params = [{transform_indices = @transform_0, window_bounds = array<i64: 128, 32>}, {pipeline_mode = #tpu.pipeline_mode<synchronous>, transform_indices = @transform_1, window_bounds = array<i64: 1, 32>}, {pipeline_mode = #tpu.pipeline_mode<synchronous>, transform_indices = @transform_2, window_bounds = array<i64: 1, 32>}, {pipeline_mode = #tpu.pipeline_mode<synchronous>, transform_indices = @transform_3, window_bounds = array<i64: 32, 64>}, {pipeline_mode = #tpu.pipeline_mode<synchronous>, transform_indices = @transform_4, window_bounds = array<i64: 1, 64>}, {transform_indices = @transform_5, window_bounds = array<i64: 128, 64>}]} {
    %c0 = arith.constant 0 : index
    %c0_0 = arith.constant 0 : index
    %0 = vector.load %arg1[%c0, %c0_0] : memref<128x32xf32, #tpu.memory_space<vmem>>, vector<128x32xf32>
    %cst = arith.constant dense<0.000000e+00> : vector<128xf32>
    %1 = vector.multi_reduction <add>, %0, %cst [1] : vector<128x32xf32> to vector<128xf32>
    %2 = vector.shape_cast %1 : vector<128xf32> to vector<128x1xf32>
    %cst_1 = arith.constant 3.200000e+01 : f32
    %3 = vector.broadcast %cst_1 : f32 to vector<128x1xf32>
    %4 = arith.divf %2, %3 : vector<128x1xf32>
    %5 = vector.broadcast %4 : vector<128x1xf32> to vector<128x32xf32>
    %6 = arith.subf %0, %5 : vector<128x32xf32>
    %7 = arith.mulf %6, %6 : vector<128x32xf32>
    %cst_2 = arith.constant dense<0.000000e+00> : vector<128xf32>
    %8 = vector.multi_reduction <add>, %7, %cst_2 [1] : vector<128x32xf32> to vector<128xf32>
    %9 = vector.shape_cast %8 : vector<128xf32> to vector<128x1xf32>
    %cst_3 = arith.constant 3.200000e+01 : f32
    %10 = vector.broadcast %cst_3 : f32 to vector<128x1xf32>
    %11 = arith.divf %9, %10 : vector<128x1xf32>
    %cst_4 = arith.constant 9.99999997E-7 : f32
    %12 = vector.broadcast %cst_4 : f32 to vector<128x1xf32>
    %13 = arith.addf %11, %12 : vector<128x1xf32>
    %14 = math.rsqrt %13 : vector<128x1xf32>
    %15 = vector.broadcast %14 : vector<128x1xf32> to vector<128x32xf32>
    %16 = arith.mulf %6, %15 : vector<128x32xf32>
    %c0_5 = arith.constant 0 : index
    %c0_6 = arith.constant 0 : index
    %17 = vector.load %arg2[%c0_5, %c0_6] : memref<1x32xf32, #tpu.memory_space<vmem>>, vector<1x32xf32>
    %18 = vector.broadcast %17 : vector<1x32xf32> to vector<128x32xf32>
    %19 = arith.mulf %16, %18 : vector<128x32xf32>
    %c0_7 = arith.constant 0 : index
    %c0_8 = arith.constant 0 : index
    %20 = vector.load %arg3[%c0_7, %c0_8] : memref<1x32xf32, #tpu.memory_space<vmem>>, vector<1x32xf32>
    %21 = vector.broadcast %20 : vector<1x32xf32> to vector<128x32xf32>
    %22 = arith.addf %19, %21 : vector<128x32xf32>
    %23 = arith.truncf %22 : vector<128x32xf32> to vector<128x32xbf16>
    %c0_9 = arith.constant 0 : index
    %c0_10 = arith.constant 0 : index
    %24 = vector.load %arg4[%c0_9, %c0_10] : memref<32x64xbf16, #tpu.memory_space<vmem>>, vector<32x64xbf16>
    %cst_11 = arith.constant dense<0.000000e+00> : vector<128x64xf32>
    %25 = tpu.matmul %23, %24, %cst_11 {dimension_numbers = #tpu.dot_dimension_numbers<[1], [0], [0], [1], [0, 0, 1, 1], [], []>} : vector<128x32xbf16>, vector<32x64xbf16>, vector<128x64xf32> -> vector<128x64xf32>
    %c0_12 = arith.constant 0 : index
    %c0_13 = arith.constant 0 : index
    %26 = vector.load %arg5[%c0_12, %c0_13] : memref<1x64xf32, #tpu.memory_space<vmem>>, vector<1x64xf32>
    %27 = vector.broadcast %26 : vector<1x64xf32> to vector<128x64xf32>
    %28 = arith.addf %25, %27 : vector<128x64xf32>
    %cst_14 = arith.constant 0.000000e+00 : f32
    %29 = vector.broadcast %cst_14 : f32 to vector<128x64xf32>
    %30 = arith.cmpf ogt, %28, %29 : vector<128x64xf32>
    %cst_15 = arith.constant 0.000000e+00 : f32
    %31 = vector.broadcast %cst_15 : f32 to vector<128x64xf32>
    %32 = arith.minimumf %28, %31 : vector<128x64xf32>
    %33 = math.exp %32 : vector<128x64xf32>
    %cst_16 = arith.constant 1.000000e+00 : f32
    %34 = vector.broadcast %cst_16 : f32 to vector<128x64xf32>
    %35 = arith.subf %33, %34 : vector<128x64xf32>
    %36 = arith.select %30, %28, %35 : vector<128x64xi1>, vector<128x64xf32>
    %c0_17 = arith.constant 0 : index
    %c0_18 = arith.constant 0 : index
    %37 = vector.load %arg6[%c0_17, %c0_18] : memref<128x64xf32, #tpu.memory_space<vmem>>, vector<128x64xf32>
    tpu.vector_store %arg6[%c0_17, %c0_18], %36 {strides = array<i32>} : memref<128x64xf32, #tpu.memory_space<vmem>>, vector<128x64xf32>,
    return
  }
  func.func @transform_0(%arg0: i32) -> (i32, i32) {
    %c0_i32 = arith.constant 0 : i32
    %c0_i32_0 = arith.constant 0 : i32
    return %arg0, %c0_i32 : i32, i32
  }
  func.func @transform_1(%arg0: i32) -> (i32, i32) {
    %c0_i32 = arith.constant 0 : i32
    %c0_i32_0 = arith.constant 0 : i32
    %c0_i32_1 = arith.constant 0 : i32
    return %c0_i32, %c0_i32_0 : i32, i32
  }
  func.func @transform_2(%arg0: i32) -> (i32, i32) {
    %c0_i32 = arith.constant 0 : i32
    %c0_i32_0 = arith.constant 0 : i32
    %c0_i32_1 = arith.constant 0 : i32
    return %c0_i32, %c0_i32_0 : i32, i32
  }
  func.func @transform_3(%arg0: i32) -> (i32, i32) {
    %c0_i32 = arith.constant 0 : i32
    %c0_i32_0 = arith.constant 0 : i32
    %c0_i32_1 = arith.constant 0 : i32
    return %c0_i32, %c0_i32_0 : i32, i32
  }
  func.func @transform_4(%arg0: i32) -> (i32, i32) {
    %c0_i32 = arith.constant 0 : i32
    %c0_i32_0 = arith.constant 0 : i32
    %c0_i32_1 = arith.constant 0 : i32
    return %c0_i32, %c0_i32_0 : i32, i32
  }
  func.func @transform_5(%arg0: i32) -> (i32, i32) {
    %c0_i32 = arith.constant 0 : i32
    %c0_i32_0 = arith.constant 0 : i32
    return %arg0, %c0_i32 : i32, i32
  }
}

module attributes {stable_mosaic.version = 11 : i64} {
  func.func @_matmul_res_kernel(%arg0: i32, %arg1: memref<128x32xbf16, #tpu.memory_space<vmem>>, %arg2: memref<32x32xbf16, #tpu.memory_space<vmem>>, %arg3: memref<1x32xf32, #tpu.memory_space<vmem>>, %arg4: memref<128x32xf32, #tpu.memory_space<vmem>>, %arg5: memref<128x32xf32, #tpu.memory_space<vmem>>) attributes {dimension_semantics = [#tpu.dimension_semantics<parallel>], iteration_bounds = array<i64: 1>, scalar_prefetch = 0 : i64, scratch_operands = 0 : i64, tpu.core_type = #tpu.core_type<tc>, window_params = [{transform_indices = @transform_0, window_bounds = array<i64: 128, 32>}, {pipeline_mode = #tpu.pipeline_mode<synchronous>, transform_indices = @transform_1, window_bounds = array<i64: 32, 32>}, {pipeline_mode = #tpu.pipeline_mode<synchronous>, transform_indices = @transform_2, window_bounds = array<i64: 1, 32>}, {transform_indices = @transform_3, window_bounds = array<i64: 128, 32>}, {transform_indices = @transform_4, window_bounds = array<i64: 128, 32>}]} {
    %c0 = arith.constant 0 : index
    %c0_0 = arith.constant 0 : index
    %0 = vector.load %arg1[%c0, %c0_0] : memref<128x32xbf16, #tpu.memory_space<vmem>>, vector<128x32xbf16>
    %c0_1 = arith.constant 0 : index
    %c0_2 = arith.constant 0 : index
    %1 = vector.load %arg2[%c0_1, %c0_2] : memref<32x32xbf16, #tpu.memory_space<vmem>>, vector<32x32xbf16>
    %cst = arith.constant dense<0.000000e+00> : vector<128x32xf32>
    %2 = tpu.matmul %0, %1, %cst {dimension_numbers = #tpu.dot_dimension_numbers<[1], [0], [0], [1], [0, 0, 1, 1], [], []>} : vector<128x32xbf16>, vector<32x32xbf16>, vector<128x32xf32> -> vector<128x32xf32>
    %c0_3 = arith.constant 0 : index
    %c0_4 = arith.constant 0 : index
    %3 = vector.load %arg3[%c0_3, %c0_4] : memref<1x32xf32, #tpu.memory_space<vmem>>, vector<1x32xf32>
    %4 = vector.broadcast %3 : vector<1x32xf32> to vector<128x32xf32>
    %5 = arith.addf %2, %4 : vector<128x32xf32>
    %c0_5 = arith.constant 0 : index
    %c0_6 = arith.constant 0 : index
    %6 = vector.load %arg4[%c0_5, %c0_6] : memref<128x32xf32, #tpu.memory_space<vmem>>, vector<128x32xf32>
    %7 = arith.addf %5, %6 : vector<128x32xf32>
    %c0_7 = arith.constant 0 : index
    %c0_8 = arith.constant 0 : index
    %8 = vector.load %arg5[%c0_7, %c0_8] : memref<128x32xf32, #tpu.memory_space<vmem>>, vector<128x32xf32>
    tpu.vector_store %arg5[%c0_7, %c0_8], %7 {strides = array<i32>} : memref<128x32xf32, #tpu.memory_space<vmem>>, vector<128x32xf32>,
    return
  }
  func.func @transform_0(%arg0: i32) -> (i32, i32) {
    %c0_i32 = arith.constant 0 : i32
    %c0_i32_0 = arith.constant 0 : i32
    return %arg0, %c0_i32 : i32, i32
  }
  func.func @transform_1(%arg0: i32) -> (i32, i32) {
    %c0_i32 = arith.constant 0 : i32
    %c0_i32_0 = arith.constant 0 : i32
    %c0_i32_1 = arith.constant 0 : i32
    return %c0_i32, %c0_i32_0 : i32, i32
  }
  func.func @transform_2(%arg0: i32) -> (i32, i32) {
    %c0_i32 = arith.constant 0 : i32
    %c0_i32_0 = arith.constant 0 : i32
    %c0_i32_1 = arith.constant 0 : i32
    return %c0_i32, %c0_i32_0 : i32, i32
  }
  func.func @transform_3(%arg0: i32) -> (i32, i32) {
    %c0_i32 = arith.constant 0 : i32
    %c0_i32_0 = arith.constant 0 : i32
    return %arg0, %c0_i32 : i32, i32
  }
  func.func @transform_4(%arg0: i32) -> (i32, i32) {
    %c0_i32 = arith.constant 0 : i32
    %c0_i32_0 = arith.constant 0 : i32
    return %arg0, %c0_i32 : i32, i32
  }
}

module attributes {stable_mosaic.version = 11 : i64} {
  func.func @_matmul_res_kernel(%arg0: i32, %arg1: memref<128x64xbf16, #tpu.memory_space<vmem>>, %arg2: memref<64x32xbf16, #tpu.memory_space<vmem>>, %arg3: memref<1x32xf32, #tpu.memory_space<vmem>>, %arg4: memref<128x32xf32, #tpu.memory_space<vmem>>, %arg5: memref<128x32xf32, #tpu.memory_space<vmem>>) attributes {dimension_semantics = [#tpu.dimension_semantics<parallel>], iteration_bounds = array<i64: 1>, scalar_prefetch = 0 : i64, scratch_operands = 0 : i64, tpu.core_type = #tpu.core_type<tc>, window_params = [{transform_indices = @transform_0, window_bounds = array<i64: 128, 64>}, {pipeline_mode = #tpu.pipeline_mode<synchronous>, transform_indices = @transform_1, window_bounds = array<i64: 64, 32>}, {pipeline_mode = #tpu.pipeline_mode<synchronous>, transform_indices = @transform_2, window_bounds = array<i64: 1, 32>}, {transform_indices = @transform_3, window_bounds = array<i64: 128, 32>}, {transform_indices = @transform_4, window_bounds = array<i64: 128, 32>}]} {
    %c0 = arith.constant 0 : index
    %c0_0 = arith.constant 0 : index
    %0 = vector.load %arg1[%c0, %c0_0] : memref<128x64xbf16, #tpu.memory_space<vmem>>, vector<128x64xbf16>
    %c0_1 = arith.constant 0 : index
    %c0_2 = arith.constant 0 : index
    %1 = vector.load %arg2[%c0_1, %c0_2] : memref<64x32xbf16, #tpu.memory_space<vmem>>, vector<64x32xbf16>
    %cst = arith.constant dense<0.000000e+00> : vector<128x32xf32>
    %2 = tpu.matmul %0, %1, %cst {dimension_numbers = #tpu.dot_dimension_numbers<[1], [0], [0], [1], [0, 0, 1, 1], [], []>} : vector<128x64xbf16>, vector<64x32xbf16>, vector<128x32xf32> -> vector<128x32xf32>
    %c0_3 = arith.constant 0 : index
    %c0_4 = arith.constant 0 : index
    %3 = vector.load %arg3[%c0_3, %c0_4] : memref<1x32xf32, #tpu.memory_space<vmem>>, vector<1x32xf32>
    %4 = vector.broadcast %3 : vector<1x32xf32> to vector<128x32xf32>
    %5 = arith.addf %2, %4 : vector<128x32xf32>
    %c0_5 = arith.constant 0 : index
    %c0_6 = arith.constant 0 : index
    %6 = vector.load %arg4[%c0_5, %c0_6] : memref<128x32xf32, #tpu.memory_space<vmem>>, vector<128x32xf32>
    %7 = arith.addf %5, %6 : vector<128x32xf32>
    %c0_7 = arith.constant 0 : index
    %c0_8 = arith.constant 0 : index
    %8 = vector.load %arg5[%c0_7, %c0_8] : memref<128x32xf32, #tpu.memory_space<vmem>>, vector<128x32xf32>
    tpu.vector_store %arg5[%c0_7, %c0_8], %7 {strides = array<i32>} : memref<128x32xf32, #tpu.memory_space<vmem>>, vector<128x32xf32>,
    return
  }
  func.func @transform_0(%arg0: i32) -> (i32, i32) {
    %c0_i32 = arith.constant 0 : i32
    %c0_i32_0 = arith.constant 0 : i32
    return %arg0, %c0_i32 : i32, i32
  }
  func.func @transform_1(%arg0: i32) -> (i32, i32) {
    %c0_i32 = arith.constant 0 : i32
    %c0_i32_0 = arith.constant 0 : i32
    %c0_i32_1 = arith.constant 0 : i32
    return %c0_i32, %c0_i32_0 : i32, i32
  }
  func.func @transform_2(%arg0: i32) -> (i32, i32) {
    %c0_i32 = arith.constant 0 : i32
    %c0_i32_0 = arith.constant 0 : i32
    %c0_i32_1 = arith.constant 0 : i32
    return %c0_i32, %c0_i32_0 : i32, i32
  }
  func.func @transform_3(%arg0: i32) -> (i32, i32) {
    %c0_i32 = arith.constant 0 : i32
    %c0_i32_0 = arith.constant 0 : i32
    return %arg0, %c0_i32 : i32, i32
  }
  func.func @transform_4(%arg0: i32) -> (i32, i32) {
    %c0_i32 = arith.constant 0 : i32
    %c0_i32_0 = arith.constant 0 : i32
    return %arg0, %c0_i32 : i32, i32
  }
}

module attributes {stable_mosaic.version = 11 : i64} {
  func.func @_attention_scores_kernel(%arg0: i32, %arg1: memref<1x4x64x8xbf16, #tpu.memory_space<vmem>>, %arg2: memref<1x4x64x8xbf16, #tpu.memory_space<vmem>>, %arg3: memref<1x4x64x8xbf16, #tpu.memory_space<vmem>>, %arg4: memref<1x4x64x8xbf16, #tpu.memory_space<vmem>>, %arg5: memref<1x4x64x64xf32, #tpu.memory_space<vmem>>) attributes {dimension_semantics = [#tpu.dimension_semantics<parallel>], iteration_bounds = array<i64: 2>, scalar_prefetch = 0 : i64, scratch_operands = 0 : i64, tpu.core_type = #tpu.core_type<tc>, window_params = [{transform_indices = @transform_0, window_bounds = array<i64: 1, 4, 64, 8>}, {transform_indices = @transform_1, window_bounds = array<i64: 1, 4, 64, 8>}, {transform_indices = @transform_2, window_bounds = array<i64: 1, 4, 64, 8>}, {transform_indices = @transform_3, window_bounds = array<i64: 1, 4, 64, 8>}, {transform_indices = @transform_4, window_bounds = array<i64: 1, 4, 64, 64>}]} {
    %c0 = arith.constant 0 : index
    %c0_0 = arith.constant 0 : index
    %c0_1 = arith.constant 0 : index
    %c0_2 = arith.constant 0 : index
    %0 = vector.load %arg1[%c0, %c0_0, %c0_1, %c0_2] : memref<1x4x64x8xbf16, #tpu.memory_space<vmem>>, vector<1x4x64x8xbf16>
    %1 = vector.shape_cast %0 : vector<1x4x64x8xbf16> to vector<4x64x8xbf16>
    %c0_3 = arith.constant 0 : index
    %c0_4 = arith.constant 0 : index
    %c0_5 = arith.constant 0 : index
    %c0_6 = arith.constant 0 : index
    %2 = vector.load %arg2[%c0_3, %c0_4, %c0_5, %c0_6] : memref<1x4x64x8xbf16, #tpu.memory_space<vmem>>, vector<1x4x64x8xbf16>
    %3 = vector.shape_cast %2 : vector<1x4x64x8xbf16> to vector<4x64x8xbf16>
    %c0_7 = arith.constant 0 : index
    %c0_8 = arith.constant 0 : index
    %c0_9 = arith.constant 0 : index
    %c0_10 = arith.constant 0 : index
    %4 = vector.load %arg3[%c0_7, %c0_8, %c0_9, %c0_10] : memref<1x4x64x8xbf16, #tpu.memory_space<vmem>>, vector<1x4x64x8xbf16>
    %5 = vector.shape_cast %4 : vector<1x4x64x8xbf16> to vector<4x64x8xbf16>
    "tpu.trace_start"() <{level = 10 : i32, message = "hqd,hkd->hqk"}> : () -> ()
    %cst = arith.constant dense<0.000000e+00> : vector<4x64x64xf32>
    %6 = tpu.matmul %1, %3, %cst {dimension_numbers = #tpu.dot_dimension_numbers<[2], [2], [1], [1], [0, 0, 0, 1, 1, 1], [0], [0]>} : vector<4x64x8xbf16>, vector<4x64x8xbf16>, vector<4x64x64xf32> -> vector<4x64x64xf32>
    "tpu.trace_stop"() : () -> ()
    %cst_11 = arith.constant dense<0xFF800000> : vector<4x64xf32>
    %7 = vector.multi_reduction <maximumf>, %6, %cst_11 [2] : vector<4x64x64xf32> to vector<4x64xf32>
    %8 = vector.shape_cast %7 : vector<4x64xf32> to vector<4x64x1xf32>
    %9 = vector.broadcast %8 : vector<4x64x1xf32> to vector<4x64x64xf32>
    %10 = arith.subf %6, %9 : vector<4x64x64xf32>
    %11 = math.exp %10 : vector<4x64x64xf32>
    %cst_12 = arith.constant dense<0.000000e+00> : vector<4x64xf32>
    %12 = vector.multi_reduction <add>, %11, %cst_12 [2] : vector<4x64x64xf32> to vector<4x64xf32>
    %13 = vector.shape_cast %12 : vector<4x64xf32> to vector<4x64x1xf32>
    %14 = tpu.reciprocal %13 {approx = true} : vector<4x64x1xf32> -> vector<4x64x1xf32>
    %15 = vector.broadcast %14 : vector<4x64x1xf32> to vector<4x64x64xf32>
    %16 = arith.mulf %11, %15 : vector<4x64x64xf32>
    %17 = arith.truncf %16 : vector<4x64x64xf32> to vector<4x64x64xbf16>
    "tpu.trace_start"() <{level = 10 : i32, message = "hqk,hkd->hqd"}> : () -> ()
    %cst_13 = arith.constant dense<0.000000e+00> : vector<4x64x8xf32>
    %18 = tpu.matmul %17, %5, %cst_13 {dimension_numbers = #tpu.dot_dimension_numbers<[2], [1], [1], [2], [0, 0, 0, 1, 1, 2], [0], [0]>} : vector<4x64x64xbf16>, vector<4x64x8xbf16>, vector<4x64x8xf32> -> vector<4x64x8xf32>
    "tpu.trace_stop"() : () -> ()
    %19 = arith.truncf %18 : vector<4x64x8xf32> to vector<4x64x8xbf16>
    %c0_14 = arith.constant 0 : index
    %c0_15 = arith.constant 0 : index
    %c0_16 = arith.constant 0 : index
    %c0_17 = arith.constant 0 : index
    %20 = vector.load %arg4[%c0_14, %c0_15, %c0_16, %c0_17] : memref<1x4x64x8xbf16, #tpu.memory_space<vmem>>, vector<1x4x64x8xbf16>
    %21 = vector.shape_cast %20 : vector<1x4x64x8xbf16> to vector<4x64x8xbf16>
    %22 = vector.shape_cast %19 : vector<4x64x8xbf16> to vector<1x4x64x8xbf16>
    tpu.vector_store %arg4[%c0_14, %c0_15, %c0_16, %c0_17], %22 {strides = array<i32>} : memref<1x4x64x8xbf16, #tpu.memory_space<vmem>>, vector<1x4x64x8xbf16>,
    %c0_18 = arith.constant 0 : index
    %c0_19 = arith.constant 0 : index
    %c0_20 = arith.constant 0 : index
    %c0_21 = arith.constant 0 : index
    %23 = vector.load %arg5[%c0_18, %c0_19, %c0_20, %c0_21] : memref<1x4x64x64xf32, #tpu.memory_space<vmem>>, vector<1x4x64x64xf32>
    %24 = vector.shape_cast %23 : vector<1x4x64x64xf32> to vector<4x64x64xf32>
    %25 = vector.shape_cast %16 : vector<4x64x64xf32> to vector<1x4x64x64xf32>
    tpu.vector_store %arg5[%c0_18, %c0_19, %c0_20, %c0_21], %25 {strides = array<i32>} : memref<1x4x64x64xf32, #tpu.memory_space<vmem>>, vector<1x4x64x64xf32>,
    return
  }
  func.func @transform_0(%arg0: i32) -> (i32, i32, i32, i32) {
    %c0_i32 = arith.constant 0 : i32
    %c0_i32_0 = arith.constant 0 : i32
    %c0_i32_1 = arith.constant 0 : i32
    %c0_i32_2 = arith.constant 0 : i32
    return %arg0, %c0_i32, %c0_i32_0, %c0_i32_1 : i32, i32, i32, i32
  }
  func.func @transform_1(%arg0: i32) -> (i32, i32, i32, i32) {
    %c0_i32 = arith.constant 0 : i32
    %c0_i32_0 = arith.constant 0 : i32
    %c0_i32_1 = arith.constant 0 : i32
    %c0_i32_2 = arith.constant 0 : i32
    return %arg0, %c0_i32, %c0_i32_0, %c0_i32_1 : i32, i32, i32, i32
  }
  func.func @transform_2(%arg0: i32) -> (i32, i32, i32, i32) {
    %c0_i32 = arith.constant 0 : i32
    %c0_i32_0 = arith.constant 0 : i32
    %c0_i32_1 = arith.constant 0 : i32
    %c0_i32_2 = arith.constant 0 : i32
    return %arg0, %c0_i32, %c0_i32_0, %c0_i32_1 : i32, i32, i32, i32
  }
  func.func @transform_3(%arg0: i32) -> (i32, i32, i32, i32) {
    %c0_i32 = arith.constant 0 : i32
    %c0_i32_0 = arith.constant 0 : i32
    %c0_i32_1 = arith.constant 0 : i32
    %c0_i32_2 = arith.constant 0 : i32
    return %arg0, %c0_i32, %c0_i32_0, %c0_i32_1 : i32, i32, i32, i32
  }
  func.func @transform_4(%arg0: i32) -> (i32, i32, i32, i32) {
    %c0_i32 = arith.constant 0 : i32
    %c0_i32_0 = arith.constant 0 : i32
    %c0_i32_1 = arith.constant 0 : i32
    %c0_i32_2 = arith.constant 0 : i32
    return %arg0, %c0_i32, %c0_i32_0, %c0_i32_1 : i32, i32, i32, i32
  }
}

module attributes {stable_mosaic.version = 11 : i64} {
  func.func @_dwconv3d_bn_elu_kernel(%arg0: i32, %arg1: memref<1x6x6x6x64xf32, #tpu.memory_space<vmem>>, %arg2: memref<27x64xf32, #tpu.memory_space<vmem>>, %arg3: memref<1x64xf32, #tpu.memory_space<vmem>>, %arg4: memref<1x64xf32, #tpu.memory_space<vmem>>, %arg5: memref<1x4x4x4x64xbf16, #tpu.memory_space<vmem>>) attributes {dimension_semantics = [#tpu.dimension_semantics<parallel>], iteration_bounds = array<i64: 2>, scalar_prefetch = 0 : i64, scratch_operands = 0 : i64, tpu.core_type = #tpu.core_type<tc>, window_params = [{transform_indices = @transform_0, window_bounds = array<i64: 1, 6, 6, 6, 64>}, {pipeline_mode = #tpu.pipeline_mode<synchronous>, transform_indices = @transform_1, window_bounds = array<i64: 27, 64>}, {pipeline_mode = #tpu.pipeline_mode<synchronous>, transform_indices = @transform_2, window_bounds = array<i64: 1, 64>}, {pipeline_mode = #tpu.pipeline_mode<synchronous>, transform_indices = @transform_3, window_bounds = array<i64: 1, 64>}, {transform_indices = @transform_4, window_bounds = array<i64: 1, 4, 4, 4, 64>}]} {
    %c0 = arith.constant 0 : index
    %c0_0 = arith.constant 0 : index
    %0 = vector.load %arg2[%c0, %c0_0] : memref<27x64xf32, #tpu.memory_space<vmem>>, vector<27x64xf32>
    %c0_1 = arith.constant 0 : index
    %c0_2 = arith.constant 0 : index
    %c0_3 = arith.constant 0 : index
    %c0_4 = arith.constant 0 : index
    %c0_5 = arith.constant 0 : index
    %1 = vector.load %arg1[%c0_1, %c0_2, %c0_3, %c0_4, %c0_5] : memref<1x6x6x6x64xf32, #tpu.memory_space<vmem>>, vector<1x4x4x4x64xf32>
    %2 = vector.shape_cast %1 : vector<1x4x4x4x64xf32> to vector<4x4x4x64xf32>
    %3 = vector.extract_strided_slice %0 {offsets = [0, 0], sizes = [1, 64], strides = [1, 1]} : vector<27x64xf32> to vector<1x64xf32>
    %4 = vector.shape_cast %3 : vector<1x64xf32> to vector<1x1x1x64xf32>
    %5 = vector.broadcast %4 : vector<1x1x1x64xf32> to vector<4x4x4x64xf32>
    %6 = arith.mulf %2, %5 : vector<4x4x4x64xf32>
    %c0_6 = arith.constant 0 : index
    %c0_7 = arith.constant 0 : index
    %c0_8 = arith.constant 0 : index
    %c1 = arith.constant 1 : index
    %c0_9 = arith.constant 0 : index
    %7 = vector.load %arg1[%c0_6, %c0_7, %c0_8, %c1, %c0_9] : memref<1x6x6x6x64xf32, #tpu.memory_space<vmem>>, vector<1x4x4x4x64xf32>
    %8 = vector.shape_cast %7 : vector<1x4x4x4x64xf32> to vector<4x4x4x64xf32>
    %9 = vector.extract_strided_slice %0 {offsets = [1, 0], sizes = [1, 64], strides = [1, 1]} : vector<27x64xf32> to vector<1x64xf32>
    %10 = vector.shape_cast %9 : vector<1x64xf32> to vector<1x1x1x64xf32>
    %11 = vector.broadcast %10 : vector<1x1x1x64xf32> to vector<4x4x4x64xf32>
    %12 = arith.mulf %8, %11 : vector<4x4x4x64xf32>
    %13 = arith.addf %6, %12 : vector<4x4x4x64xf32>
    %c0_10 = arith.constant 0 : index
    %c0_11 = arith.constant 0 : index
    %c0_12 = arith.constant 0 : index
    %c2 = arith.constant 2 : index
    %c0_13 = arith.constant 0 : index
    %14 = vector.load %arg1[%c0_10, %c0_11, %c0_12, %c2, %c0_13] : memref<1x6x6x6x64xf32, #tpu.memory_space<vmem>>, vector<1x4x4x4x64xf32>
    %15 = vector.shape_cast %14 : vector<1x4x4x4x64xf32> to vector<4x4x4x64xf32>
    %16 = vector.extract_strided_slice %0 {offsets = [2, 0], sizes = [1, 64], strides = [1, 1]} : vector<27x64xf32> to vector<1x64xf32>
    %17 = vector.shape_cast %16 : vector<1x64xf32> to vector<1x1x1x64xf32>
    %18 = vector.broadcast %17 : vector<1x1x1x64xf32> to vector<4x4x4x64xf32>
    %19 = arith.mulf %15, %18 : vector<4x4x4x64xf32>
    %20 = arith.addf %13, %19 : vector<4x4x4x64xf32>
    %c0_14 = arith.constant 0 : index
    %c0_15 = arith.constant 0 : index
    %c1_16 = arith.constant 1 : index
    %c0_17 = arith.constant 0 : index
    %c0_18 = arith.constant 0 : index
    %21 = vector.load %arg1[%c0_14, %c0_15, %c1_16, %c0_17, %c0_18] : memref<1x6x6x6x64xf32, #tpu.memory_space<vmem>>, vector<1x4x4x4x64xf32>
    %22 = vector.shape_cast %21 : vector<1x4x4x4x64xf32> to vector<4x4x4x64xf32>
    %23 = vector.extract_strided_slice %0 {offsets = [3, 0], sizes = [1, 64], strides = [1, 1]} : vector<27x64xf32> to vector<1x64xf32>
    %24 = vector.shape_cast %23 : vector<1x64xf32> to vector<1x1x1x64xf32>
    %25 = vector.broadcast %24 : vector<1x1x1x64xf32> to vector<4x4x4x64xf32>
    %26 = arith.mulf %22, %25 : vector<4x4x4x64xf32>
    %27 = arith.addf %20, %26 : vector<4x4x4x64xf32>
    %c0_19 = arith.constant 0 : index
    %c0_20 = arith.constant 0 : index
    %c1_21 = arith.constant 1 : index
    %c1_22 = arith.constant 1 : index
    %c0_23 = arith.constant 0 : index
    %28 = vector.load %arg1[%c0_19, %c0_20, %c1_21, %c1_22, %c0_23] : memref<1x6x6x6x64xf32, #tpu.memory_space<vmem>>, vector<1x4x4x4x64xf32>
    %29 = vector.shape_cast %28 : vector<1x4x4x4x64xf32> to vector<4x4x4x64xf32>
    %30 = vector.extract_strided_slice %0 {offsets = [4, 0], sizes = [1, 64], strides = [1, 1]} : vector<27x64xf32> to vector<1x64xf32>
    %31 = vector.shape_cast %30 : vector<1x64xf32> to vector<1x1x1x64xf32>
    %32 = vector.broadcast %31 : vector<1x1x1x64xf32> to vector<4x4x4x64xf32>
    %33 = arith.mulf %29, %32 : vector<4x4x4x64xf32>
    %34 = arith.addf %27, %33 : vector<4x4x4x64xf32>
    %c0_24 = arith.constant 0 : index
    %c0_25 = arith.constant 0 : index
    %c1_26 = arith.constant 1 : index
    %c2_27 = arith.constant 2 : index
    %c0_28 = arith.constant 0 : index
    %35 = vector.load %arg1[%c0_24, %c0_25, %c1_26, %c2_27, %c0_28] : memref<1x6x6x6x64xf32, #tpu.memory_space<vmem>>, vector<1x4x4x4x64xf32>
    %36 = vector.shape_cast %35 : vector<1x4x4x4x64xf32> to vector<4x4x4x64xf32>
    %37 = vector.extract_strided_slice %0 {offsets = [5, 0], sizes = [1, 64], strides = [1, 1]} : vector<27x64xf32> to vector<1x64xf32>
    %38 = vector.shape_cast %37 : vector<1x64xf32> to vector<1x1x1x64xf32>
    %39 = vector.broadcast %38 : vector<1x1x1x64xf32> to vector<4x4x4x64xf32>
    %40 = arith.mulf %36, %39 : vector<4x4x4x64xf32>
    %41 = arith.addf %34, %40 : vector<4x4x4x64xf32>
    %c0_29 = arith.constant 0 : index
    %c0_30 = arith.constant 0 : index
    %c2_31 = arith.constant 2 : index
    %c0_32 = arith.constant 0 : index
    %c0_33 = arith.constant 0 : index
    %42 = vector.load %arg1[%c0_29, %c0_30, %c2_31, %c0_32, %c0_33] : memref<1x6x6x6x64xf32, #tpu.memory_space<vmem>>, vector<1x4x4x4x64xf32>
    %43 = vector.shape_cast %42 : vector<1x4x4x4x64xf32> to vector<4x4x4x64xf32>
    %44 = vector.extract_strided_slice %0 {offsets = [6, 0], sizes = [1, 64], strides = [1, 1]} : vector<27x64xf32> to vector<1x64xf32>
    %45 = vector.shape_cast %44 : vector<1x64xf32> to vector<1x1x1x64xf32>
    %46 = vector.broadcast %45 : vector<1x1x1x64xf32> to vector<4x4x4x64xf32>
    %47 = arith.mulf %43, %46 : vector<4x4x4x64xf32>
    %48 = arith.addf %41, %47 : vector<4x4x4x64xf32>
    %c0_34 = arith.constant 0 : index
    %c0_35 = arith.constant 0 : index
    %c2_36 = arith.constant 2 : index
    %c1_37 = arith.constant 1 : index
    %c0_38 = arith.constant 0 : index
    %49 = vector.load %arg1[%c0_34, %c0_35, %c2_36, %c1_37, %c0_38] : memref<1x6x6x6x64xf32, #tpu.memory_space<vmem>>, vector<1x4x4x4x64xf32>
    %50 = vector.shape_cast %49 : vector<1x4x4x4x64xf32> to vector<4x4x4x64xf32>
    %51 = vector.extract_strided_slice %0 {offsets = [7, 0], sizes = [1, 64], strides = [1, 1]} : vector<27x64xf32> to vector<1x64xf32>
    %52 = vector.shape_cast %51 : vector<1x64xf32> to vector<1x1x1x64xf32>
    %53 = vector.broadcast %52 : vector<1x1x1x64xf32> to vector<4x4x4x64xf32>
    %54 = arith.mulf %50, %53 : vector<4x4x4x64xf32>
    %55 = arith.addf %48, %54 : vector<4x4x4x64xf32>
    %c0_39 = arith.constant 0 : index
    %c0_40 = arith.constant 0 : index
    %c2_41 = arith.constant 2 : index
    %c2_42 = arith.constant 2 : index
    %c0_43 = arith.constant 0 : index
    %56 = vector.load %arg1[%c0_39, %c0_40, %c2_41, %c2_42, %c0_43] : memref<1x6x6x6x64xf32, #tpu.memory_space<vmem>>, vector<1x4x4x4x64xf32>
    %57 = vector.shape_cast %56 : vector<1x4x4x4x64xf32> to vector<4x4x4x64xf32>
    %58 = vector.extract_strided_slice %0 {offsets = [8, 0], sizes = [1, 64], strides = [1, 1]} : vector<27x64xf32> to vector<1x64xf32>
    %59 = vector.shape_cast %58 : vector<1x64xf32> to vector<1x1x1x64xf32>
    %60 = vector.broadcast %59 : vector<1x1x1x64xf32> to vector<4x4x4x64xf32>
    %61 = arith.mulf %57, %60 : vector<4x4x4x64xf32>
    %62 = arith.addf %55, %61 : vector<4x4x4x64xf32>
    %c0_44 = arith.constant 0 : index
    %c1_45 = arith.constant 1 : index
    %c0_46 = arith.constant 0 : index
    %c0_47 = arith.constant 0 : index
    %c0_48 = arith.constant 0 : index
    %63 = vector.load %arg1[%c0_44, %c1_45, %c0_46, %c0_47, %c0_48] : memref<1x6x6x6x64xf32, #tpu.memory_space<vmem>>, vector<1x4x4x4x64xf32>
    %64 = vector.shape_cast %63 : vector<1x4x4x4x64xf32> to vector<4x4x4x64xf32>
    %65 = vector.extract_strided_slice %0 {offsets = [9, 0], sizes = [1, 64], strides = [1, 1]} : vector<27x64xf32> to vector<1x64xf32>
    %66 = vector.shape_cast %65 : vector<1x64xf32> to vector<1x1x1x64xf32>
    %67 = vector.broadcast %66 : vector<1x1x1x64xf32> to vector<4x4x4x64xf32>
    %68 = arith.mulf %64, %67 : vector<4x4x4x64xf32>
    %69 = arith.addf %62, %68 : vector<4x4x4x64xf32>
    %c0_49 = arith.constant 0 : index
    %c1_50 = arith.constant 1 : index
    %c0_51 = arith.constant 0 : index
    %c1_52 = arith.constant 1 : index
    %c0_53 = arith.constant 0 : index
    %70 = vector.load %arg1[%c0_49, %c1_50, %c0_51, %c1_52, %c0_53] : memref<1x6x6x6x64xf32, #tpu.memory_space<vmem>>, vector<1x4x4x4x64xf32>
    %71 = vector.shape_cast %70 : vector<1x4x4x4x64xf32> to vector<4x4x4x64xf32>
    %72 = vector.extract_strided_slice %0 {offsets = [10, 0], sizes = [1, 64], strides = [1, 1]} : vector<27x64xf32> to vector<1x64xf32>
    %73 = vector.shape_cast %72 : vector<1x64xf32> to vector<1x1x1x64xf32>
    %74 = vector.broadcast %73 : vector<1x1x1x64xf32> to vector<4x4x4x64xf32>
    %75 = arith.mulf %71, %74 : vector<4x4x4x64xf32>
    %76 = arith.addf %69, %75 : vector<4x4x4x64xf32>
    %c0_54 = arith.constant 0 : index
    %c1_55 = arith.constant 1 : index
    %c0_56 = arith.constant 0 : index
    %c2_57 = arith.constant 2 : index
    %c0_58 = arith.constant 0 : index
    %77 = vector.load %arg1[%c0_54, %c1_55, %c0_56, %c2_57, %c0_58] : memref<1x6x6x6x64xf32, #tpu.memory_space<vmem>>, vector<1x4x4x4x64xf32>
    %78 = vector.shape_cast %77 : vector<1x4x4x4x64xf32> to vector<4x4x4x64xf32>
    %79 = vector.extract_strided_slice %0 {offsets = [11, 0], sizes = [1, 64], strides = [1, 1]} : vector<27x64xf32> to vector<1x64xf32>
    %80 = vector.shape_cast %79 : vector<1x64xf32> to vector<1x1x1x64xf32>
    %81 = vector.broadcast %80 : vector<1x1x1x64xf32> to vector<4x4x4x64xf32>
    %82 = arith.mulf %78, %81 : vector<4x4x4x64xf32>
    %83 = arith.addf %76, %82 : vector<4x4x4x64xf32>
    %c0_59 = arith.constant 0 : index
    %c1_60 = arith.constant 1 : index
    %c1_61 = arith.constant 1 : index
    %c0_62 = arith.constant 0 : index
    %c0_63 = arith.constant 0 : index
    %84 = vector.load %arg1[%c0_59, %c1_60, %c1_61, %c0_62, %c0_63] : memref<1x6x6x6x64xf32, #tpu.memory_space<vmem>>, vector<1x4x4x4x64xf32>
    %85 = vector.shape_cast %84 : vector<1x4x4x4x64xf32> to vector<4x4x4x64xf32>
    %86 = vector.extract_strided_slice %0 {offsets = [12, 0], sizes = [1, 64], strides = [1, 1]} : vector<27x64xf32> to vector<1x64xf32>
    %87 = vector.shape_cast %86 : vector<1x64xf32> to vector<1x1x1x64xf32>
    %88 = vector.broadcast %87 : vector<1x1x1x64xf32> to vector<4x4x4x64xf32>
    %89 = arith.mulf %85, %88 : vector<4x4x4x64xf32>
    %90 = arith.addf %83, %89 : vector<4x4x4x64xf32>
    %c0_64 = arith.constant 0 : index
    %c1_65 = arith.constant 1 : index
    %c1_66 = arith.constant 1 : index
    %c1_67 = arith.constant 1 : index
    %c0_68 = arith.constant 0 : index
    %91 = vector.load %arg1[%c0_64, %c1_65, %c1_66, %c1_67, %c0_68] : memref<1x6x6x6x64xf32, #tpu.memory_space<vmem>>, vector<1x4x4x4x64xf32>
    %92 = vector.shape_cast %91 : vector<1x4x4x4x64xf32> to vector<4x4x4x64xf32>
    %93 = vector.extract_strided_slice %0 {offsets = [13, 0], sizes = [1, 64], strides = [1, 1]} : vector<27x64xf32> to vector<1x64xf32>
    %94 = vector.shape_cast %93 : vector<1x64xf32> to vector<1x1x1x64xf32>
    %95 = vector.broadcast %94 : vector<1x1x1x64xf32> to vector<4x4x4x64xf32>
    %96 = arith.mulf %92, %95 : vector<4x4x4x64xf32>
    %97 = arith.addf %90, %96 : vector<4x4x4x64xf32>
    %c0_69 = arith.constant 0 : index
    %c1_70 = arith.constant 1 : index
    %c1_71 = arith.constant 1 : index
    %c2_72 = arith.constant 2 : index
    %c0_73 = arith.constant 0 : index
    %98 = vector.load %arg1[%c0_69, %c1_70, %c1_71, %c2_72, %c0_73] : memref<1x6x6x6x64xf32, #tpu.memory_space<vmem>>, vector<1x4x4x4x64xf32>
    %99 = vector.shape_cast %98 : vector<1x4x4x4x64xf32> to vector<4x4x4x64xf32>
    %100 = vector.extract_strided_slice %0 {offsets = [14, 0], sizes = [1, 64], strides = [1, 1]} : vector<27x64xf32> to vector<1x64xf32>
    %101 = vector.shape_cast %100 : vector<1x64xf32> to vector<1x1x1x64xf32>
    %102 = vector.broadcast %101 : vector<1x1x1x64xf32> to vector<4x4x4x64xf32>
    %103 = arith.mulf %99, %102 : vector<4x4x4x64xf32>
    %104 = arith.addf %97, %103 : vector<4x4x4x64xf32>
    %c0_74 = arith.constant 0 : index
    %c1_75 = arith.constant 1 : index
    %c2_76 = arith.constant 2 : index
    %c0_77 = arith.constant 0 : index
    %c0_78 = arith.constant 0 : index
    %105 = vector.load %arg1[%c0_74, %c1_75, %c2_76, %c0_77, %c0_78] : memref<1x6x6x6x64xf32, #tpu.memory_space<vmem>>, vector<1x4x4x4x64xf32>
    %106 = vector.shape_cast %105 : vector<1x4x4x4x64xf32> to vector<4x4x4x64xf32>
    %107 = vector.extract_strided_slice %0 {offsets = [15, 0], sizes = [1, 64], strides = [1, 1]} : vector<27x64xf32> to vector<1x64xf32>
    %108 = vector.shape_cast %107 : vector<1x64xf32> to vector<1x1x1x64xf32>
    %109 = vector.broadcast %108 : vector<1x1x1x64xf32> to vector<4x4x4x64xf32>
    %110 = arith.mulf %106, %109 : vector<4x4x4x64xf32>
    %111 = arith.addf %104, %110 : vector<4x4x4x64xf32>
    %c0_79 = arith.constant 0 : index
    %c1_80 = arith.constant 1 : index
    %c2_81 = arith.constant 2 : index
    %c1_82 = arith.constant 1 : index
    %c0_83 = arith.constant 0 : index
    %112 = vector.load %arg1[%c0_79, %c1_80, %c2_81, %c1_82, %c0_83] : memref<1x6x6x6x64xf32, #tpu.memory_space<vmem>>, vector<1x4x4x4x64xf32>
    %113 = vector.shape_cast %112 : vector<1x4x4x4x64xf32> to vector<4x4x4x64xf32>
    %114 = vector.extract_strided_slice %0 {offsets = [16, 0], sizes = [1, 64], strides = [1, 1]} : vector<27x64xf32> to vector<1x64xf32>
    %115 = vector.shape_cast %114 : vector<1x64xf32> to vector<1x1x1x64xf32>
    %116 = vector.broadcast %115 : vector<1x1x1x64xf32> to vector<4x4x4x64xf32>
    %117 = arith.mulf %113, %116 : vector<4x4x4x64xf32>
    %118 = arith.addf %111, %117 : vector<4x4x4x64xf32>
    %c0_84 = arith.constant 0 : index
    %c1_85 = arith.constant 1 : index
    %c2_86 = arith.constant 2 : index
    %c2_87 = arith.constant 2 : index
    %c0_88 = arith.constant 0 : index
    %119 = vector.load %arg1[%c0_84, %c1_85, %c2_86, %c2_87, %c0_88] : memref<1x6x6x6x64xf32, #tpu.memory_space<vmem>>, vector<1x4x4x4x64xf32>
    %120 = vector.shape_cast %119 : vector<1x4x4x4x64xf32> to vector<4x4x4x64xf32>
    %121 = vector.extract_strided_slice %0 {offsets = [17, 0], sizes = [1, 64], strides = [1, 1]} : vector<27x64xf32> to vector<1x64xf32>
    %122 = vector.shape_cast %121 : vector<1x64xf32> to vector<1x1x1x64xf32>
    %123 = vector.broadcast %122 : vector<1x1x1x64xf32> to vector<4x4x4x64xf32>
    %124 = arith.mulf %120, %123 : vector<4x4x4x64xf32>
    %125 = arith.addf %118, %124 : vector<4x4x4x64xf32>
    %c0_89 = arith.constant 0 : index
    %c2_90 = arith.constant 2 : index
    %c0_91 = arith.constant 0 : index
    %c0_92 = arith.constant 0 : index
    %c0_93 = arith.constant 0 : index
    %126 = vector.load %arg1[%c0_89, %c2_90, %c0_91, %c0_92, %c0_93] : memref<1x6x6x6x64xf32, #tpu.memory_space<vmem>>, vector<1x4x4x4x64xf32>
    %127 = vector.shape_cast %126 : vector<1x4x4x4x64xf32> to vector<4x4x4x64xf32>
    %128 = vector.extract_strided_slice %0 {offsets = [18, 0], sizes = [1, 64], strides = [1, 1]} : vector<27x64xf32> to vector<1x64xf32>
    %129 = vector.shape_cast %128 : vector<1x64xf32> to vector<1x1x1x64xf32>
    %130 = vector.broadcast %129 : vector<1x1x1x64xf32> to vector<4x4x4x64xf32>
    %131 = arith.mulf %127, %130 : vector<4x4x4x64xf32>
    %132 = arith.addf %125, %131 : vector<4x4x4x64xf32>
    %c0_94 = arith.constant 0 : index
    %c2_95 = arith.constant 2 : index
    %c0_96 = arith.constant 0 : index
    %c1_97 = arith.constant 1 : index
    %c0_98 = arith.constant 0 : index
    %133 = vector.load %arg1[%c0_94, %c2_95, %c0_96, %c1_97, %c0_98] : memref<1x6x6x6x64xf32, #tpu.memory_space<vmem>>, vector<1x4x4x4x64xf32>
    %134 = vector.shape_cast %133 : vector<1x4x4x4x64xf32> to vector<4x4x4x64xf32>
    %135 = vector.extract_strided_slice %0 {offsets = [19, 0], sizes = [1, 64], strides = [1, 1]} : vector<27x64xf32> to vector<1x64xf32>
    %136 = vector.shape_cast %135 : vector<1x64xf32> to vector<1x1x1x64xf32>
    %137 = vector.broadcast %136 : vector<1x1x1x64xf32> to vector<4x4x4x64xf32>
    %138 = arith.mulf %134, %137 : vector<4x4x4x64xf32>
    %139 = arith.addf %132, %138 : vector<4x4x4x64xf32>
    %c0_99 = arith.constant 0 : index
    %c2_100 = arith.constant 2 : index
    %c0_101 = arith.constant 0 : index
    %c2_102 = arith.constant 2 : index
    %c0_103 = arith.constant 0 : index
    %140 = vector.load %arg1[%c0_99, %c2_100, %c0_101, %c2_102, %c0_103] : memref<1x6x6x6x64xf32, #tpu.memory_space<vmem>>, vector<1x4x4x4x64xf32>
    %141 = vector.shape_cast %140 : vector<1x4x4x4x64xf32> to vector<4x4x4x64xf32>
    %142 = vector.extract_strided_slice %0 {offsets = [20, 0], sizes = [1, 64], strides = [1, 1]} : vector<27x64xf32> to vector<1x64xf32>
    %143 = vector.shape_cast %142 : vector<1x64xf32> to vector<1x1x1x64xf32>
    %144 = vector.broadcast %143 : vector<1x1x1x64xf32> to vector<4x4x4x64xf32>
    %145 = arith.mulf %141, %144 : vector<4x4x4x64xf32>
    %146 = arith.addf %139, %145 : vector<4x4x4x64xf32>
    %c0_104 = arith.constant 0 : index
    %c2_105 = arith.constant 2 : index
    %c1_106 = arith.constant 1 : index
    %c0_107 = arith.constant 0 : index
    %c0_108 = arith.constant 0 : index
    %147 = vector.load %arg1[%c0_104, %c2_105, %c1_106, %c0_107, %c0_108] : memref<1x6x6x6x64xf32, #tpu.memory_space<vmem>>, vector<1x4x4x4x64xf32>
    %148 = vector.shape_cast %147 : vector<1x4x4x4x64xf32> to vector<4x4x4x64xf32>
    %149 = vector.extract_strided_slice %0 {offsets = [21, 0], sizes = [1, 64], strides = [1, 1]} : vector<27x64xf32> to vector<1x64xf32>
    %150 = vector.shape_cast %149 : vector<1x64xf32> to vector<1x1x1x64xf32>
    %151 = vector.broadcast %150 : vector<1x1x1x64xf32> to vector<4x4x4x64xf32>
    %152 = arith.mulf %148, %151 : vector<4x4x4x64xf32>
    %153 = arith.addf %146, %152 : vector<4x4x4x64xf32>
    %c0_109 = arith.constant 0 : index
    %c2_110 = arith.constant 2 : index
    %c1_111 = arith.constant 1 : index
    %c1_112 = arith.constant 1 : index
    %c0_113 = arith.constant 0 : index
    %154 = vector.load %arg1[%c0_109, %c2_110, %c1_111, %c1_112, %c0_113] : memref<1x6x6x6x64xf32, #tpu.memory_space<vmem>>, vector<1x4x4x4x64xf32>
    %155 = vector.shape_cast %154 : vector<1x4x4x4x64xf32> to vector<4x4x4x64xf32>
    %156 = vector.extract_strided_slice %0 {offsets = [22, 0], sizes = [1, 64], strides = [1, 1]} : vector<27x64xf32> to vector<1x64xf32>
    %157 = vector.shape_cast %156 : vector<1x64xf32> to vector<1x1x1x64xf32>
    %158 = vector.broadcast %157 : vector<1x1x1x64xf32> to vector<4x4x4x64xf32>
    %159 = arith.mulf %155, %158 : vector<4x4x4x64xf32>
    %160 = arith.addf %153, %159 : vector<4x4x4x64xf32>
    %c0_114 = arith.constant 0 : index
    %c2_115 = arith.constant 2 : index
    %c1_116 = arith.constant 1 : index
    %c2_117 = arith.constant 2 : index
    %c0_118 = arith.constant 0 : index
    %161 = vector.load %arg1[%c0_114, %c2_115, %c1_116, %c2_117, %c0_118] : memref<1x6x6x6x64xf32, #tpu.memory_space<vmem>>, vector<1x4x4x4x64xf32>
    %162 = vector.shape_cast %161 : vector<1x4x4x4x64xf32> to vector<4x4x4x64xf32>
    %163 = vector.extract_strided_slice %0 {offsets = [23, 0], sizes = [1, 64], strides = [1, 1]} : vector<27x64xf32> to vector<1x64xf32>
    %164 = vector.shape_cast %163 : vector<1x64xf32> to vector<1x1x1x64xf32>
    %165 = vector.broadcast %164 : vector<1x1x1x64xf32> to vector<4x4x4x64xf32>
    %166 = arith.mulf %162, %165 : vector<4x4x4x64xf32>
    %167 = arith.addf %160, %166 : vector<4x4x4x64xf32>
    %c0_119 = arith.constant 0 : index
    %c2_120 = arith.constant 2 : index
    %c2_121 = arith.constant 2 : index
    %c0_122 = arith.constant 0 : index
    %c0_123 = arith.constant 0 : index
    %168 = vector.load %arg1[%c0_119, %c2_120, %c2_121, %c0_122, %c0_123] : memref<1x6x6x6x64xf32, #tpu.memory_space<vmem>>, vector<1x4x4x4x64xf32>
    %169 = vector.shape_cast %168 : vector<1x4x4x4x64xf32> to vector<4x4x4x64xf32>
    %170 = vector.extract_strided_slice %0 {offsets = [24, 0], sizes = [1, 64], strides = [1, 1]} : vector<27x64xf32> to vector<1x64xf32>
    %171 = vector.shape_cast %170 : vector<1x64xf32> to vector<1x1x1x64xf32>
    %172 = vector.broadcast %171 : vector<1x1x1x64xf32> to vector<4x4x4x64xf32>
    %173 = arith.mulf %169, %172 : vector<4x4x4x64xf32>
    %174 = arith.addf %167, %173 : vector<4x4x4x64xf32>
    %c0_124 = arith.constant 0 : index
    %c2_125 = arith.constant 2 : index
    %c2_126 = arith.constant 2 : index
    %c1_127 = arith.constant 1 : index
    %c0_128 = arith.constant 0 : index
    %175 = vector.load %arg1[%c0_124, %c2_125, %c2_126, %c1_127, %c0_128] : memref<1x6x6x6x64xf32, #tpu.memory_space<vmem>>, vector<1x4x4x4x64xf32>
    %176 = vector.shape_cast %175 : vector<1x4x4x4x64xf32> to vector<4x4x4x64xf32>
    %177 = vector.extract_strided_slice %0 {offsets = [25, 0], sizes = [1, 64], strides = [1, 1]} : vector<27x64xf32> to vector<1x64xf32>
    %178 = vector.shape_cast %177 : vector<1x64xf32> to vector<1x1x1x64xf32>
    %179 = vector.broadcast %178 : vector<1x1x1x64xf32> to vector<4x4x4x64xf32>
    %180 = arith.mulf %176, %179 : vector<4x4x4x64xf32>
    %181 = arith.addf %174, %180 : vector<4x4x4x64xf32>
    %c0_129 = arith.constant 0 : index
    %c2_130 = arith.constant 2 : index
    %c2_131 = arith.constant 2 : index
    %c2_132 = arith.constant 2 : index
    %c0_133 = arith.constant 0 : index
    %182 = vector.load %arg1[%c0_129, %c2_130, %c2_131, %c2_132, %c0_133] : memref<1x6x6x6x64xf32, #tpu.memory_space<vmem>>, vector<1x4x4x4x64xf32>
    %183 = vector.shape_cast %182 : vector<1x4x4x4x64xf32> to vector<4x4x4x64xf32>
    %184 = vector.extract_strided_slice %0 {offsets = [26, 0], sizes = [1, 64], strides = [1, 1]} : vector<27x64xf32> to vector<1x64xf32>
    %185 = vector.shape_cast %184 : vector<1x64xf32> to vector<1x1x1x64xf32>
    %186 = vector.broadcast %185 : vector<1x1x1x64xf32> to vector<4x4x4x64xf32>
    %187 = arith.mulf %183, %186 : vector<4x4x4x64xf32>
    %188 = arith.addf %181, %187 : vector<4x4x4x64xf32>
    %c0_134 = arith.constant 0 : index
    %c0_135 = arith.constant 0 : index
    %189 = vector.load %arg3[%c0_134, %c0_135] : memref<1x64xf32, #tpu.memory_space<vmem>>, vector<1x64xf32>
    %190 = vector.shape_cast %189 : vector<1x64xf32> to vector<1x1x1x64xf32>
    %191 = vector.broadcast %190 : vector<1x1x1x64xf32> to vector<4x4x4x64xf32>
    %192 = arith.mulf %188, %191 : vector<4x4x4x64xf32>
    %c0_136 = arith.constant 0 : index
    %c0_137 = arith.constant 0 : index
    %193 = vector.load %arg4[%c0_136, %c0_137] : memref<1x64xf32, #tpu.memory_space<vmem>>, vector<1x64xf32>
    %194 = vector.shape_cast %193 : vector<1x64xf32> to vector<1x1x1x64xf32>
    %195 = vector.broadcast %194 : vector<1x1x1x64xf32> to vector<4x4x4x64xf32>
    %196 = arith.addf %192, %195 : vector<4x4x4x64xf32>
    %cst = arith.constant 0.000000e+00 : f32
    %197 = vector.broadcast %cst : f32 to vector<4x4x4x64xf32>
    %198 = arith.cmpf ogt, %196, %197 : vector<4x4x4x64xf32>
    %cst_138 = arith.constant 0.000000e+00 : f32
    %199 = vector.broadcast %cst_138 : f32 to vector<4x4x4x64xf32>
    %200 = arith.minimumf %196, %199 : vector<4x4x4x64xf32>
    %201 = math.exp %200 : vector<4x4x4x64xf32>
    %cst_139 = arith.constant 1.000000e+00 : f32
    %202 = vector.broadcast %cst_139 : f32 to vector<4x4x4x64xf32>
    %203 = arith.subf %201, %202 : vector<4x4x4x64xf32>
    %204 = arith.select %198, %196, %203 : vector<4x4x4x64xi1>, vector<4x4x4x64xf32>
    %205 = arith.truncf %204 : vector<4x4x4x64xf32> to vector<4x4x4x64xbf16>
    %c0_140 = arith.constant 0 : index
    %c0_141 = arith.constant 0 : index
    %c0_142 = arith.constant 0 : index
    %c0_143 = arith.constant 0 : index
    %c0_144 = arith.constant 0 : index
    %206 = vector.load %arg5[%c0_140, %c0_141, %c0_142, %c0_143, %c0_144] : memref<1x4x4x4x64xbf16, #tpu.memory_space<vmem>>, vector<1x4x4x4x64xbf16>
    %207 = vector.shape_cast %206 : vector<1x4x4x4x64xbf16> to vector<4x4x4x64xbf16>
    %208 = vector.shape_cast %205 : vector<4x4x4x64xbf16> to vector<1x4x4x4x64xbf16>
    tpu.vector_store %arg5[%c0_140, %c0_141, %c0_142, %c0_143, %c0_144], %208 {strides = array<i32>} : memref<1x4x4x4x64xbf16, #tpu.memory_space<vmem>>, vector<1x4x4x4x64xbf16>,
    return
  }
  func.func @transform_0(%arg0: i32) -> (i32, i32, i32, i32, i32) {
    %c0_i32 = arith.constant 0 : i32
    %c0_i32_0 = arith.constant 0 : i32
    %c0_i32_1 = arith.constant 0 : i32
    %c0_i32_2 = arith.constant 0 : i32
    %c0_i32_3 = arith.constant 0 : i32
    return %arg0, %c0_i32, %c0_i32_0, %c0_i32_1, %c0_i32_2 : i32, i32, i32, i32, i32
  }
  func.func @transform_1(%arg0: i32) -> (i32, i32) {
    %c0_i32 = arith.constant 0 : i32
    %c0_i32_0 = arith.constant 0 : i32
    %c0_i32_1 = arith.constant 0 : i32
    return %c0_i32, %c0_i32_0 : i32, i32
  }
  func.func @transform_2(%arg0: i32) -> (i32, i32) {
    %c0_i32 = arith.constant 0 : i32
    %c0_i32_0 = arith.constant 0 : i32
    %c0_i32_1 = arith.constant 0 : i32
    return %c0_i32, %c0_i32_0 : i32, i32
  }
  func.func @transform_3(%arg0: i32) -> (i32, i32) {
    %c0_i32 = arith.constant 0 : i32
    %c0_i32_0 = arith.constant 0 : i32
    %c0_i32_1 = arith.constant 0 : i32
    return %c0_i32, %c0_i32_0 : i32, i32
  }
  func.func @transform_4(%arg0: i32) -> (i32, i32, i32, i32, i32) {
    %c0_i32 = arith.constant 0 : i32
    %c0_i32_0 = arith.constant 0 : i32
    %c0_i32_1 = arith.constant 0 : i32
    %c0_i32_2 = arith.constant 0 : i32
    %c0_i32_3 = arith.constant 0 : i32
    return %arg0, %c0_i32, %c0_i32_0, %c0_i32_1, %c0_i32_2 : i32, i32, i32, i32, i32
  }
}

</mosaic_0001>

<bundles_post_ra>
// kernel: transformer_forward.14
= control target key start
LH: loop header
LB: loop body
LE: loop exit
PB: predicated region body
PF: predicated region fallthrough
CT: control target
= control target key end

     0   :  { %vm30_vm0 = vcmask 261120   ;;  %vm350_vm1 = vcmask 257024   ;;  %s763_s0 = inlined_call_operand.vmem [shape: f32[128,32], index: 0, kind: input, shape index: {}]   ;;  %s764_s1 = inlined_call_operand.vmem [shape: f32[1,32], index: 1, kind: input, shape index: {}]   ;;  %s765_s2 = inlined_call_operand.vmem [shape: f32[1,32], index: 2, kind: input, shape index: {}]   ;;  %s766_s3 = inlined_call_operand.vmem [shape: bf16[128,32], index: 3, kind: output, shape index: {}]  }
   0x1   :  { %v14_v0 = vld [vmem:[%s763_s0] sm:$0xff]  ;;  %v16_v1 = vld [vmem:[%s763_s0 + $0x10] sm:$0xff]  ;;  %v15_v2 = vld [vmem:[%s763_s0 + $0x8] sm:$0xff] }
   0x2   :  { %v31_v3 = vsel %vm30_vm0, %v14_v0, 0.0  ;;  %v37_v4 = vsel %vm30_vm0, %v16_v1, 0.0  ;;  %v17_v5 = vld [vmem:[%s763_s0 + $0x18] sm:$0xff]  ;;  %v34_v6 = vsel %vm30_vm0, %v15_v2, 0.0  ;;  %v18_v8 = vld [vmem:[%s763_s0 + $0x20] sm:$0xff]  ;;  %v19_v9 = vld [vmem:[%s763_s0 + $0x28] sm:$0xff] }
   0x3   :  { %32 = vadd.xlane.f32.xlu0 %v31_v3  ;;  %38 = vadd.xlane.f32.xlu1 %v37_v4  ;;  %v40_v7 = vsel %vm30_vm0, %v17_v5, 0.0  ;;  %v43_v10 = vsel %vm30_vm0, %v18_v8, 0.0  ;;  %v46_v11 = vsel %vm30_vm0, %v19_v9, 0.0  ;;  %v484_v12 = vld [vmem:[%s763_s0 + $0x30] sm:$0xff]  ;;  %v489_v13 = vld [vmem:[%s763_s0 + $0x38] sm:$0xff]  ;;  %v498_v16 = vld [vmem:[%s763_s0 + $0x40] sm:$0xff] }
   0x4   :  { %v49_v14 = vsel %vm30_vm0, %v484_v12, 0.0  ;;  %v52_v15 = vsel %vm30_vm0, %v489_v13, 0.0  ;;  %v503_v17 = vld [vmem:[%s763_s0 + $0x48] sm:$0xff]  ;;  %v55_v18 = vsel %vm30_vm0, %v498_v16, 0.0  ;;  %v512_v20 = vld [vmem:[%s763_s0 + $0x50] sm:$0xff]  ;;  %v517_v21 = vld [vmem:[%s763_s0 + $0x58] sm:$0xff] }
   0x5   :  { %v58_v19 = vsel %vm30_vm0, %v503_v17, 0.0  ;;  %v61_v22 = vsel %vm30_vm0, %v512_v20, 0.0  ;;  %v64_v23 = vsel %vm30_vm0, %v517_v21, 0.0  ;;  %v526_v24 = vld [vmem:[%s763_s0 + $0x60] sm:$0xff]  ;;  %v531_v25 = vld [vmem:[%s763_s0 + $0x68] sm:$0xff]  ;;  %v540_v28 = vld [vmem:[%s763_s0 + $0x70] sm:$0xff] }
   0x6   :  { %v67_v26 = vsel %vm30_vm0, %v526_v24, 0.0  ;;  %v70_v27 = vsel %vm30_vm0, %v531_v25, 0.0  ;;  %v545_v29 = vld [vmem:[%s763_s0 + $0x78] sm:$0xff]  ;;  %v73_v30 = vsel %vm30_vm0, %v540_v28, 0.0 }
   0x7   :  { %35 = vadd.xlane.f32.xlu0 %v34_v6  ;;  %41 = vadd.xlane.f32.xlu1 %v40_v7  ;;  %v76_v31 = vsel %vm30_vm0, %v545_v29, 0.0 }
   0xb   :  { %44 = vadd.xlane.f32.xlu0 %v43_v10  ;;  %47 = vadd.xlane.f32.xlu1 %v46_v11 }
   0xf   :  { %50 = vadd.xlane.f32.xlu0 %v49_v14  ;;  %53 = vadd.xlane.f32.xlu1 %v52_v15 }
  0x13   :  { %56 = vadd.xlane.f32.xlu0 %v55_v18  ;;  %59 = vadd.xlane.f32.xlu1 %v58_v19 }
  0x17   :  { %62 = vadd.xlane.f32.xlu0 %v61_v22  ;;  %65 = vadd.xlane.f32.xlu1 %v64_v23 }
  0x1b   :  { %68 = vadd.xlane.f32.xlu0 %v67_v26  ;;  %71 = vadd.xlane.f32.xlu1 %v70_v27 }
  0x1f   :  { %74 = vadd.xlane.f32.xlu0 %v73_v30  ;;  %77 = vadd.xlane.f32.xlu1 %v76_v31 }
  0x90   :  { %v33_v32 = vpop.xlane.xlu0 %32  ;;  %v39_v33 = vpop.xlane.xlu1 %38 }
  0x91   :  { %v80_v34 = vmul.f32 0.03125, %v33_v32  ;;  %v82_v35 = vmul.f32 0.03125, %v39_v33 }
  0x93   :  { %v551_v36 = vsub.f32 %v14_v0, %v80_v34  ;;  %v553_v37 = vsub.f32 %v16_v1, %v82_v35 }
  0x94   :  { %v36_v38 = vpop.xlane.xlu0 %35  ;;  %v42_v39 = vpop.xlane.xlu1 %41 }
  0x95   :  { %v81_v40 = vmul.f32 0.03125, %v36_v38  ;;  %v83_v41 = vmul.f32 0.03125, %v42_v39  ;;  %v112_v42 = vmul.f32 %v551_v36, %v551_v36  ;;  %v114_v43 = vmul.f32 %v553_v37, %v553_v37 }
  0x97   :  { %v559_v44 = vsub.f32 %v15_v2, %v81_v40  ;;  %v561_v45 = vsub.f32 %v17_v5, %v83_v41  ;;  %v128_v46 = vsel %vm30_vm0, %v112_v42, 0.0  ;;  %v134_v49 = vsel %vm30_vm0, %v114_v43, 0.0 }
  0x98   :  { %129 = vadd.xlane.f32.xlu0 %v128_v46  ;;  %v45_v47 = vpop.xlane.xlu0 %44  ;;  %v48_v48 = vpop.xlane.xlu1 %47 }
  0x99   :  { %v84_v50 = vmul.f32 0.03125, %v45_v47  ;;  %v85_v51 = vmul.f32 0.03125, %v48_v48  ;;  %v113_v52 = vmul.f32 %v559_v44, %v559_v44  ;;  %v115_v53 = vmul.f32 %v561_v45, %v561_v45 }
  0x9b   :  { %v569_v54 = vsub.f32 %v18_v8, %v84_v50  ;;  %v571_v55 = vsub.f32 %v19_v9, %v85_v51  ;;  %v131_v56 = vsel %vm30_vm0, %v113_v52, 0.0  ;;  %v137_v59 = vsel %vm30_vm0, %v115_v53, 0.0 }
  0x9c   :  { %135 = vadd.xlane.f32.xlu0 %v134_v49  ;;  %132 = vadd.xlane.f32.xlu1 %v131_v56  ;;  %v51_v57 = vpop.xlane.xlu0 %50  ;;  %v54_v58 = vpop.xlane.xlu1 %53 }
  0x9d   :  { %v86_v60 = vmul.f32 0.03125, %v51_v57  ;;  %v87_v61 = vmul.f32 0.03125, %v54_v58  ;;  %v116_v62 = vmul.f32 %v569_v54, %v569_v54  ;;  %v117_v63 = vmul.f32 %v571_v55, %v571_v55 }
  0x9f   :  { %v580_v0 = vsub.f32 %v484_v12, %v86_v60  ;;  %v583_v1 = vsub.f32 %v489_v13, %v87_v61  ;;  %v140_v2 = vsel %vm30_vm0, %v116_v62, 0.0  ;;  %v143_v5 = vsel %vm30_vm0, %v117_v63, 0.0 }
  0xa0   :  { %138 = vadd.xlane.f32.xlu1 %v137_v59  ;;  %141 = vadd.xlane.f32.xlu0 %v140_v2  ;;  %v57_v3 = vpop.xlane.xlu0 %56  ;;  %v60_v4 = vpop.xlane.xlu1 %59 }
  0xa1   :  { %v88_v6 = vmul.f32 0.03125, %v57_v3  ;;  %v89_v7 = vmul.f32 0.03125, %v60_v4  ;;  %v118_v8 = vmul.f32 %v580_v0, %v580_v0  ;;  %v119_v9 = vmul.f32 %v583_v1, %v583_v1 }
  0xa3   :  { %v592_v10 = vsub.f32 %v498_v16, %v88_v6  ;;  %v595_v11 = vsub.f32 %v503_v17, %v89_v7  ;;  %v146_v12 = vsel %vm30_vm0, %v118_v8, 0.0  ;;  %v149_v15 = vsel %vm30_vm0, %v119_v9, 0.0 }
  0xa4   :  { %144 = vadd.xlane.f32.xlu1 %v143_v5  ;;  %147 = vadd.xlane.f32.xlu0 %v146_v12  ;;  %v63_v13 = vpop.xlane.xlu0 %62  ;;  %v66_v14 = vpop.xlane.xlu1 %65 }
  0xa5   :  { %v90_v18 = vmul.f32 0.03125, %v63_v13  ;;  %v91_v19 = vmul.f32 0.03125, %v66_v14  ;;  %v120_v22 = vmul.f32 %v592_v10, %v592_v10  ;;  %v121_v16 = vmul.f32 %v595_v11, %v595_v11  ;;  %v644_v14 = vld [vmem:[%s764_s1] ss:$0 sm:$0xff] }
  0xa7   :  { %v604_v23 = vsub.f32 %v512_v20, %v90_v18  ;;  %v607_v17 = vsub.f32 %v517_v21, %v91_v19  ;;  %v152_v26 = vsel %vm30_vm0, %v120_v22, 0.0  ;;  %v155_v31 = vsel %vm30_vm0, %v121_v16, 0.0 }
  0xa8   :  { %150 = vadd.xlane.f32.xlu1 %v149_v15  ;;  %153 = vadd.xlane.f32.xlu0 %v152_v26  ;;  %v69_v27 = vpop.xlane.xlu0 %68  ;;  %v72_v30 = vpop.xlane.xlu1 %71  ;;  %v650_v26 = vld [vmem:[%s765_s2] ss:$0 sm:$0xff] }
  0xa9   :  { %v92_v32 = vmul.f32 0.03125, %v69_v27  ;;  %v93_v33 = vmul.f32 0.03125, %v72_v30  ;;  %v122_v34 = vmul.f32 %v604_v23, %v604_v23  ;;  %v123_v20 = vmul.f32 %v607_v17, %v607_v17 }
  0xab   :  { %v616_v35 = vsub.f32 %v526_v24, %v92_v32  ;;  %v619_v21 = vsub.f32 %v531_v25, %v93_v33  ;;  %v158_v38 = vsel %vm30_vm0, %v122_v34, 0.0  ;;  %v161_v41 = vsel %vm30_vm0, %v123_v20, 0.0 }
  0xac   :  { %156 = vadd.xlane.f32.xlu1 %v155_v31  ;;  %159 = vadd.xlane.f32.xlu0 %v158_v38  ;;  %v75_v39 = vpop.xlane.xlu0 %74  ;;  %v78_v40 = vpop.xlane.xlu1 %77 }
  0xad   :  { %v94_v42 = vmul.f32 0.03125, %v75_v39  ;;  %v95_v43 = vmul.f32 0.03125, %v78_v40  ;;  %v124_v46 = vmul.f32 %v616_v35, %v616_v35  ;;  %v125_v24 = vmul.f32 %v619_v21, %v619_v21 }
  0xaf   :  { %v628_v47 = vsub.f32 %v540_v28, %v94_v42  ;;  %v631_v25 = vsub.f32 %v545_v29, %v95_v43  ;;  %v164_v48 = vsel %vm30_vm0, %v124_v46, 0.0  ;;  %v167_v49 = vsel %vm30_vm0, %v125_v24, 0.0 }
  0xb0   :  { %162 = vadd.xlane.f32.xlu1 %v161_v41  ;;  %165 = vadd.xlane.f32.xlu0 %v164_v48 }
  0xb1   :  { %v126_v50 = vmul.f32 %v628_v47, %v628_v47  ;;  %v127_v51 = vmul.f32 %v631_v25, %v631_v25 }
  0xb3   :  { %v170_v52 = vsel %vm30_vm0, %v126_v50, 0.0  ;;  %v173_v28 = vsel %vm30_vm0, %v127_v51, 0.0 }
  0xb4   :  { %168 = vadd.xlane.f32.xlu1 %v167_v49  ;;  %171 = vadd.xlane.f32.xlu0 %v170_v52 }
  0xb8   :  { %174 = vadd.xlane.f32.xlu1 %v173_v28 }
 0x125   :  { %v130_v29 = vpop.xlane.xlu0 %129 }
 0x126   :  { %v176_v53 = vmul.f32 0.03125, %v130_v29 }
 0x128   :  { %v192_v56 = vadd.f32 1e-06, %v176_v53 }
 0x129   :  { %v133_v57 = vpop.xlane.xlu1 %132  ;;  %v136_v58 = vpop.xlane.xlu0 %135 }
 0x12a   :  { %405 = vrsqrt.f32 %v192_v56  ;;  %v177_v59 = vmul.f32 0.03125, %v133_v57  ;;  %v178_v60 = vmul.f32 0.03125, %v136_v58 }
 0x12c   :  { %v193_v61 = vadd.f32 1e-06, %v177_v59  ;;  %v194_v62 = vadd.f32 1e-06, %v178_v60 }
 0x12d   :  { %v139_v63 = vpop.xlane.xlu1 %138  ;;  %v142_v2 = vpop.xlane.xlu0 %141 }
 0x12e   :  { %407 = vrsqrt.f32 %v193_v61  ;;  %v179_v3 = vmul.f32 0.03125, %v139_v63  ;;  %v180_v4 = vmul.f32 0.03125, %v142_v2 }
 0x12f   :  { %409 = vrsqrt.f32 %v194_v62 }
 0x130   :  { %v195_v5 = vadd.f32 1e-06, %v179_v3  ;;  %v196_v6 = vadd.f32 1e-06, %v180_v4 }
 0x131   :  { %v145_v7 = vpop.xlane.xlu1 %144  ;;  %v148_v8 = vpop.xlane.xlu0 %147 }
 0x132   :  { %411 = vrsqrt.f32 %v195_v5  ;;  %v181_v9 = vmul.f32 0.03125, %v145_v7  ;;  %v182_v12 = vmul.f32 0.03125, %v148_v8 }
 0x133   :  { %413 = vrsqrt.f32 %v196_v6 }
 0x134   :  { %v406_v13 = vpop.eup %405  ;;  %v197_v15 = vadd.f32 1e-06, %v181_v9  ;;  %v198_v18 = vadd.f32 1e-06, %v182_v12 }
 0x135   :  { %v224_v19 = vmul.f32 %v406_v13, %v551_v36  ;;  %v151_v22 = vpop.xlane.xlu1 %150  ;;  %v154_v16 = vpop.xlane.xlu0 %153 }
 0x136   :  { %415 = vrsqrt.f32 %v197_v15  ;;  %v183_v27 = vmul.f32 0.03125, %v151_v22  ;;  %v184_v30 = vmul.f32 0.03125, %v154_v16 }
 0x137   :  { %v247_v31 = vmul.f32 %v644_v14, %v224_v19  ;;  %417 = vrsqrt.f32 %v198_v18 }
 0x138   :  { %v408_v32 = vpop.eup %407  ;;  %v199_v33 = vadd.f32 1e-06, %v183_v27  ;;  %v200_v34 = vadd.f32 1e-06, %v184_v30 }
 0x139   :  { %v410_v20 = vpop.eup %409  ;;  %v270_v36 = vadd.f32 %v650_v26, %v247_v31  ;;  %v225_v38 = vmul.f32 %v408_v32, %v559_v44  ;;  %v157_v39 = vpop.xlane.xlu1 %156 }
 0x13a   :  { %v160_v40 = vpop.xlane.xlu0 %159  ;;  %v226_v41 = vmul.f32 %v410_v20, %v553_v37  ;;  %419 = vrsqrt.f32 %v199_v33  ;;  %v185_v42 = vmul.f32 0.03125, %v157_v39 }
 0x13b   :  { %v186_v43 = vmul.f32 0.03125, %v160_v40  ;;  %v389_v46 = vpack.c.bf16 %v270_v36, %v270_v36  ;;  %v248_v24 = vmul.f32 %v644_v14, %v225_v38  ;;  %421 = vrsqrt.f32 %v200_v34 }
 0x13c   :  { %v412_v48 = vpop.eup %411  ;;  %v249_v49 = vmul.f32 %v644_v14, %v226_v41  ;;  %v201_v50 = vadd.f32 1e-06, %v185_v42 }
 0x13d   :  { %v202_v51 = vadd.f32 1e-06, %v186_v43  ;;  %v414_v52 = vpop.eup %413  ;;  %351 = vst.msk [vmem:[%s766_s3] sm:$0xf] %vm350_vm1, %v389_v46  ;;  %v271_v37 = vadd.f32 %v650_v26, %v248_v24  ;;  %v227_v44 = vmul.f32 %v412_v48, %v561_v45  ;;  %v163_v28 = vpop.xlane.xlu1 %162 }
 0x13e   :  { %v166_v29 = vpop.xlane.xlu0 %165  ;;  %v272_v53 = vadd.f32 %v650_v26, %v249_v49  ;;  %v228_v56 = vmul.f32 %v414_v52, %v569_v54  ;;  %423 = vrsqrt.f32 %v201_v50  ;;  %v187_v57 = vmul.f32 0.03125, %v163_v28 }
 0x13f   :  { %v390_v58 = vpack.c.bf16 %v271_v37, %v271_v37  ;;  %v250_v59 = vmul.f32 %v644_v14, %v227_v44  ;;  %425 = vrsqrt.f32 %v202_v51  ;;  %v188_v60 = vmul.f32 0.03125, %v166_v29 }
 0x140   :  { %v416_v61 = vpop.eup %415  ;;  %v391_v62 = vpack.c.bf16 %v272_v53, %v272_v53  ;;  %v251_v63 = vmul.f32 %v644_v14, %v228_v56  ;;  %v203_v2 = vadd.f32 1e-06, %v187_v57 }
 0x141   :  { %v418_v3 = vpop.eup %417  ;;  %352 = vst.msk [vmem:[%s766_s3 + $0x4] sm:$0xf] %vm350_vm1, %v390_v58  ;;  %v273_v45 = vadd.f32 %v650_v26, %v250_v59  ;;  %v229_v54 = vmul.f32 %v416_v61, %v571_v55  ;;  %v204_v4 = vadd.f32 1e-06, %v188_v60  ;;  %v169_v5 = vpop.xlane.xlu1 %168 }
 0x142   :  { %v172_v6 = vpop.xlane.xlu0 %171  ;;  %353 = vst.msk [vmem:[%s766_s3 + $0x8] sm:$0xf] %vm350_vm1, %v391_v62  ;;  %v274_v7 = vadd.f32 %v650_v26, %v251_v63  ;;  %v230_v8 = vmul.f32 %v418_v3, %v580_v0  ;;  %427 = vrsqrt.f32 %v203_v2  ;;  %v189_v9 = vmul.f32 0.03125, %v169_v5 }
 0x143   :  { %v392_v12 = vpack.c.bf16 %v273_v45, %v273_v45  ;;  %v252_v13 = vmul.f32 %v644_v14, %v229_v54  ;;  %429 = vrsqrt.f32 %v204_v4  ;;  %v190_v15 = vmul.f32 0.03125, %v172_v6 }
 0x144   :  { %v420_v55 = vpop.eup %419  ;;  %v393_v18 = vpack.c.bf16 %v274_v7, %v274_v7  ;;  %v253_v19 = vmul.f32 %v644_v14, %v230_v8  ;;  %v205_v22 = vadd.f32 1e-06, %v189_v9 }
 0x145   :  { %v422_v16 = vpop.eup %421  ;;  %354 = vst.msk [vmem:[%s766_s3 + $0xc] sm:$0xf] %vm350_vm1, %v392_v12  ;;  %v275_v0 = vadd.f32 %v650_v26, %v252_v13  ;;  %v231_v27 = vmul.f32 %v420_v55, %v583_v1  ;;  %v206_v30 = vadd.f32 1e-06, %v190_v15  ;;  %v175_v31 = vpop.xlane.xlu1 %174 }
 0x146   :  { %355 = vst.msk [vmem:[%s766_s3 + $0x10] sm:$0xf] %vm350_vm1, %v393_v18  ;;  %v276_v32 = vadd.f32 %v650_v26, %v253_v19  ;;  %v232_v33 = vmul.f32 %v422_v16, %v592_v10  ;;  %431 = vrsqrt.f32 %v205_v22  ;;  %v191_v34 = vmul.f32 0.03125, %v175_v31 }
 0x147   :  { %v394_v20 = vpack.c.bf16 %v275_v0, %v275_v0  ;;  %v254_v36 = vmul.f32 %v644_v14, %v231_v27  ;;  %433 = vrsqrt.f32 %v206_v30 }
 0x148   :  { %v424_v38 = vpop.eup %423  ;;  %v395_v39 = vpack.c.bf16 %v276_v32, %v276_v32  ;;  %v255_v1 = vmul.f32 %v644_v14, %v232_v33  ;;  %v207_v40 = vadd.f32 1e-06, %v191_v34 }
 0x149   :  { %v426_v41 = vpop.eup %425  ;;  %356 = vst.msk [vmem:[%s766_s3 + $0x14] sm:$0xf] %vm350_vm1, %v394_v20  ;;  %v277_v42 = vadd.f32 %v650_v26, %v254_v36  ;;  %v233_v10 = vmul.f32 %v424_v38, %v595_v11 }
 0x14a   :  { %357 = vst.msk [vmem:[%s766_s3 + $0x18] sm:$0xf] %vm350_vm1, %v395_v39  ;;  %v278_v43 = vadd.f32 %v650_v26, %v255_v1  ;;  %v234_v46 = vmul.f32 %v426_v41, %v604_v23  ;;  %435 = vrsqrt.f32 %v207_v40 }
 0x14b   :  { %v396_v24 = vpack.c.bf16 %v277_v42, %v277_v42  ;;  %v256_v48 = vmul.f32 %v644_v14, %v233_v10 }
 0x14c   :  { %v428_v49 = vpop.eup %427  ;;  %v397_v50 = vpack.c.bf16 %v278_v43, %v278_v43  ;;  %v257_v51 = vmul.f32 %v644_v14, %v234_v46 }
 0x14d   :  { %v430_v52 = vpop.eup %429  ;;  %358 = vst.msk [vmem:[%s766_s3 + $0x1c] sm:$0xf] %vm350_vm1, %v396_v24  ;;  %v279_v11 = vadd.f32 %v650_v26, %v256_v48  ;;  %v235_v37 = vmul.f32 %v428_v49, %v607_v17 }
 0x14e   :  { %359 = vst.msk [vmem:[%s766_s3 + $0x20] sm:$0xf] %vm350_vm1, %v397_v50  ;;  %v280_v23 = vadd.f32 %v650_v26, %v257_v51  ;;  %v236_v44 = vmul.f32 %v430_v52, %v616_v35 }
 0x14f   :  { %v398_v28 = vpack.c.bf16 %v279_v11, %v279_v11  ;;  %v258_v29 = vmul.f32 %v644_v14, %v235_v37 }
 0x150   :  { %v432_v53 = vpop.eup %431  ;;  %v399_v56 = vpack.c.bf16 %v280_v23, %v280_v23  ;;  %v259_v57 = vmul.f32 %v644_v14, %v236_v44 }
 0x151   :  { %v434_v58 = vpop.eup %433  ;;  %360 = vst.msk [vmem:[%s766_s3 + $0x24] sm:$0xf] %vm350_vm1, %v398_v28  ;;  %v281_v17 = vadd.f32 %v650_v26, %v258_v29  ;;  %v237_v59 = vmul.f32 %v432_v53, %v619_v21 }
 0x152   :  { %361 = vst.msk [vmem:[%s766_s3 + $0x28] sm:$0xf] %vm350_vm1, %v399_v56  ;;  %v282_v35 = vadd.f32 %v650_v26, %v259_v57  ;;  %v238_v60 = vmul.f32 %v434_v58, %v628_v47 }
 0x153   :  { %v400_v61 = vpack.c.bf16 %v281_v17, %v281_v17  ;;  %v260_v62 = vmul.f32 %v644_v14, %v237_v59 }
 0x154   :  { %v436_v63 = vpop.eup %435  ;;  %v401_v2 = vpack.c.bf16 %v282_v35, %v282_v35  ;;  %v261_v3 = vmul.f32 %v644_v14, %v238_v60 }
 0x155   :  { %362 = vst.msk [vmem:[%s766_s3 + $0x2c] sm:$0xf] %vm350_vm1, %v400_v61  ;;  %v283_v21 = vadd.f32 %v650_v26, %v260_v62  ;;  %v239_v45 = vmul.f32 %v436_v63, %v631_v25 }
 0x156   :  { %363 = vst.msk [vmem:[%s766_s3 + $0x30] sm:$0xf] %vm350_vm1, %v401_v2  ;;  %v284_v47 = vadd.f32 %v650_v26, %v261_v3 }
 0x157   :  { %v402_v54 = vpack.c.bf16 %v283_v21, %v283_v21  ;;  %v262_v4 = vmul.f32 %v644_v14, %v239_v45 }
 0x158   :  { %v403_v5 = vpack.c.bf16 %v284_v47, %v284_v47 }
 0x159   :  { %364 = vst.msk [vmem:[%s766_s3 + $0x34] sm:$0xf] %vm350_vm1, %v402_v54  ;;  %v285_v6 = vadd.f32 %v650_v26, %v262_v4 }
 0x15a   :  { %365 = vst.msk [vmem:[%s766_s3 + $0x38] sm:$0xf] %vm350_vm1, %v403_v5 }
 0x15b   :  { %v404_v25 = vpack.c.bf16 %v285_v6, %v285_v6 }
 0x15d   :  { %366 = vst.msk [vmem:[%s766_s3 + $0x3c] sm:$0xf] %vm350_vm1, %v404_v25 }

// kernel: transformer_forward.16
= control target key start
LH: loop header
LB: loop body
LE: loop exit
PB: predicated region body
PF: predicated region fallthrough
CT: control target
= control target key end

     0   :  { %s2421_s12 = smov 0   ;;  %s2958_s0 = inlined_call_operand.vmem [shape: bf16[2,4,64,8], index: 0, kind: input, shape index: {}]   ;;  %s2959_s1 = inlined_call_operand.vmem [shape: bf16[2,4,64,8], index: 1, kind: input, shape index: {}]   ;;  %s2960_s2 = inlined_call_operand.vmem [shape: bf16[2,4,64,8], index: 2, kind: input, shape index: {}]   ;;  %s2961_s3 = inlined_call_operand.vmem [shape: bf16[2,4,64,8], index: 3, kind: output, shape index: {}]  }
   0x1 LB: > { %s1838_s13 = sadd.s32 4294967295, %s2399_s12   ;;  %p1842_p0 = scmp.ge.s32.totalorder %s2399_s12, 1  ;;  %s2399_s12 = sphi %s2421_s12, %s13_s12  }
   0x2   : > { %p157_p1 = scmp.lt.s32.totalorder %s2399_s12, 3 }
   0x4   : > { %p158_p2 = pnand %p1842_p0, %p157_p1 }
   0x5   : > { %p191_p3 = scmp.lt.s32.totalorder (!%p158_p2), %s1838_s13, 1  ;;  %vm348_vm0 = vcmask (!%p158_p2), 64512   ;;  %vm825_vm1 = vcmask (!%p158_p2), 523264   ;;  %vm1726_vm2 = vcmask (!%p158_p2), 60416  }
   0x6   : > { %161 = sbr.rel (%p158_p2) target bundleno = 861 (0x35d), region = 32 }
   0xd   : > { %s2963_s13 = smov (!%p191_p3, %s1838_s13), 1 }
   0xe   : > { %s2429_s14 = sshll.u32 %s2963_s13, 7 }
   0xf   : > { %s2435_s17 = scalar_lea.vmem %s2959_s1, %s2429_s14  ;;  %s2451_s20 = scalar_lea.vmem %s2958_s0, %s2429_s14 }
  0x10   : > { %v2217_v0 = vld [vmem:[%s2435_s17] sm:$0xff]   ;;  %v2219_v3 = vld [vmem:[%s2435_s17 + $0x8] sm:$0xff]   ;;  %v2221_v6 = vld [vmem:[%s2435_s17 + $0x10] sm:$0xff]   ;;  %s2730_s23 = scalar_lea.vmem %s2960_s2, %s2429_s14  ;;  %s2889_s26 = scalar_lea.vmem %s2961_s3, %s2429_s14 }
  0x11   : > { %v2218_v1 = vld [vmem:[%s2435_s17 + $0x20] sm:$0xff]   ;;  %2193 = vmatprep.subr.msk.bf16.mxu0 %vm348_vm0, %v2217_v0  ;;  %v362_v2 = vsel %vm348_vm0, %v2217_v0, 0  ;;  %v2220_v5 = vld [vmem:[%s2435_s17 + $0x28] sm:$0xff]   ;;  %v2222_v7 = vld [vmem:[%s2435_s17 + $0x30] sm:$0xff]   ;;  %v365_v8 = vsel %vm348_vm0, %v2219_v3, 0  ;;  %v368_v12 = vsel %vm348_vm0, %v2221_v6, 0 }
  0x12   : > { %2197 = vmatprep.subr.msk.bf16.mxu1 %vm348_vm0, %v2218_v1  ;;  %2066 = vmatpush3.bf16.xpose.msra.mxu0 %v362_v2  ;;  %v491_v4 = vsel %vm348_vm0, %v2218_v1, 0  ;;  %v2225_v9 = vld [vmem:[%s2451_s20] sm:$0xff]   ;;  %v494_v10 = vsel %vm348_vm0, %v2220_v5, 0  ;;  %v2223_v13 = vld [vmem:[%s2435_s17 + $0x18] sm:$0xff]   ;;  %v497_v14 = vsel %vm348_vm0, %v2222_v7, 0  ;;  %v2227_v20 = vld [vmem:[%s2451_s20 + $0x8] sm:$0xff]  }
  0x13   : > { %2082 = vmatpush3.bf16.xpose.msra.mxu1 %v491_v4  ;;  %2194 = vmatprep.subr.msk.bf16.mxu0 %vm348_vm0, %v2219_v3  ;;  %v2226_v11 = vld [vmem:[%s2451_s20 + $0x20] sm:$0xff]   ;;  %v2224_v15 = vld [vmem:[%s2435_s17 + $0x38] sm:$0xff]   ;;  %v371_v16 = vsel %vm348_vm0, %v2223_v13, 0  ;;  %v2228_v21 = vld [vmem:[%s2451_s20 + $0x28] sm:$0xff]  }
  0x14   : > { %2198 = vmatprep.subr.msk.bf16.mxu1 %vm348_vm0, %v2220_v5  ;;  %2073 = vmatprep.mubr.msk.bf16.mxu0 %vm348_vm0, %v2225_v9  ;;  %v2229_v17 = vld [vmem:[%s2435_s17 + $0x40] sm:$0xff]   ;;  %v500_v18 = vsel %vm348_vm0, %v2224_v15, 0  ;;  %v2231_v23 = vld [vmem:[%s2435_s17 + $0x48] sm:$0xff]   ;;  %v2233_v26 = vld [vmem:[%s2451_s20 + $0x10] sm:$0xff]  }
  0x15   : > { %2089 = vmatprep.mubr.msk.bf16.mxu1 %vm348_vm0, %v2226_v11  ;;  %v2230_v19 = vld [vmem:[%s2435_s17 + $0x60] sm:$0xff]   ;;  %v620_v22 = vsel %vm348_vm0, %v2229_v17, 0  ;;  %v2232_v25 = vld [vmem:[%s2435_s17 + $0x68] sm:$0xff]   ;;  %v2236_v27 = vld [vmem:[%s2451_s20 + $0x30] sm:$0xff]   ;;  %v623_v30 = vsel %vm348_vm0, %v2231_v23, 0 }
  0x16   : > { %v749_v24 = vsel %vm348_vm0, %v2230_v19, 0  ;;  %v2234_v28 = vld [vmem:[%s2451_s20 + $0x18] sm:$0xff]   ;;  %v2235_v31 = vld [vmem:[%s2435_s17 + $0x50] sm:$0xff]   ;;  %v752_v32 = vsel %vm348_vm0, %v2232_v25, 0  ;;  %v2241_v34 = vld [vmem:[%s2451_s20 + $0x40] sm:$0xff]  }
  0x17   : > { %v2237_v29 = vld [vmem:[%s2451_s20 + $0x38] sm:$0xff]   ;;  %v2238_v33 = vld [vmem:[%s2435_s17 + $0x70] sm:$0xff]   ;;  %v2243_v35 = vld [vmem:[%s2451_s20 + $0x60] sm:$0xff]   ;;  %v626_v36 = vsel %vm348_vm0, %v2235_v31, 0 }
  0x18   : > { %v2239_v37 = vld [vmem:[%s2435_s17 + $0x58] sm:$0xff]   ;;  %v755_v38 = vsel %vm348_vm0, %v2238_v33, 0  ;;  %v2242_v42 = vld [vmem:[%s2451_s20 + $0x48] sm:$0xff]   ;;  %v2245_v44 = vld [vmem:[%s2451_s20 + $0x50] sm:$0xff]  }
  0x19   : > { %v2240_v39 = vld [vmem:[%s2435_s17 + $0x78] sm:$0xff]   ;;  %v629_v40 = vsel %vm348_vm0, %v2239_v37, 0  ;;  %v2244_v43 = vld [vmem:[%s2451_s20 + $0x68] sm:$0xff]   ;;  %v2247_v45 = vld [vmem:[%s2451_s20 + $0x70] sm:$0xff]  }
  0x1a   : > { %2068 = vmatpush3.bf16.xpose.msra.mxu0 %v365_v8  ;;  %v758_v41 = vsel %vm348_vm0, %v2240_v39, 0  ;;  %v2246_v46 = vld [vmem:[%s2451_s20 + $0x58] sm:$0xff]  }
  0x1b   : > { %2084 = vmatpush3.bf16.xpose.msra.mxu1 %v494_v10  ;;  %2195 = vmatprep.subr.msk.bf16.mxu0 %vm348_vm0, %v2221_v6  ;;  %v2248_v47 = vld [vmem:[%s2451_s20 + $0x78] sm:$0xff]  }
  0x1c   : > { %2199 = vmatprep.subr.msk.bf16.mxu1 %vm348_vm0, %v2222_v7 }
  0x22   : > { %2070 = vmatpush3.bf16.xpose.msra.mxu0 %v368_v12 }
  0x23   : > { %2086 = vmatpush3.bf16.xpose.msra.mxu1 %v497_v14  ;;  %2196 = vmatprep.subr.msk.bf16.mxu0 %vm348_vm0, %v2223_v13 }
  0x24   : > { %2200 = vmatprep.subr.msk.bf16.mxu1 %vm348_vm0, %v2224_v15 }
  0x2a   : > { %2072 = vmatpush3.bf16.xpose.msra.mxu0 %v371_v16 }
  0x2b   : > { %2088 = vmatpush3.bf16.xpose.msra.mxu1 %v500_v18  ;;  %2201 = vmatprep.subr.msk.bf16.mxu0 %vm348_vm0, %v2229_v17 }
  0x2c   : > { %2205 = vmatprep.subr.msk.bf16.mxu1 %vm348_vm0, %v2230_v19 }
  0x31   : > { %2074 = vmatmul.mubr.msk.bf16.vlgmr.msra.gmra.mrb[0].mxu0 %vm348_vm0, %v2227_v20 }
  0x32   : > { %2090 = vmatmul.mubr.msk.bf16.vlgmr.msra.gmra.mrb[0].mxu1 %vm348_vm0, %v2228_v21  ;;  %2098 = vmatpush3.bf16.xpose.msra.mxu0 %v620_v22 }
  0x33   : > { %2114 = vmatpush3.bf16.xpose.msra.mxu1 %v749_v24  ;;  %2202 = vmatprep.subr.msk.bf16.mxu0 %vm348_vm0, %v2231_v23 }
  0x34   : > { %2206 = vmatprep.subr.msk.bf16.mxu1 %vm348_vm0, %v2232_v25  ;;  %2077 = vmatprep.mubr.msk.bf16.mxu0 %vm348_vm0, %v2233_v26 }
  0x35   : > { %2093 = vmatprep.mubr.msk.bf16.mxu1 %vm348_vm0, %v2236_v27 }
  0x39   : > { %2078 = vmatmul.mubr.msk.bf16.gmra.mrb[4].mxu0 %vm348_vm0, %v2234_v28 }
  0x3a   : > { %2100 = vmatpush3.bf16.xpose.msra.mxu0 %v623_v30  ;;  %2094 = vmatmul.mubr.msk.bf16.gmra.mrb[4].mxu1 %vm348_vm0, %v2237_v29 }
  0x3b   : > { %2116 = vmatpush3.bf16.xpose.msra.mxu1 %v752_v32  ;;  %2203 = vmatprep.subr.msk.bf16.mxu0 %vm348_vm0, %v2235_v31 }
  0x3c   : > { %2207 = vmatprep.subr.msk.bf16.mxu1 %vm348_vm0, %v2238_v33  ;;  %2105 = vmatprep.mubr.msk.bf16.mxu0 %vm348_vm0, %v2241_v34 }
  0x3d   : > { %2121 = vmatprep.mubr.msk.bf16.mxu1 %vm348_vm0, %v2243_v35 }
  0x42   : > { %2102 = vmatpush3.bf16.xpose.msra.mxu0 %v626_v36 }
  0x43   : > { %2118 = vmatpush3.bf16.xpose.msra.mxu1 %v755_v38  ;;  %2204 = vmatprep.subr.msk.bf16.mxu0 %vm348_vm0, %v2239_v37 }
  0x44   : > { %2208 = vmatprep.subr.msk.bf16.mxu1 %vm348_vm0, %v2240_v39 }
  0x4a   : > { %2104 = vmatpush3.bf16.xpose.msra.mxu0 %v629_v40 }
  0x4b   : > { %2120 = vmatpush3.bf16.xpose.msra.mxu1 %v758_v41 }
  0x51   : > { %2106 = vmatmul.mubr.msk.bf16.vlgmr.msra.gmra.mrb[8].mxu0 %vm348_vm0, %v2242_v42 }
  0x52   : > { %2122 = vmatmul.mubr.msk.bf16.vlgmr.msra.gmra.mrb[8].mxu1 %vm348_vm0, %v2244_v43  ;;  %2109 = vmatprep.mubr.msk.bf16.mxu0 %vm348_vm0, %v2245_v44 }
  0x53   : > { %2125 = vmatprep.mubr.msk.bf16.mxu1 %vm348_vm0, %v2247_v45 }
  0x59   : > { %2110 = vmatmul.mubr.msk.bf16.gmra.mrb[12].mxu0 %vm348_vm0, %v2246_v46 }
  0x5a   : > { %2126 = vmatmul.mubr.msk.bf16.gmra.mrb[12].mxu1 %vm348_vm0, %v2248_v47 }
 0x104   : > { %v2523_v48 = vpop.f32.mrb[0].mxu0 }
 0x105   : > { %v2525_v49 = vpop.f32.mrb[0].mxu1  ;;  %v2527_v50 = vpop.f32.mrb[1].mxu0  ;;  %v832_v51 = vsel %vm825_vm1, %v2523_v48, -inf }
 0x106   : > { %v2531_v52 = vpop.f32.mrb[1].mxu1  ;;  %833 = vmax.xlane.f32.xlu0 %v832_v51  ;;  %v2533_v53 = vpop.f32.mrb[2].mxu0  ;;  %v856_v58 = vsel %vm825_vm1, %v2525_v49, -inf  ;;  %v826_v61 = vsel %vm825_vm1, %v2527_v50, -inf }
 0x107   : > { %v2535_v54 = vpop.f32.mrb[2].mxu1  ;;  %v850_v55 = vsel %vm825_vm1, %v2531_v52, -inf  ;;  %v2539_v56 = vpop.f32.mrb[3].mxu0  ;;  %v835_v59 = vsel %vm825_vm1, %v2533_v53, -inf }
 0x108   : > { %851 = vmax.xlane.f32.xlu1 %v850_v55  ;;  %v2541_v57 = vpop.f32.mrb[3].mxu1  ;;  %v859_v2 = vsel %vm825_vm1, %v2535_v54, -inf  ;;  %v829_v6 = vsel %vm825_vm1, %v2539_v56, -inf }
 0x109   : > { %v853_v7 = vsel %vm825_vm1, %v2541_v57, -inf }
 0x10a   : > { %857 = vmax.xlane.f32.xlu0 %v856_v58 }
 0x10c   : > { %836 = vmax.xlane.f32.xlu1 %v835_v59  ;;  %v2547_v60 = vpop.f32.mrb[4].mxu0 }
 0x10d   : > { %v2551_v62 = vpop.f32.mrb[5].mxu0  ;;  %v2553_v63 = vpop.f32.mrb[4].mxu1  ;;  %v844_v8 = vsel %vm825_vm1, %v2547_v60, -inf }
 0x10e   : > { %827 = vmax.xlane.f32.xlu0 %v826_v61  ;;  %v2555_v0 = vpop.f32.mrb[6].mxu0  ;;  %v2557_v1 = vpop.f32.mrb[5].mxu1  ;;  %v868_v10 = vsel %vm825_vm1, %v2553_v63, -inf  ;;  %v838_v12 = vsel %vm825_vm1, %v2551_v62, -inf }
 0x10f   : > { %v2561_v3 = vpop.f32.mrb[7].mxu0  ;;  %v2563_v4 = vpop.f32.mrb[6].mxu1  ;;  %v847_v9 = vsel %vm825_vm1, %v2555_v0, -inf  ;;  %v862_v14 = vsel %vm825_vm1, %v2557_v1, -inf }
 0x110   : > { %860 = vmax.xlane.f32.xlu1 %v859_v2  ;;  %v2565_v5 = vpop.f32.mrb[7].mxu1  ;;  %v871_v11 = vsel %vm825_vm1, %v2563_v4, -inf  ;;  %v841_v13 = vsel %vm825_vm1, %v2561_v3, -inf }
 0x111   : > { %v865_v15 = vsel %vm825_vm1, %v2565_v5, -inf }
 0x112   : > { %830 = vmax.xlane.f32.xlu0 %v829_v6 }
 0x114   : > { %854 = vmax.xlane.f32.xlu1 %v853_v7 }
 0x116   : > { %845 = vmax.xlane.f32.xlu0 %v844_v8 }
 0x118   : > { %848 = vmax.xlane.f32.xlu1 %v847_v9 }
 0x11a   : > { %869 = vmax.xlane.f32.xlu0 %v868_v10 }
 0x11c   : > { %872 = vmax.xlane.f32.xlu1 %v871_v11 }
 0x11e   : > { %839 = vmax.xlane.f32.xlu0 %v838_v12 }
 0x120   : > { %842 = vmax.xlane.f32.xlu1 %v841_v13 }
 0x122   : > { %863 = vmax.xlane.f32.xlu0 %v862_v14 }
 0x124   : > { %866 = vmax.xlane.f32.xlu1 %v865_v15  ;;  %v2587_v16 = vpop.f32.mrb[8].mxu0 }
 0x125   : > { %v2589_v17 = vpop.f32.mrb[9].mxu0  ;;  %v880_v18 = vsel %vm825_vm1, %v2587_v16, -inf  ;;  %v2593_v19 = vpop.f32.mrb[8].mxu1 }
 0x126   : > { %881 = vmax.xlane.f32.xlu0 %v880_v18  ;;  %v2595_v20 = vpop.f32.mrb[10].mxu0  ;;  %v2597_v21 = vpop.f32.mrb[9].mxu1  ;;  %v904_v25 = vsel %vm825_vm1, %v2593_v19, -inf  ;;  %v874_v29 = vsel %vm825_vm1, %v2589_v17, -inf }
 0x127   : > { %v2599_v22 = vpop.f32.mrb[11].mxu0  ;;  %v883_v23 = vsel %vm825_vm1, %v2595_v20, -inf  ;;  %v2603_v24 = vpop.f32.mrb[10].mxu1  ;;  %v898_v38 = vsel %vm825_vm1, %v2597_v21, -inf }
 0x128   : > { %884 = vmax.xlane.f32.xlu1 %v883_v23  ;;  %v2607_v26 = vpop.f32.mrb[11].mxu1  ;;  %v907_v27 = vsel %vm825_vm1, %v2603_v24, -inf  ;;  %v877_v34 = vsel %vm825_vm1, %v2599_v22, -inf }
 0x129   : > { %v901_v39 = vsel %vm825_vm1, %v2607_v26, -inf }
 0x12a   : > { %905 = vmax.xlane.f32.xlu0 %v904_v25 }
 0x12c   : > { %908 = vmax.xlane.f32.xlu1 %v907_v27  ;;  %v2611_v28 = vpop.f32.mrb[12].mxu0 }
 0x12d   : > { %v2615_v30 = vpop.f32.mrb[13].mxu0  ;;  %v2617_v31 = vpop.f32.mrb[12].mxu1  ;;  %v892_v40 = vsel %vm825_vm1, %v2611_v28, -inf }
 0x12e   : > { %875 = vmax.xlane.f32.xlu0 %v874_v29  ;;  %v2619_v32 = vpop.f32.mrb[14].mxu0  ;;  %v2621_v33 = vpop.f32.mrb[13].mxu1  ;;  %v886_v42 = vsel %vm825_vm1, %v2615_v30, -inf  ;;  %v916_v46 = vsel %vm825_vm1, %v2617_v31, -inf }
 0x12f   : > { %v2625_v35 = vpop.f32.mrb[15].mxu0  ;;  %v2627_v36 = vpop.f32.mrb[14].mxu1  ;;  %v895_v41 = vsel %vm825_vm1, %v2619_v32, -inf  ;;  %v910_v44 = vsel %vm825_vm1, %v2621_v33, -inf }
 0x130   : > { %878 = vmax.xlane.f32.xlu1 %v877_v34  ;;  %v2629_v37 = vpop.f32.mrb[15].mxu1  ;;  %v889_v43 = vsel %vm825_vm1, %v2625_v35, -inf  ;;  %v919_v47 = vsel %vm825_vm1, %v2627_v36, -inf }
 0x131   : > { %v913_v45 = vsel %vm825_vm1, %v2629_v37, -inf }
 0x132   : > { %899 = vmax.xlane.f32.xlu0 %v898_v38 }
 0x134   : > { %902 = vmax.xlane.f32.xlu1 %v901_v39 }
 0x136   : > { %893 = vmax.xlane.f32.xlu0 %v892_v40 }
 0x138   : > { %896 = vmax.xlane.f32.xlu1 %v895_v41 }
 0x13a   : > { %887 = vmax.xlane.f32.xlu0 %v886_v42 }
 0x13c   : > { %890 = vmax.xlane.f32.xlu1 %v889_v43 }
 0x13e   : > { %911 = vmax.xlane.f32.xlu0 %v910_v44 }
 0x140   : > { %914 = vmax.xlane.f32.xlu1 %v913_v45 }
 0x142   : > { %917 = vmax.xlane.f32.xlu0 %v916_v46 }
 0x144   : > { %920 = vmax.xlane.f32.xlu1 %v919_v47 }
 0x193   : > { %v834_v51 = vpop.xlane.xlu0 %833 }
 0x194   : > { %v924_v55 = vsub.f32 %v2523_v48, %v834_v51 }
 0x195   : > { %v852_v58 = vpop.xlane.xlu1 %851 }
 0x196   : > { %v958_v59 = vmul.f32 1.442695, %v924_v55  ;;  %v930_v6 = vsub.f32 %v2531_v52, %v852_v58 }
 0x197   : > { %v858_v61 = vpop.xlane.xlu0 %857 }
 0x198   : > { %2265 = vpow2.f32 %v958_v59  ;;  %v932_v2 = vsub.f32 %v2525_v49, %v858_v61  ;;  %v970_v13 = vmul.f32 1.442695, %v930_v6 }
 0x199   : > { %v837_v7 = vpop.xlane.xlu1 %836 }
 0x19a   : > { %v974_v8 = vmul.f32 1.442695, %v932_v2  ;;  %v925_v9 = vsub.f32 %v2533_v53, %v837_v7 }
 0x19b   : > { %v828_v10 = vpop.xlane.xlu0 %827 }
 0x19c   : > { %2267 = vpow2.f32 %v974_v8  ;;  %v960_v11 = vmul.f32 1.442695, %v925_v9  ;;  %v922_v12 = vsub.f32 %v2527_v50, %v828_v10 }
 0x19d   : > { %v861_v14 = vpop.xlane.xlu1 %860 }
 0x19e   : > { %2269 = vpow2.f32 %v960_v11  ;;  %v954_v48 = vmul.f32 1.442695, %v922_v12  ;;  %v933_v15 = vsub.f32 %v2535_v54, %v861_v14 }
 0x19f   : > { %v831_v18 = vpop.xlane.xlu0 %830 }
 0x1a0   : > { %2271 = vpow2.f32 %v954_v48  ;;  %v976_v49 = vmul.f32 1.442695, %v933_v15  ;;  %v923_v52 = vsub.f32 %v2539_v56, %v831_v18 }
 0x1a1   : > { %2273 = vpow2.f32 %v970_v13  ;;  %v855_v23 = vpop.xlane.xlu1 %854 }
 0x1a2   : > { %v2658_v25 = vpop.eup %2265  ;;  %2275 = vpow2.f32 %v976_v49  ;;  %v956_v53 = vmul.f32 1.442695, %v923_v52  ;;  %v931_v27 = vsub.f32 %v2541_v57, %v855_v23 }
 0x1a3   : > { %v846_v50 = vpop.xlane.xlu0 %845  ;;  %v1024_v29 = vsel %vm825_vm1, %v2658_v25, 0.0 }
 0x1a4   : > { %2277 = vpow2.f32 %v956_v53  ;;  %v972_v34 = vmul.f32 1.442695, %v931_v27  ;;  %v928_v54 = vsub.f32 %v2547_v60, %v846_v50  ;;  %1025 = vadd.xlane.f32.xlu0 %v1024_v29 }
 0x1a5   : > { %v849_v38 = vpop.xlane.xlu1 %848 }
 0x1a6   : > { %v2664_v39 = vpop.eup %2267  ;;  %v966_v56 = vmul.f32 1.442695, %v928_v54  ;;  %v929_v40 = vsub.f32 %v2555_v0, %v849_v38  ;;  %2279 = vpow2.f32 %v972_v34 }
 0x1a7   : > { %v870_v41 = vpop.xlane.xlu0 %869  ;;  %v1048_v57 = vsel %vm825_vm1, %v2664_v39, 0.0 }
 0x1a8   : > { %v2669_v42 = vpop.eup %2269  ;;  %2281 = vpow2.f32 %v966_v56  ;;  %v968_v43 = vmul.f32 1.442695, %v929_v40  ;;  %v936_v44 = vsub.f32 %v2553_v63, %v870_v41  ;;  %1049 = vadd.xlane.f32.xlu0 %v1048_v57 }
 0x1a9   : > { %v873_v60 = vpop.xlane.xlu1 %872  ;;  %v1027_v45 = vsel %vm825_vm1, %v2669_v42, 0.0 }
 0x1aa   : > { %v2674_v46 = vpop.eup %2271  ;;  %v982_v47 = vmul.f32 1.442695, %v936_v44  ;;  %v937_v0 = vsub.f32 %v2563_v4, %v873_v60  ;;  %1028 = vadd.xlane.f32.xlu1 %v1027_v45  ;;  %2283 = vpow2.f32 %v968_v43 }
 0x1ab   : > { %v2677_v51 = vpop.eup %2273  ;;  %v840_v55 = vpop.xlane.xlu0 %839  ;;  %v1018_v58 = vsel %vm825_vm1, %v2674_v46, 0.0 }
 0x1ac   : > { %v2681_v59 = vpop.eup %2275  ;;  %2285 = vpow2.f32 %v982_v47  ;;  %v984_v63 = vmul.f32 1.442695, %v937_v0  ;;  %v926_v61 = vsub.f32 %v2551_v62, %v840_v55  ;;  %1019 = vadd.xlane.f32.xlu0 %v1018_v58  ;;  %v1042_v10 = vsel %vm825_vm1, %v2677_v51, 0.0 }
 0x1ad   : > { %v843_v2 = vpop.xlane.xlu1 %842  ;;  %v1051_v6 = vsel %vm825_vm1, %v2681_v59, 0.0 }
 0x1ae   : > { %v2686_v4 = vpop.eup %2277  ;;  %v962_v7 = vmul.f32 1.442695, %v926_v61  ;;  %v927_v8 = vsub.f32 %v2561_v3, %v843_v2  ;;  %1052 = vadd.xlane.f32.xlu1 %v1051_v6  ;;  %2287 = vpow2.f32 %v984_v63  ;;  %v2249_v2 = vld [vmem:[%s2730_s23] sm:$0xff]  }
 0x1af   : > { %v864_v9 = vpop.xlane.xlu0 %863  ;;  %v1021_v11 = vsel %vm825_vm1, %v2686_v4, 0.0  ;;  %2129 = vmatprep.subr.bf16.mxu0 %v2249_v2 }
 0x1b0   : > { %2289 = vpow2.f32 %v962_v7  ;;  %v964_v62 = vmul.f32 1.442695, %v927_v8  ;;  %v934_v12 = vsub.f32 %v2557_v1, %v864_v9  ;;  %1043 = vadd.xlane.f32.xlu0 %v1042_v10  ;;  %v2694_v13 = vpop.eup %2279  ;;  %2130 = vmatpush3.bf16.msra.mxu0 %v2249_v2  ;;  %v2256_v2 = vld [vmem:[%s2730_s23 + $0x38] sm:$0xff]  }
 0x1b1   : > { %v867_v14 = vpop.xlane.xlu1 %866  ;;  %v1045_v27 = vsel %vm825_vm1, %v2694_v13, 0.0 }
 0x1b2   : > { %v2696_v48 = vpop.eup %2281  ;;  %v978_v3 = vmul.f32 1.442695, %v934_v12  ;;  %v935_v15 = vsub.f32 %v2565_v5, %v867_v14  ;;  %1022 = vadd.xlane.f32.xlu1 %v1021_v11  ;;  %2291 = vpow2.f32 %v964_v62  ;;  %v2250_v12 = vld [vmem:[%s2730_s23 + $0x8] sm:$0xff]   ;;  %v2251_v14 = vld [vmem:[%s2730_s23 + $0x20] sm:$0xff]  }
 0x1b3   : > { %v882_v18 = vpop.xlane.xlu0 %881  ;;  %v1036_v49 = vsel %vm825_vm1, %v2696_v48, 0.0  ;;  %2131 = vmatprep.subr.bf16.mxu0 %v2250_v12  ;;  %2145 = vmatprep.subr.bf16.mxu1 %v2251_v14 }
 0x1b4   : > { %2293 = vpow2.f32 %v978_v3  ;;  %v980_v52 = vmul.f32 1.442695, %v935_v15  ;;  %v940_v23 = vsub.f32 %v2587_v16, %v882_v18  ;;  %1037 = vadd.xlane.f32.xlu0 %v1036_v49  ;;  %v2702_v1 = vpop.eup %2283  ;;  %2132 = vmatpush3.bf16.msra.mxu0 %v2250_v12 }
 0x1b5   : > { %v885_v53 = vpop.xlane.xlu1 %884  ;;  %v1039_v41 = vsel %vm825_vm1, %v2702_v1, 0.0  ;;  %2146 = vmatpush3.bf16.msra.mxu1 %v2251_v14 }
 0x1b6   : > { %v2706_v50 = vpop.eup %2285  ;;  %v990_v5 = vmul.f32 1.442695, %v940_v23  ;;  %v941_v29 = vsub.f32 %v2595_v20, %v885_v53  ;;  %1046 = vadd.xlane.f32.xlu1 %v1045_v27  ;;  %2295 = vpow2.f32 %v980_v52 }
 0x1b7   : > { %v906_v34 = vpop.xlane.xlu0 %905  ;;  %v1060_v54 = vsel %vm825_vm1, %v2706_v50, 0.0 }
 0x1b8   : > { %2297 = vpow2.f32 %v990_v5  ;;  %v992_v16 = vmul.f32 1.442695, %v941_v29  ;;  %v948_v38 = vsub.f32 %v2593_v19, %v906_v34  ;;  %1061 = vadd.xlane.f32.xlu0 %v1060_v54  ;;  %v2712_v56 = vpop.eup %2287  ;;  %v2252_v5 = vld [vmem:[%s2730_s23 + $0x10] sm:$0xff]   ;;  %v2253_v29 = vld [vmem:[%s2730_s23 + $0x28] sm:$0xff]  }
 0x1b9   : > { %v909_v40 = vpop.xlane.xlu1 %908  ;;  %v1063_v55 = vsel %vm825_vm1, %v2712_v56, 0.0  ;;  %2133 = vmatprep.subr.bf16.mxu0 %v2252_v5  ;;  %2147 = vmatprep.subr.bf16.mxu1 %v2253_v29 }
 0x1ba   : > { %v2716_v57 = vpop.eup %2289  ;;  %v1006_v20 = vmul.f32 1.442695, %v948_v38  ;;  %v949_v43 = vsub.f32 %v2603_v24, %v909_v40  ;;  %1040 = vadd.xlane.f32.xlu1 %v1039_v41  ;;  %2299 = vpow2.f32 %v992_v16  ;;  %2134 = vmatpush3.bf16.msra.mxu0 %v2252_v5 }
 0x1bb   : > { %v876_v44 = vpop.xlane.xlu0 %875  ;;  %v1030_v60 = vsel %vm825_vm1, %v2716_v57, 0.0  ;;  %2148 = vmatpush3.bf16.msra.mxu1 %v2253_v29 }
 0x1bc   : > { %2301 = vpow2.f32 %v1006_v20  ;;  %v1008_v19 = vmul.f32 1.442695, %v949_v43  ;;  %v938_v45 = vsub.f32 %v2589_v17, %v876_v44  ;;  %1031 = vadd.xlane.f32.xlu0 %v1030_v60  ;;  %v2722_v47 = vpop.eup %2291  ;;  %v2254_v44 = vld [vmem:[%s2730_s23 + $0x18] sm:$0xff]   ;;  %v2255_v60 = vld [vmem:[%s2730_s23 + $0x30] sm:$0xff]  }
 0x1bd   : > { %v879_v0 = vpop.xlane.xlu1 %878  ;;  %2135 = vmatprep.subr.bf16.mxu0 %v2254_v44  ;;  %2149 = vmatprep.subr.bf16.mxu1 %v2255_v60 }
 0x1be   : > { %v2732_v24 = vpop.eup %2293  ;;  %v986_v58 = vmul.f32 1.442695, %v938_v45  ;;  %v939_v63 = vsub.f32 %v2599_v22, %v879_v0  ;;  %1064 = vadd.xlane.f32.xlu1 %v1063_v55  ;;  %2303 = vpow2.f32 %v1008_v19  ;;  %v1033_v22 = vsel %vm825_vm1, %v2722_v47, 0.0  ;;  %2136 = vmatpush3.bf16.msra.mxu0 %v2254_v44 }
 0x1bf   : > { %v900_v17 = vpop.xlane.xlu0 %899  ;;  %v1054_v61 = vsel %vm825_vm1, %v2732_v24, 0.0  ;;  %2150 = vmatpush3.bf16.msra.mxu1 %v2255_v60 }
 0x1c0   : > { %2305 = vpow2.f32 %v986_v58  ;;  %v988_v6 = vmul.f32 1.442695, %v939_v63  ;;  %v946_v7 = vsub.f32 %v2597_v21, %v900_v17  ;;  %1055 = vadd.xlane.f32.xlu0 %v1054_v61  ;;  %v2739_v8 = vpop.eup %2295  ;;  %2151 = vmatprep.subr.bf16.mxu1 %v2256_v2 }
 0x1c1   : > { %v903_v9 = vpop.xlane.xlu1 %902  ;;  %v1057_v52 = vsel %vm825_vm1, %v2739_v8, 0.0 }
 0x1c2   : > { %v2743_v10 = vpop.eup %2297  ;;  %v1002_v11 = vmul.f32 1.442695, %v946_v7  ;;  %v947_v62 = vsub.f32 %v2607_v26, %v903_v9  ;;  %1034 = vadd.xlane.f32.xlu1 %v1033_v22  ;;  %2307 = vpow2.f32 %v988_v6 }
 0x1c3   : > { %v894_v3 = vpop.xlane.xlu0 %893  ;;  %v1072_v21 = vsel %vm825_vm1, %v2743_v10, 0.0  ;;  %2152 = vmatpush3.bf16.msra.mxu1 %v2256_v2 }
 0x1c4   : > { %2309 = vpow2.f32 %v1002_v11  ;;  %v1004_v15 = vmul.f32 1.442695, %v947_v62  ;;  %v944_v18 = vsub.f32 %v2611_v28, %v894_v3  ;;  %1073 = vadd.xlane.f32.xlu0 %v1072_v21  ;;  %v2751_v49 = vpop.eup %2299 }
 0x1c5   : > { %v897_v26 = vpop.xlane.xlu1 %896 }
 0x1c6   : > { %v2755_v23 = vpop.eup %2301  ;;  %v998_v53 = vmul.f32 1.442695, %v944_v18  ;;  %v945_v27 = vsub.f32 %v2619_v32, %v897_v26  ;;  %1058 = vadd.xlane.f32.xlu1 %v1057_v52  ;;  %2311 = vpow2.f32 %v1004_v15  ;;  %v1075_v32 = vsel %vm825_vm1, %v2751_v49, 0.0 }
 0x1c7   : > { %v888_v28 = vpop.xlane.xlu0 %887  ;;  %v1096_v34 = vsel %vm825_vm1, %v2755_v23, 0.0 }
 0x1c8   : > { %2313 = vpow2.f32 %v998_v53  ;;  %v1000_v54 = vmul.f32 1.442695, %v945_v27  ;;  %v942_v16 = vsub.f32 %v2615_v30, %v888_v28  ;;  %1097 = vadd.xlane.f32.xlu0 %v1096_v34  ;;  %v2763_v38 = vpop.eup %2303  ;;  %v2257_v34 = vld [vmem:[%s2730_s23 + $0x40] sm:$0xff]  }
 0x1c9   : > { %v891_v40 = vpop.xlane.xlu1 %890  ;;  %2161 = vmatprep.subr.bf16.mxu0 %v2257_v34 }
 0x1ca   : > { %v2767_v41 = vpop.eup %2305  ;;  %v994_v20 = vmul.f32 1.442695, %v942_v16  ;;  %1076 = vadd.xlane.f32.xlu1 %v1075_v32  ;;  %v943_v43 = vsub.f32 %v2625_v35, %v891_v40  ;;  %2315 = vpow2.f32 %v1000_v54  ;;  %v1099_v35 = vsel %vm825_vm1, %v2763_v38, 0.0  ;;  %v2825_v40 = vld [vmem:[%s2730_s23 + $0x60] sm:$0xff]  }
 0x1cb   : > { %v912_v30 = vpop.xlane.xlu0 %911  ;;  %v1066_v19 = vsel %vm825_vm1, %v2767_v41, 0.0  ;;  %2177 = vmatprep.subr.bf16.mxu1 %v2825_v40 }
 0x1cc   : > { %2317 = vpow2.f32 %v994_v20  ;;  %v996_v45 = vmul.f32 1.442695, %v943_v43  ;;  %v950_v0 = vsub.f32 %v2621_v33, %v912_v30  ;;  %1067 = vadd.xlane.f32.xlu0 %v1066_v19  ;;  %v2775_v55 = vpop.eup %2307 }
 0x1cd   : > { %v915_v58 = vpop.xlane.xlu1 %914  ;;  %v1069_v11 = vsel %vm825_vm1, %v2775_v55, 0.0 }
 0x1ce   : > { %v2779_v63 = vpop.eup %2309  ;;  %v1010_v17 = vmul.f32 1.442695, %v950_v0  ;;  %1100 = vadd.xlane.f32.xlu1 %v1099_v35  ;;  %v951_v61 = vsub.f32 %v2629_v37, %v915_v58  ;;  %2319 = vpow2.f32 %v996_v45 }
 0x1cf   : > { %v918_v6 = vpop.xlane.xlu0 %917  ;;  %v1090_v33 = vsel %vm825_vm1, %v2779_v63, 0.0 }
 0x1d0   : > { %2321 = vpow2.f32 %v1010_v17  ;;  %v1012_v7 = vmul.f32 1.442695, %v951_v61  ;;  %v952_v9 = vsub.f32 %v2617_v31, %v918_v6  ;;  %1091 = vadd.xlane.f32.xlu0 %v1090_v33  ;;  %v2786_v22 = vpop.eup %2311 }
 0x1d1   : > { %v921_v37 = vpop.xlane.xlu1 %920  ;;  %v1093_v15 = vsel %vm825_vm1, %v2786_v22, 0.0 }
 0x1d2   : > { %v2790_v62 = vpop.eup %2313  ;;  %v1014_v12 = vmul.f32 1.442695, %v952_v9  ;;  %1070 = vadd.xlane.f32.xlu1 %v1069_v11  ;;  %v953_v14 = vsub.f32 %v2627_v36, %v921_v37  ;;  %2323 = vpow2.f32 %v1012_v7 }
 0x1d3   : > { %v1084_v3 = vsel %vm825_vm1, %v2790_v62, 0.0 }
 0x1d4   : > { %2325 = vpow2.f32 %v1014_v12  ;;  %v1016_v31 = vmul.f32 1.442695, %v953_v14  ;;  %1085 = vadd.xlane.f32.xlu0 %v1084_v3  ;;  %v2795_v21 = vpop.eup %2315 }
 0x1d5   : > { %v1087_v52 = vsel %vm825_vm1, %v2795_v21, 0.0 }
 0x1d6   : > { %v2799_v18 = vpop.eup %2317  ;;  %1094 = vadd.xlane.f32.xlu1 %v1093_v15  ;;  %2327 = vpow2.f32 %v1016_v31 }
 0x1d7   : > { %v1078_v36 = vsel %vm825_vm1, %v2799_v18, 0.0 }
 0x1d8   : > { %1079 = vadd.xlane.f32.xlu0 %v1078_v36  ;;  %v2803_v26 = vpop.eup %2319 }
 0x1d9   : > { %v1081_v29 = vsel %vm825_vm1, %v2803_v26, 0.0 }
 0x1da   : > { %v2807_v53 = vpop.eup %2321  ;;  %1088 = vadd.xlane.f32.xlu1 %v1087_v52 }
 0x1db   : > { %v1102_v27 = vsel %vm825_vm1, %v2807_v53, 0.0 }
 0x1dc   : > { %1103 = vadd.xlane.f32.xlu0 %v1102_v27  ;;  %v2811_v5 = vpop.eup %2323 }
 0x1dd   : > { %v1105_v16 = vsel %vm825_vm1, %v2811_v5, 0.0 }
 0x1de   : > { %v2815_v28 = vpop.eup %2325  ;;  %1082 = vadd.xlane.f32.xlu1 %v1081_v29 }
 0x1df   : > { %v1108_v54 = vsel %vm825_vm1, %v2815_v28, 0.0 }
 0x1e0   : > { %1109 = vadd.xlane.f32.xlu0 %v1108_v54  ;;  %v2822_v32 = vpop.eup %2327 }
 0x1e1   : > { %v1111_v20 = vsel %vm825_vm1, %v2822_v32, 0.0 }
 0x1e2   : > { %1106 = vadd.xlane.f32.xlu1 %v1105_v16 }
 0x1e6   : > { %1112 = vadd.xlane.f32.xlu1 %v1111_v20  ;;  %v2258_v20 = vld [vmem:[%s2730_s23 + $0x48] sm:$0xff]  }
 0x231   : > { %v1026_v43 = vpop.xlane.xlu0 %1025 }
 0x235   : > { %v1050_v44 = vpop.xlane.xlu0 %1049 }
 0x237   : > { %v1029_v60 = vpop.xlane.xlu1 %1028 }
 0x238   : > { %2329 = vrcp.f32 %v1029_v60  ;;  %v2260_v60 = vld [vmem:[%s2730_s23 + $0x50] sm:$0xff]  }
 0x239   : > { %v1020_v30 = vpop.xlane.xlu0 %1019 }
 0x23a   : > { %2331 = vrcp.f32 %v1020_v30  ;;  %v2261_v30 = vld [vmem:[%s2730_s23 + $0x68] sm:$0xff]  }
 0x23b   : > { %v1053_v19 = vpop.xlane.xlu1 %1052  ;;  %2333 = vrcp.f32 %v1026_v43 }
 0x23d   : > { %v1044_v45 = vpop.xlane.xlu0 %1043 }
 0x23f   : > { %v1023_v0 = vpop.xlane.xlu1 %1022 }
 0x240   : > { %2335 = vrcp.f32 %v1023_v0 }
 0x241   : > { %2337 = vrcp.f32 %v1053_v19  ;;  %v1038_v35 = vpop.xlane.xlu0 %1037 }
 0x242   : > { %2339 = vrcp.f32 %v1044_v45  ;;  %v2330_v61 = vpop.eup %2329 }
 0x243   : > { %2341 = vrcp.f32 %v1050_v44  ;;  %v1047_v58 = vpop.xlane.xlu1 %1046  ;;  %v1149_v11 = vmul.f32 %v2330_v61, %v2669_v42 }
 0x244   : > { %2343 = vrcp.f32 %v1047_v58  ;;  %v2332_v6 = vpop.eup %2331 }
 0x245   : > { %v1062_v17 = vpop.xlane.xlu0 %1061  ;;  %v2334_v33 = vpop.eup %2333  ;;  %v1146_v14 = vmul.f32 %v2332_v6, %v2674_v46 }
 0x246   : > { %v1148_v15 = vmul.f32 %v2334_v33, %v2658_v25 }
 0x247   : > { %v1041_v2 = vpop.xlane.xlu1 %1040 }
 0x248   : > { %2345 = vrcp.f32 %v1041_v2  ;;  %v1179_v54 = vpack.c.bf16 %v1149_v11, %v1148_v15  ;;  %v2264_v2 = vld [vmem:[%s2730_s23 + $0x78] sm:$0xff]  }
 0x249   : > { %v1032_v7 = vpop.xlane.xlu0 %1031 }
 0x24a   : > { %v2336_v9 = vpop.eup %2335  ;;  %2347 = vrcp.f32 %v1032_v7 }
 0x24b   : > { %v2338_v37 = vpop.eup %2337  ;;  %v1065_v12 = vpop.xlane.xlu1 %1064  ;;  %v1147_v3 = vmul.f32 %v2336_v9, %v2686_v4  ;;  %2349 = vrcp.f32 %v1038_v35 }
 0x24c   : > { %v2340_v31 = vpop.eup %2339  ;;  %v1157_v16 = vmul.f32 %v2338_v37, %v2681_v59 }
 0x24d   : > { %v2342_v36 = vpop.eup %2341  ;;  %v1056_v52 = vpop.xlane.xlu0 %1055  ;;  %v1178_v27 = vpack.c.bf16 %v1147_v3, %v1146_v14  ;;  %v1154_v46 = vmul.f32 %v2340_v31, %v2677_v51 }
 0x24e   : > { %v2344_v29 = vpop.eup %2343  ;;  %v1156_v4 = vmul.f32 %v2342_v36, %v2664_v39 }
 0x24f   : > { %2137 = vmatprep.mubr.msk.bf16.mxu0 %vm825_vm1, %v1178_v27  ;;  %v1035_v42 = vpop.xlane.xlu1 %1034  ;;  %v1155_v25 = vmul.f32 %v2344_v29, %v2694_v13  ;;  %v2262_v13 = vld [vmem:[%s2730_s23 + $0x58] sm:$0xff]  }
 0x250   : > { %2351 = vrcp.f32 %v1035_v42  ;;  %2138 = vmatmul.mubr.msk.bf16.vlgmr.msra.gmra.mrb[16].mxu0 %vm825_vm1, %v1179_v54  ;;  %v1183_v44 = vpack.c.bf16 %v1157_v16, %v1156_v4 }
 0x251   : > { %2353 = vrcp.f32 %v1065_v12  ;;  %v1074_v43 = vpop.xlane.xlu0 %1073  ;;  %v1182_v59 = vpack.c.bf16 %v1155_v25, %v1154_v46  ;;  %2162 = vmatpush3.bf16.msra.mxu0 %v2257_v34  ;;  %v2263_v34 = vld [vmem:[%s2730_s23 + $0x70] sm:$0xff]  }
 0x252   : > { %2355 = vrcp.f32 %v1056_v52  ;;  %2163 = vmatprep.subr.bf16.mxu0 %v2258_v20  ;;  %v2346_v19 = vpop.eup %2345 }
 0x253   : > { %2357 = vrcp.f32 %v1062_v17  ;;  %2153 = vmatprep.mubr.msk.bf16.mxu1 %vm825_vm1, %v1182_v59  ;;  %v1059_v51 = vpop.xlane.xlu1 %1058  ;;  %v1153_v61 = vmul.f32 %v2346_v19, %v2702_v1 }
 0x254   : > { %2359 = vrcp.f32 %v1059_v51  ;;  %2154 = vmatmul.mubr.msk.bf16.vlgmr.msra.gmra.mrb[16].mxu1 %vm825_vm1, %v1183_v44  ;;  %v2348_v0 = vpop.eup %2347 }
 0x255   : > { %v1098_v39 = vpop.xlane.xlu0 %1097  ;;  %2164 = vmatpush3.bf16.msra.mxu0 %v2258_v20  ;;  %2178 = vmatpush3.bf16.msra.mxu1 %v2825_v40  ;;  %v2350_v35 = vpop.eup %2349  ;;  %v1150_v33 = vmul.f32 %v2348_v0, %v2716_v57 }
 0x256   : > { %2165 = vmatprep.subr.bf16.mxu0 %v2260_v60  ;;  %2179 = vmatprep.subr.bf16.mxu1 %v2261_v30  ;;  %v1152_v11 = vmul.f32 %v2350_v35, %v2696_v48 }
 0x257   : > { %v1077_v45 = vpop.xlane.xlu1 %1076 }
 0x258   : > { %2361 = vrcp.f32 %v1077_v45  ;;  %v1181_v1 = vpack.c.bf16 %v1153_v61, %v1152_v11 }
 0x259   : > { %v1068_v58 = vpop.xlane.xlu0 %1067  ;;  %2166 = vmatpush3.bf16.msra.mxu0 %v2260_v60  ;;  %2180 = vmatpush3.bf16.msra.mxu1 %v2261_v30 }
 0x25a   : > { %v2352_v17 = vpop.eup %2351  ;;  %2167 = vmatprep.subr.bf16.mxu0 %v2262_v13  ;;  %2181 = vmatprep.subr.bf16.mxu1 %v2263_v34  ;;  %2363 = vrcp.f32 %v1068_v58 }
 0x25b   : > { %v2354_v6 = vpop.eup %2353  ;;  %v1101_v40 = vpop.xlane.xlu1 %1100  ;;  %v1151_v7 = vmul.f32 %v2352_v17, %v2722_v47  ;;  %2365 = vrcp.f32 %v1074_v43 }
 0x25c   : > { %v2356_v9 = vpop.eup %2355  ;;  %v1161_v31 = vmul.f32 %v2354_v6, %v2712_v56 }
 0x25d   : > { %v2358_v37 = vpop.eup %2357  ;;  %v1092_v12 = vpop.xlane.xlu0 %1091  ;;  %v1180_v14 = vpack.c.bf16 %v1151_v7, %v1150_v33  ;;  %2168 = vmatpush3.bf16.msra.mxu0 %v2262_v13  ;;  %2182 = vmatpush3.bf16.msra.mxu1 %v2263_v34  ;;  %v1158_v47 = vmul.f32 %v2356_v9, %v2732_v24 }
 0x25e   : > { %v2360_v3 = vpop.eup %2359  ;;  %2183 = vmatprep.subr.bf16.mxu1 %v2264_v2  ;;  %v1160_v15 = vmul.f32 %v2358_v37, %v2706_v50 }
 0x25f   : > { %2141 = vmatprep.mubr.msk.bf16.mxu0 %vm825_vm1, %v1180_v14  ;;  %v1071_v57 = vpop.xlane.xlu1 %1070  ;;  %v1159_v48 = vmul.f32 %v2360_v3, %v2739_v8 }
 0x260   : > { %2367 = vrcp.f32 %v1071_v57  ;;  %2142 = vmatmul.mubr.msk.bf16.gmra.mrb[20].mxu0 %vm825_vm1, %v1181_v1  ;;  %v1185_v56 = vpack.c.bf16 %v1161_v31, %v1160_v15 }
 0x261   : > { %2369 = vrcp.f32 %v1101_v40  ;;  %v1086_v36 = vpop.xlane.xlu0 %1085  ;;  %v1184_v52 = vpack.c.bf16 %v1159_v48, %v1158_v47  ;;  %2184 = vmatpush3.bf16.msra.mxu1 %v2264_v2 }
 0x262   : > { %2371 = vrcp.f32 %v1092_v12  ;;  %v2362_v8 = vpop.eup %2361 }
 0x263   : > { %2373 = vrcp.f32 %v1098_v39  ;;  %2157 = vmatprep.mubr.msk.bf16.mxu1 %vm825_vm1, %v1184_v52  ;;  %v1095_v27 = vpop.xlane.xlu1 %1094  ;;  %v1165_v42 = vmul.f32 %v2362_v8, %v2751_v49 }
 0x264   : > { %2375 = vrcp.f32 %v1095_v27  ;;  %2158 = vmatmul.mubr.msk.bf16.gmra.mrb[20].mxu1 %vm825_vm1, %v1185_v56  ;;  %v2364_v54 = vpop.eup %2363 }
 0x265   : > { %v1080_v24 = vpop.xlane.xlu0 %1079  ;;  %v2366_v16 = vpop.eup %2365  ;;  %v1162_v4 = vmul.f32 %v2364_v54, %v2767_v41 }
 0x266   : > { %v1164_v44 = vmul.f32 %v2366_v16, %v2743_v10 }
 0x267   : > { %v1089_v29 = vpop.xlane.xlu1 %1088 }
 0x268   : > { %2377 = vrcp.f32 %v1089_v29  ;;  %v1187_v39 = vpack.c.bf16 %v1165_v42, %v1164_v44 }
 0x269   : > { %v1104_v50 = vpop.xlane.xlu0 %1103  ;;  %2379 = vrcp.f32 %v1080_v24 }
 0x26a   : > { %v2368_v20 = vpop.eup %2367  ;;  %2381 = vrcp.f32 %v1086_v36 }
 0x26b   : > { %v2370_v46 = vpop.eup %2369  ;;  %v1083_v25 = vpop.xlane.xlu1 %1082  ;;  %v1163_v43 = vmul.f32 %v2368_v20, %v2775_v55 }
 0x26c   : > { %v2372_v59 = vpop.eup %2371  ;;  %2383 = vrcp.f32 %v1083_v25  ;;  %v1173_v13 = vmul.f32 %v2370_v46, %v2763_v38 }
 0x26d   : > { %v2374_v60 = vpop.eup %2373  ;;  %v1186_v30 = vpack.c.bf16 %v1163_v43, %v1162_v4  ;;  %2385 = vrcp.f32 %v1104_v50  ;;  %v1110_v49 = vpop.xlane.xlu0 %1109  ;;  %v1170_v19 = vmul.f32 %v2372_v59, %v2779_v63 }
 0x26e   : > { %v2376_v51 = vpop.eup %2375  ;;  %v1172_v55 = vmul.f32 %v2374_v60, %v2755_v23 }
 0x26f   : > { %2169 = vmatprep.mubr.msk.bf16.mxu0 %vm825_vm1, %v1186_v30  ;;  %v1107_v34 = vpop.xlane.xlu1 %1106  ;;  %v1171_v41 = vmul.f32 %v2376_v51, %v2786_v22 }
 0x270   : > { %2387 = vrcp.f32 %v1107_v34  ;;  %2170 = vmatmul.mubr.msk.bf16.vlgmr.msra.gmra.mrb[24].mxu0 %vm825_vm1, %v1187_v39  ;;  %v1191_v45 = vpack.c.bf16 %v1173_v13, %v1172_v55 }
 0x271   : > { %v1190_v10 = vpack.c.bf16 %v1171_v41, %v1170_v19  ;;  %2389 = vrcp.f32 %v1110_v49 }
 0x272   : > { %v2378_v0 = vpop.eup %2377 }
 0x273   : > { %2185 = vmatprep.mubr.msk.bf16.mxu1 %vm825_vm1, %v1190_v10  ;;  %v1113_v38 = vpop.xlane.xlu1 %1112  ;;  %v2380_v35 = vpop.eup %2379  ;;  %v1169_v22 = vmul.f32 %v2378_v0, %v2795_v21 }
 0x274   : > { %2391 = vrcp.f32 %v1113_v38  ;;  %2186 = vmatmul.mubr.msk.bf16.vlgmr.msra.gmra.mrb[24].mxu1 %vm825_vm1, %v1191_v45  ;;  %v2382_v58 = vpop.eup %2381  ;;  %v1166_v23 = vmul.f32 %v2380_v35, %v2799_v18 }
 0x275   : > { %v1168_v2 = vmul.f32 %v2382_v58, %v2790_v62 }
 0x276   : > { %v2384_v63 = vpop.eup %2383 }
 0x277   : > { %v1167_v17 = vmul.f32 %v2384_v63, %v2803_v26  ;;  %v2386_v61 = vpop.eup %2385  ;;  %v1189_v33 = vpack.c.bf16 %v1169_v22, %v1168_v2 }
 0x278   : > { %v1174_v7 = vmul.f32 %v2386_v61, %v2807_v53 }
 0x279   : > { %v1188_v6 = vpack.c.bf16 %v1167_v17, %v1166_v23 }
 0x27a   : > { %v2388_v40 = vpop.eup %2387 }
 0x27b   : > { %2173 = vmatprep.mubr.msk.bf16.mxu0 %vm825_vm1, %v1188_v6  ;;  %v1175_v9 = vmul.f32 %v2388_v40, %v2811_v5  ;;  %v2390_v11 = vpop.eup %2389 }
 0x27c   : > { %2174 = vmatmul.mubr.msk.bf16.gmra.mrb[28].mxu0 %vm825_vm1, %v1189_v33  ;;  %v1176_v26 = vmul.f32 %v2390_v11, %v2815_v28 }
 0x27d   : > { %v1192_v21 = vpack.c.bf16 %v1175_v9, %v1174_v7 }
 0x27e   : > { %v2392_v18 = vpop.eup %2391 }
 0x27f   : > { %2189 = vmatprep.mubr.msk.bf16.mxu1 %vm825_vm1, %v1192_v21  ;;  %v1177_v62 = vmul.f32 %v2392_v18, %v2822_v32 }
 0x281   : > { %v1193_v37 = vpack.c.bf16 %v1177_v62, %v1176_v26 }
 0x283   : > { %2190 = vmatmul.mubr.msk.bf16.gmra.mrb[28].mxu1 %vm825_vm1, %v1193_v37 }
 0x323   : > { %v2139_v53 = vpop.f32.mrb[16].mxu0 }
 0x324   : > { %v1971_v5 = vpack.c.bf16 %v2139_v53, %v2139_v53  ;;  %v1264_v12 = vpop.f32.mrb[17].mxu0 }
 0x325   : > { %v1969_v28 = vpack.c.bf16 %v1264_v12, %v1264_v12  ;;  %v2140_v14 = vpop.f32.mrb[18].mxu0 }
 0x326   : > { %1729 = vst.msk [vmem:[%s2889_s26 + $0x8] sm:$0xf] %vm1726_vm2, %v1971_v5  ;;  %v1972_v32 = vpack.c.bf16 %v2140_v14, %v2140_v14  ;;  %v1267_v3 = vpop.f32.mrb[19].mxu0 }
 0x327   : > { %1727 = vst.msk [vmem:[%s2889_s26] sm:$0xf] %vm1726_vm2, %v1969_v28  ;;  %v1970_v1 = vpack.c.bf16 %v1267_v3, %v1267_v3  ;;  %v2155_v31 = vpop.f32.mrb[16].mxu1 }
 0x328   : > { %1730 = vst.msk [vmem:[%s2889_s26 + $0xc] sm:$0xf] %vm1726_vm2, %v1972_v32  ;;  %v1979_v57 = vpack.c.bf16 %v2155_v31, %v2155_v31  ;;  %v1365_v47 = vpop.f32.mrb[17].mxu1 }
 0x329   : > { %1728 = vst.msk [vmem:[%s2889_s26 + $0x4] sm:$0xf] %vm1726_vm2, %v1970_v1  ;;  %v1977_v48 = vpack.c.bf16 %v1365_v47, %v1365_v47  ;;  %v2156_v15 = vpop.f32.mrb[18].mxu1 }
 0x32a   : > { %1737 = vst.msk [vmem:[%s2889_s26 + $0x28] sm:$0xf] %vm1726_vm2, %v1979_v57  ;;  %v1980_v36 = vpack.c.bf16 %v2156_v15, %v2156_v15  ;;  %v1368_v52 = vpop.f32.mrb[19].mxu1 }
 0x32b   : > { %1735 = vst.msk [vmem:[%s2889_s26 + $0x20] sm:$0xf] %vm1726_vm2, %v1977_v48  ;;  %v1978_v56 = vpack.c.bf16 %v1368_v52, %v1368_v52 }
 0x32c   : > { %1738 = vst.msk [vmem:[%s2889_s26 + $0x2c] sm:$0xf] %vm1726_vm2, %v1980_v36 }
 0x32d   : > { %1736 = vst.msk [vmem:[%s2889_s26 + $0x24] sm:$0xf] %vm1726_vm2, %v1978_v56 }
 0x333   : > { %v2143_v27 = vpop.f32.mrb[20].mxu0 }
 0x334   : > { %v1975_v24 = vpack.c.bf16 %v2143_v27, %v2143_v27  ;;  %v1280_v8 = vpop.f32.mrb[21].mxu0 }
 0x335   : > { %v1973_v29 = vpack.c.bf16 %v1280_v8, %v1280_v8  ;;  %v2144_v54 = vpop.f32.mrb[22].mxu0 }
 0x336   : > { %1733 = vst.msk [vmem:[%s2889_s26 + $0x18] sm:$0xf] %vm1726_vm2, %v1975_v24  ;;  %v1976_v16 = vpack.c.bf16 %v2144_v54, %v2144_v54  ;;  %v1283_v50 = vpop.f32.mrb[23].mxu0 }
 0x337   : > { %1731 = vst.msk [vmem:[%s2889_s26 + $0x10] sm:$0xf] %vm1726_vm2, %v1973_v29  ;;  %v1974_v20 = vpack.c.bf16 %v1283_v50, %v1283_v50  ;;  %v2159_v42 = vpop.f32.mrb[20].mxu1 }
 0x338   : > { %1734 = vst.msk [vmem:[%s2889_s26 + $0x1c] sm:$0xf] %vm1726_vm2, %v1976_v16  ;;  %v1983_v46 = vpack.c.bf16 %v2159_v42, %v2159_v42  ;;  %v1381_v25 = vpop.f32.mrb[21].mxu1 }
 0x339   : > { %1732 = vst.msk [vmem:[%s2889_s26 + $0x14] sm:$0xf] %vm1726_vm2, %v1974_v20  ;;  %v1981_v4 = vpack.c.bf16 %v1381_v25, %v1381_v25  ;;  %v2160_v43 = vpop.f32.mrb[22].mxu1 }
 0x33a   : > { %1741 = vst.msk [vmem:[%s2889_s26 + $0x38] sm:$0xf] %vm1726_vm2, %v1983_v46  ;;  %v1984_v59 = vpack.c.bf16 %v2160_v43, %v2160_v43  ;;  %v1384_v44 = vpop.f32.mrb[23].mxu1 }
 0x33b   : > { %1739 = vst.msk [vmem:[%s2889_s26 + $0x30] sm:$0xf] %vm1726_vm2, %v1981_v4  ;;  %v1982_v60 = vpack.c.bf16 %v1384_v44, %v1384_v44 }
 0x33c   : > { %1742 = vst.msk [vmem:[%s2889_s26 + $0x3c] sm:$0xf] %vm1726_vm2, %v1984_v59 }
 0x33d   : > { %1740 = vst.msk [vmem:[%s2889_s26 + $0x34] sm:$0xf] %vm1726_vm2, %v1982_v60 }
 0x343   : > { %v2171_v30 = vpop.f32.mrb[24].mxu0 }
 0x344   : > { %v1987_v51 = vpack.c.bf16 %v2171_v30, %v2171_v30  ;;  %v1466_v39 = vpop.f32.mrb[25].mxu0 }
 0x345   : > { %v1985_v13 = vpack.c.bf16 %v1466_v39, %v1466_v39  ;;  %v2172_v49 = vpop.f32.mrb[26].mxu0 }
 0x346   : > { %1745 = vst.msk [vmem:[%s2889_s26 + $0x48] sm:$0xf] %vm1726_vm2, %v1987_v51  ;;  %v1988_v34 = vpack.c.bf16 %v2172_v49, %v2172_v49  ;;  %v1469_v19 = vpop.f32.mrb[27].mxu0 }
 0x347   : > { %1743 = vst.msk [vmem:[%s2889_s26 + $0x40] sm:$0xf] %vm1726_vm2, %v1985_v13  ;;  %v1986_v41 = vpack.c.bf16 %v1469_v19, %v1469_v19  ;;  %v2187_v55 = vpop.f32.mrb[24].mxu1 }
 0x348   : > { %1746 = vst.msk [vmem:[%s2889_s26 + $0x4c] sm:$0xf] %vm1726_vm2, %v1988_v34  ;;  %v1995_v10 = vpack.c.bf16 %v2187_v55, %v2187_v55  ;;  %v1567_v45 = vpop.f32.mrb[25].mxu1 }
 0x349   : > { %1744 = vst.msk [vmem:[%s2889_s26 + $0x44] sm:$0xf] %vm1726_vm2, %v1986_v41  ;;  %v1993_v0 = vpack.c.bf16 %v1567_v45, %v1567_v45  ;;  %v2188_v38 = vpop.f32.mrb[26].mxu1 }
 0x34a   : > { %1753 = vst.msk [vmem:[%s2889_s26 + $0x68] sm:$0xf] %vm1726_vm2, %v1995_v10  ;;  %v1996_v35 = vpack.c.bf16 %v2188_v38, %v2188_v38  ;;  %v1570_v58 = vpop.f32.mrb[27].mxu1 }
 0x34b   : > { %1751 = vst.msk [vmem:[%s2889_s26 + $0x60] sm:$0xf] %vm1726_vm2, %v1993_v0  ;;  %v1994_v63 = vpack.c.bf16 %v1570_v58, %v1570_v58 }
 0x34c   : > { %1754 = vst.msk [vmem:[%s2889_s26 + $0x6c] sm:$0xf] %vm1726_vm2, %v1996_v35 }
 0x34d   : > { %1752 = vst.msk [vmem:[%s2889_s26 + $0x64] sm:$0xf] %vm1726_vm2, %v1994_v63 }
 0x34f   : > { %v2175_v22 = vpop.f32.mrb[28].mxu0 }
 0x350   : > { %v1991_v23 = vpack.c.bf16 %v2175_v22, %v2175_v22  ;;  %v1482_v17 = vpop.f32.mrb[29].mxu0 }
 0x351   : > { %v1989_v61 = vpack.c.bf16 %v1482_v17, %v1482_v17  ;;  %v2176_v2 = vpop.f32.mrb[30].mxu0 }
 0x352   : > { %1749 = vst.msk [vmem:[%s2889_s26 + $0x58] sm:$0xf] %vm1726_vm2, %v1991_v23  ;;  %v1992_v6 = vpack.c.bf16 %v2176_v2, %v2176_v2  ;;  %v1485_v40 = vpop.f32.mrb[31].mxu0 }
 0x353   : > { %1747 = vst.msk [vmem:[%s2889_s26 + $0x50] sm:$0xf] %vm1726_vm2, %v1989_v61  ;;  %v1990_v33 = vpack.c.bf16 %v1485_v40, %v1485_v40 }
 0x354   : > { %1750 = vst.msk [vmem:[%s2889_s26 + $0x5c] sm:$0xf] %vm1726_vm2, %v1992_v6 }
 0x355   : > { %1748 = vst.msk [vmem:[%s2889_s26 + $0x54] sm:$0xf] %vm1726_vm2, %v1990_v33 }
 0x356   : > { %v2191_v7 = vpop.f32.mrb[28].mxu1 }
 0x357   : > { %v1999_v9 = vpack.c.bf16 %v2191_v7, %v2191_v7  ;;  %v1583_v11 = vpop.f32.mrb[29].mxu1 }
 0x358   : > { %v1997_v21 = vpack.c.bf16 %v1583_v11, %v1583_v11  ;;  %v2192_v18 = vpop.f32.mrb[30].mxu1 }
 0x359   : > { %1757 = vst.msk [vmem:[%s2889_s26 + $0x78] sm:$0xf] %vm1726_vm2, %v1999_v9  ;;  %v2000_v26 = vpack.c.bf16 %v2192_v18, %v2192_v18  ;;  %v1586_v62 = vpop.f32.mrb[31].mxu1 }
 0x35a   : > { %1755 = vst.msk [vmem:[%s2889_s26 + $0x70] sm:$0xf] %vm1726_vm2, %v1997_v21  ;;  %v1998_v37 = vpack.c.bf16 %v1586_v62, %v1586_v62 }
 0x35b   : > { %1758 = vst.msk [vmem:[%s2889_s26 + $0x7c] sm:$0xf] %vm1726_vm2, %v2000_v26 }
 0x35c   : > { %1756 = vst.msk [vmem:[%s2889_s26 + $0x74] sm:$0xf] %vm1726_vm2, %v1998_v37 }
 0x35d PF: > { %s13_s12 = sadd.s32 1, %s2399_s12  }
 0x35e   : > { %p10_p4 = scmp.ge.s32.totalorder %s13_s12, 4  }
 0x360   :  { %12 = sbr.rel (!%p10_p4) target bundleno = 1 (0x1), region = 68 }

// kernel: transformer_forward.15
= control target key start
LH: loop header
LB: loop body
LE: loop exit
PB: predicated region body
PF: predicated region fallthrough
CT: control target
= control target key end

     0   :  { %vm798_vm0 = vcmask 785408   ;;  %vm1275_vm1 = vcmask 781312   ;;  %s2309_s1 = inlined_call_operand.vmem [shape: bf16[864,96], index: 1, kind: input, shape index: {}]   ;;  %s2310_s0 = inlined_call_operand.vmem [shape: bf16[128,864], index: 0, kind: input, shape index: {}]   ;;  %s2311_s2 = inlined_call_operand.vmem [shape: f32[1,96], index: 2, kind: input, shape index: {}]   ;;  %s2312_s3 = inlined_call_operand.vmem [shape: bf16[128,96], index: 3, kind: output, shape index: {}]  }
   0x1   :  { %v1681_v0 = vld [vmem:[%s2309_s1 + $0x40] sm:$0xff]   ;;  %v1685_v4 = vld [vmem:[%s2309_s1 + $0x48] sm:$0xff]   ;;  %v1689_v8 = vld [vmem:[%s2309_s1 + $0x50] sm:$0xff]  }
   0x2   :  { %v1682_v1 = vld [vmem:[%s2309_s1] sm:$0xff]   ;;  %1447 = vmatprep.subr.bf16.mxu0 %v1681_v0  ;;  %v1686_v5 = vld [vmem:[%s2309_s1 + $0x8] sm:$0xff]   ;;  %v1690_v9 = vld [vmem:[%s2309_s1 + $0x10] sm:$0xff]  }
   0x3   :  { %v1683_v2 = vld [vmem:[%s2309_s1 + $0xc0] sm:$0xff]   ;;  %1448 = vmatpush3.bf16.msra.mxu0 %v1682_v1  ;;  %v1687_v6 = vld [vmem:[%s2309_s1 + $0xc8] sm:$0xff]   ;;  %v1691_v10 = vld [vmem:[%s2309_s1 + $0xd0] sm:$0xff]  }
   0x4   :  { %v1684_v3 = vld [vmem:[%s2309_s1 + $0x80] sm:$0xff]   ;;  %1511 = vmatprep.subr.bf16.mxu1 %v1683_v2  ;;  %1449 = vmatprep.subr.bf16.mxu0 %v1685_v4  ;;  %v1688_v7 = vld [vmem:[%s2309_s1 + $0x88] sm:$0xff]   ;;  %v1692_v11 = vld [vmem:[%s2309_s1 + $0x90] sm:$0xff]  }
   0x5   :  { %1512 = vmatpush3.bf16.msra.mxu1 %v1684_v3  ;;  %v1693_v12 = vld [vmem:[%s2309_s1 + $0x58] sm:$0xff]   ;;  %v1697_v16 = vld [vmem:[%s2309_s1 + $0x60] sm:$0xff]   ;;  %v1701_v20 = vld [vmem:[%s2309_s1 + $0x68] sm:$0xff]  }
   0x6   :  { %1513 = vmatprep.subr.bf16.mxu1 %v1687_v6  ;;  %v1694_v13 = vld [vmem:[%s2309_s1 + $0x18] sm:$0xff]   ;;  %v1698_v17 = vld [vmem:[%s2309_s1 + $0x20] sm:$0xff]   ;;  %v1702_v21 = vld [vmem:[%s2309_s1 + $0x28] sm:$0xff]  }
   0x7   :  { %1450 = vmatpush3.bf16.msra.mxu0 %v1686_v5  ;;  %v1695_v14 = vld [vmem:[%s2309_s1 + $0xd8] sm:$0xff]   ;;  %v1699_v18 = vld [vmem:[%s2309_s1 + $0xe0] sm:$0xff]   ;;  %v1703_v22 = vld [vmem:[%s2309_s1 + $0xe8] sm:$0xff]  }
   0x8   :  { %1451 = vmatprep.subr.bf16.mxu0 %v1689_v8  ;;  %v1696_v15 = vld [vmem:[%s2309_s1 + $0x98] sm:$0xff]   ;;  %v1700_v19 = vld [vmem:[%s2309_s1 + $0xa0] sm:$0xff]   ;;  %v1704_v23 = vld [vmem:[%s2309_s1 + $0xa8] sm:$0xff]  }
   0x9   :  { %1514 = vmatpush3.bf16.msra.mxu1 %v1688_v7  ;;  %v1705_v24 = vld [vmem:[%s2309_s1 + $0x70] sm:$0xff]   ;;  %v1709_v28 = vld [vmem:[%s2309_s1 + $0x78] sm:$0xff]   ;;  %v1714_v32 = vld [vmem:[%s2310_s0 + $0x4] ss:$28 sps:$4 sm:$0xff]  }
   0xa   :  { %1515 = vmatprep.subr.bf16.mxu1 %v1691_v10  ;;  %v1706_v25 = vld [vmem:[%s2309_s1 + $0x30] sm:$0xff]   ;;  %v1710_v29 = vld [vmem:[%s2309_s1 + $0x38] sm:$0xff]   ;;  %855 = vmatprep.mubr.bf16.mxu0 %v1714_v32  ;;  %v1716_v34 = vld [vmem:[%s2309_s1 + $0x140] sm:$0xff]  }
   0xb   :  { %1452 = vmatpush3.bf16.msra.mxu0 %v1690_v9  ;;  %v1707_v26 = vld [vmem:[%s2309_s1 + $0xf0] sm:$0xff]   ;;  %v1711_v30 = vld [vmem:[%s2309_s1 + $0xf8] sm:$0xff]   ;;  %v1717_v35 = vld [vmem:[%s2310_s0 + $0x8] ss:$28 sps:$4 sm:$0xff]  }
   0xc   :  { %1453 = vmatprep.subr.bf16.mxu0 %v1693_v12  ;;  %v1708_v27 = vld [vmem:[%s2309_s1 + $0xb0] sm:$0xff]   ;;  %v1712_v31 = vld [vmem:[%s2310_s0] ss:$28 sps:$4 sm:$0xff]   ;;  %v1719_v36 = vld [vmem:[%s2310_s0 + $0xc] ss:$28 sps:$4 sm:$0xff]  }
   0xd   :  { %1516 = vmatpush3.bf16.msra.mxu1 %v1692_v11  ;;  %v1715_v33 = vld [vmem:[%s2309_s1 + $0xb8] sm:$0xff]   ;;  %v1720_v37 = vld [vmem:[%s2309_s1 + $0x100] sm:$0xff]   ;;  %952 = vmatprep.mubr.bf16.mxu1 %v1719_v36  ;;  %v1724_v40 = vld [vmem:[%s2309_s1 + $0x148] sm:$0xff]  }
   0xe   :  { %1517 = vmatprep.subr.bf16.mxu1 %v1695_v14  ;;  %v1721_v38 = vld [vmem:[%s2310_s0 + $0x3c] ss:$28 sps:$4 sm:$0xff]   ;;  %v1725_v41 = vld [vmem:[%s2310_s0 + $0x44] ss:$28 sps:$4 sm:$0xff]   ;;  %v1727_v42 = vld [vmem:[%s2309_s1 + $0x108] sm:$0xff]  }
   0xf   :  { %1454 = vmatpush3.bf16.msra.mxu0 %v1694_v13  ;;  %v1723_v39 = vld [vmem:[%s2310_s0 + $0x38] ss:$28 sps:$4 sm:$0xff]   ;;  %v1728_v43 = vld [vmem:[%s2310_s0 + $0x40] ss:$28 sps:$4 sm:$0xff]   ;;  %v1731_v48 = vld [vmem:[%s2310_s0 + $0x70] ss:$28 sps:$4 sm:$0xff]  }
  0x10   :  { %1455 = vmatprep.subr.bf16.mxu0 %v1697_v16  ;;  %v1729_v44 = vld [vmem:[%s2310_s0 + $0x74] ss:$28 sps:$4 sm:$0xff]   ;;  %v1733_v46 = vld [vmem:[%s2310_s0 + $0x7c] ss:$28 sps:$4 sm:$0xff]   ;;  %v1737_v49 = vld [vmem:[%s2310_s0 + $0xac] ss:$28 sps:$4 sm:$0xff]  }
  0x11   :  { %1518 = vmatpush3.bf16.msra.mxu1 %v1696_v15  ;;  %v1732_v45 = vld [vmem:[%s2309_s1 + $0x150] sm:$0xff]   ;;  %v1740_v50 = vld [vmem:[%s2309_s1 + $0x158] sm:$0xff]   ;;  %v1748_v54 = vld [vmem:[%s2309_s1 + $0x160] sm:$0xff]  }
  0x12   :  { %1519 = vmatprep.subr.bf16.mxu1 %v1699_v18  ;;  %v1735_v47 = vld [vmem:[%s2309_s1 + $0x110] sm:$0xff]   ;;  %v1743_v52 = vld [vmem:[%s2309_s1 + $0x118] sm:$0xff]   ;;  %v1739_v55 = vld [vmem:[%s2310_s0 + $0xa8] ss:$28 sps:$4 sm:$0xff]  }
  0x13   :  { %1456 = vmatpush3.bf16.msra.mxu0 %v1698_v17  ;;  %v1736_v51 = vld [vmem:[%s2310_s0 + $0x78] ss:$28 sps:$4 sm:$0xff]   ;;  %v1751_v56 = vld [vmem:[%s2309_s1 + $0x120] sm:$0xff]   ;;  %v1744_v59 = vld [vmem:[%s2310_s0 + $0xb0] ss:$28 sps:$4 sm:$0xff]  }
  0x14   :  { %1457 = vmatprep.subr.bf16.mxu0 %v1701_v20  ;;  %v1741_v53 = vld [vmem:[%s2310_s0 + $0xb4] ss:$28 sps:$4 sm:$0xff]   ;;  %v1745_v57 = vld [vmem:[%s2310_s0 + $0xe4] ss:$28 sps:$4 sm:$0xff]   ;;  %v1757_v60 = vld [vmem:[%s2309_s1 + $0x168] sm:$0xff]  }
  0x15   :  { %1520 = vmatpush3.bf16.msra.mxu1 %v1700_v19  ;;  %v1753_v58 = vld [vmem:[%s2309_s1 + $0x180] sm:$0xff]   ;;  %v1749_v61 = vld [vmem:[%s2310_s0 + $0xec] ss:$28 sps:$4 sm:$0xff]   ;;  %v1754_v1 = vld [vmem:[%s2310_s0 + $0x11c] ss:$28 sps:$4 sm:$0xff]  }
  0x16   :  { %1521 = vmatprep.subr.bf16.mxu1 %v1703_v22  ;;  %v1760_v62 = vld [vmem:[%s2309_s1 + $0x128] sm:$0xff]   ;;  %v1747_v63 = vld [vmem:[%s2310_s0 + $0xe0] ss:$28 sps:$4 sm:$0xff]   ;;  %v1766_v2 = vld [vmem:[%s2309_s1 + $0x170] sm:$0xff]  }
  0x17   :  { %1458 = vmatpush3.bf16.msra.mxu0 %v1702_v21  ;;  %v1764_v0 = vld [vmem:[%s2309_s1 + $0x188] sm:$0xff]   ;;  %v1758_v4 = vld [vmem:[%s2310_s0 + $0x124] ss:$28 sps:$4 sm:$0xff]   ;;  %v1769_v5 = vld [vmem:[%s2309_s1 + $0x130] sm:$0xff]  }
  0x18   :  { %1459 = vmatprep.subr.bf16.mxu0 %v1705_v24  ;;  %v1752_v3 = vld [vmem:[%s2310_s0 + $0xe8] ss:$28 sps:$4 sm:$0xff]   ;;  %v1771_v6 = vld [vmem:[%s2309_s1 + $0x190] sm:$0xff]   ;;  %v1775_v8 = vld [vmem:[%s2309_s1 + $0x178] sm:$0xff]  }
  0x19   :  { %1522 = vmatpush3.bf16.msra.mxu1 %v1704_v23  ;;  %v1756_v7 = vld [vmem:[%s2310_s0 + $0x118] ss:$28 sps:$4 sm:$0xff]   ;;  %v1761_v12 = vld [vmem:[%s2310_s0 + $0x120] ss:$28 sps:$4 sm:$0xff]   ;;  %v1785_v15 = vld [vmem:[%s2309_s1 + $0x1a8] sm:$0xff]  }
  0x1a   :  { %1523 = vmatprep.subr.bf16.mxu1 %v1707_v26  ;;  %v1776_v9 = vld [vmem:[%s2309_s1 + $0x198] sm:$0xff]   ;;  %v1762_v10 = vld [vmem:[%s2310_s0 + $0x154] ss:$28 sps:$4 sm:$0xff]   ;;  %v1781_v13 = vld [vmem:[%s2309_s1 + $0x1a0] sm:$0xff]  }
  0x1b   :  { %1460 = vmatpush3.bf16.msra.mxu0 %v1706_v25  ;;  %v1779_v11 = vld [vmem:[%s2309_s1 + $0x138] sm:$0xff]   ;;  %v1765_v16 = vld [vmem:[%s2310_s0 + $0x150] ss:$28 sps:$4 sm:$0xff]   ;;  %v1774_v20 = vld [vmem:[%s2310_s0 + $0x188] ss:$28 sps:$4 sm:$0xff]  }
  0x1c   :  { %1461 = vmatprep.subr.bf16.mxu0 %v1709_v28  ;;  %v1767_v14 = vld [vmem:[%s2310_s0 + $0x15c] ss:$28 sps:$4 sm:$0xff]   ;;  %v1772_v17 = vld [vmem:[%s2310_s0 + $0x18c] ss:$28 sps:$4 sm:$0xff]   ;;  %v1777_v19 = vld [vmem:[%s2310_s0 + $0x194] ss:$28 sps:$4 sm:$0xff]  }
  0x1d   :  { %1524 = vmatpush3.bf16.msra.mxu1 %v1708_v27  ;;  %v1770_v18 = vld [vmem:[%s2310_s0 + $0x158] ss:$28 sps:$4 sm:$0xff]   ;;  %v1780_v22 = vld [vmem:[%s2310_s0 + $0x190] ss:$28 sps:$4 sm:$0xff]   ;;  %v1794_v27 = vld [vmem:[%s2310_s0 + $0x88] ss:$28 sps:$4 sm:$0xff]  }
  0x1e   :  { %1525 = vmatprep.subr.bf16.mxu1 %v1711_v30  ;;  %v1784_v21 = vld [vmem:[%s2310_s0 + $0x14] ss:$28 sps:$4 sm:$0xff]   ;;  %v1788_v25 = vld [vmem:[%s2310_s0 + $0x4c] ss:$28 sps:$4 sm:$0xff]   ;;  %v1795_v30 = vld [vmem:[%s2310_s0 + $0xc0] ss:$28 sps:$4 sm:$0xff]  }
  0x1f   :  { %1462 = vmatpush3.bf16.msra.mxu0 %v1710_v29  ;;  %v1786_v23 = vld [vmem:[%s2310_s0 + $0x18] ss:$28 sps:$4 sm:$0xff]   ;;  %v1782_v24 = vld [vmem:[%s2310_s0 + $0x10] ss:$28 sps:$4 sm:$0xff]   ;;  %v1790_v28 = vld [vmem:[%s2310_s0 + $0x48] ss:$28 sps:$4 sm:$0xff]  }
  0x20   :  { %1575 = vmatprep.subr.bf16.mxu0 %v1716_v34  ;;  %v1787_v26 = vld [vmem:[%s2310_s0 + $0x50] ss:$28 sps:$4 sm:$0xff]   ;;  %v1791_v29 = vld [vmem:[%s2310_s0 + $0x84] ss:$28 sps:$4 sm:$0xff]   ;;  %v1798_v36 = vld [vmem:[%s2310_s0 + $0xb8] ss:$28 sps:$4 sm:$0xff]  }
  0x21   :  { %1526 = vmatpush3.bf16.msra.mxu1 %v1715_v33  ;;  %v1793_v32 = vld [vmem:[%s2310_s0 + $0x80] ss:$28 sps:$4 sm:$0xff]   ;;  %v1803_v34 = vld [vmem:[%s2310_s0 + $0x130] ss:$28 sps:$4 sm:$0xff]  }
  0x22   :  { %856 = vmatmul.mubr.bf16.vlgmr.msra.gmra.mrb[0].mxu0 %v1712_v31  ;;  %1653 = vmatprep.subr.bf16.mxu1 %v1753_v58  ;;  %v1802_v31 = vld [vmem:[%s2310_s0 + $0xf8] ss:$28 sps:$4 sm:$0xff]  }
  0x23   :  { %1576 = vmatpush3.bf16.msra.mxu0 %v1720_v37  ;;  %863 = vmatprep.mubr.bf16.mxu0 %v1721_v38  ;;  %v1796_v33 = vld [vmem:[%s2310_s0 + $0xbc] ss:$28 sps:$4 sm:$0xff]   ;;  %v1799_v37 = vld [vmem:[%s2310_s0 + $0xf4] ss:$28 sps:$4 sm:$0xff]  }
  0x24   :  { %953 = vmatmul.mubr.bf16.vlgmr.msra.gmra.mrb[0].mxu1 %v1717_v35  ;;  %1577 = vmatprep.subr.bf16.mxu0 %v1724_v40  ;;  %v1810_v35 = vld [vmem:[%s2310_s0 + $0x168] ss:$28 sps:$4 sm:$0xff]   ;;  %v1811_v38 = vld [vmem:[%s2310_s0 + $0x1a0] ss:$28 sps:$4 sm:$0xff]  }
  0x25   :  { %960 = vmatprep.mubr.bf16.mxu1 %v1725_v41  ;;  %1654 = vmatpush3.bf16.msra.mxu1 %v1753_v58  ;;  %v1804_v40 = vld [vmem:[%s2310_s0 + $0x12c] ss:$28 sps:$4 sm:$0xff]  }
  0x26   :  { %1655 = vmatprep.subr.bf16.mxu1 %v1764_v0  ;;  %v1806_v41 = vld [vmem:[%s2310_s0 + $0x128] ss:$28 sps:$4 sm:$0xff]  }
  0x27   :  { %1578 = vmatpush3.bf16.msra.mxu0 %v1727_v42  ;;  %v1807_v42 = vld [vmem:[%s2310_s0 + $0x164] ss:$28 sps:$4 sm:$0xff]  }
  0x28   :  { %1579 = vmatprep.subr.bf16.mxu0 %v1732_v45  ;;  %v1814_v45 = vld [vmem:[%s2310_s0 + $0x198] ss:$28 sps:$4 sm:$0xff]  }
  0x29   :  { %1656 = vmatpush3.bf16.msra.mxu1 %v1764_v0 }
  0x2a   :  { %864 = vmatmul.mubr.bf16.gmra.mrb[4].mxu0 %v1723_v39  ;;  %1657 = vmatprep.subr.bf16.mxu1 %v1771_v6  ;;  %v1801_v39 = vld [vmem:[%s2310_s0 + $0xf0] ss:$28 sps:$4 sm:$0xff]  }
  0x2b   :  { %871 = vmatprep.mubr.bf16.mxu0 %v1729_v44  ;;  %1580 = vmatpush3.bf16.msra.mxu0 %v1735_v47  ;;  %v1812_v44 = vld [vmem:[%s2310_s0 + $0x19c] ss:$28 sps:$4 sm:$0xff]   ;;  %v2176_v47 = vld [vmem:[%s2311_s2] ss:$0 sm:$0xff] }
  0x2c   :  { %961 = vmatmul.mubr.bf16.gmra.mrb[4].mxu1 %v1728_v43  ;;  %1581 = vmatprep.subr.bf16.mxu0 %v1740_v50  ;;  %v1809_v43 = vld [vmem:[%s2310_s0 + $0x160] ss:$28 sps:$4 sm:$0xff]  }
  0x2d   :  { %968 = vmatprep.mubr.bf16.mxu1 %v1733_v46  ;;  %1658 = vmatpush3.bf16.msra.mxu1 %v1771_v6 }
  0x2e   :  { %1659 = vmatprep.subr.bf16.mxu1 %v1776_v9 }
  0x2f   :  { %1582 = vmatpush3.bf16.msra.mxu0 %v1743_v52 }
  0x30   :  { %1583 = vmatprep.subr.bf16.mxu0 %v1748_v54 }
  0x31   :  { %1660 = vmatpush3.bf16.msra.mxu1 %v1776_v9 }
  0x32   :  { %872 = vmatmul.mubr.bf16.gmra.mrb[8].mxu0 %v1731_v48  ;;  %1661 = vmatprep.subr.bf16.mxu1 %v1781_v13 }
  0x33   :  { %879 = vmatprep.mubr.bf16.mxu0 %v1737_v49  ;;  %1584 = vmatpush3.bf16.msra.mxu0 %v1751_v56 }
  0x34   :  { %969 = vmatmul.mubr.bf16.gmra.mrb[8].mxu1 %v1736_v51  ;;  %1585 = vmatprep.subr.bf16.mxu0 %v1757_v60 }
  0x35   :  { %976 = vmatprep.mubr.bf16.mxu1 %v1741_v53  ;;  %1662 = vmatpush3.bf16.msra.mxu1 %v1781_v13 }
  0x36   :  { %1663 = vmatprep.subr.bf16.mxu1 %v1785_v15 }
  0x37   :  { %1586 = vmatpush3.bf16.msra.mxu0 %v1760_v62 }
  0x38   :  { %1587 = vmatprep.subr.bf16.mxu0 %v1766_v2 }
  0x39   :  { %1664 = vmatpush3.bf16.msra.mxu1 %v1785_v15 }
  0x3a   :  { %880 = vmatmul.mubr.bf16.gmra.mrb[12].mxu0 %v1739_v55 }
  0x3b   :  { %887 = vmatprep.mubr.bf16.mxu0 %v1745_v57  ;;  %1588 = vmatpush3.bf16.msra.mxu0 %v1769_v5 }
  0x3c   :  { %977 = vmatmul.mubr.bf16.gmra.mrb[12].mxu1 %v1744_v59  ;;  %1589 = vmatprep.subr.bf16.mxu0 %v1775_v8 }
  0x3d   :  { %984 = vmatprep.mubr.bf16.mxu1 %v1749_v61 }
  0x3f   :  { %1590 = vmatpush3.bf16.msra.mxu0 %v1779_v11 }
  0x42   :  { %888 = vmatmul.mubr.bf16.gmra.mrb[16].mxu0 %v1747_v63 }
  0x43   :  { %895 = vmatprep.mubr.bf16.mxu0 %v1754_v1 }
  0x44   :  { %985 = vmatmul.mubr.bf16.gmra.mrb[16].mxu1 %v1752_v3 }
  0x45   :  { %992 = vmatprep.mubr.bf16.mxu1 %v1758_v4 }
  0x4a   :  { %896 = vmatmul.mubr.bf16.gmra.mrb[20].mxu0 %v1756_v7 }
  0x4b   :  { %903 = vmatprep.mubr.bf16.mxu0 %v1762_v10 }
  0x4c   :  { %993 = vmatmul.mubr.bf16.gmra.mrb[20].mxu1 %v1761_v12 }
  0x4d   :  { %1000 = vmatprep.mubr.bf16.mxu1 %v1767_v14 }
  0x52   :  { %904 = vmatmul.mubr.bf16.gmra.mrb[24].mxu0 %v1765_v16 }
  0x53   :  { %911 = vmatprep.mubr.bf16.mxu0 %v1772_v17 }
  0x54   :  { %1001 = vmatmul.mubr.bf16.gmra.mrb[24].mxu1 %v1770_v18 }
  0x55   :  { %1008 = vmatprep.mubr.bf16.mxu1 %v1777_v19 }
  0x5a   :  { %912 = vmatmul.mubr.bf16.gmra.mrb[28].mxu0 %v1774_v20 }
  0x5b   :  { %1049 = vmatprep.mubr.bf16.mxu0 %v1784_v21 }
  0x5c   :  { %1009 = vmatmul.mubr.bf16.gmra.mrb[28].mxu1 %v1780_v22 }
  0x5d   :  { %1665 = vmatprep.mubr.msk.bf16.mxu1 %vm798_vm0, %v1786_v23 }
  0x62   :  { %1050 = vmatmul.mubr.bf16.vlgmr.msra.gmra.mrb[32].mxu0 %v1782_v24 }
  0x63   :  { %1057 = vmatprep.mubr.bf16.mxu0 %v1788_v25 }
  0x64   :  { %1666 = vmatmul.mubr.msk.bf16.vlgmr.msra.gmra.mrb[32].mxu1 %vm798_vm0, %v1787_v26 }
  0x65   :  { %1669 = vmatprep.mubr.msk.bf16.mxu1 %vm798_vm0, %v1794_v27 }
  0x6a   :  { %1058 = vmatmul.mubr.bf16.gmra.mrb[36].mxu0 %v1790_v28 }
  0x6b   :  { %1065 = vmatprep.mubr.bf16.mxu0 %v1791_v29 }
  0x6c   :  { %1670 = vmatmul.mubr.msk.bf16.gmra.mrb[36].mxu1 %vm798_vm0, %v1795_v30 }
  0x6d   :  { %1673 = vmatprep.mubr.msk.bf16.mxu1 %vm798_vm0, %v1802_v31 }
  0x72   :  { %1066 = vmatmul.mubr.bf16.gmra.mrb[40].mxu0 %v1793_v32 }
  0x73   :  { %1073 = vmatprep.mubr.bf16.mxu0 %v1796_v33 }
  0x74   :  { %1674 = vmatmul.mubr.msk.bf16.gmra.mrb[40].mxu1 %vm798_vm0, %v1803_v34 }
  0x75   :  { %1677 = vmatprep.mubr.msk.bf16.mxu1 %vm798_vm0, %v1810_v35 }
  0x7a   :  { %1074 = vmatmul.mubr.bf16.gmra.mrb[44].mxu0 %v1798_v36 }
  0x7b   :  { %1081 = vmatprep.mubr.bf16.mxu0 %v1799_v37 }
  0x7c   :  { %1678 = vmatmul.mubr.msk.bf16.gmra.mrb[44].mxu1 %vm798_vm0, %v1811_v38 }
  0x82   :  { %1082 = vmatmul.mubr.bf16.gmra.mrb[48].mxu0 %v1801_v39 }
  0x83   :  { %1089 = vmatprep.mubr.bf16.mxu0 %v1804_v40 }
  0x8a   :  { %1090 = vmatmul.mubr.bf16.gmra.mrb[52].mxu0 %v1806_v41 }
  0x8b   :  { %1097 = vmatprep.mubr.bf16.mxu0 %v1807_v42 }
  0x92   :  { %1098 = vmatmul.mubr.bf16.gmra.mrb[56].mxu0 %v1809_v43 }
  0x93   :  { %1105 = vmatprep.mubr.bf16.mxu0 %v1812_v44 }
  0x9a   :  { %1106 = vmatmul.mubr.bf16.gmra.mrb[60].mxu0 %v1814_v45 }
  0xf5   :  { %v1463_v46 = vpop.f32.mrb[0].mxu0 }
  0xf6   :  { %v1464_v48 = vpop.f32.mrb[1].mxu0 }
  0xf7   :  { %v1465_v49 = vadd.f32 %v1464_v48, %v1463_v46  ;;  %v1466_v50 = vpop.f32.mrb[2].mxu0  ;;  %v1527_v51 = vpop.f32.mrb[0].mxu1 }
  0xf8   :  { %v1467_v52 = vpop.f32.mrb[3].mxu0  ;;  %v1528_v55 = vpop.f32.mrb[1].mxu1 }
  0xf9   :  { %v858_v53 = vadd.f32 %v1465_v49, %v2176_v47  ;;  %v1468_v54 = vadd.f32 %v1467_v52, %v1466_v50  ;;  %v1529_v56 = vadd.f32 %v1528_v55, %v1527_v51  ;;  %v1530_v57 = vpop.f32.mrb[2].mxu1 }
  0xfa   :  { %v1531_v59 = vpop.f32.mrb[3].mxu1 }
  0xfb   :  { %v861_v58 = vadd.f32 %v1468_v54, %v2176_v47  ;;  %v2180_v60 = vadd.f32 %v1529_v56, %v858_v53  ;;  %v1532_v61 = vadd.f32 %v1531_v59, %v1530_v57 }
  0xfd   :  { %v1469_v62 = vpop.f32.mrb[4].mxu0  ;;  %v2182_v63 = vadd.f32 %v1532_v61, %v861_v58 }
  0xfe   :  { %v1470_v0 = vpop.f32.mrb[5].mxu0 }
  0xff   :  { %v1471_v1 = vadd.f32 %v1470_v0, %v1469_v62  ;;  %v1472_v2 = vpop.f32.mrb[6].mxu0  ;;  %v1533_v3 = vpop.f32.mrb[4].mxu1 }
 0x100   :  { %v1473_v4 = vpop.f32.mrb[7].mxu0  ;;  %v1534_v7 = vpop.f32.mrb[5].mxu1 }
 0x101   :  { %v866_v5 = vadd.f32 %v1471_v1, %v2176_v47  ;;  %v1474_v6 = vadd.f32 %v1473_v4, %v1472_v2  ;;  %v1535_v8 = vadd.f32 %v1534_v7, %v1533_v3  ;;  %v1536_v9 = vpop.f32.mrb[6].mxu1 }
 0x102   :  { %v1537_v11 = vpop.f32.mrb[7].mxu1 }
 0x103   :  { %v869_v10 = vadd.f32 %v1474_v6, %v2176_v47  ;;  %v2186_v12 = vadd.f32 %v1535_v8, %v866_v5  ;;  %v1538_v13 = vadd.f32 %v1537_v11, %v1536_v9 }
 0x105   :  { %v1475_v14 = vpop.f32.mrb[8].mxu0  ;;  %v2188_v15 = vadd.f32 %v1538_v13, %v869_v10 }
 0x106   :  { %v1476_v16 = vpop.f32.mrb[9].mxu0 }
 0x107   :  { %v1477_v17 = vadd.f32 %v1476_v16, %v1475_v14  ;;  %v1478_v18 = vpop.f32.mrb[10].mxu0  ;;  %v1539_v19 = vpop.f32.mrb[8].mxu1 }
 0x108   :  { %v1479_v20 = vpop.f32.mrb[11].mxu0  ;;  %v1540_v23 = vpop.f32.mrb[9].mxu1 }
 0x109   :  { %v874_v21 = vadd.f32 %v1477_v17, %v2176_v47  ;;  %v1480_v22 = vadd.f32 %v1479_v20, %v1478_v18  ;;  %v1541_v24 = vadd.f32 %v1540_v23, %v1539_v19  ;;  %v1542_v25 = vpop.f32.mrb[10].mxu1 }
 0x10a   :  { %v1543_v27 = vpop.f32.mrb[11].mxu1 }
 0x10b   :  { %v877_v26 = vadd.f32 %v1480_v22, %v2176_v47  ;;  %v2192_v28 = vadd.f32 %v1541_v24, %v874_v21  ;;  %v1544_v29 = vadd.f32 %v1543_v27, %v1542_v25 }
 0x10d   :  { %v1481_v30 = vpop.f32.mrb[12].mxu0  ;;  %v2194_v31 = vadd.f32 %v1544_v29, %v877_v26 }
 0x10e   :  { %v1482_v32 = vpop.f32.mrb[13].mxu0 }
 0x10f   :  { %v1483_v33 = vadd.f32 %v1482_v32, %v1481_v30  ;;  %v1484_v34 = vpop.f32.mrb[14].mxu0  ;;  %v1545_v35 = vpop.f32.mrb[12].mxu1 }
 0x110   :  { %v1485_v36 = vpop.f32.mrb[15].mxu0  ;;  %v1546_v39 = vpop.f32.mrb[13].mxu1 }
 0x111   :  { %v882_v37 = vadd.f32 %v1483_v33, %v2176_v47  ;;  %v1486_v38 = vadd.f32 %v1485_v36, %v1484_v34  ;;  %v1547_v40 = vadd.f32 %v1546_v39, %v1545_v35  ;;  %v1548_v41 = vpop.f32.mrb[14].mxu1 }
 0x112   :  { %v1549_v43 = vpop.f32.mrb[15].mxu1 }
 0x113   :  { %v885_v42 = vadd.f32 %v1486_v38, %v2176_v47  ;;  %v2198_v44 = vadd.f32 %v1547_v40, %v882_v37  ;;  %v1550_v45 = vadd.f32 %v1549_v43, %v1548_v41 }
 0x115   :  { %v1487_v46 = vpop.f32.mrb[16].mxu0  ;;  %v2200_v48 = vadd.f32 %v1550_v45, %v885_v42 }
 0x116   :  { %v1488_v49 = vpop.f32.mrb[17].mxu0 }
 0x117   :  { %v1489_v50 = vadd.f32 %v1488_v49, %v1487_v46  ;;  %v1490_v51 = vpop.f32.mrb[18].mxu0  ;;  %v1551_v52 = vpop.f32.mrb[16].mxu1 }
 0x118   :  { %v1491_v53 = vpop.f32.mrb[19].mxu0  ;;  %v1552_v56 = vpop.f32.mrb[17].mxu1 }
 0x119   :  { %v890_v54 = vadd.f32 %v1489_v50, %v2176_v47  ;;  %v1492_v55 = vadd.f32 %v1491_v53, %v1490_v51  ;;  %v1553_v57 = vadd.f32 %v1552_v56, %v1551_v52  ;;  %v1554_v58 = vpop.f32.mrb[18].mxu1 }
 0x11a   :  { %v1555_v61 = vpop.f32.mrb[19].mxu1 }
 0x11b   :  { %v893_v59 = vadd.f32 %v1492_v55, %v2176_v47  ;;  %v2204_v62 = vadd.f32 %v1553_v57, %v890_v54  ;;  %v1556_v0 = vadd.f32 %v1555_v61, %v1554_v58 }
 0x11d   :  { %v1493_v1 = vpop.f32.mrb[20].mxu0  ;;  %v2206_v2 = vadd.f32 %v1556_v0, %v893_v59 }
 0x11e   :  { %v1494_v3 = vpop.f32.mrb[21].mxu0 }
 0x11f   :  { %v1495_v4 = vadd.f32 %v1494_v3, %v1493_v1  ;;  %v1496_v5 = vpop.f32.mrb[22].mxu0  ;;  %v1557_v6 = vpop.f32.mrb[20].mxu1 }
 0x120   :  { %v1497_v7 = vpop.f32.mrb[23].mxu0  ;;  %v1558_v10 = vpop.f32.mrb[21].mxu1 }
 0x121   :  { %v898_v8 = vadd.f32 %v1495_v4, %v2176_v47  ;;  %v1498_v9 = vadd.f32 %v1497_v7, %v1496_v5  ;;  %v1559_v11 = vadd.f32 %v1558_v10, %v1557_v6  ;;  %v1560_v13 = vpop.f32.mrb[22].mxu1 }
 0x122   :  { %v1561_v16 = vpop.f32.mrb[23].mxu1 }
 0x123   :  { %v901_v14 = vadd.f32 %v1498_v9, %v2176_v47  ;;  %v2210_v17 = vadd.f32 %v1559_v11, %v898_v8  ;;  %v1562_v18 = vadd.f32 %v1561_v16, %v1560_v13 }
 0x125   :  { %v1499_v19 = vpop.f32.mrb[24].mxu0  ;;  %v2212_v20 = vadd.f32 %v1562_v18, %v901_v14 }
 0x126   :  { %v1500_v21 = vpop.f32.mrb[25].mxu0 }
 0x127   :  { %v1501_v22 = vadd.f32 %v1500_v21, %v1499_v19  ;;  %v1502_v23 = vpop.f32.mrb[26].mxu0  ;;  %v1563_v24 = vpop.f32.mrb[24].mxu1 }
 0x128   :  { %v1503_v25 = vpop.f32.mrb[27].mxu0  ;;  %v1564_v29 = vpop.f32.mrb[25].mxu1 }
 0x129   :  { %v906_v26 = vadd.f32 %v1501_v22, %v2176_v47  ;;  %v1504_v27 = vadd.f32 %v1503_v25, %v1502_v23  ;;  %v1565_v30 = vadd.f32 %v1564_v29, %v1563_v24  ;;  %v1566_v32 = vpop.f32.mrb[26].mxu1 }
 0x12a   :  { %v1567_v34 = vpop.f32.mrb[27].mxu1 }
 0x12b   :  { %v909_v33 = vadd.f32 %v1504_v27, %v2176_v47  ;;  %v2216_v35 = vadd.f32 %v1565_v30, %v906_v26  ;;  %v1568_v36 = vadd.f32 %v1567_v34, %v1566_v32 }
 0x12d   :  { %v1505_v37 = vpop.f32.mrb[28].mxu0  ;;  %v2218_v38 = vadd.f32 %v1568_v36, %v909_v33 }
 0x12e   :  { %v1506_v39 = vpop.f32.mrb[29].mxu0 }
 0x12f   :  { %v1507_v40 = vadd.f32 %v1506_v39, %v1505_v37  ;;  %v1508_v41 = vpop.f32.mrb[30].mxu0  ;;  %v1569_v42 = vpop.f32.mrb[28].mxu1 }
 0x130   :  { %v1509_v43 = vpop.f32.mrb[31].mxu0  ;;  %v1570_v49 = vpop.f32.mrb[29].mxu1 }
 0x131   :  { %v914_v45 = vadd.f32 %v1507_v40, %v2176_v47  ;;  %v1510_v46 = vadd.f32 %v1509_v43, %v1508_v41  ;;  %v1571_v50 = vadd.f32 %v1570_v49, %v1569_v42  ;;  %v1572_v51 = vpop.f32.mrb[30].mxu1 }
 0x132   :  { %v1573_v53 = vpop.f32.mrb[31].mxu1 }
 0x133   :  { %v917_v52 = vadd.f32 %v1510_v46, %v2176_v47  ;;  %v2222_v54 = vadd.f32 %v1571_v50, %v914_v45  ;;  %v1574_v55 = vadd.f32 %v1573_v53, %v1572_v51 }
 0x135   :  { %v1591_v56 = vpop.f32.mrb[32].mxu0  ;;  %v2224_v57 = vadd.f32 %v1574_v55, %v917_v52 }
 0x136   :  { %v1592_v58 = vpop.f32.mrb[33].mxu0 }
 0x137   :  { %v1593_v59 = vadd.f32 %v1592_v58, %v1591_v56  ;;  %v1594_v61 = vpop.f32.mrb[34].mxu0  ;;  %v1667_v1 = vpop.f32.mrb[32].mxu1 }
 0x138   :  { %v1595_v0 = vpop.f32.mrb[35].mxu0  ;;  %v1148_v5 = vpop.f32.mrb[33].mxu1 }
 0x139   :  { %v1596_v3 = vadd.f32 %v1595_v0, %v1594_v61  ;;  %v1052_v4 = vadd.f32 %v1593_v59, %v2180_v60  ;;  %v1668_v6 = vpop.f32.mrb[34].mxu1 }
 0x13a   :  { %v1151_v8 = vpop.f32.mrb[35].mxu1 }
 0x13b   :  { %v1149_v7 = vadd.f32 %v1148_v5, %v1052_v4  ;;  %v1055_v47 = vadd.f32 %v1596_v3, %v2182_v63 }
 0x13d   :  { %v1431_v9 = vpack.c.bf16 %v1149_v7, %v1149_v7  ;;  %v1152_v10 = vadd.f32 %v1151_v8, %v1055_v47  ;;  %v1597_v11 = vpop.f32.mrb[36].mxu0 }
 0x13e   :  { %v1598_v13 = vpop.f32.mrb[37].mxu0 }
 0x13f   :  { %1276 = vst.msk [vmem:[%s2312_s3] sm:$0xf] %vm1275_vm1, %v1431_v9  ;;  %v1432_v14 = vpack.c.bf16 %v1152_v10, %v1152_v10  ;;  %v1599_v16 = vadd.f32 %v1598_v13, %v1597_v11  ;;  %v1600_v18 = vpop.f32.mrb[38].mxu0  ;;  %v1671_v19 = vpop.f32.mrb[36].mxu1 }
 0x140   :  { %v1601_v60 = vpop.f32.mrb[39].mxu0  ;;  %v1164_v22 = vpop.f32.mrb[37].mxu1 }
 0x141   :  { %1277 = vst.msk [vmem:[%s2312_s3 + $0x4] sm:$0xf] %vm1275_vm1, %v1432_v14  ;;  %v1060_v63 = vadd.f32 %v1599_v16, %v2186_v12  ;;  %v1602_v21 = vadd.f32 %v1601_v60, %v1600_v18  ;;  %v1672_v23 = vpop.f32.mrb[38].mxu1 }
 0x142   :  { %v1167_v26 = vpop.f32.mrb[39].mxu1 }
 0x143   :  { %v1157_v24 = vadd.f32 %v1667_v1, %v1060_v63  ;;  %v1063_v25 = vadd.f32 %v1602_v21, %v2188_v15 }
 0x145   :  { %v1433_v27 = vpack.c.bf16 %v1157_v24, %v1157_v24  ;;  %v1160_v29 = vadd.f32 %v1668_v6, %v1063_v25  ;;  %v1603_v30 = vpop.f32.mrb[40].mxu0 }
 0x146   :  { %v1604_v32 = vpop.f32.mrb[41].mxu0 }
 0x147   :  { %1278 = vst.msk [vmem:[%s2312_s3 + $0x8] sm:$0xf] %vm1275_vm1, %v1433_v27  ;;  %v1434_v33 = vpack.c.bf16 %v1160_v29, %v1160_v29  ;;  %v1605_v34 = vadd.f32 %v1604_v32, %v1603_v30  ;;  %v1606_v36 = vpop.f32.mrb[42].mxu0  ;;  %v1675_v37 = vpop.f32.mrb[40].mxu1 }
 0x148   :  { %v1607_v12 = vpop.f32.mrb[43].mxu0  ;;  %v1180_v40 = vpop.f32.mrb[41].mxu1 }
 0x149   :  { %1279 = vst.msk [vmem:[%s2312_s3 + $0xc] sm:$0xf] %vm1275_vm1, %v1434_v33  ;;  %v1608_v15 = vadd.f32 %v1607_v12, %v1606_v36  ;;  %v1068_v39 = vadd.f32 %v1605_v34, %v2192_v28  ;;  %v1676_v41 = vpop.f32.mrb[42].mxu1 }
 0x14a   :  { %v1183_v45 = vpop.f32.mrb[43].mxu1 }
 0x14b   :  { %v1165_v42 = vadd.f32 %v1164_v22, %v1068_v39  ;;  %v1071_v43 = vadd.f32 %v1608_v15, %v2194_v31 }
 0x14d   :  { %v1435_v46 = vpack.c.bf16 %v1165_v42, %v1165_v42  ;;  %v1168_v49 = vadd.f32 %v1167_v26, %v1071_v43  ;;  %v1609_v50 = vpop.f32.mrb[44].mxu0 }
 0x14e   :  { %v1610_v51 = vpop.f32.mrb[45].mxu0 }
 0x14f   :  { %1280 = vst.msk [vmem:[%s2312_s3 + $0x10] sm:$0xf] %vm1275_vm1, %v1435_v46  ;;  %v1436_v52 = vpack.c.bf16 %v1168_v49, %v1168_v49  ;;  %v1611_v53 = vadd.f32 %v1610_v51, %v1609_v50  ;;  %v1612_v55 = vpop.f32.mrb[46].mxu0  ;;  %v2252_v28 = vpop.f32.mrb[44].mxu1 }
 0x150   :  { %v1613_v56 = vpop.f32.mrb[47].mxu0  ;;  %v1196_v59 = vpop.f32.mrb[45].mxu1 }
 0x151   :  { %1281 = vst.msk [vmem:[%s2312_s3 + $0x14] sm:$0xf] %vm1275_vm1, %v1436_v52  ;;  %v1076_v31 = vadd.f32 %v1611_v53, %v2198_v44  ;;  %v1614_v58 = vadd.f32 %v1613_v56, %v1612_v55  ;;  %v1680_v61 = vpop.f32.mrb[46].mxu1 }
 0x152   :  { %v1199_v3 = vpop.f32.mrb[47].mxu1 }
 0x153   :  { %v1173_v0 = vadd.f32 %v1671_v19, %v1076_v31  ;;  %v1079_v1 = vadd.f32 %v1614_v58, %v2200_v48 }
 0x155   :  { %v1437_v4 = vpack.c.bf16 %v1173_v0, %v1173_v0  ;;  %v1176_v5 = vadd.f32 %v1672_v23, %v1079_v1  ;;  %v1615_v6 = vpop.f32.mrb[48].mxu0 }
 0x156   :  { %v1616_v7 = vpop.f32.mrb[49].mxu0 }
 0x157   :  { %1282 = vst.msk [vmem:[%s2312_s3 + $0x18] sm:$0xf] %vm1275_vm1, %v1437_v4  ;;  %v1438_v47 = vpack.c.bf16 %v1176_v5, %v1176_v5  ;;  %v1617_v8 = vadd.f32 %v1616_v7, %v1615_v6  ;;  %v1618_v9 = vpop.f32.mrb[50].mxu0 }
 0x158   :  { %v1619_v44 = vpop.f32.mrb[51].mxu0 }
 0x159   :  { %1283 = vst.msk [vmem:[%s2312_s3 + $0x1c] sm:$0xf] %vm1275_vm1, %v1438_v47  ;;  %v1620_v48 = vadd.f32 %v1619_v44, %v1618_v9  ;;  %v1084_v10 = vadd.f32 %v1617_v8, %v2204_v62 }
 0x15b   :  { %v1181_v11 = vadd.f32 %v1180_v40, %v1084_v10  ;;  %v1087_v13 = vadd.f32 %v1620_v48, %v2206_v2 }
 0x15d   :  { %v1439_v14 = vpack.c.bf16 %v1181_v11, %v1181_v11  ;;  %v1184_v16 = vadd.f32 %v1183_v45, %v1087_v13  ;;  %v1621_v18 = vpop.f32.mrb[52].mxu0 }
 0x15e   :  { %v1622_v60 = vpop.f32.mrb[53].mxu0 }
 0x15f   :  { %1284 = vst.msk [vmem:[%s2312_s3 + $0x20] sm:$0xf] %vm1275_vm1, %v1439_v14  ;;  %v1440_v19 = vpack.c.bf16 %v1184_v16, %v1184_v16  ;;  %v1623_v63 = vadd.f32 %v1622_v60, %v1621_v18  ;;  %v1624_v21 = vpop.f32.mrb[54].mxu0 }
 0x160   :  { %v1625_v22 = vpop.f32.mrb[55].mxu0 }
 0x161   :  { %1285 = vst.msk [vmem:[%s2312_s3 + $0x24] sm:$0xf] %vm1275_vm1, %v1440_v19  ;;  %v1092_v62 = vadd.f32 %v1623_v63, %v2210_v17  ;;  %v1626_v2 = vadd.f32 %v1625_v22, %v1624_v21 }
 0x163   :  { %v1189_v23 = vadd.f32 %v1675_v37, %v1092_v62  ;;  %v1095_v24 = vadd.f32 %v1626_v2, %v2212_v20 }
 0x165   :  { %v1441_v25 = vpack.c.bf16 %v1189_v23, %v1189_v23  ;;  %v1192_v26 = vadd.f32 %v1676_v41, %v1095_v24  ;;  %v1627_v27 = vpop.f32.mrb[56].mxu0 }
 0x166   :  { %v1628_v29 = vpop.f32.mrb[57].mxu0 }
 0x167   :  { %1286 = vst.msk [vmem:[%s2312_s3 + $0x28] sm:$0xf] %vm1275_vm1, %v1441_v25  ;;  %v1442_v30 = vpack.c.bf16 %v1192_v26, %v1192_v26  ;;  %v1629_v32 = vadd.f32 %v1628_v29, %v1627_v27  ;;  %v1630_v33 = vpop.f32.mrb[58].mxu0 }
 0x168   :  { %v1631_v34 = vpop.f32.mrb[59].mxu0 }
 0x169   :  { %1287 = vst.msk [vmem:[%s2312_s3 + $0x2c] sm:$0xf] %vm1275_vm1, %v1442_v30  ;;  %v1632_v17 = vadd.f32 %v1631_v34, %v1630_v33  ;;  %v1100_v20 = vadd.f32 %v1629_v32, %v2216_v35 }
 0x16b   :  { %v1197_v36 = vadd.f32 %v1196_v59, %v1100_v20  ;;  %v1103_v12 = vadd.f32 %v1632_v17, %v2218_v38 }
 0x16d   :  { %v1443_v37 = vpack.c.bf16 %v1197_v36, %v1197_v36  ;;  %v1200_v15 = vadd.f32 %v1199_v3, %v1103_v12  ;;  %v1633_v39 = vpop.f32.mrb[60].mxu0 }
 0x16e   :  { %v1634_v40 = vpop.f32.mrb[61].mxu0 }
 0x16f   :  { %1288 = vst.msk [vmem:[%s2312_s3 + $0x30] sm:$0xf] %vm1275_vm1, %v1443_v37  ;;  %v1444_v41 = vpack.c.bf16 %v1200_v15, %v1200_v15  ;;  %v1635_v42 = vadd.f32 %v1634_v40, %v1633_v39  ;;  %v1636_v43 = vpop.f32.mrb[62].mxu0 }
 0x170   :  { %v1637_v45 = vpop.f32.mrb[63].mxu0 }
 0x171   :  { %1289 = vst.msk [vmem:[%s2312_s3 + $0x34] sm:$0xf] %vm1275_vm1, %v1444_v41  ;;  %v1108_v35 = vadd.f32 %v1635_v42, %v2222_v54  ;;  %v1638_v38 = vadd.f32 %v1637_v45, %v1636_v43 }
 0x173   :  { %v1205_v46 = vadd.f32 %v2252_v28, %v1108_v35  ;;  %v1111_v49 = vadd.f32 %v1638_v38, %v2224_v57 }
 0x175   :  { %v1445_v50 = vpack.c.bf16 %v1205_v46, %v1205_v46  ;;  %v1208_v51 = vadd.f32 %v1680_v61, %v1111_v49 }
 0x177   :  { %1290 = vst.msk [vmem:[%s2312_s3 + $0x38] sm:$0xf] %vm1275_vm1, %v1445_v50  ;;  %v1446_v52 = vpack.c.bf16 %v1208_v51, %v1208_v51 }
 0x179   :  { %1291 = vst.msk [vmem:[%s2312_s3 + $0x3c] sm:$0xf] %vm1275_vm1, %v1446_v52 }

// kernel: transformer_forward.18
= control target key start
LH: loop header
LB: loop body
LE: loop exit
PB: predicated region body
PF: predicated region fallthrough
CT: control target
= control target key end

     0   :  { %vm37_vm0 = vcmask 261120   ;;  %vm541_vm2 = vcmask 523264   ;;  %s1123_s0 = inlined_call_operand.vmem [shape: f32[128,32], index: 0, kind: input, shape index: {}]   ;;  %s1124_s3 = inlined_call_operand.vmem [shape: bf16[32,64], index: 3, kind: input, shape index: {}]   ;;  %s1125_s1 = inlined_call_operand.vmem [shape: f32[1,32], index: 1, kind: input, shape index: {}]   ;;  %s1126_s2 = inlined_call_operand.vmem [shape: f32[1,32], index: 2, kind: input, shape index: {}]   ;;  %s1127_s4 = inlined_call_operand.vmem [shape: f32[1,64], index: 4, kind: input, shape index: {}]   ;;  %s1128_s5 = inlined_call_operand.vmem [shape: f32[128,64], index: 5, kind: output, shape index: {}]  }
   0x1   :  { %v21_v0 = vld [vmem:[%s1123_s0] sm:$0xff]  ;;  %v22_v2 = vld [vmem:[%s1123_s0 + $0x8] sm:$0xff]  ;;  %v23_v8 = vld [vmem:[%s1123_s0 + $0x10] sm:$0xff] }
   0x2   :  { %v29_v1 = vld [vmem:[%s1123_s0 + $0x40] sm:$0xff]  ;;  %v38_v3 = vsel %vm37_vm0, %v21_v0, 0.0  ;;  %v30_v5 = vld [vmem:[%s1123_s0 + $0x48] sm:$0xff]  ;;  %v41_v6 = vsel %vm37_vm0, %v22_v2, 0.0  ;;  %v24_v9 = vld [vmem:[%s1123_s0 + $0x18] sm:$0xff]  ;;  %v44_v10 = vsel %vm37_vm0, %v23_v8, 0.0 }
   0x3   :  { %v62_v4 = vsel %vm37_vm0, %v29_v1, 0.0  ;;  %39 = vadd.xlane.f32.xlu0 %v38_v3  ;;  %v65_v7 = vsel %vm37_vm0, %v30_v5, 0.0  ;;  %v47_v11 = vsel %vm37_vm0, %v24_v9, 0.0  ;;  %v748_v12 = vld [vmem:[%s1123_s0 + $0x50] sm:$0xff]  ;;  %v753_v13 = vld [vmem:[%s1123_s0 + $0x58] sm:$0xff]  ;;  %v762_v16 = vld [vmem:[%s1123_s0 + $0x20] sm:$0xff] }
   0x4   :  { %63 = vadd.xlane.f32.xlu1 %v62_v4  ;;  %v68_v14 = vsel %vm37_vm0, %v748_v12, 0.0  ;;  %v71_v15 = vsel %vm37_vm0, %v753_v13, 0.0  ;;  %v767_v17 = vld [vmem:[%s1123_s0 + $0x28] sm:$0xff]  ;;  %v50_v18 = vsel %vm37_vm0, %v762_v16, 0.0  ;;  %v776_v20 = vld [vmem:[%s1123_s0 + $0x60] sm:$0xff]  ;;  %v790_v24 = vld [vmem:[%s1123_s0 + $0x30] sm:$0xff] }
   0x5   :  { %v53_v19 = vsel %vm37_vm0, %v767_v17, 0.0  ;;  %v781_v21 = vld [vmem:[%s1123_s0 + $0x68] sm:$0xff]  ;;  %v74_v22 = vsel %vm37_vm0, %v776_v20, 0.0  ;;  %v795_v25 = vld [vmem:[%s1123_s0 + $0x38] sm:$0xff]  ;;  %v56_v26 = vsel %vm37_vm0, %v790_v24, 0.0  ;;  %v804_v28 = vld [vmem:[%s1123_s0 + $0x70] sm:$0xff] }
   0x6   :  { %v77_v23 = vsel %vm37_vm0, %v781_v21, 0.0  ;;  %v59_v27 = vsel %vm37_vm0, %v795_v25, 0.0  ;;  %v809_v29 = vld [vmem:[%s1123_s0 + $0x78] sm:$0xff]  ;;  %v80_v30 = vsel %vm37_vm0, %v804_v28, 0.0 }
   0x7   :  { %42 = vadd.xlane.f32.xlu0 %v41_v6  ;;  %v83_v31 = vsel %vm37_vm0, %v809_v29, 0.0 }
   0x8   :  { %66 = vadd.xlane.f32.xlu1 %v65_v7 }
   0xb   :  { %45 = vadd.xlane.f32.xlu0 %v44_v10 }
   0xc   :  { %48 = vadd.xlane.f32.xlu1 %v47_v11 }
   0xf   :  { %69 = vadd.xlane.f32.xlu0 %v68_v14 }
  0x10   :  { %72 = vadd.xlane.f32.xlu1 %v71_v15 }
  0x13   :  { %51 = vadd.xlane.f32.xlu0 %v50_v18 }
  0x14   :  { %54 = vadd.xlane.f32.xlu1 %v53_v19 }
  0x17   :  { %75 = vadd.xlane.f32.xlu0 %v74_v22 }
  0x18   :  { %78 = vadd.xlane.f32.xlu1 %v77_v23 }
  0x1b   :  { %57 = vadd.xlane.f32.xlu0 %v56_v26 }
  0x1c   :  { %60 = vadd.xlane.f32.xlu1 %v59_v27 }
  0x1f   :  { %81 = vadd.xlane.f32.xlu0 %v80_v30 }
  0x20   :  { %84 = vadd.xlane.f32.xlu1 %v83_v31 }
  0x90   :  { %v40_v32 = vpop.xlane.xlu0 %39 }
  0x91   :  { %v64_v33 = vpop.xlane.xlu1 %63  ;;  %v87_v34 = vmul.f32 0.03125, %v40_v32 }
  0x92   :  { %v95_v35 = vmul.f32 0.03125, %v64_v33 }
  0x93   :  { %v815_v36 = vsub.f32 %v21_v0, %v87_v34 }
  0x94   :  { %v817_v37 = vsub.f32 %v29_v1, %v95_v35  ;;  %v43_v38 = vpop.xlane.xlu0 %42 }
  0x95   :  { %v67_v39 = vpop.xlane.xlu1 %66  ;;  %v88_v40 = vmul.f32 0.03125, %v43_v38  ;;  %v119_v42 = vmul.f32 %v815_v36, %v815_v36 }
  0x96   :  { %v96_v41 = vmul.f32 0.03125, %v67_v39  ;;  %v127_v43 = vmul.f32 %v817_v37, %v817_v37 }
  0x97   :  { %v823_v44 = vsub.f32 %v22_v2, %v88_v40  ;;  %v135_v46 = vsel %vm37_vm0, %v119_v42, 0.0 }
  0x98   :  { %v825_v45 = vsub.f32 %v30_v5, %v96_v41  ;;  %136 = vadd.xlane.f32.xlu0 %v135_v46  ;;  %v46_v47 = vpop.xlane.xlu0 %45  ;;  %v159_v49 = vsel %vm37_vm0, %v127_v43, 0.0 }
  0x99   :  { %v49_v48 = vpop.xlane.xlu1 %48  ;;  %v89_v50 = vmul.f32 0.03125, %v46_v47  ;;  %v120_v52 = vmul.f32 %v823_v44, %v823_v44 }
  0x9a   :  { %v90_v51 = vmul.f32 0.03125, %v49_v48  ;;  %v128_v53 = vmul.f32 %v825_v45, %v825_v45 }
  0x9b   :  { %v833_v54 = vsub.f32 %v23_v8, %v89_v50  ;;  %v138_v56 = vsel %vm37_vm0, %v120_v52, 0.0 }
  0x9c   :  { %v835_v55 = vsub.f32 %v24_v9, %v90_v51  ;;  %160 = vadd.xlane.f32.xlu0 %v159_v49  ;;  %139 = vadd.xlane.f32.xlu1 %v138_v56  ;;  %v70_v57 = vpop.xlane.xlu0 %69  ;;  %v162_v59 = vsel %vm37_vm0, %v128_v53, 0.0  ;;  %v626_v53 = vld [vmem:[%s1124_s3 + $0x8] sm:$0xff]  }
  0x9d   :  { %v73_v58 = vpop.xlane.xlu1 %72  ;;  %v97_v60 = vmul.f32 0.03125, %v70_v57  ;;  %v121_v62 = vmul.f32 %v833_v54, %v833_v54 }
  0x9e   :  { %v98_v61 = vmul.f32 0.03125, %v73_v58  ;;  %v122_v63 = vmul.f32 %v835_v55, %v835_v55 }
  0x9f   :  { %v844_v0 = vsub.f32 %v748_v12, %v97_v60  ;;  %v141_v2 = vsel %vm37_vm0, %v121_v62, 0.0 }
  0xa0   :  { %v847_v1 = vsub.f32 %v753_v13, %v98_v61  ;;  %163 = vadd.xlane.f32.xlu1 %v162_v59  ;;  %142 = vadd.xlane.f32.xlu0 %v141_v2  ;;  %v52_v3 = vpop.xlane.xlu0 %51  ;;  %v144_v5 = vsel %vm37_vm0, %v122_v63, 0.0 }
  0xa1   :  { %v55_v4 = vpop.xlane.xlu1 %54  ;;  %v91_v6 = vmul.f32 0.03125, %v52_v3  ;;  %v129_v8 = vmul.f32 %v844_v0, %v844_v0 }
  0xa2   :  { %v92_v7 = vmul.f32 0.03125, %v55_v4  ;;  %v130_v9 = vmul.f32 %v847_v1, %v847_v1 }
  0xa3   :  { %v856_v10 = vsub.f32 %v762_v16, %v91_v6  ;;  %v165_v12 = vsel %vm37_vm0, %v129_v8, 0.0 }
  0xa4   :  { %v859_v11 = vsub.f32 %v767_v17, %v92_v7  ;;  %145 = vadd.xlane.f32.xlu1 %v144_v5  ;;  %166 = vadd.xlane.f32.xlu0 %v165_v12  ;;  %v76_v13 = vpop.xlane.xlu0 %75  ;;  %v168_v15 = vsel %vm37_vm0, %v130_v9, 0.0 }
  0xa5   :  { %v79_v14 = vpop.xlane.xlu1 %78  ;;  %v99_v18 = vmul.f32 0.03125, %v76_v13  ;;  %v123_v22 = vmul.f32 %v856_v10, %v856_v10 }
  0xa6   :  { %v100_v19 = vmul.f32 0.03125, %v79_v14  ;;  %v124_v16 = vmul.f32 %v859_v11, %v859_v11 }
  0xa7   :  { %v868_v23 = vsub.f32 %v776_v20, %v99_v18  ;;  %v147_v26 = vsel %vm37_vm0, %v123_v22, 0.0 }
  0xa8   :  { %v871_v17 = vsub.f32 %v781_v21, %v100_v19  ;;  %169 = vadd.xlane.f32.xlu1 %v168_v15  ;;  %148 = vadd.xlane.f32.xlu0 %v147_v26  ;;  %v58_v27 = vpop.xlane.xlu0 %57  ;;  %v150_v31 = vsel %vm37_vm0, %v124_v16, 0.0 }
  0xa9   :  { %v61_v30 = vpop.xlane.xlu1 %60  ;;  %v93_v32 = vmul.f32 0.03125, %v58_v27  ;;  %v131_v34 = vmul.f32 %v868_v23, %v868_v23 }
  0xaa   :  { %v94_v33 = vmul.f32 0.03125, %v61_v30  ;;  %v132_v20 = vmul.f32 %v871_v17, %v871_v17 }
  0xab   :  { %v880_v35 = vsub.f32 %v790_v24, %v93_v32  ;;  %v171_v38 = vsel %vm37_vm0, %v131_v34, 0.0 }
  0xac   :  { %v883_v21 = vsub.f32 %v795_v25, %v94_v33  ;;  %151 = vadd.xlane.f32.xlu1 %v150_v31  ;;  %172 = vadd.xlane.f32.xlu0 %v171_v38  ;;  %v82_v39 = vpop.xlane.xlu0 %81  ;;  %v174_v41 = vsel %vm37_vm0, %v132_v20, 0.0  ;;  %v915_v31 = vld [vmem:[%s1125_s1] ss:$0 sm:$0xff] }
  0xad   :  { %v85_v40 = vpop.xlane.xlu1 %84  ;;  %v101_v42 = vmul.f32 0.03125, %v82_v39  ;;  %v125_v46 = vmul.f32 %v880_v35, %v880_v35 }
  0xae   :  { %v102_v43 = vmul.f32 0.03125, %v85_v40  ;;  %v126_v24 = vmul.f32 %v883_v21, %v883_v21 }
  0xaf   :  { %v892_v47 = vsub.f32 %v804_v28, %v101_v42  ;;  %v153_v48 = vsel %vm37_vm0, %v125_v46, 0.0 }
  0xb0   :  { %v895_v25 = vsub.f32 %v809_v29, %v102_v43  ;;  %175 = vadd.xlane.f32.xlu1 %v174_v41  ;;  %154 = vadd.xlane.f32.xlu0 %v153_v48  ;;  %v156_v49 = vsel %vm37_vm0, %v126_v24, 0.0  ;;  %v625_v29 = vld [vmem:[%s1124_s3] sm:$0xff]  }
  0xb1   :  { %v133_v50 = vmul.f32 %v892_v47, %v892_v47  ;;  %601 = vmatprep.subr.bf16.mxu0 %v625_v29  ;;  %621 = vmatprep.subr.bf16.mxu1 %v625_v29  ;;  %v922_v43 = vld [vmem:[%s1126_s2] ss:$0 sm:$0xff] }
  0xb2   :  { %v134_v51 = vmul.f32 %v895_v25, %v895_v25  ;;  %602 = vmatpush3.bf16.msra.mxu0 %v625_v29  ;;  %623 = vmatpush3.bf16.msra.mxu1 %v625_v29 }
  0xb3   :  { %v177_v52 = vsel %vm37_vm0, %v133_v50, 0.0  ;;  %603 = vmatprep.subr.bf16.mxu0 %v626_v53  ;;  %622 = vmatprep.subr.bf16.mxu1 %v626_v53 }
  0xb4   :  { %157 = vadd.xlane.f32.xlu1 %v156_v49  ;;  %178 = vadd.xlane.f32.xlu0 %v177_v52  ;;  %v180_v28 = vsel %vm37_vm0, %v134_v51, 0.0 }
  0xb6   :  { %604 = vmatpush3.bf16.msra.mxu0 %v626_v53  ;;  %624 = vmatpush3.bf16.msra.mxu1 %v626_v53 }
  0xb8   :  { %181 = vadd.xlane.f32.xlu1 %v180_v28 }
 0x125   :  { %v137_v56 = vpop.xlane.xlu0 %136 }
 0x126   :  { %v183_v57 = vmul.f32 0.03125, %v137_v56 }
 0x128   :  { %v199_v58 = vadd.f32 1e-06, %v183_v57 }
 0x129   :  { %v140_v59 = vpop.xlane.xlu1 %139  ;;  %v161_v60 = vpop.xlane.xlu0 %160 }
 0x12a   :  { %627 = vrsqrt.f32 %v199_v58  ;;  %v184_v61 = vmul.f32 0.03125, %v140_v59  ;;  %v191_v62 = vmul.f32 0.03125, %v161_v60 }
 0x12c   :  { %v200_v63 = vadd.f32 1e-06, %v184_v61  ;;  %v207_v2 = vadd.f32 1e-06, %v191_v62 }
 0x12d   :  { %v164_v3 = vpop.xlane.xlu1 %163  ;;  %v143_v4 = vpop.xlane.xlu0 %142 }
 0x12e   :  { %629 = vrsqrt.f32 %v200_v63  ;;  %v192_v5 = vmul.f32 0.03125, %v164_v3  ;;  %v185_v6 = vmul.f32 0.03125, %v143_v4 }
 0x12f   :  { %631 = vrsqrt.f32 %v207_v2 }
 0x130   :  { %v208_v7 = vadd.f32 1e-06, %v192_v5  ;;  %v201_v8 = vadd.f32 1e-06, %v185_v6 }
 0x131   :  { %v146_v9 = vpop.xlane.xlu1 %145  ;;  %v167_v12 = vpop.xlane.xlu0 %166 }
 0x132   :  { %633 = vrsqrt.f32 %v208_v7  ;;  %v186_v13 = vmul.f32 0.03125, %v146_v9  ;;  %v193_v14 = vmul.f32 0.03125, %v167_v12 }
 0x133   :  { %635 = vrsqrt.f32 %v201_v8 }
 0x134   :  { %v628_v15 = vpop.eup %627  ;;  %v202_v18 = vadd.f32 1e-06, %v186_v13  ;;  %v209_v19 = vadd.f32 1e-06, %v193_v14 }
 0x135   :  { %v170_v22 = vpop.xlane.xlu1 %169  ;;  %v149_v16 = vpop.xlane.xlu0 %148  ;;  %v231_v26 = vmul.f32 %v628_v15, %v815_v36 }
 0x136   :  { %637 = vrsqrt.f32 %v202_v18  ;;  %v194_v27 = vmul.f32 0.03125, %v170_v22  ;;  %v187_v30 = vmul.f32 0.03125, %v149_v16 }
 0x137   :  { %639 = vrsqrt.f32 %v209_v19  ;;  %v254_v41 = vmul.f32 %v915_v31, %v231_v26 }
 0x138   :  { %v630_v32 = vpop.eup %629  ;;  %v210_v33 = vadd.f32 1e-06, %v194_v27  ;;  %v203_v34 = vadd.f32 1e-06, %v187_v30 }
 0x139   :  { %v632_v20 = vpop.eup %631  ;;  %v152_v38 = vpop.xlane.xlu1 %151  ;;  %v232_v40 = vmul.f32 %v630_v32, %v823_v44  ;;  %v277_v28 = vadd.f32 %v922_v43, %v254_v41 }
 0x13a   :  { %v173_v39 = vpop.xlane.xlu0 %172  ;;  %641 = vrsqrt.f32 %v210_v33  ;;  %v188_v36 = vmul.f32 0.03125, %v152_v38  ;;  %v239_v46 = vmul.f32 %v632_v20, %v817_v37 }
 0x13b   :  { %v195_v42 = vmul.f32 0.03125, %v173_v39  ;;  %643 = vrsqrt.f32 %v203_v34  ;;  %v255_v24 = vmul.f32 %v915_v31, %v232_v40 }
 0x13c   :  { %v634_v48 = vpop.eup %633  ;;  %v204_v49 = vadd.f32 1e-06, %v188_v36  ;;  %v262_v56 = vmul.f32 %v915_v31, %v239_v46 }
 0x13d   :  { %v211_v50 = vadd.f32 1e-06, %v195_v42  ;;  %v636_v51 = vpop.eup %635  ;;  %v176_v44 = vpop.xlane.xlu1 %175  ;;  %v278_v29 = vadd.f32 %v922_v43, %v255_v24  ;;  %v240_v53 = vmul.f32 %v634_v48, %v825_v45 }
 0x13e   :  { %v155_v52 = vpop.xlane.xlu0 %154  ;;  %v233_v57 = vmul.f32 %v636_v51, %v833_v54  ;;  %645 = vrsqrt.f32 %v204_v49  ;;  %v196_v37 = vmul.f32 0.03125, %v176_v44  ;;  %v285_v5 = vadd.f32 %v922_v43, %v262_v56 }
 0x13f   :  { %v189_v58 = vmul.f32 0.03125, %v155_v52  ;;  %647 = vrsqrt.f32 %v211_v50  ;;  %v293_v59 = vpack.c.bf16 %v278_v29, %v277_v28  ;;  %v263_v60 = vmul.f32 %v915_v31, %v240_v53 }
 0x140   :  { %v638_v61 = vpop.eup %637  ;;  %v212_v62 = vadd.f32 1e-06, %v196_v37  ;;  %v256_v6 = vmul.f32 %v915_v31, %v233_v57 }
 0x141   :  { %v205_v63 = vadd.f32 1e-06, %v189_v58  ;;  %v640_v2 = vpop.eup %639  ;;  %v234_v3 = vmul.f32 %v638_v61, %v835_v55  ;;  %v158_v4 = vpop.xlane.xlu1 %157  ;;  %605 = vmatprep.mubr.msk.bf16.mxu0 %vm37_vm0, %v293_v59  ;;  %v286_v54 = vadd.f32 %v922_v43, %v263_v60 }
 0x142   :  { %v179_v45 = vpop.xlane.xlu0 %178  ;;  %v241_v7 = vmul.f32 %v640_v2, %v844_v0  ;;  %649 = vrsqrt.f32 %v212_v62  ;;  %v190_v8 = vmul.f32 0.03125, %v158_v4  ;;  %v279_v16 = vadd.f32 %v922_v43, %v256_v6 }
 0x143   :  { %v197_v9 = vmul.f32 0.03125, %v179_v45  ;;  %651 = vrsqrt.f32 %v205_v63  ;;  %v297_v12 = vpack.c.bf16 %v286_v54, %v285_v5  ;;  %v257_v13 = vmul.f32 %v915_v31, %v234_v3 }
 0x144   :  { %v642_v55 = vpop.eup %641  ;;  %v206_v14 = vadd.f32 1e-06, %v190_v8  ;;  %v264_v26 = vmul.f32 %v915_v31, %v241_v7 }
 0x145   :  { %v213_v15 = vadd.f32 1e-06, %v197_v9  ;;  %v644_v18 = vpop.eup %643  ;;  %v242_v19 = vmul.f32 %v642_v55, %v847_v1  ;;  %v182_v22 = vpop.xlane.xlu1 %181  ;;  %613 = vmatprep.mubr.msk.bf16.mxu1 %vm37_vm0, %v297_v12  ;;  %v280_v0 = vadd.f32 %v922_v43, %v257_v13 }
 0x146   :  { %v235_v27 = vmul.f32 %v644_v18, %v856_v10  ;;  %653 = vrsqrt.f32 %v206_v14  ;;  %v198_v30 = vmul.f32 0.03125, %v182_v22  ;;  %v287_v39 = vadd.f32 %v922_v43, %v264_v26 }
 0x147   :  { %655 = vrsqrt.f32 %v213_v15  ;;  %v294_v32 = vpack.c.bf16 %v280_v0, %v279_v16  ;;  %v265_v33 = vmul.f32 %v915_v31, %v242_v19 }
 0x148   :  { %v646_v34 = vpop.eup %645  ;;  %v214_v20 = vadd.f32 1e-06, %v198_v30  ;;  %v258_v41 = vmul.f32 %v915_v31, %v235_v27 }
 0x149   :  { %v648_v1 = vpop.eup %647  ;;  %v236_v38 = vmul.f32 %v646_v34, %v859_v11  ;;  %606 = vmatmul.mubr.msk.bf16.vlgmr.msra.gmra.mrb[0].mxu0 %vm37_vm0, %v294_v32  ;;  %v288_v40 = vadd.f32 %v922_v43, %v265_v33 }
 0x14a   :  { %v243_v10 = vmul.f32 %v648_v1, %v868_v23  ;;  %657 = vrsqrt.f32 %v214_v20  ;;  %v281_v11 = vadd.f32 %v922_v43, %v258_v41 }
 0x14b   :  { %v298_v36 = vpack.c.bf16 %v288_v40, %v287_v39  ;;  %v259_v42 = vmul.f32 %v915_v31, %v236_v38 }
 0x14c   :  { %v650_v46 = vpop.eup %649  ;;  %v266_v50 = vmul.f32 %v915_v31, %v243_v10 }
 0x14d   :  { %v652_v24 = vpop.eup %651  ;;  %v244_v48 = vmul.f32 %v650_v46, %v871_v17  ;;  %614 = vmatmul.mubr.msk.bf16.vlgmr.msra.gmra.mrb[0].mxu1 %vm37_vm0, %v298_v36  ;;  %v282_v49 = vadd.f32 %v922_v43, %v259_v42 }
 0x14e   :  { %v237_v51 = vmul.f32 %v652_v24, %v880_v35  ;;  %v289_v17 = vadd.f32 %v922_v43, %v266_v50 }
 0x14f   :  { %v295_v44 = vpack.c.bf16 %v282_v49, %v281_v11  ;;  %v267_v23 = vmul.f32 %v915_v31, %v244_v48 }
 0x150   :  { %v654_v52 = vpop.eup %653  ;;  %v260_v56 = vmul.f32 %v915_v31, %v237_v51 }
 0x151   :  { %v656_v28 = vpop.eup %655  ;;  %v238_v29 = vmul.f32 %v654_v52, %v883_v21  ;;  %609 = vmatprep.mubr.msk.bf16.mxu0 %vm37_vm0, %v295_v44  ;;  %v290_v53 = vadd.f32 %v922_v43, %v267_v23 }
 0x152   :  { %v245_v57 = vmul.f32 %v656_v28, %v892_v47  ;;  %v283_v21 = vadd.f32 %v922_v43, %v260_v56 }
 0x153   :  { %v299_v37 = vpack.c.bf16 %v290_v53, %v289_v17  ;;  %v261_v35 = vmul.f32 %v915_v31, %v238_v29 }
 0x154   :  { %v658_v58 = vpop.eup %657  ;;  %v268_v61 = vmul.f32 %v915_v31, %v245_v57 }
 0x155   :  { %v246_v59 = vmul.f32 %v658_v58, %v895_v25  ;;  %617 = vmatprep.mubr.msk.bf16.mxu1 %vm37_vm0, %v299_v37  ;;  %v284_v60 = vadd.f32 %v922_v43, %v261_v35  ;;  %v980_v25 = vld [vmem:[%s1127_s4] ss:$0 sm:$0xff] }
 0x156   :  { %v291_v47 = vadd.f32 %v922_v43, %v268_v61 }
 0x157   :  { %v296_v62 = vpack.c.bf16 %v284_v60, %v283_v21  ;;  %v269_v63 = vmul.f32 %v915_v31, %v246_v59 }
 0x159   :  { %610 = vmatmul.mubr.msk.bf16.gmra.mrb[4].mxu0 %vm37_vm0, %v296_v62  ;;  %v292_v2 = vadd.f32 %v922_v43, %v269_v63 }
 0x15b   :  { %v300_v3 = vpack.c.bf16 %v292_v2, %v291_v47 }
 0x15d   :  { %618 = vmatmul.mubr.msk.bf16.gmra.mrb[4].mxu1 %vm37_vm0, %v300_v3 }
 0x21c   :  { %v607_v4 = vpop.f32.mrb[0].mxu0 }
 0x21d   :  { %v391_v45 = vadd.f32 %v607_v4, %v980_v25  ;;  %v382_v5 = vpop.f32.mrb[1].mxu0 }
 0x21e   :  { %v984_v31 = vadd.f32 %v980_v25, %v382_v5  ;;  %v608_v54 = vpop.f32.mrb[2].mxu0 }
 0x21f   :  { %v463_v6 = vmin.f32 %v391_v45, 0.0  ;;  %v987_v7 = vadd.f32 %v608_v54, %v980_v25  ;;  %v385_v43 = vpop.f32.mrb[3].mxu0  ;;  %vm447_vm1 = vcmp.gt.f32.partialorder %v391_v45, 0.0 }
 0x220   :  { %v461_v8 = vmin.f32 %v984_v31, 0.0  ;;  %v991_v9 = vadd.f32 %v980_v25, %v385_v43  ;;  %v615_v12 = vpop.f32.mrb[0].mxu1  ;;  %vm445_vm3 = vcmp.gt.f32.partialorder %v984_v31, 0.0 }
 0x221   :  { %v481_v13 = vmul.f32 1.442695, %v463_v6  ;;  %v464_v55 = vmin.f32 %v987_v7, 0.0  ;;  %v995_v14 = vadd.f32 %v615_v12, %v980_v25  ;;  %v414_v15 = vpop.f32.mrb[1].mxu1  ;;  %vm448_vm4 = vcmp.gt.f32.partialorder %v987_v7, 0.0 }
 0x222   :  { %v477_v18 = vmul.f32 1.442695, %v461_v8  ;;  %v462_v19 = vmin.f32 %v991_v9, 0.0  ;;  %v999_v22 = vadd.f32 %v980_v25, %v414_v15  ;;  %v616_v16 = vpop.f32.mrb[2].mxu1  ;;  %vm446_vm5 = vcmp.gt.f32.partialorder %v991_v9, 0.0 }
 0x223   :  { %659 = vpow2.f32 %v481_v13  ;;  %v483_v0 = vmul.f32 1.442695, %v464_v55  ;;  %v471_v26 = vmin.f32 %v995_v14, 0.0  ;;  %v417_v27 = vpop.f32.mrb[3].mxu1  ;;  %v1004_v34 = vadd.f32 %v616_v16, %v980_v25 }
 0x224   :  { %661 = vpow2.f32 %v477_v18  ;;  %v479_v30 = vmul.f32 1.442695, %v462_v19  ;;  %v469_v32 = vmin.f32 %v999_v22, 0.0  ;;  %v1007_v20 = vadd.f32 %v980_v25, %v417_v27 }
 0x225   :  { %663 = vpow2.f32 %v483_v0  ;;  %v497_v33 = vmul.f32 1.442695, %v471_v26  ;;  %v472_v38 = vmin.f32 %v1004_v34, 0.0  ;;  %vm455_vm6 = vcmp.gt.f32.partialorder %v995_v14, 0.0 }
 0x226   :  { %665 = vpow2.f32 %v479_v30  ;;  %v493_v1 = vmul.f32 1.442695, %v469_v32  ;;  %v470_v39 = vmin.f32 %v1007_v20, 0.0  ;;  %vm453_vm7 = vcmp.gt.f32.partialorder %v999_v22, 0.0 }
 0x227   :  { %667 = vpow2.f32 %v497_v33  ;;  %v499_v40 = vmul.f32 1.442695, %v472_v38  ;;  %vm456_vm8 = vcmp.gt.f32.partialorder %v1004_v34, 0.0  ;;  %vm454_vm9 = vcmp.gt.f32.partialorder %v1007_v20, 0.0 }
 0x228   :  { %669 = vpow2.f32 %v493_v1  ;;  %v495_v41 = vmul.f32 1.442695, %v470_v39 }
 0x229   :  { %671 = vpow2.f32 %v499_v40 }
 0x22a   :  { %673 = vpow2.f32 %v495_v41 }
 0x22c   :  { %v611_v10 = vpop.f32.mrb[4].mxu0 }
 0x22d   :  { %v660_v36 = vpop.eup %659  ;;  %v1012_v42 = vadd.f32 %v611_v10, %v980_v25  ;;  %v398_v46 = vpop.f32.mrb[5].mxu0 }
 0x22e   :  { %v662_v24 = vpop.eup %661  ;;  %v577_v48 = vadd.f32 -1.0, %v660_v36  ;;  %v1017_v11 = vadd.f32 %v980_v25, %v398_v46  ;;  %v612_v49 = vpop.f32.mrb[6].mxu0 }
 0x22f   :  { %v664_v50 = vpop.eup %663  ;;  %v575_v51 = vadd.f32 -1.0, %v662_v24  ;;  %v467_v44 = vmin.f32 %v1012_v42, 0.0  ;;  %v1022_v23 = vadd.f32 %v612_v49, %v980_v25  ;;  %v401_v52 = vpop.f32.mrb[7].mxu0  ;;  %vm451_vm10 = vcmp.gt.f32.partialorder %v1012_v42, 0.0 }
 0x230   :  { %v666_v28 = vpop.eup %665  ;;  %v527_v29 = vsel %vm447_vm1, %v391_v45, %v577_v48  ;;  %v578_v17 = vadd.f32 -1.0, %v664_v50  ;;  %v465_v53 = vmin.f32 %v1017_v11, 0.0  ;;  %v619_v56 = vpop.f32.mrb[4].mxu1  ;;  %v402_v4 = vadd.f32 %v980_v25, %v401_v52 }
 0x231   :  { %v668_v57 = vpop.eup %667  ;;  %544 = vst.msk [vmem:[%s1128_s5 + $0x10] sm:$0xff] %vm541_vm2, %v527_v29  ;;  %v525_v37 = vsel %vm445_vm3, %v984_v31, %v575_v51  ;;  %v576_v35 = vadd.f32 -1.0, %v666_v28  ;;  %v489_v58 = vmul.f32 1.442695, %v467_v44  ;;  %v430_v59 = vpop.f32.mrb[5].mxu1  ;;  %v468_v63 = vmin.f32 %v1022_v23, 0.0 }
 0x232   :  { %v670_v21 = vpop.eup %669  ;;  %542 = vst.msk [vmem:[%s1128_s5] sm:$0xff] %vm541_vm2, %v525_v37  ;;  %v528_v60 = vsel %vm448_vm4, %v987_v7, %v578_v17  ;;  %v585_v61 = vadd.f32 -1.0, %v668_v57  ;;  %v485_v62 = vmul.f32 1.442695, %v465_v53  ;;  %v620_v47 = vpop.f32.mrb[6].mxu1  ;;  %v439_v54 = vadd.f32 %v619_v56, %v980_v25 }
 0x233   :  { %545 = vst.msk [vmem:[%s1128_s5 + $0x18] sm:$0xff] %vm541_vm2, %v528_v60  ;;  %v526_v2 = vsel %vm446_vm5, %v991_v9, %v576_v35  ;;  %v583_v3 = vadd.f32 -1.0, %v670_v21  ;;  %675 = vpow2.f32 %v489_v58  ;;  %v433_v45 = vpop.f32.mrb[7].mxu1  ;;  %v491_v31 = vmul.f32 1.442695, %v468_v63  ;;  %v672_v6 = vpop.eup %671 }
 0x234   :  { %543 = vst.msk [vmem:[%s1128_s5 + $0x8] sm:$0xff] %vm541_vm2, %v526_v2  ;;  %v535_v5 = vsel %vm455_vm6, %v995_v14, %v585_v61  ;;  %677 = vpow2.f32 %v485_v62  ;;  %v466_v43 = vmin.f32 %v402_v4, 0.0  ;;  %v431_v8 = vadd.f32 %v980_v25, %v430_v59  ;;  %v674_v9 = vpop.eup %673 }
 0x235   :  { %552 = vst.msk [vmem:[%s1128_s5 + $0x50] sm:$0xff] %vm541_vm2, %v535_v5  ;;  %v533_v7 = vsel %vm453_vm7, %v999_v22, %v583_v3  ;;  %v586_v12 = vadd.f32 -1.0, %v672_v6  ;;  %679 = vpow2.f32 %v491_v31  ;;  %v475_v13 = vmin.f32 %v439_v54, 0.0 }
 0x236   :  { %550 = vst.msk [vmem:[%s1128_s5 + $0x40] sm:$0xff] %vm541_vm2, %v533_v7  ;;  %v584_v55 = vadd.f32 -1.0, %v674_v9  ;;  %v487_v14 = vmul.f32 1.442695, %v466_v43  ;;  %v473_v15 = vmin.f32 %v431_v8, 0.0  ;;  %v442_v22 = vadd.f32 %v620_v47, %v980_v25 }
 0x237   :  { %v536_v18 = vsel %vm456_vm8, %v1004_v34, %v586_v12  ;;  %v505_v19 = vmul.f32 1.442695, %v475_v13  ;;  %v434_v16 = vadd.f32 %v980_v25, %v433_v45  ;;  %vm449_vm11 = vcmp.gt.f32.partialorder %v1017_v11, 0.0 }
 0x238   :  { %553 = vst.msk [vmem:[%s1128_s5 + $0x58] sm:$0xff] %vm541_vm2, %v536_v18  ;;  %v534_v0 = vsel %vm454_vm9, %v1007_v20, %v584_v55  ;;  %681 = vpow2.f32 %v487_v14  ;;  %v501_v26 = vmul.f32 1.442695, %v473_v15  ;;  %v476_v27 = vmin.f32 %v442_v22, 0.0 }
 0x239   :  { %551 = vst.msk [vmem:[%s1128_s5 + $0x48] sm:$0xff] %vm541_vm2, %v534_v0  ;;  %683 = vpow2.f32 %v505_v19  ;;  %v474_v30 = vmin.f32 %v434_v16, 0.0  ;;  %vm452_vm12 = vcmp.gt.f32.partialorder %v1022_v23, 0.0  ;;  %vm450_vm13 = vcmp.gt.f32.partialorder %v402_v4, 0.0 }
 0x23a   :  { %685 = vpow2.f32 %v501_v26  ;;  %v507_v32 = vmul.f32 1.442695, %v476_v27  ;;  %vm459_vm14 = vcmp.gt.f32.partialorder %v439_v54, 0.0  ;;  %vm457_vm15 = vcmp.gt.f32.partialorder %v431_v8, 0.0 }
 0x23b   :  { %v503_v33 = vmul.f32 1.442695, %v474_v30  ;;  %vm460_vm0 = vcmp.gt.f32.partialorder %v442_v22, 0.0  ;;  %vm458_vm1 = vcmp.gt.f32.partialorder %v434_v16, 0.0 }
 0x23c   :  { %687 = vpow2.f32 %v507_v32 }
 0x23d   :  { %v676_v25 = vpop.eup %675  ;;  %689 = vpow2.f32 %v503_v33 }
 0x23e   :  { %v678_v34 = vpop.eup %677  ;;  %v581_v1 = vadd.f32 -1.0, %v676_v25 }
 0x23f   :  { %v579_v20 = vadd.f32 -1.0, %v678_v34  ;;  %v680_v38 = vpop.eup %679 }
 0x240   :  { %v531_v39 = vsel %vm451_vm10, %v1012_v42, %v581_v1  ;;  %v582_v41 = vadd.f32 -1.0, %v680_v38 }
 0x241   :  { %548 = vst.msk [vmem:[%s1128_s5 + $0x30] sm:$0xff] %vm541_vm2, %v531_v39  ;;  %v529_v40 = vsel %vm449_vm11, %v1017_v11, %v579_v20 }
 0x242   :  { %546 = vst.msk [vmem:[%s1128_s5 + $0x20] sm:$0xff] %vm541_vm2, %v529_v40  ;;  %v682_v10 = vpop.eup %681  ;;  %v532_v36 = vsel %vm452_vm12, %v1022_v23, %v582_v41 }
 0x243   :  { %v684_v42 = vpop.eup %683  ;;  %549 = vst.msk [vmem:[%s1128_s5 + $0x38] sm:$0xff] %vm541_vm2, %v532_v36  ;;  %v580_v46 = vadd.f32 -1.0, %v682_v10 }
 0x244   :  { %v686_v24 = vpop.eup %685  ;;  %v589_v48 = vadd.f32 -1.0, %v684_v42 }
 0x245   :  { %v530_v11 = vsel %vm450_vm13, %v402_v4, %v580_v46  ;;  %v587_v49 = vadd.f32 -1.0, %v686_v24 }
 0x246   :  { %547 = vst.msk [vmem:[%s1128_s5 + $0x28] sm:$0xff] %vm541_vm2, %v530_v11  ;;  %v539_v50 = vsel %vm459_vm14, %v439_v54, %v589_v48  ;;  %v688_v51 = vpop.eup %687 }
 0x247   :  { %556 = vst.msk [vmem:[%s1128_s5 + $0x70] sm:$0xff] %vm541_vm2, %v539_v50  ;;  %v537_v44 = vsel %vm457_vm15, %v431_v8, %v587_v49  ;;  %v690_v23 = vpop.eup %689  ;;  %v590_v52 = vadd.f32 -1.0, %v688_v51 }
 0x248   :  { %554 = vst.msk [vmem:[%s1128_s5 + $0x60] sm:$0xff] %vm541_vm2, %v537_v44  ;;  %v588_v28 = vadd.f32 -1.0, %v690_v23 }
 0x249   :  { %v540_v29 = vsel %vm460_vm0, %v442_v22, %v590_v52 }
 0x24a   :  { %557 = vst.msk [vmem:[%s1128_s5 + $0x78] sm:$0xff] %vm541_vm2, %v540_v29  ;;  %v538_v17 = vsel %vm458_vm1, %v434_v16, %v588_v28 }
 0x24b   :  { %555 = vst.msk [vmem:[%s1128_s5 + $0x68] sm:$0xff] %vm541_vm2, %v538_v17 }

// kernel: transformer_forward.17
= control target key start
LH: loop header
LB: loop body
LE: loop exit
PB: predicated region body
PF: predicated region fallthrough
CT: control target
= control target key end

     0   :  { %vm97_vm0 = vcmask 261120   ;;  %s530_s1 = inlined_call_operand.vmem [shape: bf16[32,32], index: 1, kind: input, shape index: {}]   ;;  %s531_s0 = inlined_call_operand.vmem [shape: bf16[128,32], index: 0, kind: input, shape index: {}]   ;;  %s532_s2 = inlined_call_operand.vmem [shape: f32[1,32], index: 2, kind: input, shape index: {}]   ;;  %s533_s3 = inlined_call_operand.vmem [shape: f32[128,32], index: 3, kind: input, shape index: {}]   ;;  %s534_s4 = inlined_call_operand.vmem [shape: f32[128,32], index: 4, kind: output, shape index: {}]  }
   0x1   :  { %v324_v0 = vld [vmem:[%s530_s1] sm:$0xff]   ;;  %v325_v1 = vld [vmem:[%s530_s1 + $0x8] sm:$0xff]   ;;  %v330_v6 = vld [vmem:[%s531_s0 + $0x10] sm:$0xff]  }
   0x2   :  { %300 = vmatprep.subr.bf16.mxu0 %v324_v0  ;;  %320 = vmatprep.subr.bf16.mxu1 %v324_v0  ;;  %v326_v2 = vld [vmem:[%s531_s0] sm:$0xff]   ;;  %v328_v4 = vld [vmem:[%s531_s0 + $0x8] sm:$0xff]   ;;  %v331_v7 = vld [vmem:[%s531_s0 + $0x30] sm:$0xff]  }
   0x3   :  { %301 = vmatpush3.bf16.msra.mxu0 %v324_v0  ;;  %322 = vmatpush3.bf16.msra.mxu1 %v324_v0  ;;  %v327_v3 = vld [vmem:[%s531_s0 + $0x20] sm:$0xff]   ;;  %v329_v5 = vld [vmem:[%s531_s0 + $0x28] sm:$0xff]   ;;  %v332_v8 = vld [vmem:[%s531_s0 + $0x18] sm:$0xff]  }
   0x4   :  { %302 = vmatprep.subr.bf16.mxu0 %v325_v1  ;;  %321 = vmatprep.subr.bf16.mxu1 %v325_v1  ;;  %v333_v9 = vld [vmem:[%s531_s0 + $0x38] sm:$0xff]   ;;  %v400_v10 = vld [vmem:[%s532_s2] ss:$0 sm:$0xff]  ;;  %v221_v12 = vld [vmem:[%s533_s3 + $0x10] sm:$0xff] }
   0x5   :  { %304 = vmatprep.mubr.msk.bf16.mxu0 %vm97_vm0, %v326_v2  ;;  %312 = vmatprep.mubr.msk.bf16.mxu1 %vm97_vm0, %v327_v3  ;;  %v229_v14 = vld [vmem:[%s533_s3 + $0x50] sm:$0xff]  ;;  %v219_v18 = vld [vmem:[%s533_s3] sm:$0xff]  ;;  %v222_v24 = vld [vmem:[%s533_s3 + $0x18] sm:$0xff] }
   0x6   :  { %v227_v20 = vld [vmem:[%s533_s3 + $0x40] sm:$0xff]  ;;  %v230_v26 = vld [vmem:[%s533_s3 + $0x58] sm:$0xff]  ;;  %v220_v32 = vld [vmem:[%s533_s3 + $0x8] sm:$0xff] }
   0x7   :  { %303 = vmatpush3.bf16.msra.mxu0 %v325_v1  ;;  %323 = vmatpush3.bf16.msra.mxu1 %v325_v1  ;;  %v228_v34 = vld [vmem:[%s533_s3 + $0x48] sm:$0xff]  ;;  %v225_v44 = vld [vmem:[%s533_s3 + $0x30] sm:$0xff]  ;;  %v223_v50 = vld [vmem:[%s533_s3 + $0x20] sm:$0xff] }
   0x8   :  { %v233_v46 = vld [vmem:[%s533_s3 + $0x70] sm:$0xff]  ;;  %v231_v52 = vld [vmem:[%s533_s3 + $0x60] sm:$0xff]  ;;  %v226_v56 = vld [vmem:[%s533_s3 + $0x38] sm:$0xff] }
   0x9   :  { %v234_v58 = vld [vmem:[%s533_s3 + $0x78] sm:$0xff]  ;;  %v224_v0 = vld [vmem:[%s533_s3 + $0x28] sm:$0xff] }
   0xa   :  { %305 = vmatmul.mubr.msk.bf16.vlgmr.msra.gmra.mrb[0].mxu0 %vm97_vm0, %v328_v4  ;;  %313 = vmatmul.mubr.msk.bf16.vlgmr.msra.gmra.mrb[0].mxu1 %vm97_vm0, %v329_v5  ;;  %v232_v2 = vld [vmem:[%s533_s3 + $0x68] sm:$0xff] }
   0xb   :  { %308 = vmatprep.mubr.msk.bf16.mxu0 %vm97_vm0, %v330_v6  ;;  %316 = vmatprep.mubr.msk.bf16.mxu1 %vm97_vm0, %v331_v7 }
  0x12   :  { %309 = vmatmul.mubr.msk.bf16.gmra.mrb[4].mxu0 %vm97_vm0, %v332_v8  ;;  %317 = vmatmul.mubr.msk.bf16.gmra.mrb[4].mxu1 %vm97_vm0, %v333_v9 }
  0xdd   :  { %v306_v11 = vpop.f32.mrb[0].mxu0  ;;  %v314_v13 = vpop.f32.mrb[0].mxu1 }
  0xde   :  { %v165_v15 = vadd.f32 %v306_v11, %v400_v10  ;;  %v197_v16 = vadd.f32 %v314_v13, %v400_v10  ;;  %v156_v17 = vpop.f32.mrb[1].mxu0  ;;  %v188_v19 = vpop.f32.mrb[1].mxu1 }
  0xdf   :  { %v157_v21 = vadd.f32 %v400_v10, %v156_v17  ;;  %v189_v22 = vadd.f32 %v400_v10, %v188_v19  ;;  %v307_v23 = vpop.f32.mrb[2].mxu0  ;;  %v315_v25 = vpop.f32.mrb[2].mxu1 }
  0xe0   :  { %v237_v27 = vadd.f32 %v221_v12, %v165_v15  ;;  %v245_v28 = vadd.f32 %v229_v14, %v197_v16  ;;  %v168_v29 = vadd.f32 %v307_v23, %v400_v10  ;;  %v200_v30 = vadd.f32 %v315_v25, %v400_v10  ;;  %v159_v31 = vpop.f32.mrb[3].mxu0  ;;  %v191_v33 = vpop.f32.mrb[3].mxu1 }
  0xe1   :  { %v235_v35 = vadd.f32 %v219_v18, %v157_v21  ;;  %v243_v36 = vadd.f32 %v227_v20, %v189_v22  ;;  %v160_v37 = vadd.f32 %v400_v10, %v159_v31  ;;  %v192_v38 = vadd.f32 %v400_v10, %v191_v33 }
  0xe2   :  { %253 = vst.msk [vmem:[%s534_s4 + $0x10] sm:$0xff] %vm97_vm0, %v237_v27  ;;  %261 = vst.msk [vmem:[%s534_s4 + $0x50] sm:$0xff] %vm97_vm0, %v245_v28  ;;  %v238_v39 = vadd.f32 %v222_v24, %v168_v29  ;;  %v246_v40 = vadd.f32 %v230_v26, %v200_v30 }
  0xe3   :  { %251 = vst.msk [vmem:[%s534_s4] sm:$0xff] %vm97_vm0, %v235_v35  ;;  %259 = vst.msk [vmem:[%s534_s4 + $0x40] sm:$0xff] %vm97_vm0, %v243_v36  ;;  %v236_v41 = vadd.f32 %v220_v32, %v160_v37  ;;  %v244_v42 = vadd.f32 %v228_v34, %v192_v38 }
  0xe4   :  { %254 = vst.msk [vmem:[%s534_s4 + $0x18] sm:$0xff] %vm97_vm0, %v238_v39  ;;  %262 = vst.msk [vmem:[%s534_s4 + $0x58] sm:$0xff] %vm97_vm0, %v246_v40 }
  0xe5   :  { %252 = vst.msk [vmem:[%s534_s4 + $0x8] sm:$0xff] %vm97_vm0, %v236_v41  ;;  %260 = vst.msk [vmem:[%s534_s4 + $0x48] sm:$0xff] %vm97_vm0, %v244_v42  ;;  %v310_v43 = vpop.f32.mrb[4].mxu0  ;;  %v318_v45 = vpop.f32.mrb[4].mxu1 }
  0xe6   :  { %v181_v47 = vadd.f32 %v310_v43, %v400_v10  ;;  %v213_v48 = vadd.f32 %v318_v45, %v400_v10  ;;  %v172_v49 = vpop.f32.mrb[5].mxu0  ;;  %v204_v51 = vpop.f32.mrb[5].mxu1 }
  0xe7   :  { %v173_v53 = vadd.f32 %v400_v10, %v172_v49  ;;  %v205_v54 = vadd.f32 %v400_v10, %v204_v51  ;;  %v311_v55 = vpop.f32.mrb[6].mxu0  ;;  %v319_v57 = vpop.f32.mrb[6].mxu1 }
  0xe8   :  { %v241_v59 = vadd.f32 %v225_v44, %v181_v47  ;;  %v249_v60 = vadd.f32 %v233_v46, %v213_v48  ;;  %v184_v61 = vadd.f32 %v311_v55, %v400_v10  ;;  %v216_v62 = vadd.f32 %v319_v57, %v400_v10  ;;  %v175_v63 = vpop.f32.mrb[7].mxu0  ;;  %v207_v1 = vpop.f32.mrb[7].mxu1 }
  0xe9   :  { %v239_v3 = vadd.f32 %v223_v50, %v173_v53  ;;  %v247_v4 = vadd.f32 %v231_v52, %v205_v54  ;;  %v176_v5 = vadd.f32 %v400_v10, %v175_v63  ;;  %v208_v6 = vadd.f32 %v400_v10, %v207_v1 }
  0xea   :  { %257 = vst.msk [vmem:[%s534_s4 + $0x30] sm:$0xff] %vm97_vm0, %v241_v59  ;;  %265 = vst.msk [vmem:[%s534_s4 + $0x70] sm:$0xff] %vm97_vm0, %v249_v60  ;;  %v242_v7 = vadd.f32 %v226_v56, %v184_v61  ;;  %v250_v8 = vadd.f32 %v234_v58, %v216_v62 }
  0xeb   :  { %255 = vst.msk [vmem:[%s534_s4 + $0x20] sm:$0xff] %vm97_vm0, %v239_v3  ;;  %263 = vst.msk [vmem:[%s534_s4 + $0x60] sm:$0xff] %vm97_vm0, %v247_v4  ;;  %v240_v9 = vadd.f32 %v224_v0, %v176_v5  ;;  %v248_v10 = vadd.f32 %v232_v2, %v208_v6 }
  0xec   :  { %258 = vst.msk [vmem:[%s534_s4 + $0x38] sm:$0xff] %vm97_vm0, %v242_v7  ;;  %266 = vst.msk [vmem:[%s534_s4 + $0x78] sm:$0xff] %vm97_vm0, %v250_v8 }
  0xed   :  { %256 = vst.msk [vmem:[%s534_s4 + $0x28] sm:$0xff] %vm97_vm0, %v240_v9  ;;  %264 = vst.msk [vmem:[%s534_s4 + $0x68] sm:$0xff] %vm97_vm0, %v248_v10 }

// kernel: transformer_forward.20
= control target key start
LH: loop header
LB: loop body
LE: loop exit
PB: predicated region body
PF: predicated region fallthrough
CT: control target
= control target key end

     0   :  { %vm113_vm0 = vcmask 523264   ;;  %vm267_vm1 = vcmask 261120   ;;  %s567_s1 = inlined_call_operand.vmem [shape: bf16[64,32], index: 1, kind: input, shape index: {}]   ;;  %s568_s0 = inlined_call_operand.vmem [shape: bf16[128,64], index: 0, kind: input, shape index: {}]   ;;  %s569_s2 = inlined_call_operand.vmem [shape: f32[1,32], index: 2, kind: input, shape index: {}]   ;;  %s570_s3 = inlined_call_operand.vmem [shape: f32[128,32], index: 3, kind: input, shape index: {}]   ;;  %s571_s4 = inlined_call_operand.vmem [shape: f32[128,32], index: 4, kind: output, shape index: {}]  }
   0x1   :  { %v353_v0 = vld [vmem:[%s567_s1] sm:$0xff]   ;;  %v354_v1 = vld [vmem:[%s567_s1 + $0x8] sm:$0xff]   ;;  %v355_v2 = vld [vmem:[%s567_s1 + $0x10] sm:$0xff]  }
   0x2   :  { %321 = vmatprep.subr.bf16.mxu0 %v353_v0  ;;  %345 = vmatprep.subr.bf16.mxu1 %v353_v0  ;;  %v357_v3 = vld [vmem:[%s568_s0] sm:$0xff]   ;;  %v356_v5 = vld [vmem:[%s567_s1 + $0x18] sm:$0xff]   ;;  %v359_v6 = vld [vmem:[%s568_s0 + $0x8] sm:$0xff]  }
   0x3   :  { %322 = vmatpush3.bf16.msra.mxu0 %v353_v0  ;;  %349 = vmatpush3.bf16.msra.mxu1 %v353_v0  ;;  %v358_v4 = vld [vmem:[%s568_s0 + $0x20] sm:$0xff]   ;;  %v360_v7 = vld [vmem:[%s568_s0 + $0x28] sm:$0xff]   ;;  %v361_v8 = vld [vmem:[%s568_s0 + $0x10] sm:$0xff]  }
   0x4   :  { %323 = vmatprep.subr.bf16.mxu0 %v354_v1  ;;  %346 = vmatprep.subr.bf16.mxu1 %v354_v1  ;;  %v362_v9 = vld [vmem:[%s568_s0 + $0x30] sm:$0xff]   ;;  %v363_v10 = vld [vmem:[%s568_s0 + $0x18] sm:$0xff]   ;;  %v437_v12 = vld [vmem:[%s569_s2] ss:$0 sm:$0xff] }
   0x5   :  { %329 = vmatprep.mubr.msk.bf16.mxu0 %vm113_vm0, %v357_v3  ;;  %337 = vmatprep.mubr.msk.bf16.mxu1 %vm113_vm0, %v358_v4  ;;  %v364_v11 = vld [vmem:[%s568_s0 + $0x38] sm:$0xff]   ;;  %v237_v14 = vld [vmem:[%s570_s3 + $0x10] sm:$0xff]  ;;  %v235_v20 = vld [vmem:[%s570_s3] sm:$0xff] }
   0x6   :  { %v245_v16 = vld [vmem:[%s570_s3 + $0x50] sm:$0xff]  ;;  %v243_v22 = vld [vmem:[%s570_s3 + $0x40] sm:$0xff]  ;;  %v238_v26 = vld [vmem:[%s570_s3 + $0x18] sm:$0xff] }
   0x7   :  { %324 = vmatpush3.bf16.msra.mxu0 %v354_v1  ;;  %350 = vmatpush3.bf16.msra.mxu1 %v354_v1  ;;  %v246_v28 = vld [vmem:[%s570_s3 + $0x58] sm:$0xff]  ;;  %v236_v34 = vld [vmem:[%s570_s3 + $0x8] sm:$0xff]  ;;  %v241_v46 = vld [vmem:[%s570_s3 + $0x30] sm:$0xff] }
   0x8   :  { %325 = vmatprep.subr.bf16.mxu0 %v355_v2  ;;  %347 = vmatprep.subr.bf16.mxu1 %v355_v2  ;;  %v244_v36 = vld [vmem:[%s570_s3 + $0x48] sm:$0xff]  ;;  %v249_v48 = vld [vmem:[%s570_s3 + $0x70] sm:$0xff]  ;;  %v239_v52 = vld [vmem:[%s570_s3 + $0x20] sm:$0xff] }
   0x9   :  { %v247_v54 = vld [vmem:[%s570_s3 + $0x60] sm:$0xff]  ;;  %v242_v58 = vld [vmem:[%s570_s3 + $0x38] sm:$0xff]  ;;  %v248_v4 = vld [vmem:[%s570_s3 + $0x68] sm:$0xff] }
   0xa   :  { %v250_v60 = vld [vmem:[%s570_s3 + $0x78] sm:$0xff] }
   0xb   :  { %326 = vmatpush3.bf16.msra.mxu0 %v355_v2  ;;  %351 = vmatpush3.bf16.msra.mxu1 %v355_v2  ;;  %v240_v2 = vld [vmem:[%s570_s3 + $0x28] sm:$0xff] }
   0xc   :  { %327 = vmatprep.subr.bf16.mxu0 %v356_v5  ;;  %348 = vmatprep.subr.bf16.mxu1 %v356_v5 }
   0xf   :  { %328 = vmatpush3.bf16.msra.mxu0 %v356_v5  ;;  %352 = vmatpush3.bf16.msra.mxu1 %v356_v5 }
  0x12   :  { %330 = vmatmul.mubr.msk.bf16.vlgmr.msra.gmra.mrb[0].mxu0 %vm113_vm0, %v359_v6  ;;  %338 = vmatmul.mubr.msk.bf16.vlgmr.msra.gmra.mrb[0].mxu1 %vm113_vm0, %v360_v7 }
  0x13   :  { %333 = vmatprep.mubr.msk.bf16.mxu0 %vm113_vm0, %v361_v8  ;;  %341 = vmatprep.mubr.msk.bf16.mxu1 %vm113_vm0, %v362_v9 }
  0x1a   :  { %334 = vmatmul.mubr.msk.bf16.gmra.mrb[4].mxu0 %vm113_vm0, %v363_v10  ;;  %342 = vmatmul.mubr.msk.bf16.gmra.mrb[4].mxu1 %vm113_vm0, %v364_v11 }
  0xe5   :  { %v331_v13 = vpop.f32.mrb[0].mxu0  ;;  %v339_v15 = vpop.f32.mrb[0].mxu1 }
  0xe6   :  { %v181_v17 = vadd.f32 %v331_v13, %v437_v12  ;;  %v213_v18 = vadd.f32 %v339_v15, %v437_v12  ;;  %v172_v19 = vpop.f32.mrb[1].mxu0  ;;  %v204_v21 = vpop.f32.mrb[1].mxu1 }
  0xe7   :  { %v173_v23 = vadd.f32 %v437_v12, %v172_v19  ;;  %v205_v24 = vadd.f32 %v437_v12, %v204_v21  ;;  %v332_v25 = vpop.f32.mrb[2].mxu0  ;;  %v340_v27 = vpop.f32.mrb[2].mxu1 }
  0xe8   :  { %v253_v29 = vadd.f32 %v237_v14, %v181_v17  ;;  %v261_v30 = vadd.f32 %v245_v16, %v213_v18  ;;  %v184_v31 = vadd.f32 %v332_v25, %v437_v12  ;;  %v216_v32 = vadd.f32 %v340_v27, %v437_v12  ;;  %v175_v33 = vpop.f32.mrb[3].mxu0  ;;  %v207_v35 = vpop.f32.mrb[3].mxu1 }
  0xe9   :  { %v251_v37 = vadd.f32 %v235_v20, %v173_v23  ;;  %v259_v38 = vadd.f32 %v243_v22, %v205_v24  ;;  %v176_v39 = vadd.f32 %v437_v12, %v175_v33  ;;  %v208_v40 = vadd.f32 %v437_v12, %v207_v35 }
  0xea   :  { %270 = vst.msk [vmem:[%s571_s4 + $0x10] sm:$0xff] %vm267_vm1, %v253_v29  ;;  %278 = vst.msk [vmem:[%s571_s4 + $0x50] sm:$0xff] %vm267_vm1, %v261_v30  ;;  %v254_v41 = vadd.f32 %v238_v26, %v184_v31  ;;  %v262_v42 = vadd.f32 %v246_v28, %v216_v32 }
  0xeb   :  { %268 = vst.msk [vmem:[%s571_s4] sm:$0xff] %vm267_vm1, %v251_v37  ;;  %276 = vst.msk [vmem:[%s571_s4 + $0x40] sm:$0xff] %vm267_vm1, %v259_v38  ;;  %v252_v43 = vadd.f32 %v236_v34, %v176_v39  ;;  %v260_v44 = vadd.f32 %v244_v36, %v208_v40 }
  0xec   :  { %271 = vst.msk [vmem:[%s571_s4 + $0x18] sm:$0xff] %vm267_vm1, %v254_v41  ;;  %279 = vst.msk [vmem:[%s571_s4 + $0x58] sm:$0xff] %vm267_vm1, %v262_v42 }
  0xed   :  { %269 = vst.msk [vmem:[%s571_s4 + $0x8] sm:$0xff] %vm267_vm1, %v252_v43  ;;  %277 = vst.msk [vmem:[%s571_s4 + $0x48] sm:$0xff] %vm267_vm1, %v260_v44  ;;  %v335_v45 = vpop.f32.mrb[4].mxu0  ;;  %v343_v47 = vpop.f32.mrb[4].mxu1 }
  0xee   :  { %v197_v49 = vadd.f32 %v335_v45, %v437_v12  ;;  %v229_v50 = vadd.f32 %v343_v47, %v437_v12  ;;  %v188_v51 = vpop.f32.mrb[5].mxu0  ;;  %v220_v53 = vpop.f32.mrb[5].mxu1 }
  0xef   :  { %v189_v55 = vadd.f32 %v437_v12, %v188_v51  ;;  %v221_v56 = vadd.f32 %v437_v12, %v220_v53  ;;  %v336_v57 = vpop.f32.mrb[6].mxu0  ;;  %v344_v59 = vpop.f32.mrb[6].mxu1 }
  0xf0   :  { %v257_v61 = vadd.f32 %v241_v46, %v197_v49  ;;  %v265_v62 = vadd.f32 %v249_v48, %v229_v50  ;;  %v200_v63 = vadd.f32 %v336_v57, %v437_v12  ;;  %v232_v0 = vadd.f32 %v344_v59, %v437_v12  ;;  %v191_v1 = vpop.f32.mrb[7].mxu0  ;;  %v223_v3 = vpop.f32.mrb[7].mxu1 }
  0xf1   :  { %v255_v5 = vadd.f32 %v239_v52, %v189_v55  ;;  %v263_v6 = vadd.f32 %v247_v54, %v221_v56  ;;  %v192_v7 = vadd.f32 %v437_v12, %v191_v1  ;;  %v224_v8 = vadd.f32 %v437_v12, %v223_v3 }
  0xf2   :  { %274 = vst.msk [vmem:[%s571_s4 + $0x30] sm:$0xff] %vm267_vm1, %v257_v61  ;;  %282 = vst.msk [vmem:[%s571_s4 + $0x70] sm:$0xff] %vm267_vm1, %v265_v62  ;;  %v258_v9 = vadd.f32 %v242_v58, %v200_v63  ;;  %v266_v10 = vadd.f32 %v250_v60, %v232_v0 }
  0xf3   :  { %272 = vst.msk [vmem:[%s571_s4 + $0x20] sm:$0xff] %vm267_vm1, %v255_v5  ;;  %280 = vst.msk [vmem:[%s571_s4 + $0x60] sm:$0xff] %vm267_vm1, %v263_v6  ;;  %v256_v11 = vadd.f32 %v240_v2, %v192_v7  ;;  %v264_v12 = vadd.f32 %v248_v4, %v224_v8 }
  0xf4   :  { %275 = vst.msk [vmem:[%s571_s4 + $0x38] sm:$0xff] %vm267_vm1, %v258_v9  ;;  %283 = vst.msk [vmem:[%s571_s4 + $0x78] sm:$0xff] %vm267_vm1, %v266_v10 }
  0xf5   :  { %273 = vst.msk [vmem:[%s571_s4 + $0x28] sm:$0xff] %vm267_vm1, %v256_v11  ;;  %281 = vst.msk [vmem:[%s571_s4 + $0x68] sm:$0xff] %vm267_vm1, %v264_v12 }

// kernel: transformer_forward.23
= control target key start
LH: loop header
LB: loop body
LE: loop exit
PB: predicated region body
PF: predicated region fallthrough
CT: control target
= control target key end

     0   :  { %10 = vsyncpa [#allocation3], 0  ;;  %s3359_s0 = inlined_call_operand.vmem [shape: bf16[2,4,64,8], index: 0, kind: input, shape index: {}]   ;;  %s3360_s1 = inlined_call_operand.vmem [shape: bf16[2,4,64,8], index: 1, kind: input, shape index: {}]   ;;  %s3361_s2 = inlined_call_operand.vmem [shape: bf16[2,4,64,8], index: 2, kind: input, shape index: {}]   ;;  %s3362_s3 = inlined_call_operand.vmem [shape: bf16[2,4,64,8], index: 3, kind: output, shape index: {0}]   ;;  %s3363_s4 = inlined_call_operand.hbm [shape: f32[2,4,64,64], index: 4, kind: output, shape index: {1}]  }
   0x1   :  { %12 = vsyncpa [#allocation3 + $0x1], 0  ;;  %s2646_s15 = smov 0   ;;  %s2648_s16 = smov 0  }
   0x2   :  { %s2650_s17 = smov 0   ;;  %s2652_s18 = smov 0  }
   0x3 LB: > { %s2667_s19 = sadd.s32 4294967295, %s2616_s18   ;;  %s1962_s20 = sadd.s32 4294967294, %s2616_s18   ;;  %s2616_s18 = sphi %s2652_s18, %s3369_s18   ;;  %s2612_s17 = sphi %s2650_s17, %s3368_s17   ;;  %s2608_s16 = sphi %s2648_s16, %s3367_s16   ;;  %s2604_s15 = sphi %s2646_s15, %s3366_s15  }
   0x4   : > { %s2671_s21 = sadd.s32 1, %s2616_s18   ;;  %s129_s22 = sadd.s32 1, %s2612_s17 }
   0x5   : > { %s126_s23 = ssub.s32 %s2616_s18, %s2671_s21  ;;  %p139_p0 = scmp.ne.s32.totalorder %s2612_s17, %s2608_s16 }
   0x6   : > { %p127_p1 = scmp.eq.s32.totalorder %s126_s23, 0  ;;  %p140_p2 = scmp.eq.s32.totalorder %s2667_s19, 1 }
   0x7   : > { %p145_p3 = scmp.ne.s32.totalorder %s2608_s16, %s2604_s15  ;;  %p146_p4 = scmp.eq.s32.totalorder %s1962_s20, 1 }
   0x8   : > { %s2682_s24 = scalar_select %p127_p1, %s2612_s17, %s129_s22  }
   0x9   : > { %p2684_p5 = por %p140_p2, %p139_p0  ;;  %p2688_p6 = por %p146_p4, %p145_p3 }
   0xa   : > { %p1965_p7 = scmp.ge.s32.totalorder %s2616_s18, 1  ;;  %p188_p8 = scmp.lt.s32.totalorder %s2616_s18, 3 }
   0xc   : > { %p189_p9 = pnand %p1965_p7, %p188_p8 }
   0xd   : > { %p229_p10 = scmp.lt.s32.totalorder (!%p189_p9), %s2667_s19, 1  ;;  %vm386_vm0 = vcmask (!%p189_p9), 64512   ;;  %vm863_vm1 = vcmask (!%p189_p9), 523264   ;;  %s226_s12 = sand.u32 (!%p189_p9), 1, %s2608_s16  }
   0xe   : > { %192 = sbr.rel (%p189_p9) target bundleno = 870 (0x366), region = 32  ;;  %s1966_s13 = sshll.u32 (!%p189_p9), %s226_s12, 8 }
   0xf   : > { %s3104_s14 = scalar_lea.vmem (!%p189_p9), [#allocation2], %s1966_s13  ;;  %s2128_s20 = sshll.u32 (!%p189_p9), %s2667_s19, 12 }
  0x10   : > { %s1851_s22 = sshll.u32 (!%p189_p9), %s3104_s14, 4  ;;  %s3242_s29 = scalar_lea.hbm (!%p189_p9), %s3363_s4, %s2128_s20  ;;  %s3244_s22 = int_to_ptr.vmem [resolvable:$true] %s1851_s22 }
  0x11   : > { %s3248_s30 = scalar_lea.sflag (!%p189_p9), [#allocation3], %s226_s12 }
  0x15   : > { %s230_s27 = scalar_select %p229_p10, %s2667_s19, 1 }
  0x16   : > { %s2618_s19 = smov [#allocation2]  }
  0x17   : > { %s2696_s28 = sshll.u32 %s230_s27, 7  ;;  %s2558_s6 = sshll.u32 %s2618_s19, 4  ;;  %s2559_s6 = int_to_ptr.vmem [resolvable:$false] %s2558_s6 }
  0x18   : > { %s2702_s5 = scalar_lea.vmem %s3360_s1, %s2696_s28  ;;  %s2718_s8 = scalar_lea.vmem %s3359_s0, %s2696_s28 }
  0x19   : > { %v2378_v0 = vld [vmem:[%s2702_s5] sm:$0xff]   ;;  %v2380_v3 = vld [vmem:[%s2702_s5 + $0x8] sm:$0xff]   ;;  %v2382_v6 = vld [vmem:[%s2702_s5 + $0x10] sm:$0xff]   ;;  %s2997_s11 = scalar_lea.vmem %s3361_s2, %s2696_s28  ;;  %s2560_s7 = scalar_lea.vmem %s2559_s6, 8192 }
  0x1a   : > { %v2379_v1 = vld [vmem:[%s2702_s5 + $0x20] sm:$0xff]   ;;  %2321 = vmatprep.subr.msk.bf16.mxu0 %vm386_vm0, %v2378_v0  ;;  %v400_v2 = vsel %vm386_vm0, %v2378_v0, 0  ;;  %v2381_v5 = vld [vmem:[%s2702_s5 + $0x28] sm:$0xff]   ;;  %v2383_v7 = vld [vmem:[%s2702_s5 + $0x30] sm:$0xff]   ;;  %v403_v8 = vsel %vm386_vm0, %v2380_v3, 0  ;;  %v406_v12 = vsel %vm386_vm0, %v2382_v6, 0  ;;  %p2561_p0 = scmp.lt.s32.totalorder %s3244_s22, %s2559_s6 }
  0x1b   : > { %2325 = vmatprep.subr.msk.bf16.mxu1 %vm386_vm0, %v2379_v1  ;;  %2194 = vmatpush3.bf16.xpose.msra.mxu0 %v400_v2  ;;  %v529_v4 = vsel %vm386_vm0, %v2379_v1, 0  ;;  %v2386_v9 = vld [vmem:[%s2718_s8] sm:$0xff]   ;;  %v532_v10 = vsel %vm386_vm0, %v2381_v5, 0  ;;  %v2384_v13 = vld [vmem:[%s2702_s5 + $0x18] sm:$0xff]   ;;  %v535_v14 = vsel %vm386_vm0, %v2383_v7, 0  ;;  %v2388_v20 = vld [vmem:[%s2718_s8 + $0x8] sm:$0xff]  }
  0x1c   : > { %2210 = vmatpush3.bf16.xpose.msra.mxu1 %v529_v4  ;;  %2322 = vmatprep.subr.msk.bf16.mxu0 %vm386_vm0, %v2380_v3  ;;  %v2387_v11 = vld [vmem:[%s2718_s8 + $0x20] sm:$0xff]   ;;  %v2385_v15 = vld [vmem:[%s2702_s5 + $0x38] sm:$0xff]   ;;  %v409_v16 = vsel %vm386_vm0, %v2384_v13, 0  ;;  %v2389_v21 = vld [vmem:[%s2718_s8 + $0x28] sm:$0xff]  }
  0x1d   : > { %2326 = vmatprep.subr.msk.bf16.mxu1 %vm386_vm0, %v2381_v5  ;;  %2201 = vmatprep.mubr.msk.bf16.mxu0 %vm386_vm0, %v2386_v9  ;;  %v2390_v17 = vld [vmem:[%s2702_s5 + $0x40] sm:$0xff]   ;;  %v538_v18 = vsel %vm386_vm0, %v2385_v15, 0  ;;  %v2392_v23 = vld [vmem:[%s2702_s5 + $0x48] sm:$0xff]   ;;  %v2394_v26 = vld [vmem:[%s2718_s8 + $0x10] sm:$0xff]  }
  0x1e   : > { %2217 = vmatprep.mubr.msk.bf16.mxu1 %vm386_vm0, %v2387_v11  ;;  %v2391_v19 = vld [vmem:[%s2702_s5 + $0x60] sm:$0xff]   ;;  %v658_v22 = vsel %vm386_vm0, %v2390_v17, 0  ;;  %v2393_v25 = vld [vmem:[%s2702_s5 + $0x68] sm:$0xff]   ;;  %v2397_v27 = vld [vmem:[%s2718_s8 + $0x30] sm:$0xff]   ;;  %v661_v30 = vsel %vm386_vm0, %v2392_v23, 0 }
  0x1f   : > { %v787_v24 = vsel %vm386_vm0, %v2391_v19, 0  ;;  %v2395_v28 = vld [vmem:[%s2718_s8 + $0x18] sm:$0xff]   ;;  %v2396_v31 = vld [vmem:[%s2702_s5 + $0x50] sm:$0xff]   ;;  %v790_v32 = vsel %vm386_vm0, %v2393_v25, 0  ;;  %v2402_v34 = vld [vmem:[%s2718_s8 + $0x40] sm:$0xff]  }
  0x20   : > { %v2398_v29 = vld [vmem:[%s2718_s8 + $0x38] sm:$0xff]   ;;  %v2399_v33 = vld [vmem:[%s2702_s5 + $0x70] sm:$0xff]   ;;  %v2404_v35 = vld [vmem:[%s2718_s8 + $0x60] sm:$0xff]   ;;  %v664_v36 = vsel %vm386_vm0, %v2396_v31, 0 }
  0x21   : > { %v2400_v37 = vld [vmem:[%s2702_s5 + $0x58] sm:$0xff]   ;;  %v793_v38 = vsel %vm386_vm0, %v2399_v33, 0  ;;  %v2403_v42 = vld [vmem:[%s2718_s8 + $0x48] sm:$0xff]   ;;  %v2406_v44 = vld [vmem:[%s2718_s8 + $0x50] sm:$0xff]  }
  0x22   : > { %v2401_v39 = vld [vmem:[%s2702_s5 + $0x78] sm:$0xff]   ;;  %v667_v40 = vsel %vm386_vm0, %v2400_v37, 0  ;;  %v2405_v43 = vld [vmem:[%s2718_s8 + $0x68] sm:$0xff]   ;;  %v2408_v45 = vld [vmem:[%s2718_s8 + $0x70] sm:$0xff]   ;;  %s2554_s5 = scalar_lea.vmem %s3244_s22, 4096 }
  0x23   : > { %2196 = vmatpush3.bf16.xpose.msra.mxu0 %v403_v8  ;;  %v796_v41 = vsel %vm386_vm0, %v2401_v39, 0  ;;  %v2407_v46 = vld [vmem:[%s2718_s8 + $0x58] sm:$0xff]   ;;  %p2555_p11 = scmp.ne.s32.totalorder %s3244_s22, %s2554_s5  ;;  %p2562_p1 = scmp.lt.s32.totalorder %s2560_s7, %s2554_s5 }
  0x24   : > { %2212 = vmatpush3.bf16.xpose.msra.mxu1 %v532_v10  ;;  %2323 = vmatprep.subr.msk.bf16.mxu0 %vm386_vm0, %v2382_v6  ;;  %v2409_v47 = vld [vmem:[%s2718_s8 + $0x78] sm:$0xff]  }
  0x25   : > { %2327 = vmatprep.subr.msk.bf16.mxu1 %vm386_vm0, %v2383_v7  ;;  %p2556_p12 = pnand %p2555_p11, %p2684_p5  ;;  %p2563_p2 = por %p2562_p1, %p2561_p0 }
  0x27   : > { %p2557_p13 = pneg %p2556_p12 }
  0x29   : > { %p2564_p3 = pnand %p2563_p2, %p2557_p13 }
  0x2b   : > { %2198 = vmatpush3.bf16.xpose.msra.mxu0 %v406_v12 }
  0x2c   : > { %2214 = vmatpush3.bf16.xpose.msra.mxu1 %v535_v14  ;;  %2324 = vmatprep.subr.msk.bf16.mxu0 %vm386_vm0, %v2384_v13 }
  0x2d   : > { %2328 = vmatprep.subr.msk.bf16.mxu1 %vm386_vm0, %v2385_v15 }
  0x33   : > { %2200 = vmatpush3.bf16.xpose.msra.mxu0 %v409_v16 }
  0x34   : > { %2216 = vmatpush3.bf16.xpose.msra.mxu1 %v538_v18  ;;  %2329 = vmatprep.subr.msk.bf16.mxu0 %vm386_vm0, %v2390_v17 }
  0x35   : > { %2333 = vmatprep.subr.msk.bf16.mxu1 %vm386_vm0, %v2391_v19 }
  0x3a   : > { %2202 = vmatmul.mubr.msk.bf16.vlgmr.msra.gmra.mrb[0].mxu0 %vm386_vm0, %v2388_v20 }
  0x3b   : > { %2218 = vmatmul.mubr.msk.bf16.vlgmr.msra.gmra.mrb[0].mxu1 %vm386_vm0, %v2389_v21  ;;  %2226 = vmatpush3.bf16.xpose.msra.mxu0 %v658_v22 }
  0x3c   : > { %2242 = vmatpush3.bf16.xpose.msra.mxu1 %v787_v24  ;;  %2330 = vmatprep.subr.msk.bf16.mxu0 %vm386_vm0, %v2392_v23 }
  0x3d   : > { %2334 = vmatprep.subr.msk.bf16.mxu1 %vm386_vm0, %v2393_v25  ;;  %2205 = vmatprep.mubr.msk.bf16.mxu0 %vm386_vm0, %v2394_v26 }
  0x3e   : > { %2221 = vmatprep.mubr.msk.bf16.mxu1 %vm386_vm0, %v2397_v27 }
  0x42   : > { %2206 = vmatmul.mubr.msk.bf16.gmra.mrb[4].mxu0 %vm386_vm0, %v2395_v28 }
  0x43   : > { %2228 = vmatpush3.bf16.xpose.msra.mxu0 %v661_v30  ;;  %2222 = vmatmul.mubr.msk.bf16.gmra.mrb[4].mxu1 %vm386_vm0, %v2398_v29 }
  0x44   : > { %2244 = vmatpush3.bf16.xpose.msra.mxu1 %v790_v32  ;;  %2331 = vmatprep.subr.msk.bf16.mxu0 %vm386_vm0, %v2396_v31 }
  0x45   : > { %2335 = vmatprep.subr.msk.bf16.mxu1 %vm386_vm0, %v2399_v33  ;;  %2233 = vmatprep.mubr.msk.bf16.mxu0 %vm386_vm0, %v2402_v34 }
  0x46   : > { %2249 = vmatprep.mubr.msk.bf16.mxu1 %vm386_vm0, %v2404_v35 }
  0x4b   : > { %2230 = vmatpush3.bf16.xpose.msra.mxu0 %v664_v36 }
  0x4c   : > { %2246 = vmatpush3.bf16.xpose.msra.mxu1 %v793_v38  ;;  %2332 = vmatprep.subr.msk.bf16.mxu0 %vm386_vm0, %v2400_v37 }
  0x4d   : > { %2336 = vmatprep.subr.msk.bf16.mxu1 %vm386_vm0, %v2401_v39 }
  0x53   : > { %2232 = vmatpush3.bf16.xpose.msra.mxu0 %v667_v40 }
  0x54   : > { %2248 = vmatpush3.bf16.xpose.msra.mxu1 %v796_v41 }
  0x5a   : > { %2234 = vmatmul.mubr.msk.bf16.vlgmr.msra.gmra.mrb[8].mxu0 %vm386_vm0, %v2403_v42 }
  0x5b   : > { %2250 = vmatmul.mubr.msk.bf16.vlgmr.msra.gmra.mrb[8].mxu1 %vm386_vm0, %v2405_v43  ;;  %2237 = vmatprep.mubr.msk.bf16.mxu0 %vm386_vm0, %v2406_v44 }
  0x5c   : > { %2253 = vmatprep.mubr.msk.bf16.mxu1 %vm386_vm0, %v2408_v45 }
  0x62   : > { %2238 = vmatmul.mubr.msk.bf16.gmra.mrb[12].mxu0 %vm386_vm0, %v2407_v46 }
  0x63   : > { %2254 = vmatmul.mubr.msk.bf16.gmra.mrb[12].mxu1 %vm386_vm0, %v2409_v47 }
 0x10d   : > { %v2790_v48 = vpop.f32.mrb[0].mxu0 }
 0x10e   : > { %v2792_v49 = vpop.f32.mrb[0].mxu1  ;;  %v2794_v50 = vpop.f32.mrb[1].mxu0  ;;  %v870_v51 = vsel %vm863_vm1, %v2790_v48, -inf }
 0x10f   : > { %v2798_v52 = vpop.f32.mrb[1].mxu1  ;;  %871 = vmax.xlane.f32.xlu0 %v870_v51  ;;  %v2800_v53 = vpop.f32.mrb[2].mxu0  ;;  %v894_v58 = vsel %vm863_vm1, %v2792_v49, -inf  ;;  %v864_v61 = vsel %vm863_vm1, %v2794_v50, -inf }
 0x110   : > { %v2802_v54 = vpop.f32.mrb[2].mxu1  ;;  %v888_v55 = vsel %vm863_vm1, %v2798_v52, -inf  ;;  %v2806_v56 = vpop.f32.mrb[3].mxu0  ;;  %v873_v59 = vsel %vm863_vm1, %v2800_v53, -inf }
 0x111   : > { %889 = vmax.xlane.f32.xlu1 %v888_v55  ;;  %v2808_v57 = vpop.f32.mrb[3].mxu1  ;;  %v897_v2 = vsel %vm863_vm1, %v2802_v54, -inf  ;;  %v867_v6 = vsel %vm863_vm1, %v2806_v56, -inf }
 0x112   : > { %v891_v7 = vsel %vm863_vm1, %v2808_v57, -inf }
 0x113   : > { %895 = vmax.xlane.f32.xlu0 %v894_v58 }
 0x115   : > { %874 = vmax.xlane.f32.xlu1 %v873_v59  ;;  %v2814_v60 = vpop.f32.mrb[4].mxu0 }
 0x116   : > { %v2818_v62 = vpop.f32.mrb[5].mxu0  ;;  %v2820_v63 = vpop.f32.mrb[4].mxu1  ;;  %v882_v8 = vsel %vm863_vm1, %v2814_v60, -inf }
 0x117   : > { %865 = vmax.xlane.f32.xlu0 %v864_v61  ;;  %v2822_v0 = vpop.f32.mrb[6].mxu0  ;;  %v2824_v1 = vpop.f32.mrb[5].mxu1  ;;  %v906_v10 = vsel %vm863_vm1, %v2820_v63, -inf  ;;  %v876_v12 = vsel %vm863_vm1, %v2818_v62, -inf }
 0x118   : > { %v2828_v3 = vpop.f32.mrb[7].mxu0  ;;  %v2830_v4 = vpop.f32.mrb[6].mxu1  ;;  %v885_v9 = vsel %vm863_vm1, %v2822_v0, -inf  ;;  %v900_v14 = vsel %vm863_vm1, %v2824_v1, -inf }
 0x119   : > { %898 = vmax.xlane.f32.xlu1 %v897_v2  ;;  %v2832_v5 = vpop.f32.mrb[7].mxu1  ;;  %v909_v11 = vsel %vm863_vm1, %v2830_v4, -inf  ;;  %v879_v13 = vsel %vm863_vm1, %v2828_v3, -inf }
 0x11a   : > { %v903_v15 = vsel %vm863_vm1, %v2832_v5, -inf }
 0x11b   : > { %868 = vmax.xlane.f32.xlu0 %v867_v6 }
 0x11d   : > { %892 = vmax.xlane.f32.xlu1 %v891_v7 }
 0x11f   : > { %883 = vmax.xlane.f32.xlu0 %v882_v8 }
 0x121   : > { %886 = vmax.xlane.f32.xlu1 %v885_v9 }
 0x123   : > { %907 = vmax.xlane.f32.xlu0 %v906_v10 }
 0x125   : > { %910 = vmax.xlane.f32.xlu1 %v909_v11 }
 0x127   : > { %877 = vmax.xlane.f32.xlu0 %v876_v12 }
 0x129   : > { %880 = vmax.xlane.f32.xlu1 %v879_v13 }
 0x12b   : > { %901 = vmax.xlane.f32.xlu0 %v900_v14 }
 0x12d   : > { %904 = vmax.xlane.f32.xlu1 %v903_v15  ;;  %v2854_v16 = vpop.f32.mrb[8].mxu0 }
 0x12e   : > { %v2856_v17 = vpop.f32.mrb[9].mxu0  ;;  %v918_v18 = vsel %vm863_vm1, %v2854_v16, -inf  ;;  %v2860_v19 = vpop.f32.mrb[8].mxu1 }
 0x12f   : > { %919 = vmax.xlane.f32.xlu0 %v918_v18  ;;  %v2862_v20 = vpop.f32.mrb[10].mxu0  ;;  %v2864_v21 = vpop.f32.mrb[9].mxu1  ;;  %v942_v25 = vsel %vm863_vm1, %v2860_v19, -inf  ;;  %v912_v29 = vsel %vm863_vm1, %v2856_v17, -inf }
 0x130   : > { %v2866_v22 = vpop.f32.mrb[11].mxu0  ;;  %v921_v23 = vsel %vm863_vm1, %v2862_v20, -inf  ;;  %v2870_v24 = vpop.f32.mrb[10].mxu1  ;;  %v936_v38 = vsel %vm863_vm1, %v2864_v21, -inf }
 0x131   : > { %922 = vmax.xlane.f32.xlu1 %v921_v23  ;;  %v2874_v26 = vpop.f32.mrb[11].mxu1  ;;  %v945_v27 = vsel %vm863_vm1, %v2870_v24, -inf  ;;  %v915_v34 = vsel %vm863_vm1, %v2866_v22, -inf }
 0x132   : > { %v939_v39 = vsel %vm863_vm1, %v2874_v26, -inf }
 0x133   : > { %943 = vmax.xlane.f32.xlu0 %v942_v25 }
 0x135   : > { %946 = vmax.xlane.f32.xlu1 %v945_v27  ;;  %v2878_v28 = vpop.f32.mrb[12].mxu0 }
 0x136   : > { %v2882_v30 = vpop.f32.mrb[13].mxu0  ;;  %v2884_v31 = vpop.f32.mrb[12].mxu1  ;;  %v930_v40 = vsel %vm863_vm1, %v2878_v28, -inf }
 0x137   : > { %913 = vmax.xlane.f32.xlu0 %v912_v29  ;;  %v2886_v32 = vpop.f32.mrb[14].mxu0  ;;  %v2888_v33 = vpop.f32.mrb[13].mxu1  ;;  %v924_v42 = vsel %vm863_vm1, %v2882_v30, -inf  ;;  %v954_v46 = vsel %vm863_vm1, %v2884_v31, -inf }
 0x138   : > { %v2892_v35 = vpop.f32.mrb[15].mxu0  ;;  %v2894_v36 = vpop.f32.mrb[14].mxu1  ;;  %v933_v41 = vsel %vm863_vm1, %v2886_v32, -inf  ;;  %v948_v44 = vsel %vm863_vm1, %v2888_v33, -inf }
 0x139   : > { %916 = vmax.xlane.f32.xlu1 %v915_v34  ;;  %v2896_v37 = vpop.f32.mrb[15].mxu1  ;;  %v927_v43 = vsel %vm863_vm1, %v2892_v35, -inf  ;;  %v957_v47 = vsel %vm863_vm1, %v2894_v36, -inf }
 0x13a   : > { %v951_v45 = vsel %vm863_vm1, %v2896_v37, -inf }
 0x13b   : > { %937 = vmax.xlane.f32.xlu0 %v936_v38 }
 0x13d   : > { %940 = vmax.xlane.f32.xlu1 %v939_v39 }
 0x13f   : > { %931 = vmax.xlane.f32.xlu0 %v930_v40 }
 0x141   : > { %934 = vmax.xlane.f32.xlu1 %v933_v41 }
 0x143   : > { %925 = vmax.xlane.f32.xlu0 %v924_v42 }
 0x145   : > { %928 = vmax.xlane.f32.xlu1 %v927_v43 }
 0x147   : > { %949 = vmax.xlane.f32.xlu0 %v948_v44 }
 0x149   : > { %952 = vmax.xlane.f32.xlu1 %v951_v45 }
 0x14b   : > { %955 = vmax.xlane.f32.xlu0 %v954_v46 }
 0x14d   : > { %958 = vmax.xlane.f32.xlu1 %v957_v47 }
 0x19c   : > { %v872_v51 = vpop.xlane.xlu0 %871 }
 0x19d   : > { %v962_v55 = vsub.f32 %v2790_v48, %v872_v51 }
 0x19e   : > { %v890_v58 = vpop.xlane.xlu1 %889 }
 0x19f   : > { %v996_v59 = vmul.f32 1.442695, %v962_v55  ;;  %v968_v6 = vsub.f32 %v2798_v52, %v890_v58 }
 0x1a0   : > { %v896_v61 = vpop.xlane.xlu0 %895 }
 0x1a1   : > { %2426 = vpow2.f32 %v996_v59  ;;  %v970_v2 = vsub.f32 %v2792_v49, %v896_v61  ;;  %v1008_v13 = vmul.f32 1.442695, %v968_v6 }
 0x1a2   : > { %v875_v7 = vpop.xlane.xlu1 %874 }
 0x1a3   : > { %v1012_v8 = vmul.f32 1.442695, %v970_v2  ;;  %v963_v9 = vsub.f32 %v2800_v53, %v875_v7 }
 0x1a4   : > { %v866_v10 = vpop.xlane.xlu0 %865 }
 0x1a5   : > { %2428 = vpow2.f32 %v1012_v8  ;;  %v998_v11 = vmul.f32 1.442695, %v963_v9  ;;  %v960_v12 = vsub.f32 %v2794_v50, %v866_v10 }
 0x1a6   : > { %v899_v14 = vpop.xlane.xlu1 %898 }
 0x1a7   : > { %2430 = vpow2.f32 %v998_v11  ;;  %v992_v48 = vmul.f32 1.442695, %v960_v12  ;;  %v971_v15 = vsub.f32 %v2802_v54, %v899_v14 }
 0x1a8   : > { %v869_v18 = vpop.xlane.xlu0 %868 }
 0x1a9   : > { %2432 = vpow2.f32 %v992_v48  ;;  %v1014_v49 = vmul.f32 1.442695, %v971_v15  ;;  %v961_v52 = vsub.f32 %v2806_v56, %v869_v18 }
 0x1aa   : > { %2434 = vpow2.f32 %v1008_v13  ;;  %v893_v23 = vpop.xlane.xlu1 %892 }
 0x1ab   : > { %v2925_v25 = vpop.eup %2426  ;;  %2436 = vpow2.f32 %v1014_v49  ;;  %v994_v53 = vmul.f32 1.442695, %v961_v52  ;;  %v969_v27 = vsub.f32 %v2808_v57, %v893_v23 }
 0x1ac   : > { %v884_v50 = vpop.xlane.xlu0 %883  ;;  %v1062_v29 = vsel %vm863_vm1, %v2925_v25, 0.0 }
 0x1ad   : > { %2438 = vpow2.f32 %v994_v53  ;;  %v1010_v34 = vmul.f32 1.442695, %v969_v27  ;;  %v966_v54 = vsub.f32 %v2814_v60, %v884_v50  ;;  %1063 = vadd.xlane.f32.xlu0 %v1062_v29 }
 0x1ae   : > { %v887_v38 = vpop.xlane.xlu1 %886 }
 0x1af   : > { %v2931_v39 = vpop.eup %2428  ;;  %v1004_v56 = vmul.f32 1.442695, %v966_v54  ;;  %v967_v40 = vsub.f32 %v2822_v0, %v887_v38  ;;  %2440 = vpow2.f32 %v1010_v34 }
 0x1b0   : > { %v908_v41 = vpop.xlane.xlu0 %907  ;;  %v1086_v57 = vsel %vm863_vm1, %v2931_v39, 0.0 }
 0x1b1   : > { %v2936_v42 = vpop.eup %2430  ;;  %2442 = vpow2.f32 %v1004_v56  ;;  %v1006_v43 = vmul.f32 1.442695, %v967_v40  ;;  %v974_v44 = vsub.f32 %v2820_v63, %v908_v41  ;;  %1087 = vadd.xlane.f32.xlu0 %v1086_v57 }
 0x1b2   : > { %v911_v60 = vpop.xlane.xlu1 %910  ;;  %v1065_v45 = vsel %vm863_vm1, %v2936_v42, 0.0 }
 0x1b3   : > { %v2941_v46 = vpop.eup %2432  ;;  %v1020_v47 = vmul.f32 1.442695, %v974_v44  ;;  %v975_v0 = vsub.f32 %v2830_v4, %v911_v60  ;;  %1066 = vadd.xlane.f32.xlu1 %v1065_v45  ;;  %2444 = vpow2.f32 %v1006_v43 }
 0x1b4   : > { %v2944_v51 = vpop.eup %2434  ;;  %v878_v55 = vpop.xlane.xlu0 %877  ;;  %v1056_v58 = vsel %vm863_vm1, %v2941_v46, 0.0 }
 0x1b5   : > { %v2948_v59 = vpop.eup %2436  ;;  %2446 = vpow2.f32 %v1020_v47  ;;  %v1022_v63 = vmul.f32 1.442695, %v975_v0  ;;  %v964_v61 = vsub.f32 %v2818_v62, %v878_v55  ;;  %1057 = vadd.xlane.f32.xlu0 %v1056_v58  ;;  %v1080_v10 = vsel %vm863_vm1, %v2944_v51, 0.0 }
 0x1b6   : > { %v881_v2 = vpop.xlane.xlu1 %880  ;;  %v1089_v6 = vsel %vm863_vm1, %v2948_v59, 0.0 }
 0x1b7   : > { %v2953_v4 = vpop.eup %2438  ;;  %v1000_v7 = vmul.f32 1.442695, %v964_v61  ;;  %v965_v8 = vsub.f32 %v2828_v3, %v881_v2  ;;  %1090 = vadd.xlane.f32.xlu1 %v1089_v6  ;;  %2448 = vpow2.f32 %v1022_v63  ;;  %v2410_v2 = vld [vmem:[%s2997_s11] sm:$0xff]  }
 0x1b8   : > { %v902_v9 = vpop.xlane.xlu0 %901  ;;  %v1059_v11 = vsel %vm863_vm1, %v2953_v4, 0.0  ;;  %2257 = vmatprep.subr.bf16.mxu0 %v2410_v2 }
 0x1b9   : > { %2450 = vpow2.f32 %v1000_v7  ;;  %v1002_v62 = vmul.f32 1.442695, %v965_v8  ;;  %v972_v12 = vsub.f32 %v2824_v1, %v902_v9  ;;  %1081 = vadd.xlane.f32.xlu0 %v1080_v10  ;;  %v2961_v13 = vpop.eup %2440  ;;  %2258 = vmatpush3.bf16.msra.mxu0 %v2410_v2  ;;  %v2417_v2 = vld [vmem:[%s2997_s11 + $0x38] sm:$0xff]  }
 0x1ba   : > { %v905_v14 = vpop.xlane.xlu1 %904  ;;  %v1083_v27 = vsel %vm863_vm1, %v2961_v13, 0.0 }
 0x1bb   : > { %v2963_v48 = vpop.eup %2442  ;;  %v1016_v3 = vmul.f32 1.442695, %v972_v12  ;;  %v973_v15 = vsub.f32 %v2832_v5, %v905_v14  ;;  %1060 = vadd.xlane.f32.xlu1 %v1059_v11  ;;  %2452 = vpow2.f32 %v1002_v62  ;;  %v2411_v12 = vld [vmem:[%s2997_s11 + $0x8] sm:$0xff]   ;;  %v2412_v14 = vld [vmem:[%s2997_s11 + $0x20] sm:$0xff]  }
 0x1bc   : > { %v920_v18 = vpop.xlane.xlu0 %919  ;;  %v1074_v49 = vsel %vm863_vm1, %v2963_v48, 0.0  ;;  %2259 = vmatprep.subr.bf16.mxu0 %v2411_v12  ;;  %2273 = vmatprep.subr.bf16.mxu1 %v2412_v14 }
 0x1bd   : > { %2454 = vpow2.f32 %v1016_v3  ;;  %v1018_v52 = vmul.f32 1.442695, %v973_v15  ;;  %v978_v23 = vsub.f32 %v2854_v16, %v920_v18  ;;  %1075 = vadd.xlane.f32.xlu0 %v1074_v49  ;;  %v2969_v1 = vpop.eup %2444  ;;  %2260 = vmatpush3.bf16.msra.mxu0 %v2411_v12 }
 0x1be   : > { %v923_v53 = vpop.xlane.xlu1 %922  ;;  %v1077_v41 = vsel %vm863_vm1, %v2969_v1, 0.0  ;;  %2274 = vmatpush3.bf16.msra.mxu1 %v2412_v14 }
 0x1bf   : > { %v2973_v50 = vpop.eup %2446  ;;  %v1028_v5 = vmul.f32 1.442695, %v978_v23  ;;  %v979_v29 = vsub.f32 %v2862_v20, %v923_v53  ;;  %1084 = vadd.xlane.f32.xlu1 %v1083_v27  ;;  %2456 = vpow2.f32 %v1018_v52 }
 0x1c0   : > { %v944_v34 = vpop.xlane.xlu0 %943  ;;  %v1098_v54 = vsel %vm863_vm1, %v2973_v50, 0.0 }
 0x1c1   : > { %2458 = vpow2.f32 %v1028_v5  ;;  %v1030_v16 = vmul.f32 1.442695, %v979_v29  ;;  %v986_v38 = vsub.f32 %v2860_v19, %v944_v34  ;;  %1099 = vadd.xlane.f32.xlu0 %v1098_v54  ;;  %v2979_v56 = vpop.eup %2448  ;;  %v2413_v5 = vld [vmem:[%s2997_s11 + $0x10] sm:$0xff]   ;;  %v2414_v29 = vld [vmem:[%s2997_s11 + $0x28] sm:$0xff]  }
 0x1c2   : > { %v947_v40 = vpop.xlane.xlu1 %946  ;;  %v1101_v55 = vsel %vm863_vm1, %v2979_v56, 0.0  ;;  %2261 = vmatprep.subr.bf16.mxu0 %v2413_v5  ;;  %2275 = vmatprep.subr.bf16.mxu1 %v2414_v29 }
 0x1c3   : > { %v2983_v57 = vpop.eup %2450  ;;  %v1044_v20 = vmul.f32 1.442695, %v986_v38  ;;  %v987_v43 = vsub.f32 %v2870_v24, %v947_v40  ;;  %1078 = vadd.xlane.f32.xlu1 %v1077_v41  ;;  %2460 = vpow2.f32 %v1030_v16  ;;  %2262 = vmatpush3.bf16.msra.mxu0 %v2413_v5 }
 0x1c4   : > { %v914_v44 = vpop.xlane.xlu0 %913  ;;  %v1068_v60 = vsel %vm863_vm1, %v2983_v57, 0.0  ;;  %2276 = vmatpush3.bf16.msra.mxu1 %v2414_v29 }
 0x1c5   : > { %2462 = vpow2.f32 %v1044_v20  ;;  %v1046_v19 = vmul.f32 1.442695, %v987_v43  ;;  %v976_v45 = vsub.f32 %v2856_v17, %v914_v44  ;;  %1069 = vadd.xlane.f32.xlu0 %v1068_v60  ;;  %v2989_v47 = vpop.eup %2452  ;;  %v2415_v44 = vld [vmem:[%s2997_s11 + $0x18] sm:$0xff]   ;;  %v2416_v60 = vld [vmem:[%s2997_s11 + $0x30] sm:$0xff]  }
 0x1c6   : > { %v917_v0 = vpop.xlane.xlu1 %916  ;;  %2263 = vmatprep.subr.bf16.mxu0 %v2415_v44  ;;  %2277 = vmatprep.subr.bf16.mxu1 %v2416_v60 }
 0x1c7   : > { %v2999_v24 = vpop.eup %2454  ;;  %v1024_v58 = vmul.f32 1.442695, %v976_v45  ;;  %v977_v63 = vsub.f32 %v2866_v22, %v917_v0  ;;  %1102 = vadd.xlane.f32.xlu1 %v1101_v55  ;;  %2464 = vpow2.f32 %v1046_v19  ;;  %v1071_v22 = vsel %vm863_vm1, %v2989_v47, 0.0  ;;  %2264 = vmatpush3.bf16.msra.mxu0 %v2415_v44 }
 0x1c8   : > { %v938_v17 = vpop.xlane.xlu0 %937  ;;  %v1092_v61 = vsel %vm863_vm1, %v2999_v24, 0.0  ;;  %2278 = vmatpush3.bf16.msra.mxu1 %v2416_v60 }
 0x1c9   : > { %2466 = vpow2.f32 %v1024_v58  ;;  %v1026_v6 = vmul.f32 1.442695, %v977_v63  ;;  %v984_v7 = vsub.f32 %v2864_v21, %v938_v17  ;;  %1093 = vadd.xlane.f32.xlu0 %v1092_v61  ;;  %v3006_v8 = vpop.eup %2456  ;;  %2279 = vmatprep.subr.bf16.mxu1 %v2417_v2 }
 0x1ca   : > { %v941_v9 = vpop.xlane.xlu1 %940  ;;  %v1095_v52 = vsel %vm863_vm1, %v3006_v8, 0.0 }
 0x1cb   : > { %v3010_v10 = vpop.eup %2458  ;;  %v1040_v11 = vmul.f32 1.442695, %v984_v7  ;;  %v985_v62 = vsub.f32 %v2874_v26, %v941_v9  ;;  %1072 = vadd.xlane.f32.xlu1 %v1071_v22  ;;  %2468 = vpow2.f32 %v1026_v6 }
 0x1cc   : > { %v932_v3 = vpop.xlane.xlu0 %931  ;;  %v1110_v21 = vsel %vm863_vm1, %v3010_v10, 0.0  ;;  %2280 = vmatpush3.bf16.msra.mxu1 %v2417_v2 }
 0x1cd   : > { %2470 = vpow2.f32 %v1040_v11  ;;  %v1042_v15 = vmul.f32 1.442695, %v985_v62  ;;  %v982_v18 = vsub.f32 %v2878_v28, %v932_v3  ;;  %1111 = vadd.xlane.f32.xlu0 %v1110_v21  ;;  %v3018_v49 = vpop.eup %2460 }
 0x1ce   : > { %v935_v26 = vpop.xlane.xlu1 %934 }
 0x1cf   : > { %v3022_v23 = vpop.eup %2462  ;;  %v1036_v53 = vmul.f32 1.442695, %v982_v18  ;;  %v983_v27 = vsub.f32 %v2886_v32, %v935_v26  ;;  %1096 = vadd.xlane.f32.xlu1 %v1095_v52  ;;  %2472 = vpow2.f32 %v1042_v15  ;;  %v1113_v32 = vsel %vm863_vm1, %v3018_v49, 0.0 }
 0x1d0   : > { %v926_v28 = vpop.xlane.xlu0 %925  ;;  %v1134_v34 = vsel %vm863_vm1, %v3022_v23, 0.0 }
 0x1d1   : > { %2474 = vpow2.f32 %v1036_v53  ;;  %v1038_v54 = vmul.f32 1.442695, %v983_v27  ;;  %v980_v16 = vsub.f32 %v2882_v30, %v926_v28  ;;  %1135 = vadd.xlane.f32.xlu0 %v1134_v34  ;;  %v3030_v38 = vpop.eup %2464  ;;  %v3085_v34 = vld [vmem:[%s2997_s11 + $0x40] sm:$0xff]  }
 0x1d2   : > { %v929_v40 = vpop.xlane.xlu1 %928  ;;  %2289 = vmatprep.subr.bf16.mxu0 %v3085_v34 }
 0x1d3   : > { %v3034_v41 = vpop.eup %2466  ;;  %v1032_v20 = vmul.f32 1.442695, %v980_v16  ;;  %1114 = vadd.xlane.f32.xlu1 %v1113_v32  ;;  %v981_v43 = vsub.f32 %v2892_v35, %v929_v40  ;;  %2476 = vpow2.f32 %v1038_v54  ;;  %v1137_v35 = vsel %vm863_vm1, %v3030_v38, 0.0  ;;  %v3095_v40 = vld [vmem:[%s2997_s11 + $0x60] sm:$0xff]  }
 0x1d4   : > { %v950_v30 = vpop.xlane.xlu0 %949  ;;  %v1104_v19 = vsel %vm863_vm1, %v3034_v41, 0.0  ;;  %2305 = vmatprep.subr.bf16.mxu1 %v3095_v40 }
 0x1d5   : > { %2478 = vpow2.f32 %v1032_v20  ;;  %v1034_v45 = vmul.f32 1.442695, %v981_v43  ;;  %v988_v0 = vsub.f32 %v2888_v33, %v950_v30  ;;  %1105 = vadd.xlane.f32.xlu0 %v1104_v19  ;;  %v3042_v55 = vpop.eup %2468 }
 0x1d6   : > { %v953_v58 = vpop.xlane.xlu1 %952  ;;  %v1107_v11 = vsel %vm863_vm1, %v3042_v55, 0.0 }
 0x1d7   : > { %v3046_v63 = vpop.eup %2470  ;;  %v1048_v17 = vmul.f32 1.442695, %v988_v0  ;;  %1138 = vadd.xlane.f32.xlu1 %v1137_v35  ;;  %v989_v61 = vsub.f32 %v2896_v37, %v953_v58  ;;  %2480 = vpow2.f32 %v1034_v45 }
 0x1d8   : > { %v956_v6 = vpop.xlane.xlu0 %955  ;;  %v1128_v33 = vsel %vm863_vm1, %v3046_v63, 0.0 }
 0x1d9   : > { %2482 = vpow2.f32 %v1048_v17  ;;  %v1050_v7 = vmul.f32 1.442695, %v989_v61  ;;  %v990_v9 = vsub.f32 %v2884_v31, %v956_v6  ;;  %1129 = vadd.xlane.f32.xlu0 %v1128_v33  ;;  %v3053_v22 = vpop.eup %2472 }
 0x1da   : > { %v959_v37 = vpop.xlane.xlu1 %958  ;;  %v1131_v15 = vsel %vm863_vm1, %v3053_v22, 0.0 }
 0x1db   : > { %v3057_v62 = vpop.eup %2474  ;;  %v1052_v12 = vmul.f32 1.442695, %v990_v9  ;;  %1108 = vadd.xlane.f32.xlu1 %v1107_v11  ;;  %v991_v14 = vsub.f32 %v2894_v36, %v959_v37  ;;  %2484 = vpow2.f32 %v1050_v7 }
 0x1dc   : > { %v1122_v3 = vsel %vm863_vm1, %v3057_v62, 0.0 }
 0x1dd   : > { %2486 = vpow2.f32 %v1052_v12  ;;  %v1054_v31 = vmul.f32 1.442695, %v991_v14  ;;  %1123 = vadd.xlane.f32.xlu0 %v1122_v3  ;;  %v3062_v21 = vpop.eup %2476 }
 0x1de   : > { %v1125_v52 = vsel %vm863_vm1, %v3062_v21, 0.0 }
 0x1df   : > { %v3066_v18 = vpop.eup %2478  ;;  %1132 = vadd.xlane.f32.xlu1 %v1131_v15  ;;  %2488 = vpow2.f32 %v1054_v31 }
 0x1e0   : > { %v1116_v36 = vsel %vm863_vm1, %v3066_v18, 0.0 }
 0x1e1   : > { %1117 = vadd.xlane.f32.xlu0 %v1116_v36  ;;  %v3070_v26 = vpop.eup %2480 }
 0x1e2   : > { %v1119_v29 = vsel %vm863_vm1, %v3070_v26, 0.0 }
 0x1e3   : > { %v3074_v53 = vpop.eup %2482  ;;  %1126 = vadd.xlane.f32.xlu1 %v1125_v52 }
 0x1e4   : > { %v1140_v27 = vsel %vm863_vm1, %v3074_v53, 0.0 }
 0x1e5   : > { %1141 = vadd.xlane.f32.xlu0 %v1140_v27  ;;  %v3078_v5 = vpop.eup %2484 }
 0x1e6   : > { %v1143_v16 = vsel %vm863_vm1, %v3078_v5, 0.0 }
 0x1e7   : > { %v3082_v28 = vpop.eup %2486  ;;  %1120 = vadd.xlane.f32.xlu1 %v1119_v29 }
 0x1e8   : > { %v1146_v54 = vsel %vm863_vm1, %v3082_v28, 0.0 }
 0x1e9   : > { %1147 = vadd.xlane.f32.xlu0 %v1146_v54  ;;  %v3092_v32 = vpop.eup %2488  ;;  %v2419_v54 = vld [vmem:[%s2997_s11 + $0x48] sm:$0xff]  }
 0x1ea   : > { %v1149_v20 = vsel %vm863_vm1, %v3092_v32, 0.0 }
 0x1eb   : > { %1144 = vadd.xlane.f32.xlu1 %v1143_v16 }
 0x1ef   : > { %1150 = vadd.xlane.f32.xlu1 %v1149_v20 }
 0x23a   : > { %v1064_v43 = vpop.xlane.xlu0 %1063 }
 0x23b   : > { %2490 = vrcp.f32 %v1064_v43 }
 0x23e   : > { %v1088_v44 = vpop.xlane.xlu0 %1087 }
 0x23f   : > { %2492 = vrcp.f32 %v1088_v44 }
 0x240   : > { %v1067_v60 = vpop.xlane.xlu1 %1066 }
 0x241   : > { %2494 = vrcp.f32 %v1067_v60 }
 0x242   : > { %v1058_v30 = vpop.xlane.xlu0 %1057 }
 0x243   : > { %2496 = vrcp.f32 %v1058_v30  ;;  %v2421_v30 = vld [vmem:[%s2997_s11 + $0x50] sm:$0xff]  }
 0x244   : > { %v1091_v19 = vpop.xlane.xlu1 %1090 }
 0x245   : > { %v2491_v45 = vpop.eup %2490  ;;  %2498 = vrcp.f32 %v1091_v19  ;;  %v2422_v19 = vld [vmem:[%s2997_s11 + $0x68] sm:$0xff]  }
 0x246   : > { %v1186_v0 = vmul.f32 %v2491_v45, %v2925_v25  ;;  %v1082_v35 = vpop.xlane.xlu0 %1081 }
 0x247   : > { %2500 = vrcp.f32 %v1082_v35 }
 0x248   : > { %1799 = vst.msk [vmem:[%s3104_s14 + $0x10] sm:$0xff] %vm863_vm1, %v1186_v0  ;;  %v1061_v58 = vpop.xlane.xlu1 %1060 }
 0x249   : > { %v2493_v17 = vpop.eup %2492  ;;  %2502 = vrcp.f32 %v1061_v58 }
 0x24a   : > { %v1194_v61 = vmul.f32 %v2493_v17, %v2931_v39  ;;  %v1076_v2 = vpop.xlane.xlu0 %1075  ;;  %v2424_v17 = vld [vmem:[%s2997_s11 + $0x70] sm:$0xff]  }
 0x24b   : > { %v2495_v6 = vpop.eup %2494  ;;  %2504 = vrcp.f32 %v1076_v2 }
 0x24c   : > { %1807 = vst.msk [vmem:[%s3104_s14 + $0x50] sm:$0xff] %vm863_vm1, %v1194_v61  ;;  %v1187_v25 = vmul.f32 %v2495_v6, %v2936_v42  ;;  %v1085_v33 = vpop.xlane.xlu1 %1084 }
 0x24d   : > { %v2497_v7 = vpop.eup %2496  ;;  %2506 = vrcp.f32 %v1085_v33  ;;  %v2425_v33 = vld [vmem:[%s2997_s11 + $0x78] sm:$0xff]  }
 0x24e   : > { %1800 = vst.msk [vmem:[%s3104_s14 + $0x18] sm:$0xff] %vm863_vm1, %v1187_v25  ;;  %v1100_v9 = vpop.xlane.xlu0 %1099  ;;  %v1184_v11 = vmul.f32 %v2497_v7, %v2941_v46 }
 0x24f   : > { %v2499_v37 = vpop.eup %2498  ;;  %2508 = vrcp.f32 %v1100_v9 }
 0x250   : > { %v1195_v39 = vmul.f32 %v2499_v37, %v2948_v59  ;;  %v1079_v12 = vpop.xlane.xlu1 %1078  ;;  %1797 = vst.msk [vmem:[%s3104_s14] sm:$0xff] %vm863_vm1, %v1184_v11 }
 0x251   : > { %v2501_v14 = vpop.eup %2500  ;;  %2510 = vrcp.f32 %v1079_v12 }
 0x252   : > { %1808 = vst.msk [vmem:[%s3104_s14 + $0x58] sm:$0xff] %vm863_vm1, %v1195_v39  ;;  %v1070_v42 = vpop.xlane.xlu0 %1069  ;;  %v1192_v3 = vmul.f32 %v2501_v14, %v2944_v51  ;;  %v1217_v51 = vpack.c.bf16 %v1187_v25, %v1186_v0 }
 0x253   : > { %v2503_v31 = vpop.eup %2502  ;;  %2512 = vrcp.f32 %v1070_v42 }
 0x254   : > { %v1103_v15 = vpop.xlane.xlu1 %1102  ;;  %v1185_v46 = vmul.f32 %v2503_v31, %v2953_v4  ;;  %1805 = vst.msk [vmem:[%s3104_s14 + $0x40] sm:$0xff] %vm863_vm1, %v1192_v3 }
 0x255   : > { %v2505_v59 = vpop.eup %2504  ;;  %2514 = vrcp.f32 %v1103_v15 }
 0x256   : > { %v1094_v36 = vpop.xlane.xlu0 %1093  ;;  %v1216_v52 = vpack.c.bf16 %v1185_v46, %v1184_v11  ;;  %1798 = vst.msk [vmem:[%s3104_s14 + $0x8] sm:$0xff] %vm863_vm1, %v1185_v46  ;;  %v3127_v27 = vmul.f32 %v2505_v59, %v2963_v48 }
 0x257   : > { %v2507_v29 = vpop.eup %2506  ;;  %2516 = vrcp.f32 %v1094_v36 }
 0x258   : > { %2265 = vmatprep.mubr.msk.bf16.mxu0 %vm863_vm1, %v1216_v52  ;;  %v1073_v4 = vpop.xlane.xlu1 %1072  ;;  %v1193_v16 = vmul.f32 %v2507_v29, %v2961_v13  ;;  %1803 = vst.msk [vmem:[%s3104_s14 + $0x30] sm:$0xff] %vm863_vm1, %v3127_v27  ;;  %v1221_v13 = vpack.c.bf16 %v1195_v39, %v1194_v61 }
 0x259   : > { %v2509_v20 = vpop.eup %2508  ;;  %2518 = vrcp.f32 %v1073_v4  ;;  %2266 = vmatmul.mubr.msk.bf16.vlgmr.msra.gmra.mrb[16].mxu0 %vm863_vm1, %v1217_v51 }
 0x25a   : > { %v1112_v48 = vpop.xlane.xlu0 %1111  ;;  %v1220_v43 = vpack.c.bf16 %v1193_v16, %v1192_v3  ;;  %1806 = vst.msk [vmem:[%s3104_s14 + $0x48] sm:$0xff] %vm863_vm1, %v1193_v16  ;;  %2290 = vmatpush3.bf16.msra.mxu0 %v3085_v34  ;;  %v3140_v44 = vmul.f32 %v2509_v20, %v2973_v50 }
 0x25b   : > { %v2511_v60 = vpop.eup %2510  ;;  %2520 = vrcp.f32 %v1112_v48  ;;  %2291 = vmatprep.subr.bf16.mxu0 %v2419_v54 }
 0x25c   : > { %2281 = vmatprep.mubr.msk.bf16.mxu1 %vm863_vm1, %v1220_v43  ;;  %v1097_v45 = vpop.xlane.xlu1 %1096  ;;  %v1191_v0 = vmul.f32 %v2511_v60, %v2969_v1  ;;  %1811 = vst.msk [vmem:[%s3104_s14 + $0x70] sm:$0xff] %vm863_vm1, %v3140_v44  ;;  %v2423_v1 = vld [vmem:[%s2997_s11 + $0x58] sm:$0xff]  }
 0x25d   : > { %v2513_v50 = vpop.eup %2512  ;;  %2522 = vrcp.f32 %v1097_v45  ;;  %2282 = vmatmul.mubr.msk.bf16.vlgmr.msra.gmra.mrb[16].mxu1 %vm863_vm1, %v1221_v13 }
 0x25e   : > { %v1136_v34 = vpop.xlane.xlu0 %1135  ;;  %v1188_v35 = vmul.f32 %v2513_v50, %v2983_v57  ;;  %1804 = vst.msk [vmem:[%s3104_s14 + $0x38] sm:$0xff] %vm863_vm1, %v1191_v0  ;;  %2292 = vmatpush3.bf16.msra.mxu0 %v2419_v54  ;;  %2306 = vmatpush3.bf16.msra.mxu1 %v3095_v40  ;;  %v1219_v12 = vpack.c.bf16 %v1191_v0, %v3127_v27 }
 0x25f   : > { %v2515_v58 = vpop.eup %2514  ;;  %2524 = vrcp.f32 %v1136_v34  ;;  %2293 = vmatprep.subr.bf16.mxu0 %v2421_v30  ;;  %2307 = vmatprep.subr.bf16.mxu1 %v2422_v19 }
 0x260   : > { %v1115_v61 = vpop.xlane.xlu1 %1114  ;;  %1801 = vst.msk [vmem:[%s3104_s14 + $0x20] sm:$0xff] %vm863_vm1, %v1188_v35  ;;  %v1199_v2 = vmul.f32 %v2515_v58, %v2979_v56 }
 0x261   : > { %v2517_v57 = vpop.eup %2516  ;;  %2526 = vrcp.f32 %v1115_v61 }
 0x262   : > { %v1106_v6 = vpop.xlane.xlu0 %1105  ;;  %v1196_v25 = vmul.f32 %v2517_v57, %v2999_v24  ;;  %1812 = vst.msk [vmem:[%s3104_s14 + $0x78] sm:$0xff] %vm863_vm1, %v1199_v2  ;;  %2294 = vmatpush3.bf16.msra.mxu0 %v2421_v30  ;;  %2308 = vmatpush3.bf16.msra.mxu1 %v2422_v19  ;;  %v1223_v46 = vpack.c.bf16 %v1199_v2, %v3140_v44 }
 0x263   : > { %v2519_v40 = vpop.eup %2518  ;;  %2528 = vrcp.f32 %v1106_v6  ;;  %2295 = vmatprep.subr.bf16.mxu0 %v2423_v1  ;;  %2309 = vmatprep.subr.bf16.mxu1 %v2424_v17 }
 0x264   : > { %v1139_v7 = vpop.xlane.xlu1 %1138  ;;  %v1189_v9 = vmul.f32 %v2519_v40, %v2989_v47  ;;  %1809 = vst.msk [vmem:[%s3104_s14 + $0x60] sm:$0xff] %vm863_vm1, %v1196_v25 }
 0x265   : > { %v2521_v56 = vpop.eup %2520  ;;  %2530 = vrcp.f32 %v1139_v7 }
 0x266   : > { %v3167_v24 = vmul.f32 %v2521_v56, %v3010_v10  ;;  %v1130_v11 = vpop.xlane.xlu0 %1129  ;;  %v1218_v37 = vpack.c.bf16 %v1189_v9, %v1188_v35  ;;  %1802 = vst.msk [vmem:[%s3104_s14 + $0x28] sm:$0xff] %vm863_vm1, %v1189_v9  ;;  %2296 = vmatpush3.bf16.msra.mxu0 %v2423_v1  ;;  %2310 = vmatpush3.bf16.msra.mxu1 %v2424_v17 }
 0x267   : > { %v2523_v39 = vpop.eup %2522  ;;  %2532 = vrcp.f32 %v1130_v11  ;;  %2311 = vmatprep.subr.bf16.mxu1 %v2425_v33 }
 0x268   : > { %1815 = vst.msk [vmem:[%s3104_s14 + $0x90] sm:$0xff] %vm863_vm1, %v3167_v24  ;;  %2269 = vmatprep.mubr.msk.bf16.mxu0 %vm863_vm1, %v1218_v37  ;;  %v1109_v47 = vpop.xlane.xlu1 %1108  ;;  %v1197_v10 = vmul.f32 %v2523_v39, %v3006_v8 }
 0x269   : > { %v2525_v14 = vpop.eup %2524  ;;  %2534 = vrcp.f32 %v1109_v47  ;;  %2270 = vmatmul.mubr.msk.bf16.gmra.mrb[20].mxu0 %vm863_vm1, %v1219_v12 }
 0x26a   : > { %v1210_v42 = vmul.f32 %v2525_v14, %v3022_v23  ;;  %v1124_v3 = vpop.xlane.xlu0 %1123  ;;  %v1222_v31 = vpack.c.bf16 %v1197_v10, %v1196_v25  ;;  %1810 = vst.msk [vmem:[%s3104_s14 + $0x68] sm:$0xff] %vm863_vm1, %v1197_v10  ;;  %2312 = vmatpush3.bf16.msra.mxu1 %v2425_v33 }
 0x26b   : > { %v2527_v15 = vpop.eup %2526  ;;  %2536 = vrcp.f32 %v1124_v3 }
 0x26c   : > { %1823 = vst.msk [vmem:[%s3104_s14 + $0xd0] sm:$0xff] %vm863_vm1, %v1210_v42  ;;  %v1203_v8 = vmul.f32 %v2527_v15, %v3018_v49  ;;  %2285 = vmatprep.mubr.msk.bf16.mxu1 %vm863_vm1, %v1222_v31  ;;  %v1133_v59 = vpop.xlane.xlu1 %1132 }
 0x26d   : > { %v2529_v36 = vpop.eup %2528  ;;  %2538 = vrcp.f32 %v1133_v59  ;;  %2286 = vmatmul.mubr.msk.bf16.gmra.mrb[20].mxu1 %vm863_vm1, %v1223_v46 }
 0x26e   : > { %1816 = vst.msk [vmem:[%s3104_s14 + $0x98] sm:$0xff] %vm863_vm1, %v1203_v8  ;;  %v1118_v23 = vpop.xlane.xlu0 %1117  ;;  %v1200_v52 = vmul.f32 %v2529_v36, %v3034_v41 }
 0x26f   : > { %v2531_v27 = vpop.eup %2530  ;;  %2540 = vrcp.f32 %v1118_v23 }
 0x270   : > { %v1211_v29 = vmul.f32 %v2531_v27, %v3030_v38  ;;  %v1127_v51 = vpop.xlane.xlu1 %1126  ;;  %1813 = vst.msk [vmem:[%s3104_s14 + $0x80] sm:$0xff] %vm863_vm1, %v1200_v52 }
 0x271   : > { %v2533_v49 = vpop.eup %2532  ;;  %2542 = vrcp.f32 %v1127_v51 }
 0x272   : > { %1824 = vst.msk [vmem:[%s3104_s14 + $0xd8] sm:$0xff] %vm863_vm1, %v1211_v29  ;;  %v1142_v54 = vpop.xlane.xlu0 %1141  ;;  %v1208_v4 = vmul.f32 %v2533_v49, %v3046_v63  ;;  %v1225_v63 = vpack.c.bf16 %v1203_v8, %v3167_v24  ;;  %v1229_v0 = vpack.c.bf16 %v1211_v29, %v1210_v42 }
 0x273   : > { %v2535_v16 = vpop.eup %2534  ;;  %2544 = vrcp.f32 %v1142_v54 }
 0x274   : > { %v1121_v20 = vpop.xlane.xlu1 %1120  ;;  %v1201_v41 = vmul.f32 %v2535_v16, %v3042_v55  ;;  %1821 = vst.msk [vmem:[%s3104_s14 + $0xc0] sm:$0xff] %vm863_vm1, %v1208_v4 }
 0x275   : > { %v2537_v38 = vpop.eup %2536  ;;  %2546 = vrcp.f32 %v1121_v20 }
 0x276   : > { %v1148_v48 = vpop.xlane.xlu0 %1147  ;;  %v1224_v43 = vpack.c.bf16 %v1201_v41, %v1200_v52  ;;  %1814 = vst.msk [vmem:[%s3104_s14 + $0x88] sm:$0xff] %vm863_vm1, %v1201_v41  ;;  %v1206_v44 = vmul.f32 %v2537_v38, %v3057_v62 }
 0x277   : > { %v2539_v60 = vpop.eup %2538  ;;  %2548 = vrcp.f32 %v1148_v48 }
 0x278   : > { %2297 = vmatprep.mubr.msk.bf16.mxu0 %vm863_vm1, %v1224_v43  ;;  %v1145_v13 = vpop.xlane.xlu1 %1144  ;;  %v1209_v55 = vmul.f32 %v2539_v60, %v3053_v22  ;;  %1819 = vst.msk [vmem:[%s3104_s14 + $0xb0] sm:$0xff] %vm863_vm1, %v1206_v44 }
 0x279   : > { %v2541_v30 = vpop.eup %2540  ;;  %2550 = vrcp.f32 %v1145_v13  ;;  %2298 = vmatmul.mubr.msk.bf16.vlgmr.msra.gmra.mrb[24].mxu0 %vm863_vm1, %v1225_v63 }
 0x27a   : > { %v1228_v19 = vpack.c.bf16 %v1209_v55, %v1208_v4  ;;  %1822 = vst.msk [vmem:[%s3104_s14 + $0xc8] sm:$0xff] %vm863_vm1, %v1209_v55  ;;  %v1204_v62 = vmul.f32 %v2541_v30, %v3066_v18 }
 0x27b   : > { %v2543_v45 = vpop.eup %2542 }
 0x27c   : > { %2313 = vmatprep.mubr.msk.bf16.mxu1 %vm863_vm1, %v1228_v19  ;;  %v1151_v50 = vpop.xlane.xlu1 %1150  ;;  %1817 = vst.msk [vmem:[%s3104_s14 + $0xa0] sm:$0xff] %vm863_vm1, %v1204_v62  ;;  %v1207_v22 = vmul.f32 %v2543_v45, %v3062_v21 }
 0x27d   : > { %v2545_v34 = vpop.eup %2544  ;;  %2552 = vrcp.f32 %v1151_v50  ;;  %2314 = vmatmul.mubr.msk.bf16.vlgmr.msra.gmra.mrb[24].mxu1 %vm863_vm1, %v1229_v0 }
 0x27e   : > { %1820 = vst.msk [vmem:[%s3104_s14 + $0xb8] sm:$0xff] %vm863_vm1, %v1207_v22  ;;  %v1212_v18 = vmul.f32 %v2545_v34, %v3074_v53  ;;  %v1227_v2 = vpack.c.bf16 %v1207_v22, %v1206_v44 }
 0x27f   : > { %v2547_v35 = vpop.eup %2546 }
 0x280   : > { %v1205_v58 = vmul.f32 %v2547_v35, %v3070_v26  ;;  %1825 = vst.msk [vmem:[%s3104_s14 + $0xe0] sm:$0xff] %vm863_vm1, %v1212_v18 }
 0x281   : > { %v2549_v1 = vpop.eup %2548 }
 0x282   : > { %v1226_v17 = vpack.c.bf16 %v1205_v58, %v1204_v62  ;;  %1818 = vst.msk [vmem:[%s3104_s14 + $0xa8] sm:$0xff] %vm863_vm1, %v1205_v58  ;;  %v1214_v21 = vmul.f32 %v2549_v1, %v3082_v28 }
 0x283   : > { %v2551_v61 = vpop.eup %2550 }
 0x284   : > { %2301 = vmatprep.mubr.msk.bf16.mxu0 %vm863_vm1, %v1226_v17  ;;  %v1213_v53 = vmul.f32 %v2551_v61, %v3078_v5  ;;  %1827 = vst.msk [vmem:[%s3104_s14 + $0xf0] sm:$0xff] %vm863_vm1, %v1214_v21 }
 0x285   : > { %2302 = vmatmul.mubr.msk.bf16.gmra.mrb[28].mxu0 %vm863_vm1, %v1227_v2 }
 0x286   : > { %v1230_v26 = vpack.c.bf16 %v1213_v53, %v1212_v18  ;;  %1826 = vst.msk [vmem:[%s3104_s14 + $0xe8] sm:$0xff] %vm863_vm1, %v1213_v53 }
 0x287   : > { %v2553_v57 = vpop.eup %2552 }
 0x288   : > { %2317 = vmatprep.mubr.msk.bf16.mxu1 %vm863_vm1, %v1230_v26  ;;  %v1215_v28 = vmul.f32 %v2553_v57, %v3092_v32 }
 0x28a   : > { %v1231_v6 = vpack.c.bf16 %v1215_v28, %v1214_v21  ;;  %1828 = vst.msk [vmem:[%s3104_s14 + $0xf8] sm:$0xff] %vm863_vm1, %v1215_v28 }
 0x28c   : > { %2318 = vmatmul.mubr.msk.bf16.gmra.mrb[28].mxu1 %vm863_vm1, %v1231_v6 }
 0x28d   : > { %2567 = shalt.err (!%p2564_p3)
}
 0x28e   : > { %s2568_s8 = scalar_lea.hbm %s3242_s29, 4096  ;;  %s2572_s11 = scalar_lea.hbm %s3363_s4, 8192 }
 0x28f   : > { %p2569_p4 = scmp.ne.s32.totalorder %s3242_s29, %s2568_s8  ;;  %p2573_p9 = scmp.lt.u32.totalorder %s3242_s29, %s3363_s4 }
 0x290   : > { %p2574_p10 = scmp.lt.u32.totalorder %s2572_s11, %s2568_s8  ;;  %p2576_p12 = scmp.lt.u32.totalorder %s2568_s8, %s3242_s29 }
 0x291   : > { %p2570_p7 = pnand %p2569_p4, %p2684_p5 }
 0x292   : > { %p2575_p11 = por %p2574_p10, %p2573_p9 }
 0x293   : > { %p2571_p8 = pneg %p2570_p7 }
 0x294   : > { %p2577_p13 = por %p2576_p12, %p2575_p11 }
 0x296   : > { %p2578_p0 = pnand %p2577_p13, %p2571_p8 }
 0x298   : > { %2581 = shalt.err (!%p2578_p0)
}
 0x299   : > { %s2619_s14 = smov 128   ;;  %s2620_s20 = smov 8   ;;  %vm1764_vm2 = vcmask 60416  }
 0x29a   : > { %2337 = dma.vmem_to_hbm [thread:$0]  (%p2684_p5), %s3244_s22, 4096, %s3242_s29, %s3248_s30, %s2619_s14, %s2619_s14, %s2620_s20  }
 0x29b   : > { %s3276_s5 = scalar_lea.vmem %s3362_s3, %s2696_s28 }
 0x32c   : > { %v2267_v5 = vpop.f32.mrb[16].mxu0 }
 0x32d   : > { %v2098_v32 = vpack.c.bf16 %v2267_v5, %v2267_v5  ;;  %v1302_v25 = vpop.f32.mrb[17].mxu0 }
 0x32e   : > { %v2096_v40 = vpack.c.bf16 %v1302_v25, %v1302_v25  ;;  %v2268_v33 = vpop.f32.mrb[18].mxu0 }
 0x32f   : > { %1767 = vst.msk [vmem:[%s3276_s5 + $0x8] sm:$0xf] %vm1764_vm2, %v2098_v32  ;;  %v2099_v7 = vpack.c.bf16 %v2268_v33, %v2268_v33  ;;  %v1305_v9 = vpop.f32.mrb[19].mxu0 }
 0x330   : > { %1765 = vst.msk [vmem:[%s3276_s5] sm:$0xf] %vm1764_vm2, %v2096_v40  ;;  %v2097_v56 = vpack.c.bf16 %v1305_v9, %v1305_v9  ;;  %v2283_v24 = vpop.f32.mrb[16].mxu1 }
 0x331   : > { %1768 = vst.msk [vmem:[%s3276_s5 + $0xc] sm:$0xf] %vm1764_vm2, %v2099_v7  ;;  %v2106_v11 = vpack.c.bf16 %v2283_v24, %v2283_v24  ;;  %v1403_v37 = vpop.f32.mrb[17].mxu1 }
 0x332   : > { %1766 = vst.msk [vmem:[%s3276_s5 + $0x4] sm:$0xf] %vm1764_vm2, %v2097_v56  ;;  %v2104_v39 = vpack.c.bf16 %v1403_v37, %v1403_v37  ;;  %v2284_v12 = vpop.f32.mrb[18].mxu1 }
 0x333   : > { %1775 = vst.msk [vmem:[%s3276_s5 + $0x28] sm:$0xf] %vm1764_vm2, %v2106_v11  ;;  %v2107_v47 = vpack.c.bf16 %v2284_v12, %v2284_v12  ;;  %v1406_v10 = vpop.f32.mrb[19].mxu1 }
 0x334   : > { %1773 = vst.msk [vmem:[%s3276_s5 + $0x20] sm:$0xf] %vm1764_vm2, %v2104_v39  ;;  %v2105_v14 = vpack.c.bf16 %v1406_v10, %v1406_v10 }
 0x335   : > { %1776 = vst.msk [vmem:[%s3276_s5 + $0x2c] sm:$0xf] %vm1764_vm2, %v2107_v47 }
 0x336   : > { %1774 = vst.msk [vmem:[%s3276_s5 + $0x24] sm:$0xf] %vm1764_vm2, %v2105_v14 }
 0x33c   : > { %v2271_v42 = vpop.f32.mrb[20].mxu0 }
 0x33d   : > { %v2102_v3 = vpack.c.bf16 %v2271_v42, %v2271_v42  ;;  %v1318_v31 = vpop.f32.mrb[21].mxu0 }
 0x33e   : > { %v2100_v15 = vpack.c.bf16 %v1318_v31, %v1318_v31  ;;  %v2272_v46 = vpop.f32.mrb[22].mxu0 }
 0x33f   : > { %1771 = vst.msk [vmem:[%s3276_s5 + $0x18] sm:$0xf] %vm1764_vm2, %v2102_v3  ;;  %v2103_v8 = vpack.c.bf16 %v2272_v46, %v2272_v46  ;;  %v1321_v59 = vpop.f32.mrb[23].mxu0 }
 0x340   : > { %1769 = vst.msk [vmem:[%s3276_s5 + $0x10] sm:$0xf] %vm1764_vm2, %v2100_v15  ;;  %v2101_v36 = vpack.c.bf16 %v1321_v59, %v1321_v59  ;;  %v2287_v23 = vpop.f32.mrb[20].mxu1 }
 0x341   : > { %1772 = vst.msk [vmem:[%s3276_s5 + $0x1c] sm:$0xf] %vm1764_vm2, %v2103_v8  ;;  %v2110_v52 = vpack.c.bf16 %v2287_v23, %v2287_v23  ;;  %v1419_v27 = vpop.f32.mrb[21].mxu1 }
 0x342   : > { %1770 = vst.msk [vmem:[%s3276_s5 + $0x14] sm:$0xf] %vm1764_vm2, %v2101_v36  ;;  %v2108_v29 = vpack.c.bf16 %v1419_v27, %v1419_v27  ;;  %v2288_v51 = vpop.f32.mrb[22].mxu1 }
 0x343   : > { %1779 = vst.msk [vmem:[%s3276_s5 + $0x38] sm:$0xf] %vm1764_vm2, %v2110_v52  ;;  %v2111_v49 = vpack.c.bf16 %v2288_v51, %v2288_v51  ;;  %v1422_v54 = vpop.f32.mrb[23].mxu1 }
 0x344   : > { %1777 = vst.msk [vmem:[%s3276_s5 + $0x30] sm:$0xf] %vm1764_vm2, %v2108_v29  ;;  %v2109_v4 = vpack.c.bf16 %v1422_v54, %v1422_v54 }
 0x345   : > { %1780 = vst.msk [vmem:[%s3276_s5 + $0x3c] sm:$0xf] %vm1764_vm2, %v2111_v49 }
 0x346   : > { %1778 = vst.msk [vmem:[%s3276_s5 + $0x34] sm:$0xf] %vm1764_vm2, %v2109_v4 }
 0x34c   : > { %v2299_v16 = vpop.f32.mrb[24].mxu0 }
 0x34d   : > { %v2114_v20 = vpack.c.bf16 %v2299_v16, %v2299_v16  ;;  %v1504_v41 = vpop.f32.mrb[25].mxu0 }
 0x34e   : > { %v2112_v38 = vpack.c.bf16 %v1504_v41, %v1504_v41  ;;  %v2300_v48 = vpop.f32.mrb[26].mxu0 }
 0x34f   : > { %1783 = vst.msk [vmem:[%s3276_s5 + $0x48] sm:$0xf] %vm1764_vm2, %v2114_v20  ;;  %v2115_v43 = vpack.c.bf16 %v2300_v48, %v2300_v48  ;;  %v1507_v44 = vpop.f32.mrb[27].mxu0 }
 0x350   : > { %1781 = vst.msk [vmem:[%s3276_s5 + $0x40] sm:$0xf] %vm1764_vm2, %v2112_v38  ;;  %v2113_v60 = vpack.c.bf16 %v1507_v44, %v1507_v44  ;;  %v2315_v63 = vpop.f32.mrb[24].mxu1 }
 0x351   : > { %1784 = vst.msk [vmem:[%s3276_s5 + $0x4c] sm:$0xf] %vm1764_vm2, %v2115_v43  ;;  %v2122_v13 = vpack.c.bf16 %v2315_v63, %v2315_v63  ;;  %v1605_v55 = vpop.f32.mrb[25].mxu1 }
 0x352   : > { %1782 = vst.msk [vmem:[%s3276_s5 + $0x44] sm:$0xf] %vm1764_vm2, %v2113_v60  ;;  %v2120_v30 = vpack.c.bf16 %v1605_v55, %v1605_v55  ;;  %v2316_v19 = vpop.f32.mrb[26].mxu1 }
 0x353   : > { %1791 = vst.msk [vmem:[%s3276_s5 + $0x68] sm:$0xf] %vm1764_vm2, %v2122_v13  ;;  %v2123_v62 = vpack.c.bf16 %v2316_v19, %v2316_v19  ;;  %v1608_v45 = vpop.f32.mrb[27].mxu1 }
 0x354   : > { %1789 = vst.msk [vmem:[%s3276_s5 + $0x60] sm:$0xf] %vm1764_vm2, %v2120_v30  ;;  %v2121_v0 = vpack.c.bf16 %v1608_v45, %v1608_v45 }
 0x355   : > { %1792 = vst.msk [vmem:[%s3276_s5 + $0x6c] sm:$0xf] %vm1764_vm2, %v2123_v62 }
 0x356   : > { %1790 = vst.msk [vmem:[%s3276_s5 + $0x64] sm:$0xf] %vm1764_vm2, %v2121_v0 }
 0x358   : > { %v2303_v50 = vpop.f32.mrb[28].mxu0 }
 0x359   : > { %v2118_v22 = vpack.c.bf16 %v2303_v50, %v2303_v50  ;;  %v1520_v34 = vpop.f32.mrb[29].mxu0 }
 0x35a   : > { %v2116_v18 = vpack.c.bf16 %v1520_v34, %v1520_v34  ;;  %v2304_v35 = vpop.f32.mrb[30].mxu0 }
 0x35b   : > { %1787 = vst.msk [vmem:[%s3276_s5 + $0x58] sm:$0xf] %vm1764_vm2, %v2118_v22  ;;  %v2119_v58 = vpack.c.bf16 %v2304_v35, %v2304_v35  ;;  %v1523_v1 = vpop.f32.mrb[31].mxu0 }
 0x35c   : > { %1785 = vst.msk [vmem:[%s3276_s5 + $0x50] sm:$0xf] %vm1764_vm2, %v2116_v18  ;;  %v2117_v17 = vpack.c.bf16 %v1523_v1, %v1523_v1 }
 0x35d   : > { %1788 = vst.msk [vmem:[%s3276_s5 + $0x5c] sm:$0xf] %vm1764_vm2, %v2119_v58 }
 0x35e   : > { %1786 = vst.msk [vmem:[%s3276_s5 + $0x54] sm:$0xf] %vm1764_vm2, %v2117_v17 }
 0x35f   : > { %v2319_v21 = vpop.f32.mrb[28].mxu1 }
 0x360   : > { %v2126_v61 = vpack.c.bf16 %v2319_v21, %v2319_v21  ;;  %v1621_v2 = vpop.f32.mrb[29].mxu1 }
 0x361   : > { %v2124_v53 = vpack.c.bf16 %v1621_v2, %v1621_v2  ;;  %v2320_v26 = vpop.f32.mrb[30].mxu1 }
 0x362   : > { %1795 = vst.msk [vmem:[%s3276_s5 + $0x78] sm:$0xf] %vm1764_vm2, %v2126_v61  ;;  %v2127_v57 = vpack.c.bf16 %v2320_v26, %v2320_v26  ;;  %v1624_v28 = vpop.f32.mrb[31].mxu1 }
 0x363   : > { %1793 = vst.msk [vmem:[%s3276_s5 + $0x70] sm:$0xf] %vm1764_vm2, %v2124_v53  ;;  %v2125_v6 = vpack.c.bf16 %v1624_v28, %v1624_v28 }
 0x364   : > { %1796 = vst.msk [vmem:[%s3276_s5 + $0x7c] sm:$0xf] %vm1764_vm2, %v2127_v57 }
 0x365   : > { %1794 = vst.msk [vmem:[%s3276_s5 + $0x74] sm:$0xf] %vm1764_vm2, %v2125_v6 }
 0x366 PF: > { %p2343_p5 = scmp.ge.s32.totalorder %s2616_s18, 2  ;;  %s1874_s25 = sand.u32 1, %s2604_s15  }
 0x367   : > { %s1875_s28 = scalar_lea.sflag [#allocation3], %s1874_s25 }
 0x368   : > { %p2340_p1 = pnand %p2343_p5, %p2688_p6 }
 0x36a   : > { %2599 = dma.done.wait (!%p2340_p1), %s1875_s28, 4096  }
 0x36b   : > { %2601 = vsyncadd (!%p2340_p1), %s1875_s28, 4294963200  ;;  %p15_p2 = scmp.ge.s32.totalorder %s2671_s21, 4   ;;  %s3366_s15 = smov %s2608_s16 }
 0x36c   : > { %s3367_s16 = smov %s2612_s17  ;;  %s3368_s17 = smov %s2682_s24 }
 0x36d   : > { %s3369_s18 = smov %s2671_s21  ;;  %17 = sbr.rel (!%p15_p2) target bundleno = 3 (0x3), region = 85 }
 0x374   :  { %1880 = vsyncpa [#allocation3], 1 }
 0x375   :  { %1882 = vsyncpa [#allocation3 + $0x1], 1 }

// kernel: transformer_forward.19
= control target key start
LH: loop header
LB: loop body
LE: loop exit
PB: predicated region body
PF: predicated region fallthrough
CT: control target
= control target key end

     0   :  { %s2316_s15 = smov 0   ;;  %s3455_s0 = inlined_call_operand.vmem [shape: f32[2,6,6,6,64], index: 0, kind: input, shape index: {}]   ;;  %s3456_s1 = inlined_call_operand.vmem [shape: f32[27,64], index: 1, kind: input, shape index: {}]   ;;  %s3457_s2 = inlined_call_operand.vmem [shape: f32[1,64], index: 2, kind: input, shape index: {}]   ;;  %s3458_s3 = inlined_call_operand.vmem [shape: f32[1,64], index: 3, kind: input, shape index: {}]   ;;  %s3459_s4 = inlined_call_operand.vmem [shape: bf16[2,4,4,4,64], index: 4, kind: output, shape index: {}]  }
   0x1 LB: > { %s1828_s16 = sadd.s32 4294967295, %s2289_s15   ;;  %p1832_p0 = scmp.ge.s32.totalorder %s2289_s15, 1  ;;  %s2289_s15 = sphi %s2316_s15, %s14_s15  }
   0x2   : > { %p162_p1 = scmp.lt.s32.totalorder %s2289_s15, 3 }
   0x4   : > { %p163_p2 = pnand %p1832_p0, %p162_p1 }
   0x6   : > { %166 = sbr.rel (%p163_p2) target bundleno = 281 (0x119), region = 36 }
   0xd   : > { %p188_p3 = scmp.lt.s32.totalorder %s1828_s16, 1  ;;  %v218_v0 = vlaneseq  ;;  %v198_v3 = vld [vmem:[%s3456_s1] sm:$0xff]  ;;  %v2352_v10 = vld [vmem:[%s3456_s1 + $0x8] sm:$0xff]  ;;  %vm1756_vm0 = vcmask 517120  }
   0xf   : > { %s3481_s16 = smov (!%p188_p3, %s1828_s16), 1  ;;  %v219_v1 = vshrl.u32 %v218_v0, 7 }
  0x10   : > { %s2241_s17 = smul.u32 288, %s3481_s16  ;;  %s2240_s9 = sshll.u32 %s3481_s16, 5 }
  0x11   : > { %v2327_v2 = vsub.s32 0, %v219_v1  ;;  %v2337_v4 = vsub.s32 1, %v219_v1  ;;  %v2339_v5 = vsub.s32 2, %v219_v1  ;;  %v2341_v6 = vsub.s32 3, %v219_v1  ;;  %s3363_s12 = scalar_lea.vmem %s3459_s4, %s2240_s9 }
  0x12   : > { %s2332_s20 = scalar_lea.vmem %s3455_s0, %s2241_s17  ;;  %v2343_v7 = vsub.s32 4, %v219_v1  ;;  %v2345_v8 = vsub.s32 5, %v219_v1  ;;  %v2347_v9 = vsub.s32 6, %v219_v1  ;;  %v2357_v14 = vsub.s32 7, %v219_v1 }
  0x13   : > { %3468 = vst [vmem:[#allocation2_spill] sm:$0xff] %v2337_v4  ;;  %3469 = vst [vmem:[#allocation3_spill] sm:$0xff] %v2339_v5  ;;  %v202_v11 = vld [vmem:[%s2332_s20] sm:$0xf]  ;;  %v203_v12 = vld [vmem:[%s2332_s20 + $0x8] sm:$0xf]  ;;  %v221_v13 = vrot.slane %v198_v3, %v2327_v2  ;;  %v2366_v21 = vrot.slane %v198_v3, %v2337_v4  ;;  %v2369_v22 = vrot.slane %v198_v3, %v2339_v5 }
  0x14   : > { %3470 = vst [vmem:[#allocation4_spill] sm:$0xff] %v2341_v6  ;;  %3471 = vst [vmem:[#allocation5_spill] sm:$0xff] %v2343_v7  ;;  %v204_v15 = vld [vmem:[%s2332_s20 + $0x10] sm:$0xf]  ;;  %v205_v16 = vld [vmem:[%s2332_s20 + $0x18] sm:$0xf]  ;;  %v2375_v26 = vrot.slane %v198_v3, %v2341_v6  ;;  %v2378_v27 = vrot.slane %v198_v3, %v2343_v7  ;;  %v2381_v28 = vrot.slane %v198_v3, %v2345_v8 }
  0x15   : > { %3472 = vst [vmem:[#allocation6_spill] sm:$0xff] %v2345_v8  ;;  %3473 = vst [vmem:[#allocation7_spill] sm:$0xff] %v2347_v9  ;;  %v206_v17 = vld [vmem:[%s2332_s20 + $0x30] sm:$0xf]  ;;  %v207_v18 = vld [vmem:[%s2332_s20 + $0x38] sm:$0xf]  ;;  %v2384_v29 = vrot.slane %v198_v3, %v2347_v9  ;;  %v222_v33 = vmul.f32 %v221_v13, %v202_v11  ;;  %v223_v34 = vmul.f32 %v221_v13, %v203_v12 }
  0x16   : > { %v208_v19 = vld [vmem:[%s2332_s20 + $0x40] sm:$0xf]  ;;  %v209_v20 = vld [vmem:[%s2332_s20 + $0x48] sm:$0xf]  ;;  %v212_v25 = vld [vmem:[%s2332_s20 + $0x70] sm:$0xf]  ;;  %v224_v35 = vmul.f32 %v221_v13, %v204_v15  ;;  %v2390_v36 = vrot.slane %v198_v3, %v2357_v14  ;;  %v225_v39 = vmul.f32 %v221_v13, %v205_v16  ;;  %v226_v40 = vmul.f32 %v221_v13, %v206_v17 }
  0x17   : > { %v210_v23 = vld [vmem:[%s2332_s20 + $0x60] sm:$0xf]  ;;  %v211_v24 = vld [vmem:[%s2332_s20 + $0x68] sm:$0xf]  ;;  %v213_v30 = vld [vmem:[%s2332_s20 + $0x78] sm:$0xf]  ;;  %v227_v41 = vmul.f32 %v221_v13, %v207_v18  ;;  %v2397_v43 = vrot.slane %v2352_v10, %v2327_v2  ;;  %v228_v44 = vmul.f32 %v221_v13, %v208_v19  ;;  %v229_v45 = vmul.f32 %v221_v13, %v209_v20 }
  0x18   : > { %v214_v31 = vld [vmem:[%s2332_s20 + $0x90] sm:$0xf]  ;;  %v215_v32 = vld [vmem:[%s2332_s20 + $0x98] sm:$0xf]  ;;  %v216_v37 = vld [vmem:[%s2332_s20 + $0xa0] sm:$0xf]  ;;  %v230_v46 = vmul.f32 %v221_v13, %v210_v23  ;;  %v2404_v50 = vrot.slane %v2352_v10, %v2337_v4  ;;  %v231_v51 = vmul.f32 %v221_v13, %v211_v24  ;;  %v232_v52 = vmul.f32 %v221_v13, %v212_v25 }
  0x19   : > { %v217_v38 = vld [vmem:[%s2332_s20 + $0xa8] sm:$0xf]  ;;  %v238_v42 = vld [vmem:[%s2332_s20 + $0x1] sm:$0xf]  ;;  %v240_v48 = vld [vmem:[%s2332_s20 + $0x11] sm:$0xf]  ;;  %v233_v53 = vmul.f32 %v221_v13, %v213_v30  ;;  %v2411_v57 = vrot.slane %v2352_v10, %v2339_v5  ;;  %v234_v58 = vmul.f32 %v221_v13, %v214_v31  ;;  %v235_v59 = vmul.f32 %v221_v13, %v215_v32 }
  0x1a   : > { %v239_v47 = vld [vmem:[%s2332_s20 + $0x9] sm:$0xf]  ;;  %v241_v49 = vld [vmem:[%s2332_s20 + $0x19] sm:$0xf]  ;;  %v242_v54 = vld [vmem:[%s2332_s20 + $0x31] sm:$0xf]  ;;  %v236_v60 = vmul.f32 %v221_v13, %v216_v37  ;;  %v2418_v0 = vrot.slane %v2352_v10, %v2341_v6  ;;  %v237_v1 = vmul.f32 %v221_v13, %v217_v38  ;;  %v258_v15 = vmul.f32 %v2366_v21, %v238_v42 }
  0x1b   : > { %v243_v55 = vld [vmem:[%s2332_s20 + $0x39] sm:$0xf]  ;;  %v244_v56 = vld [vmem:[%s2332_s20 + $0x41] sm:$0xf]  ;;  %v245_v61 = vld [vmem:[%s2332_s20 + $0x49] sm:$0xf]  ;;  %v259_v16 = vmul.f32 %v2366_v21, %v239_v47  ;;  %v2427_v17 = vrot.slane %v2352_v10, %v2343_v7  ;;  %v260_v23 = vmul.f32 %v2366_v21, %v240_v48  ;;  %v261_v24 = vmul.f32 %v2366_v21, %v241_v49 }
  0x1c   : > { %v246_v62 = vld [vmem:[%s2332_s20 + $0x61] sm:$0xf]  ;;  %v247_v63 = vld [vmem:[%s2332_s20 + $0x69] sm:$0xf]  ;;  %v248_v3 = vld [vmem:[%s2332_s20 + $0x71] sm:$0xf]  ;;  %v262_v13 = vmul.f32 %v2366_v21, %v242_v54  ;;  %v2437_v25 = vrot.slane %v2352_v10, %v2345_v8  ;;  %v263_v30 = vmul.f32 %v2366_v21, %v243_v55  ;;  %v264_v31 = vmul.f32 %v2366_v21, %v244_v56 }
  0x1d   : > { %v249_v11 = vld [vmem:[%s2332_s20 + $0x79] sm:$0xf]  ;;  %v250_v12 = vld [vmem:[%s2332_s20 + $0x91] sm:$0xf]  ;;  %v252_v19 = vld [vmem:[%s2332_s20 + $0xa1] sm:$0xf]  ;;  %v265_v32 = vmul.f32 %v2366_v21, %v245_v61  ;;  %v2444_v37 = vrot.slane %v2352_v10, %v2347_v9  ;;  %v266_v38 = vmul.f32 %v2366_v21, %v246_v62  ;;  %v267_v42 = vmul.f32 %v2366_v21, %v247_v63 }
  0x1e   : > { %v251_v18 = vld [vmem:[%s2332_s20 + $0x99] sm:$0xf]  ;;  %v253_v20 = vld [vmem:[%s2332_s20 + $0xa9] sm:$0xf]  ;;  %v268_v47 = vmul.f32 %v2366_v21, %v248_v3  ;;  %v269_v48 = vmul.f32 %v2366_v21, %v249_v11  ;;  %v270_v49 = vmul.f32 %v2366_v21, %v250_v12  ;;  %v272_v55 = vmul.f32 %v2366_v21, %v252_v19  ;;  %v290_v56 = vld [vmem:[%s2332_s20 + $0x2] sm:$0xf] }
  0x1f   : > { %v271_v54 = vmul.f32 %v2366_v21, %v251_v18  ;;  %v273_v10 = vmul.f32 %v2366_v21, %v253_v20  ;;  %v274_v61 = vadd.f32 %v258_v15, %v222_v33  ;;  %v275_v62 = vadd.f32 %v259_v16, %v223_v34  ;;  %v291_v3 = vld [vmem:[%s2332_s20 + $0xa] sm:$0xf]  ;;  %v292_v11 = vld [vmem:[%s2332_s20 + $0x12] sm:$0xf]  ;;  %v293_v12 = vld [vmem:[%s2332_s20 + $0x1a] sm:$0xf] }
  0x20   : > { %v276_v9 = vadd.f32 %v260_v23, %v224_v35  ;;  %v277_v63 = vadd.f32 %v261_v24, %v225_v39  ;;  %v278_v8 = vadd.f32 %v262_v13, %v226_v40  ;;  %v279_v7 = vadd.f32 %v263_v30, %v227_v41  ;;  %v294_v19 = vld [vmem:[%s2332_s20 + $0x32] sm:$0xf]  ;;  %v295_v21 = vld [vmem:[%s2332_s20 + $0x3a] sm:$0xf]  ;;  %v296_v33 = vld [vmem:[%s2332_s20 + $0x42] sm:$0xf] }
  0x21   : > { %v280_v18 = vadd.f32 %v264_v31, %v228_v44  ;;  %v281_v6 = vadd.f32 %v265_v32, %v229_v45  ;;  %v282_v34 = vadd.f32 %v266_v38, %v230_v46  ;;  %v283_v35 = vadd.f32 %v267_v42, %v231_v51  ;;  %v297_v16 = vld [vmem:[%s2332_s20 + $0x4a] sm:$0xf]  ;;  %v298_v20 = vld [vmem:[%s2332_s20 + $0x62] sm:$0xf]  ;;  %v300_v45 = vld [vmem:[%s2332_s20 + $0x72] sm:$0xf] }
  0x22   : > { %v284_v39 = vadd.f32 %v268_v47, %v232_v52  ;;  %v285_v15 = vadd.f32 %v269_v48, %v233_v53  ;;  %v299_v23 = vld [vmem:[%s2332_s20 + $0x6a] sm:$0xf]  ;;  %v286_v40 = vadd.f32 %v270_v49, %v234_v58  ;;  %v287_v41 = vadd.f32 %v271_v54, %v235_v59  ;;  %v301_v13 = vld [vmem:[%s2332_s20 + $0x7a] sm:$0xf]  ;;  %v302_v30 = vld [vmem:[%s2332_s20 + $0x92] sm:$0xf] }
  0x23   : > { %v288_v44 = vadd.f32 %v272_v55, %v236_v60  ;;  %v289_v24 = vadd.f32 %v273_v10, %v237_v1  ;;  %v303_v31 = vld [vmem:[%s2332_s20 + $0x9a] sm:$0xf]  ;;  %v304_v32 = vld [vmem:[%s2332_s20 + $0xa2] sm:$0xf]  ;;  %v305_v5 = vld [vmem:[%s2332_s20 + $0xaa] sm:$0xf]  ;;  %v310_v4 = vmul.f32 %v2369_v22, %v290_v56  ;;  %v311_v46 = vmul.f32 %v2369_v22, %v291_v3 }
  0x24   : > { %v312_v51 = vmul.f32 %v2369_v22, %v292_v11  ;;  %v313_v52 = vmul.f32 %v2369_v22, %v293_v12  ;;  %v314_v53 = vmul.f32 %v2369_v22, %v294_v19  ;;  %v315_v58 = vmul.f32 %v2369_v22, %v295_v21  ;;  %v1836_v10 = vld [vmem:[%s2332_s20 + $0x8] sm:$0xf]  ;;  %v1837_v19 = vld [vmem:[%s2332_s20 + $0x10] sm:$0xf]  ;;  %v1838_v21 = vld [vmem:[%s2332_s20 + $0x18] sm:$0xf] }
  0x25   : > { %v316_v59 = vmul.f32 %v2369_v22, %v296_v33  ;;  %v317_v60 = vmul.f32 %v2369_v22, %v297_v16  ;;  %v318_v1 = vmul.f32 %v2369_v22, %v298_v20  ;;  %v319_v38 = vmul.f32 %v2369_v22, %v299_v23  ;;  %v1839_v33 = vld [vmem:[%s2332_s20 + $0x20] sm:$0xf] }
  0x26   : > { %v320_v42 = vmul.f32 %v2369_v22, %v300_v45  ;;  %v321_v47 = vmul.f32 %v2369_v22, %v301_v13  ;;  %v322_v48 = vmul.f32 %v2369_v22, %v302_v30  ;;  %v323_v49 = vmul.f32 %v2369_v22, %v303_v31  ;;  %v1840_v13 = vld [vmem:[%s2332_s20 + $0x38] sm:$0xf]  ;;  %v1844_v30 = vld [vmem:[%s2332_s20 + $0x68] sm:$0xf]  ;;  %v1845_v31 = vld [vmem:[%s2332_s20 + $0x70] sm:$0xf] }
  0x27   : > { %v324_v54 = vmul.f32 %v2369_v22, %v304_v32  ;;  %v325_v55 = vmul.f32 %v2369_v22, %v305_v5  ;;  %v326_v56 = vadd.f32 %v310_v4, %v274_v61  ;;  %v327_v3 = vadd.f32 %v311_v46, %v275_v62  ;;  %v1841_v5 = vld [vmem:[%s2332_s20 + $0x40] sm:$0xf]  ;;  %v1842_v4 = vld [vmem:[%s2332_s20 + $0x48] sm:$0xf] }
  0x28   : > { %v328_v11 = vadd.f32 %v312_v51, %v276_v9  ;;  %v329_v12 = vadd.f32 %v313_v52, %v277_v63  ;;  %v330_v16 = vadd.f32 %v314_v53, %v278_v8  ;;  %v331_v20 = vadd.f32 %v315_v58, %v279_v7  ;;  %v1843_v63 = vld [vmem:[%s2332_s20 + $0x50] sm:$0xf]  ;;  %v1847_v46 = vld [vmem:[%s2332_s20 + $0x80] sm:$0xf]  ;;  %v1848_v51 = vld [vmem:[%s2332_s20 + $0x98] sm:$0xf] }
  0x29   : > { %v332_v23 = vadd.f32 %v316_v59, %v280_v18  ;;  %v333_v45 = vadd.f32 %v317_v60, %v281_v6  ;;  %v334_v9 = vadd.f32 %v318_v1, %v282_v34  ;;  %v335_v22 = vadd.f32 %v319_v38, %v283_v35  ;;  %v1846_v6 = vld [vmem:[%s2332_s20 + $0x78] sm:$0xf]  ;;  %v1849_v52 = vld [vmem:[%s2332_s20 + $0xa0] sm:$0xf]  ;;  %v1850_v53 = vld [vmem:[%s2332_s20 + $0xa8] sm:$0xf] }
  0x2a   : > { %v336_v61 = vadd.f32 %v320_v42, %v284_v39  ;;  %v337_v62 = vadd.f32 %v321_v47, %v285_v15  ;;  %v338_v8 = vadd.f32 %v322_v48, %v286_v40  ;;  %v339_v7 = vadd.f32 %v323_v49, %v287_v41  ;;  %v1851_v58 = vld [vmem:[%s2332_s20 + $0xb0] sm:$0xf] }
  0x2b   : > { %v340_v18 = vadd.f32 %v324_v54, %v288_v44  ;;  %v341_v32 = vadd.f32 %v325_v55, %v289_v24  ;;  %v363_v59 = vmul.f32 %v1836_v10, %v2375_v26  ;;  %v364_v34 = vmul.f32 %v1837_v19, %v2375_v26  ;;  %v1852_v54 = vld [vmem:[%s2332_s20 + $0x9] sm:$0xf] }
  0x2c   : > { %v365_v35 = vmul.f32 %v1838_v21, %v2375_v26  ;;  %v366_v39 = vmul.f32 %v1839_v33, %v2375_v26  ;;  %v367_v15 = vmul.f32 %v1840_v13, %v2375_v26  ;;  %v368_v40 = vmul.f32 %v1841_v5, %v2375_v26  ;;  %v1853_v33 = vld [vmem:[%s2332_s20 + $0x11] sm:$0xf]  ;;  %v1854_v13 = vld [vmem:[%s2332_s20 + $0x19] sm:$0xf]  ;;  %v1855_v5 = vld [vmem:[%s2332_s20 + $0x21] sm:$0xf] }
  0x2d   : > { %v369_v41 = vmul.f32 %v1842_v4, %v2375_v26  ;;  %v370_v44 = vmul.f32 %v1843_v63, %v2375_v26  ;;  %v371_v24 = vmul.f32 %v1844_v30, %v2375_v26  ;;  %v372_v60 = vmul.f32 %v1845_v31, %v2375_v26 }
  0x2e   : > { %v373_v1 = vmul.f32 %v1846_v6, %v2375_v26  ;;  %v374_v38 = vmul.f32 %v1847_v46, %v2375_v26  ;;  %v375_v42 = vmul.f32 %v1848_v51, %v2375_v26  ;;  %v376_v47 = vmul.f32 %v1849_v52, %v2375_v26  ;;  %v1856_v6 = vld [vmem:[%s2332_s20 + $0x39] sm:$0xf]  ;;  %v1859_v51 = vld [vmem:[%s2332_s20 + $0x51] sm:$0xf]  ;;  %v1860_v52 = vld [vmem:[%s2332_s20 + $0x69] sm:$0xf] }
  0x2f   : > { %v377_v48 = vmul.f32 %v1850_v53, %v2375_v26  ;;  %v378_v49 = vmul.f32 %v1851_v58, %v2375_v26  ;;  %v379_v55 = vadd.f32 %v363_v59, %v326_v56  ;;  %v380_v10 = vadd.f32 %v364_v34, %v327_v3  ;;  %v1857_v26 = vld [vmem:[%s2332_s20 + $0x41] sm:$0xf]  ;;  %v1858_v56 = vld [vmem:[%s2332_s20 + $0x49] sm:$0xf]  ;;  %v1861_v53 = vld [vmem:[%s2332_s20 + $0x71] sm:$0xf] }
  0x30   : > { %v381_v19 = vadd.f32 %v365_v35, %v328_v11  ;;  %v382_v21 = vadd.f32 %v366_v39, %v329_v12  ;;  %v383_v4 = vadd.f32 %v367_v15, %v330_v16  ;;  %v384_v63 = vadd.f32 %v368_v40, %v331_v20  ;;  %v1863_v59 = vld [vmem:[%s2332_s20 + $0x81] sm:$0xf]  ;;  %v1864_v34 = vld [vmem:[%s2332_s20 + $0x99] sm:$0xf]  ;;  %v1866_v39 = vld [vmem:[%s2332_s20 + $0xa9] sm:$0xf] }
  0x31   : > { %v385_v30 = vadd.f32 %v369_v41, %v332_v23  ;;  %v386_v31 = vadd.f32 %v370_v44, %v333_v45  ;;  %v387_v3 = vadd.f32 %v371_v24, %v334_v9  ;;  %v388_v11 = vadd.f32 %v372_v60, %v335_v22  ;;  %v1862_v45 = vld [vmem:[%s2332_s20 + $0x79] sm:$0xf]  ;;  %v1865_v35 = vld [vmem:[%s2332_s20 + $0xa1] sm:$0xf]  ;;  %v1867_v15 = vld [vmem:[%s2332_s20 + $0xb1] sm:$0xf] }
  0x32   : > { %v389_v12 = vadd.f32 %v373_v1, %v336_v61  ;;  %v390_v46 = vadd.f32 %v374_v38, %v337_v62  ;;  %v391_v16 = vadd.f32 %v375_v42, %v338_v8  ;;  %v392_v20 = vadd.f32 %v376_v47, %v339_v7  ;;  %v1868_v47 = vld [vmem:[%s2332_s20 + $0xa] sm:$0xf] }
  0x33   : > { %v393_v23 = vadd.f32 %v377_v48, %v340_v18  ;;  %v394_v58 = vadd.f32 %v378_v49, %v341_v32  ;;  %v415_v40 = vmul.f32 %v1852_v54, %v2378_v27  ;;  %v416_v9 = vmul.f32 %v1853_v33, %v2378_v27 }
  0x34   : > { %v417_v22 = vmul.f32 %v1854_v13, %v2378_v27  ;;  %v418_v61 = vmul.f32 %v1855_v5, %v2378_v27  ;;  %v419_v62 = vmul.f32 %v1856_v6, %v2378_v27  ;;  %v420_v8 = vmul.f32 %v1857_v26, %v2378_v27  ;;  %v1869_v13 = vld [vmem:[%s2332_s20 + $0x12] sm:$0xf]  ;;  %v1870_v5 = vld [vmem:[%s2332_s20 + $0x1a] sm:$0xf]  ;;  %v1871_v6 = vld [vmem:[%s2332_s20 + $0x22] sm:$0xf] }
  0x35   : > { %v421_v7 = vmul.f32 %v1858_v56, %v2378_v27  ;;  %v422_v18 = vmul.f32 %v1859_v51, %v2378_v27  ;;  %v423_v32 = vmul.f32 %v1860_v52, %v2378_v27  ;;  %v424_v41 = vmul.f32 %v1861_v53, %v2378_v27  ;;  %v1872_v53 = vld [vmem:[%s2332_s20 + $0x3a] sm:$0xf] }
  0x36   : > { %v425_v44 = vmul.f32 %v1862_v45, %v2378_v27  ;;  %v426_v24 = vmul.f32 %v1863_v59, %v2378_v27  ;;  %v427_v60 = vmul.f32 %v1864_v34, %v2378_v27  ;;  %v428_v1 = vmul.f32 %v1865_v35, %v2378_v27  ;;  %v1875_v59 = vld [vmem:[%s2332_s20 + $0x52] sm:$0xf]  ;;  %v1876_v34 = vld [vmem:[%s2332_s20 + $0x6a] sm:$0xf] }
  0x37   : > { %v429_v38 = vmul.f32 %v1866_v39, %v2378_v27  ;;  %v430_v42 = vmul.f32 %v1867_v15, %v2378_v27  ;;  %v431_v48 = vadd.f32 %v415_v40, %v379_v55  ;;  %v432_v49 = vadd.f32 %v416_v9, %v380_v10  ;;  %v1873_v27 = vld [vmem:[%s2332_s20 + $0x42] sm:$0xf]  ;;  %v1874_v55 = vld [vmem:[%s2332_s20 + $0x4a] sm:$0xf]  ;;  %v1877_v35 = vld [vmem:[%s2332_s20 + $0x72] sm:$0xf] }
  0x38   : > { %v433_v54 = vadd.f32 %v417_v22, %v381_v19  ;;  %v434_v33 = vadd.f32 %v418_v61, %v382_v21  ;;  %v435_v26 = vadd.f32 %v419_v62, %v383_v4  ;;  %v436_v56 = vadd.f32 %v420_v8, %v384_v63  ;;  %v1879_v15 = vld [vmem:[%s2332_s20 + $0x82] sm:$0xf]  ;;  %v1880_v40 = vld [vmem:[%s2332_s20 + $0x9a] sm:$0xf]  ;;  %v1882_v22 = vld [vmem:[%s2332_s20 + $0xaa] sm:$0xf] }
  0x39   : > { %v437_v51 = vadd.f32 %v421_v7, %v385_v30  ;;  %v438_v52 = vadd.f32 %v422_v18, %v386_v31  ;;  %v439_v10 = vadd.f32 %v423_v32, %v387_v3  ;;  %v440_v19 = vadd.f32 %v424_v41, %v388_v11  ;;  %v1878_v31 = vld [vmem:[%s2332_s20 + $0x7a] sm:$0xf]  ;;  %v1881_v9 = vld [vmem:[%s2332_s20 + $0xa2] sm:$0xf]  ;;  %v1883_v61 = vld [vmem:[%s2332_s20 + $0xb2] sm:$0xf] }
  0x3a   : > { %v441_v21 = vadd.f32 %v425_v44, %v389_v12  ;;  %v442_v45 = vadd.f32 %v426_v24, %v390_v46  ;;  %v443_v4 = vadd.f32 %v427_v60, %v391_v16  ;;  %v444_v63 = vadd.f32 %v428_v1, %v392_v20  ;;  %v1884_v60 = vld [vmem:[%s2332_s20 + $0x10] sm:$0xf] }
  0x3b   : > { %v445_v30 = vadd.f32 %v429_v38, %v393_v23  ;;  %v446_v39 = vadd.f32 %v430_v42, %v394_v58  ;;  %v467_v62 = vmul.f32 %v1868_v47, %v2381_v28  ;;  %v468_v3 = vmul.f32 %v1869_v13, %v2381_v28  ;;  %v1885_v13 = vld [vmem:[%s2332_s20 + $0x18] sm:$0xf] }
  0x3c   : > { %v469_v11 = vmul.f32 %v1870_v5, %v2381_v28  ;;  %v470_v12 = vmul.f32 %v1871_v6, %v2381_v28  ;;  %v471_v46 = vmul.f32 %v1872_v53, %v2381_v28  ;;  %v472_v16 = vmul.f32 %v1873_v27, %v2381_v28  ;;  %v1886_v5 = vld [vmem:[%s2332_s20 + $0x20] sm:$0xf]  ;;  %v1887_v6 = vld [vmem:[%s2332_s20 + $0x28] sm:$0xf] }
  0x3d   : > { %v473_v20 = vmul.f32 %v1874_v55, %v2381_v28  ;;  %v474_v23 = vmul.f32 %v1875_v59, %v2381_v28  ;;  %v475_v58 = vmul.f32 %v1876_v34, %v2381_v28  ;;  %v476_v8 = vmul.f32 %v1877_v35, %v2381_v28  ;;  %v1888_v34 = vld [vmem:[%s2332_s20 + $0x40] sm:$0xf] }
  0x3e   : > { %v477_v7 = vmul.f32 %v1878_v31, %v2381_v28  ;;  %v478_v18 = vmul.f32 %v1879_v15, %v2381_v28  ;;  %v479_v32 = vmul.f32 %v1880_v40, %v2381_v28  ;;  %v480_v41 = vmul.f32 %v1881_v9, %v2381_v28  ;;  %v1891_v31 = vld [vmem:[%s2332_s20 + $0x58] sm:$0xf]  ;;  %v1892_v15 = vld [vmem:[%s2332_s20 + $0x70] sm:$0xf] }
  0x3f   : > { %v481_v44 = vmul.f32 %v1882_v22, %v2381_v28  ;;  %v482_v24 = vmul.f32 %v1883_v61, %v2381_v28  ;;  %v483_v1 = vadd.f32 %v467_v62, %v431_v48  ;;  %v484_v38 = vadd.f32 %v468_v3, %v432_v49  ;;  %v1889_v28 = vld [vmem:[%s2332_s20 + $0x48] sm:$0xf]  ;;  %v1890_v48 = vld [vmem:[%s2332_s20 + $0x50] sm:$0xf]  ;;  %v1893_v40 = vld [vmem:[%s2332_s20 + $0x78] sm:$0xf] }
  0x40   : > { %v485_v42 = vadd.f32 %v469_v11, %v433_v54  ;;  %v486_v47 = vadd.f32 %v470_v12, %v434_v33  ;;  %v487_v53 = vadd.f32 %v471_v46, %v435_v26  ;;  %v488_v27 = vadd.f32 %v472_v16, %v436_v56  ;;  %v1895_v22 = vld [vmem:[%s2332_s20 + $0x88] sm:$0xf]  ;;  %v1896_v61 = vld [vmem:[%s2332_s20 + $0xa0] sm:$0xf]  ;;  %v1898_v3 = vld [vmem:[%s2332_s20 + $0xb0] sm:$0xf] }
  0x41   : > { %v489_v55 = vadd.f32 %v473_v20, %v437_v51  ;;  %v490_v59 = vadd.f32 %v474_v23, %v438_v52  ;;  %v491_v49 = vadd.f32 %v475_v58, %v439_v10  ;;  %v492_v54 = vadd.f32 %v476_v8, %v440_v19  ;;  %v1894_v52 = vld [vmem:[%s2332_s20 + $0x80] sm:$0xf]  ;;  %v1897_v62 = vld [vmem:[%s2332_s20 + $0xa8] sm:$0xf]  ;;  %v1899_v11 = vld [vmem:[%s2332_s20 + $0xb8] sm:$0xf] }
  0x42   : > { %v493_v33 = vadd.f32 %v477_v7, %v441_v21  ;;  %v494_v35 = vadd.f32 %v478_v18, %v442_v45  ;;  %v495_v26 = vadd.f32 %v479_v32, %v443_v4  ;;  %v496_v56 = vadd.f32 %v480_v41, %v444_v63  ;;  %v1900_v18 = vld [vmem:[%s2332_s20 + $0x11] sm:$0xf] }
  0x43   : > { %v497_v51 = vadd.f32 %v481_v44, %v445_v30  ;;  %v498_v9 = vadd.f32 %v482_v24, %v446_v39  ;;  %v520_v12 = vmul.f32 %v1884_v60, %v2384_v29  ;;  %v521_v10 = vmul.f32 %v1885_v13, %v2384_v29  ;;  %v1901_v60 = vld [vmem:[%s2332_s20 + $0x19] sm:$0xf]  ;;  %v1902_v13 = vld [vmem:[%s2332_s20 + $0x21] sm:$0xf] }
  0x44   : > { %v522_v19 = vmul.f32 %v1886_v5, %v2384_v29  ;;  %v523_v21 = vmul.f32 %v1887_v6, %v2384_v29  ;;  %v524_v45 = vmul.f32 %v1888_v34, %v2384_v29  ;;  %v525_v4 = vmul.f32 %v1889_v28, %v2384_v29  ;;  %v1903_v5 = vld [vmem:[%s2332_s20 + $0x29] sm:$0xf] }
  0x45   : > { %v526_v63 = vmul.f32 %v1890_v48, %v2384_v29  ;;  %v527_v30 = vmul.f32 %v1891_v31, %v2384_v29  ;;  %v528_v39 = vmul.f32 %v1892_v15, %v2384_v29  ;;  %v529_v46 = vmul.f32 %v1893_v40, %v2384_v29  ;;  %v1904_v31 = vld [vmem:[%s2332_s20 + $0x41] sm:$0xf]  ;;  %v1907_v40 = vld [vmem:[%s2332_s20 + $0x59] sm:$0xf] }
  0x46   : > { %v530_v16 = vmul.f32 %v1894_v52, %v2384_v29  ;;  %v531_v20 = vmul.f32 %v1895_v22, %v2384_v29  ;;  %v532_v23 = vmul.f32 %v1896_v61, %v2384_v29  ;;  %v533_v58 = vmul.f32 %v1897_v62, %v2384_v29  ;;  %v1908_v52 = vld [vmem:[%s2332_s20 + $0x71] sm:$0xf]  ;;  %v1909_v22 = vld [vmem:[%s2332_s20 + $0x79] sm:$0xf]  ;;  %v1911_v62 = vld [vmem:[%s2332_s20 + $0x89] sm:$0xf] }
  0x47   : > { %v534_v8 = vmul.f32 %v1898_v3, %v2384_v29  ;;  %v535_v7 = vmul.f32 %v1899_v11, %v2384_v29  ;;  %v536_v32 = vadd.f32 %v520_v12, %v483_v1  ;;  %v537_v41 = vadd.f32 %v521_v10, %v484_v38  ;;  %v1905_v29 = vld [vmem:[%s2332_s20 + $0x49] sm:$0xf]  ;;  %v1906_v1 = vld [vmem:[%s2332_s20 + $0x51] sm:$0xf]  ;;  %v1912_v3 = vld [vmem:[%s2332_s20 + $0xa1] sm:$0xf] }
  0x48   : > { %v538_v44 = vadd.f32 %v522_v19, %v485_v42  ;;  %v539_v24 = vadd.f32 %v523_v21, %v486_v47  ;;  %v540_v6 = vadd.f32 %v524_v45, %v487_v53  ;;  %v541_v34 = vadd.f32 %v525_v4, %v488_v27  ;;  %v1913_v11 = vld [vmem:[%s2332_s20 + $0xa9] sm:$0xf]  ;;  %v1914_v12 = vld [vmem:[%s2332_s20 + $0xb1] sm:$0xf]  ;;  %v1915_v10 = vld [vmem:[%s2332_s20 + $0xb9] sm:$0xf] }
  0x49   : > { %v542_v28 = vadd.f32 %v526_v63, %v489_v55  ;;  %v543_v48 = vadd.f32 %v527_v30, %v490_v59  ;;  %v544_v38 = vadd.f32 %v528_v39, %v491_v49  ;;  %v545_v42 = vadd.f32 %v529_v46, %v492_v54  ;;  %v1910_v59 = vld [vmem:[%s2332_s20 + $0x81] sm:$0xf] }
  0x4a   : > { %v546_v47 = vadd.f32 %v530_v16, %v493_v33  ;;  %v547_v15 = vadd.f32 %v531_v20, %v494_v35  ;;  %v548_v53 = vadd.f32 %v532_v23, %v495_v26  ;;  %v549_v27 = vadd.f32 %v533_v58, %v496_v56  ;;  %v1916_v16 = vld [vmem:[%s2332_s20 + $0x12] sm:$0xf] }
  0x4b   : > { %v550_v55 = vadd.f32 %v534_v8, %v497_v51  ;;  %v551_v61 = vadd.f32 %v535_v7, %v498_v9  ;;  %v572_v19 = vmul.f32 %v1900_v18, %v2390_v36  ;;  %v573_v49 = vmul.f32 %v1901_v60, %v2390_v36  ;;  %v1917_v7 = vld [vmem:[%s2332_s20 + $0x1a] sm:$0xf]  ;;  %v1918_v18 = vld [vmem:[%s2332_s20 + $0x22] sm:$0xf]  ;;  %v1919_v60 = vld [vmem:[%s2332_s20 + $0x2a] sm:$0xf] }
  0x4c   : > { %v574_v54 = vmul.f32 %v1902_v13, %v2390_v36  ;;  %v575_v33 = vmul.f32 %v1903_v5, %v2390_v36  ;;  %v576_v35 = vmul.f32 %v1904_v31, %v2390_v36  ;;  %v577_v26 = vmul.f32 %v1905_v29, %v2390_v36 }
  0x4d   : > { %v578_v56 = vmul.f32 %v1906_v1, %v2390_v36  ;;  %v579_v51 = vmul.f32 %v1907_v40, %v2390_v36  ;;  %v580_v9 = vmul.f32 %v1908_v52, %v2390_v36  ;;  %v581_v21 = vmul.f32 %v1909_v22, %v2390_v36  ;;  %v1920_v1 = vld [vmem:[%s2332_s20 + $0x42] sm:$0xf]  ;;  %v1923_v52 = vld [vmem:[%s2332_s20 + $0x5a] sm:$0xf]  ;;  %v1924_v22 = vld [vmem:[%s2332_s20 + $0x72] sm:$0xf] }
  0x4e   : > { %v582_v45 = vmul.f32 %v1910_v59, %v2390_v36  ;;  %v583_v4 = vmul.f32 %v1911_v62, %v2390_v36  ;;  %v584_v63 = vmul.f32 %v1912_v3, %v2390_v36  ;;  %v585_v30 = vmul.f32 %v1913_v11, %v2390_v36  ;;  %v1925_v59 = vld [vmem:[%s2332_s20 + $0x7a] sm:$0xf]  ;;  %v1927_v3 = vld [vmem:[%s2332_s20 + $0x8a] sm:$0xf]  ;;  %v1928_v11 = vld [vmem:[%s2332_s20 + $0xa2] sm:$0xf] }
  0x4f   : > { %v586_v39 = vmul.f32 %v1914_v12, %v2390_v36  ;;  %v587_v46 = vmul.f32 %v1915_v10, %v2390_v36  ;;  %v588_v20 = vadd.f32 %v572_v19, %v536_v32  ;;  %v589_v23 = vadd.f32 %v573_v49, %v537_v41  ;;  %v1921_v36 = vld [vmem:[%s2332_s20 + $0x4a] sm:$0xf]  ;;  %v1922_v32 = vld [vmem:[%s2332_s20 + $0x52] sm:$0xf]  ;;  %v1931_v19 = vld [vmem:[%s2332_s20 + $0xba] sm:$0xf] }
  0x50   : > { %v590_v58 = vadd.f32 %v574_v54, %v538_v44  ;;  %v591_v8 = vadd.f32 %v575_v33, %v539_v24  ;;  %v592_v13 = vadd.f32 %v576_v35, %v540_v6  ;;  %v593_v5 = vadd.f32 %v577_v26, %v541_v34  ;;  %v1929_v12 = vld [vmem:[%s2332_s20 + $0xaa] sm:$0xf]  ;;  %v1930_v10 = vld [vmem:[%s2332_s20 + $0xb2] sm:$0xf] }
  0x51   : > { %v594_v31 = vadd.f32 %v578_v56, %v542_v28  ;;  %v595_v29 = vadd.f32 %v579_v51, %v543_v48  ;;  %v596_v41 = vadd.f32 %v580_v9, %v544_v38  ;;  %v597_v44 = vadd.f32 %v581_v21, %v545_v42  ;;  %v1926_v48 = vld [vmem:[%s2332_s20 + $0x82] sm:$0xf]  ;;  %v1932_v21 = vld [vmem:[%s2332_s20 + $0x30] sm:$0xf] }
  0x52   : > { %v598_v24 = vadd.f32 %v582_v45, %v546_v47  ;;  %v599_v40 = vadd.f32 %v583_v4, %v547_v15  ;;  %v600_v6 = vadd.f32 %v584_v63, %v548_v53  ;;  %v601_v34 = vadd.f32 %v585_v30, %v549_v27 }
  0x53   : > { %v602_v28 = vadd.f32 %v586_v39, %v550_v55  ;;  %v603_v62 = vadd.f32 %v587_v46, %v551_v61  ;;  %v624_v49 = vmul.f32 %v1916_v16, %v2397_v43  ;;  %v625_v38 = vmul.f32 %v1917_v7, %v2397_v43  ;;  %v1933_v39 = vld [vmem:[%s2332_s20 + $0x38] sm:$0xf]  ;;  %v1934_v46 = vld [vmem:[%s2332_s20 + $0x40] sm:$0xf]  ;;  %v1935_v16 = vld [vmem:[%s2332_s20 + $0x48] sm:$0xf] }
  0x54   : > { %v626_v42 = vmul.f32 %v1918_v18, %v2397_v43  ;;  %v627_v47 = vmul.f32 %v1919_v60, %v2397_v43  ;;  %v628_v15 = vmul.f32 %v1920_v1, %v2397_v43  ;;  %v629_v53 = vmul.f32 %v1921_v36, %v2397_v43  ;;  %v1936_v36 = vld [vmem:[%s2332_s20 + $0x60] sm:$0xf] }
  0x55   : > { %v630_v27 = vmul.f32 %v1922_v32, %v2397_v43  ;;  %v631_v55 = vmul.f32 %v1923_v52, %v2397_v43  ;;  %v632_v61 = vmul.f32 %v1924_v22, %v2397_v43  ;;  %v633_v54 = vmul.f32 %v1925_v59, %v2397_v43  ;;  %v1939_v52 = vld [vmem:[%s2332_s20 + $0x78] sm:$0xf]  ;;  %v1940_v22 = vld [vmem:[%s2332_s20 + $0x90] sm:$0xf] }
  0x56   : > { %v634_v33 = vmul.f32 %v1926_v48, %v2397_v43  ;;  %v635_v35 = vmul.f32 %v1927_v3, %v2397_v43  ;;  %v636_v26 = vmul.f32 %v1928_v11, %v2397_v43  ;;  %v637_v56 = vmul.f32 %v1929_v12, %v2397_v43  ;;  %v1941_v59 = vld [vmem:[%s2332_s20 + $0x98] sm:$0xf]  ;;  %v1943_v3 = vld [vmem:[%s2332_s20 + $0xa8] sm:$0xf]  ;;  %v1944_v11 = vld [vmem:[%s2332_s20 + $0xc0] sm:$0xf] }
  0x57   : > { %v638_v51 = vmul.f32 %v1930_v10, %v2397_v43  ;;  %v639_v9 = vmul.f32 %v1931_v19, %v2397_v43  ;;  %v640_v45 = vadd.f32 %v624_v49, %v588_v20  ;;  %v641_v4 = vadd.f32 %v625_v38, %v589_v23  ;;  %v1937_v43 = vld [vmem:[%s2332_s20 + $0x68] sm:$0xf]  ;;  %v1938_v20 = vld [vmem:[%s2332_s20 + $0x70] sm:$0xf]  ;;  %v1947_v19 = vld [vmem:[%s2332_s20 + $0xd8] sm:$0xf] }
  0x58   : > { %v642_v63 = vadd.f32 %v626_v42, %v590_v58  ;;  %v643_v30 = vadd.f32 %v627_v47, %v591_v8  ;;  %v644_v7 = vadd.f32 %v628_v15, %v592_v13  ;;  %v645_v18 = vadd.f32 %v629_v53, %v593_v5  ;;  %v1945_v12 = vld [vmem:[%s2332_s20 + $0xc8] sm:$0xf]  ;;  %v1946_v10 = vld [vmem:[%s2332_s20 + $0xd0] sm:$0xf] }
  0x59   : > { %v646_v60 = vadd.f32 %v630_v27, %v594_v31  ;;  %v647_v1 = vadd.f32 %v631_v55, %v595_v29  ;;  %v648_v23 = vadd.f32 %v632_v61, %v596_v41  ;;  %v649_v58 = vadd.f32 %v633_v54, %v597_v44  ;;  %v1942_v29 = vld [vmem:[%s2332_s20 + $0xa0] sm:$0xf]  ;;  %v1948_v61 = vld [vmem:[%s2332_s20 + $0x31] sm:$0xf] }
  0x5a   : > { %v650_v8 = vadd.f32 %v634_v33, %v598_v24  ;;  %v651_v32 = vadd.f32 %v635_v35, %v599_v40  ;;  %v652_v13 = vadd.f32 %v636_v26, %v600_v6  ;;  %v653_v5 = vadd.f32 %v637_v56, %v601_v34  ;;  %v1949_v56 = vld [vmem:[%s2332_s20 + $0x39] sm:$0xf] }
  0x5b   : > { %v654_v31 = vadd.f32 %v638_v51, %v602_v28  ;;  %v655_v48 = vadd.f32 %v639_v9, %v603_v62  ;;  %v677_v49 = vmul.f32 %v1932_v21, %v2404_v50  ;;  %v678_v41 = vmul.f32 %v1933_v39, %v2404_v50  ;;  %v1950_v51 = vld [vmem:[%s2332_s20 + $0x41] sm:$0xf]  ;;  %v1951_v9 = vld [vmem:[%s2332_s20 + $0x49] sm:$0xf] }
  0x5c   : > { %v679_v44 = vmul.f32 %v1934_v46, %v2404_v50  ;;  %v680_v24 = vmul.f32 %v1935_v16, %v2404_v50  ;;  %v681_v40 = vmul.f32 %v1936_v36, %v2404_v50  ;;  %v682_v6 = vmul.f32 %v1937_v43, %v2404_v50  ;;  %v1952_v36 = vld [vmem:[%s2332_s20 + $0x61] sm:$0xf] }
  0x5d   : > { %v683_v34 = vmul.f32 %v1938_v20, %v2404_v50  ;;  %v684_v28 = vmul.f32 %v1939_v52, %v2404_v50  ;;  %v685_v62 = vmul.f32 %v1940_v22, %v2404_v50  ;;  %v686_v38 = vmul.f32 %v1941_v59, %v2404_v50  ;;  %v1955_v20 = vld [vmem:[%s2332_s20 + $0x79] sm:$0xf]  ;;  %v1956_v52 = vld [vmem:[%s2332_s20 + $0x91] sm:$0xf] }
  0x5e   : > { %v687_v42 = vmul.f32 %v1942_v29, %v2404_v50  ;;  %v688_v47 = vmul.f32 %v1943_v3, %v2404_v50  ;;  %v689_v15 = vmul.f32 %v1944_v11, %v2404_v50  ;;  %v690_v53 = vmul.f32 %v1945_v12, %v2404_v50  ;;  %v1957_v22 = vld [vmem:[%s2332_s20 + $0x99] sm:$0xf]  ;;  %v1959_v29 = vld [vmem:[%s2332_s20 + $0xa9] sm:$0xf]  ;;  %v1960_v3 = vld [vmem:[%s2332_s20 + $0xc1] sm:$0xf] }
  0x5f   : > { %v691_v27 = vmul.f32 %v1946_v10, %v2404_v50  ;;  %v692_v55 = vmul.f32 %v1947_v19, %v2404_v50  ;;  %v693_v54 = vadd.f32 %v677_v49, %v640_v45  ;;  %v694_v33 = vadd.f32 %v678_v41, %v641_v4  ;;  %v1953_v50 = vld [vmem:[%s2332_s20 + $0x69] sm:$0xf]  ;;  %v1954_v45 = vld [vmem:[%s2332_s20 + $0x71] sm:$0xf]  ;;  %v1963_v10 = vld [vmem:[%s2332_s20 + $0xd9] sm:$0xf] }
  0x60   : > { %v695_v35 = vadd.f32 %v679_v44, %v642_v63  ;;  %v696_v26 = vadd.f32 %v680_v24, %v643_v30  ;;  %v697_v21 = vadd.f32 %v681_v40, %v644_v7  ;;  %v698_v39 = vadd.f32 %v682_v6, %v645_v18  ;;  %v1961_v11 = vld [vmem:[%s2332_s20 + $0xc9] sm:$0xf]  ;;  %v1962_v12 = vld [vmem:[%s2332_s20 + $0xd1] sm:$0xf] }
  0x61   : > { %v699_v46 = vadd.f32 %v683_v34, %v646_v60  ;;  %v700_v16 = vadd.f32 %v684_v28, %v647_v1  ;;  %v701_v4 = vadd.f32 %v685_v62, %v648_v23  ;;  %v702_v63 = vadd.f32 %v686_v38, %v649_v58  ;;  %v1958_v1 = vld [vmem:[%s2332_s20 + $0xa1] sm:$0xf]  ;;  %v1964_v28 = vld [vmem:[%s2332_s20 + $0x32] sm:$0xf] }
  0x62   : > { %v703_v30 = vadd.f32 %v687_v42, %v650_v8  ;;  %v704_v43 = vadd.f32 %v688_v47, %v651_v32  ;;  %v705_v7 = vadd.f32 %v689_v15, %v652_v13  ;;  %v706_v18 = vadd.f32 %v690_v53, %v653_v5  ;;  %v1965_v15 = vld [vmem:[%s2332_s20 + $0x3a] sm:$0xf]  ;;  %v1966_v53 = vld [vmem:[%s2332_s20 + $0x42] sm:$0xf] }
  0x63   : > { %v707_v60 = vadd.f32 %v691_v27, %v654_v31  ;;  %v708_v59 = vadd.f32 %v692_v55, %v655_v48  ;;  %v729_v19 = vmul.f32 %v1948_v61, %v2411_v57  ;;  %v730_v23 = vmul.f32 %v1949_v56, %v2411_v57  ;;  %v1967_v27 = vld [vmem:[%s2332_s20 + $0x4a] sm:$0xf] }
  0x64   : > { %v731_v58 = vmul.f32 %v1950_v51, %v2411_v57  ;;  %v732_v8 = vmul.f32 %v1951_v9, %v2411_v57  ;;  %v733_v32 = vmul.f32 %v1952_v36, %v2411_v57  ;;  %v734_v13 = vmul.f32 %v1953_v50, %v2411_v57  ;;  %v1968_v9 = vld [vmem:[%s2332_s20 + $0x62] sm:$0xf]  ;;  %v1971_v50 = vld [vmem:[%s2332_s20 + $0x7a] sm:$0xf] }
  0x65   : > { %v735_v5 = vmul.f32 %v1954_v45, %v2411_v57  ;;  %v736_v31 = vmul.f32 %v1955_v20, %v2411_v57  ;;  %v737_v48 = vmul.f32 %v1956_v52, %v2411_v57  ;;  %v738_v49 = vmul.f32 %v1957_v22, %v2411_v57  ;;  %v1972_v45 = vld [vmem:[%s2332_s20 + $0x92] sm:$0xf]  ;;  %v1973_v20 = vld [vmem:[%s2332_s20 + $0x9a] sm:$0xf]  ;;  %v1975_v22 = vld [vmem:[%s2332_s20 + $0xaa] sm:$0xf] }
  0x66   : > { %v739_v41 = vmul.f32 %v1958_v1, %v2411_v57  ;;  %v740_v44 = vmul.f32 %v1959_v29, %v2411_v57  ;;  %v741_v24 = vmul.f32 %v1960_v3, %v2411_v57  ;;  %v742_v40 = vmul.f32 %v1961_v11, %v2411_v57  ;;  %v1976_v1 = vld [vmem:[%s2332_s20 + $0xc2] sm:$0xf]  ;;  %v1977_v29 = vld [vmem:[%s2332_s20 + $0xca] sm:$0xf]  ;;  %v1978_v3 = vld [vmem:[%s2332_s20 + $0xd2] sm:$0xf] }
  0x67   : > { %v743_v6 = vmul.f32 %v1962_v12, %v2411_v57  ;;  %v744_v34 = vmul.f32 %v1963_v10, %v2411_v57  ;;  %v745_v62 = vadd.f32 %v729_v19, %v693_v54  ;;  %v746_v38 = vadd.f32 %v730_v23, %v694_v33  ;;  %v1969_v57 = vld [vmem:[%s2332_s20 + $0x6a] sm:$0xf]  ;;  %v1970_v54 = vld [vmem:[%s2332_s20 + $0x72] sm:$0xf]  ;;  %v1979_v11 = vld [vmem:[%s2332_s20 + $0xda] sm:$0xf] }
  0x68   : > { %v747_v42 = vadd.f32 %v731_v58, %v695_v35  ;;  %v748_v47 = vadd.f32 %v732_v8, %v696_v26  ;;  %v749_v55 = vadd.f32 %v733_v32, %v697_v21  ;;  %v750_v61 = vadd.f32 %v734_v13, %v698_v39 }
  0x69   : > { %v751_v56 = vadd.f32 %v735_v5, %v699_v46  ;;  %v752_v51 = vadd.f32 %v736_v31, %v700_v16  ;;  %v753_v33 = vadd.f32 %v737_v48, %v701_v4  ;;  %v754_v35 = vadd.f32 %v738_v49, %v702_v63  ;;  %v1974_v16 = vld [vmem:[%s2332_s20 + $0xa2] sm:$0xf]  ;;  %v1980_v5 = vld [vmem:[%s2332_s20 + $0x38] sm:$0xf] }
  0x6a   : > { %v755_v26 = vadd.f32 %v739_v41, %v703_v30  ;;  %v756_v36 = vadd.f32 %v740_v44, %v704_v43  ;;  %v757_v21 = vadd.f32 %v741_v24, %v705_v7  ;;  %v758_v39 = vadd.f32 %v742_v40, %v706_v18  ;;  %v1981_v44 = vld [vmem:[%s2332_s20 + $0x40] sm:$0xf]  ;;  %v1982_v24 = vld [vmem:[%s2332_s20 + $0x48] sm:$0xf]  ;;  %v1983_v40 = vld [vmem:[%s2332_s20 + $0x50] sm:$0xf] }
  0x6b   : > { %v759_v46 = vadd.f32 %v743_v6, %v707_v60  ;;  %v760_v52 = vadd.f32 %v744_v34, %v708_v59  ;;  %v781_v12 = vmul.f32 %v1964_v28, %v2418_v0  ;;  %v782_v4 = vmul.f32 %v1965_v15, %v2418_v0 }
  0x6c   : > { %v783_v63 = vmul.f32 %v1966_v53, %v2418_v0  ;;  %v784_v30 = vmul.f32 %v1967_v27, %v2418_v0  ;;  %v785_v43 = vmul.f32 %v1968_v9, %v2418_v0  ;;  %v786_v7 = vmul.f32 %v1969_v57, %v2418_v0  ;;  %v1984_v53 = vld [vmem:[%s2332_s20 + $0x68] sm:$0xf]  ;;  %v1987_v9 = vld [vmem:[%s2332_s20 + $0x80] sm:$0xf]  ;;  %v1988_v57 = vld [vmem:[%s2332_s20 + $0x98] sm:$0xf] }
  0x6d   : > { %v787_v18 = vmul.f32 %v1970_v54, %v2418_v0  ;;  %v788_v60 = vmul.f32 %v1971_v50, %v2418_v0  ;;  %v789_v59 = vmul.f32 %v1972_v45, %v2418_v0  ;;  %v790_v10 = vmul.f32 %v1973_v20, %v2418_v0  ;;  %v1989_v54 = vld [vmem:[%s2332_s20 + $0xa0] sm:$0xf]  ;;  %v1991_v45 = vld [vmem:[%s2332_s20 + $0xb0] sm:$0xf]  ;;  %v1992_v20 = vld [vmem:[%s2332_s20 + $0xc8] sm:$0xf] }
  0x6e   : > { %v791_v19 = vmul.f32 %v1974_v16, %v2418_v0  ;;  %v792_v23 = vmul.f32 %v1975_v22, %v2418_v0  ;;  %v793_v58 = vmul.f32 %v1976_v1, %v2418_v0  ;;  %v794_v8 = vmul.f32 %v1977_v29, %v2418_v0  ;;  %v1993_v16 = vld [vmem:[%s2332_s20 + $0xd0] sm:$0xf]  ;;  %v1994_v22 = vld [vmem:[%s2332_s20 + $0xd8] sm:$0xf]  ;;  %v1995_v1 = vld [vmem:[%s2332_s20 + $0xe0] sm:$0xf] }
  0x6f   : > { %v795_v32 = vmul.f32 %v1978_v3, %v2418_v0  ;;  %v796_v13 = vmul.f32 %v1979_v11, %v2418_v0  ;;  %v797_v31 = vadd.f32 %v781_v12, %v745_v62  ;;  %v798_v48 = vadd.f32 %v782_v4, %v746_v38  ;;  %v1985_v0 = vld [vmem:[%s2332_s20 + $0x70] sm:$0xf]  ;;  %v1986_v62 = vld [vmem:[%s2332_s20 + $0x78] sm:$0xf] }
  0x70   : > { %v799_v49 = vadd.f32 %v783_v63, %v747_v42  ;;  %v800_v41 = vadd.f32 %v784_v30, %v748_v47  ;;  %v801_v6 = vadd.f32 %v785_v43, %v749_v55  ;;  %v802_v34 = vadd.f32 %v786_v7, %v750_v61  ;;  %v1996_v7 = vld [vmem:[%s2332_s20 + $0x39] sm:$0xf] }
  0x71   : > { %v803_v28 = vadd.f32 %v787_v18, %v751_v56  ;;  %v804_v15 = vadd.f32 %v788_v60, %v752_v51  ;;  %v805_v38 = vadd.f32 %v789_v59, %v753_v33  ;;  %v806_v42 = vadd.f32 %v790_v10, %v754_v35  ;;  %v1990_v51 = vld [vmem:[%s2332_s20 + $0xa8] sm:$0xf] }
  0x72   : > { %v807_v47 = vadd.f32 %v791_v19, %v755_v26  ;;  %v808_v27 = vadd.f32 %v792_v23, %v756_v36  ;;  %v809_v55 = vadd.f32 %v793_v58, %v757_v21  ;;  %v810_v61 = vadd.f32 %v794_v8, %v758_v39  ;;  %v1997_v19 = vld [vmem:[%s2332_s20 + $0x41] sm:$0xf]  ;;  %v1998_v23 = vld [vmem:[%s2332_s20 + $0x49] sm:$0xf]  ;;  %v1999_v58 = vld [vmem:[%s2332_s20 + $0x51] sm:$0xf] }
  0x73   : > { %v811_v56 = vadd.f32 %v795_v32, %v759_v46  ;;  %v812_v50 = vadd.f32 %v796_v13, %v760_v52  ;;  %v834_v29 = vmul.f32 %v1980_v5, %v2427_v17  ;;  %v835_v33 = vmul.f32 %v1981_v44, %v2427_v17  ;;  %v2000_v44 = vld [vmem:[%s2332_s20 + $0x69] sm:$0xf] }
  0x74   : > { %v836_v35 = vmul.f32 %v1982_v24, %v2427_v17  ;;  %v837_v26 = vmul.f32 %v1983_v40, %v2427_v17  ;;  %v838_v36 = vmul.f32 %v1984_v53, %v2427_v17  ;;  %v839_v21 = vmul.f32 %v1985_v0, %v2427_v17  ;;  %v2003_v40 = vld [vmem:[%s2332_s20 + $0x81] sm:$0xf]  ;;  %v2004_v53 = vld [vmem:[%s2332_s20 + $0x99] sm:$0xf] }
  0x75   : > { %v840_v39 = vmul.f32 %v1986_v62, %v2427_v17  ;;  %v841_v46 = vmul.f32 %v1987_v9, %v2427_v17  ;;  %v842_v52 = vmul.f32 %v1988_v57, %v2427_v17  ;;  %v843_v3 = vmul.f32 %v1989_v54, %v2427_v17  ;;  %v2005_v0 = vld [vmem:[%s2332_s20 + $0xa1] sm:$0xf]  ;;  %v2007_v9 = vld [vmem:[%s2332_s20 + $0xb1] sm:$0xf]  ;;  %v2008_v57 = vld [vmem:[%s2332_s20 + $0xc9] sm:$0xf] }
  0x76   : > { %v844_v11 = vmul.f32 %v1990_v51, %v2427_v17  ;;  %v845_v12 = vmul.f32 %v1991_v45, %v2427_v17  ;;  %v846_v4 = vmul.f32 %v1992_v20, %v2427_v17  ;;  %v847_v63 = vmul.f32 %v1993_v16, %v2427_v17  ;;  %v2009_v54 = vld [vmem:[%s2332_s20 + $0xd1] sm:$0xf]  ;;  %v2010_v51 = vld [vmem:[%s2332_s20 + $0xd9] sm:$0xf]  ;;  %v2011_v45 = vld [vmem:[%s2332_s20 + $0xe1] sm:$0xf] }
  0x77   : > { %v848_v30 = vmul.f32 %v1994_v22, %v2427_v17  ;;  %v849_v43 = vmul.f32 %v1995_v1, %v2427_v17  ;;  %v850_v18 = vadd.f32 %v834_v29, %v797_v31  ;;  %v851_v60 = vadd.f32 %v835_v33, %v798_v48  ;;  %v2001_v17 = vld [vmem:[%s2332_s20 + $0x71] sm:$0xf]  ;;  %v2002_v31 = vld [vmem:[%s2332_s20 + $0x79] sm:$0xf] }
  0x78   : > { %v852_v59 = vadd.f32 %v836_v35, %v799_v49  ;;  %v853_v10 = vadd.f32 %v837_v26, %v800_v41  ;;  %v854_v8 = vadd.f32 %v838_v36, %v801_v6  ;;  %v855_v32 = vadd.f32 %v839_v21, %v802_v34  ;;  %v2012_v36 = vld [vmem:[%s2332_s20 + $0x3a] sm:$0xf] }
  0x79   : > { %v856_v13 = vadd.f32 %v840_v39, %v803_v28  ;;  %v857_v5 = vadd.f32 %v841_v46, %v804_v15  ;;  %v858_v48 = vadd.f32 %v842_v52, %v805_v38  ;;  %v859_v49 = vadd.f32 %v843_v3, %v806_v42  ;;  %v2006_v15 = vld [vmem:[%s2332_s20 + $0xa9] sm:$0xf]  ;;  %v2013_v3 = vld [vmem:[%s2332_s20 + $0x42] sm:$0xf] }
  0x7a   : > { %v860_v41 = vadd.f32 %v844_v11, %v807_v47  ;;  %v861_v24 = vadd.f32 %v845_v12, %v808_v27  ;;  %v862_v6 = vadd.f32 %v846_v4, %v809_v55  ;;  %v863_v34 = vadd.f32 %v847_v63, %v810_v61  ;;  %v2014_v11 = vld [vmem:[%s2332_s20 + $0x4a] sm:$0xf]  ;;  %v2015_v12 = vld [vmem:[%s2332_s20 + $0x52] sm:$0xf] }
  0x7b   : > { %v864_v28 = vadd.f32 %v848_v30, %v811_v56  ;;  %v865_v62 = vadd.f32 %v849_v43, %v812_v50  ;;  %v886_v20 = vmul.f32 %v1996_v7, %v2437_v25  ;;  %v887_v38 = vmul.f32 %v1997_v19, %v2437_v25  ;;  %v2016_v7 = vld [vmem:[%s2332_s20 + $0x6a] sm:$0xf] }
  0x7c   : > { %v888_v42 = vmul.f32 %v1998_v23, %v2437_v25  ;;  %v889_v47 = vmul.f32 %v1999_v58, %v2437_v25  ;;  %v890_v27 = vmul.f32 %v2000_v44, %v2437_v25  ;;  %v891_v55 = vmul.f32 %v2001_v17, %v2437_v25  ;;  %v2019_v23 = vld [vmem:[%s2332_s20 + $0x82] sm:$0xf]  ;;  %v2020_v58 = vld [vmem:[%s2332_s20 + $0x9a] sm:$0xf] }
  0x7d   : > { %v892_v61 = vmul.f32 %v2002_v31, %v2437_v25  ;;  %v893_v56 = vmul.f32 %v2003_v40, %v2437_v25  ;;  %v894_v50 = vmul.f32 %v2004_v53, %v2437_v25  ;;  %v895_v16 = vmul.f32 %v2005_v0, %v2437_v25  ;;  %v2021_v44 = vld [vmem:[%s2332_s20 + $0xa2] sm:$0xf]  ;;  %v2023_v31 = vld [vmem:[%s2332_s20 + $0xb2] sm:$0xf]  ;;  %v2024_v40 = vld [vmem:[%s2332_s20 + $0xca] sm:$0xf] }
  0x7e   : > { %v896_v22 = vmul.f32 %v2006_v15, %v2437_v25  ;;  %v897_v1 = vmul.f32 %v2007_v9, %v2437_v25  ;;  %v898_v29 = vmul.f32 %v2008_v57, %v2437_v25  ;;  %v899_v33 = vmul.f32 %v2009_v54, %v2437_v25  ;;  %v2025_v53 = vld [vmem:[%s2332_s20 + $0xd2] sm:$0xf]  ;;  %v2026_v0 = vld [vmem:[%s2332_s20 + $0xda] sm:$0xf]  ;;  %v2027_v15 = vld [vmem:[%s2332_s20 + $0xe2] sm:$0xf] }
  0x7f   : > { %v900_v35 = vmul.f32 %v2010_v51, %v2437_v25  ;;  %v901_v26 = vmul.f32 %v2011_v45, %v2437_v25  ;;  %v902_v21 = vadd.f32 %v886_v20, %v850_v18  ;;  %v903_v39 = vadd.f32 %v887_v38, %v851_v60  ;;  %v2017_v25 = vld [vmem:[%s2332_s20 + $0x72] sm:$0xf]  ;;  %v2018_v18 = vld [vmem:[%s2332_s20 + $0x7a] sm:$0xf] }
  0x80   : > { %v904_v46 = vadd.f32 %v888_v42, %v852_v59  ;;  %v905_v52 = vadd.f32 %v889_v47, %v853_v10  ;;  %v906_v4 = vadd.f32 %v890_v27, %v854_v8  ;;  %v907_v63 = vadd.f32 %v891_v55, %v855_v32  ;;  %v2873_v47 = vld [vmem:[%s3456_s1 + $0x10] sm:$0xff] }
  0x81   : > { %v908_v30 = vadd.f32 %v892_v61, %v856_v13  ;;  %v909_v43 = vadd.f32 %v893_v56, %v857_v5  ;;  %v910_v60 = vadd.f32 %v894_v50, %v858_v48  ;;  %v911_v59 = vadd.f32 %v895_v16, %v859_v49  ;;  %v2022_v5 = vld [vmem:[%s2332_s20 + $0xaa] sm:$0xf] }
  0x82   : > { %v912_v10 = vadd.f32 %v896_v22, %v860_v41  ;;  %v913_v19 = vadd.f32 %v897_v1, %v861_v24  ;;  %v914_v8 = vadd.f32 %v898_v29, %v862_v6  ;;  %v915_v32 = vadd.f32 %v899_v33, %v863_v34  ;;  %v2028_v1 = vld [vmem:[%s2332_s20 + $0x40] sm:$0xf]  ;;  %v2029_v29 = vld [vmem:[%s2332_s20 + $0x48] sm:$0xf] }
  0x83   : > { %v916_v13 = vadd.f32 %v900_v35, %v864_v28  ;;  %v917_v17 = vadd.f32 %v901_v26, %v865_v62  ;;  %v938_v9 = vmul.f32 %v2012_v36, %v2444_v37  ;;  %v939_v48 = vmul.f32 %v2013_v3, %v2444_v37  ;;  %v2282_v33 = vld [vmem:[%s3456_s1 + $0x8] sm:$0xff]  ;;  %v2033_v3 = vld [vmem:[%s2332_s20 + $0x78] sm:$0xf] }
  0x84   : > { %v940_v49 = vmul.f32 %v2014_v11, %v2444_v37  ;;  %v941_v41 = vmul.f32 %v2015_v12, %v2444_v37  ;;  %v942_v24 = vmul.f32 %v2016_v7, %v2444_v37  ;;  %v943_v6 = vmul.f32 %v2017_v25, %v2444_v37  ;;  %v2035_v7 = vld [vmem:[%s2332_s20 + $0x88] sm:$0xf]  ;;  %v2036_v25 = vld [vmem:[%s2332_s20 + $0xa0] sm:$0xf] }
  0x85   : > { %v944_v34 = vmul.f32 %v2018_v18, %v2444_v37  ;;  %v945_v28 = vmul.f32 %v2019_v23, %v2444_v37  ;;  %v946_v62 = vmul.f32 %v2020_v58, %v2444_v37  ;;  %v947_v57 = vmul.f32 %v2021_v44, %v2444_v37  ;;  %v2037_v18 = vld [vmem:[%s2332_s20 + $0xa8] sm:$0xf]  ;;  %v2039_v23 = vld [vmem:[%s2332_s20 + $0xb8] sm:$0xf] }
  0x86   : > { %v948_v54 = vmul.f32 %v2022_v5, %v2444_v37  ;;  %v949_v51 = vmul.f32 %v2023_v31, %v2444_v37  ;;  %v950_v45 = vmul.f32 %v2024_v40, %v2444_v37  ;;  %v951_v20 = vmul.f32 %v2025_v53, %v2444_v37  ;;  %v3476_v40 = vld [vmem:[#allocation4_spill] sm:$0xff] }
  0x87   : > { %v952_v38 = vmul.f32 %v2026_v0, %v2444_v37  ;;  %v953_v42 = vmul.f32 %v2027_v15, %v2444_v37  ;;  %v954_v27 = vadd.f32 %v938_v9, %v902_v21  ;;  %v955_v55 = vadd.f32 %v939_v48, %v903_v39  ;;  %v2030_v37 = vld [vmem:[%s2332_s20 + $0x50] sm:$0xf]  ;;  %v2043_v0 = vld [vmem:[%s2332_s20 + $0xe8] sm:$0xf] }
  0x88   : > { %v956_v61 = vadd.f32 %v940_v49, %v904_v46  ;;  %v957_v56 = vadd.f32 %v941_v41, %v905_v52  ;;  %v958_v50 = vadd.f32 %v942_v24, %v906_v4  ;;  %v959_v16 = vadd.f32 %v943_v6, %v907_v63  ;;  %v2031_v46 = vld [vmem:[%s2332_s20 + $0x58] sm:$0xf]  ;;  %v2032_v52 = vld [vmem:[%s2332_s20 + $0x70] sm:$0xf] }
  0x89   : > { %v960_v22 = vadd.f32 %v944_v34, %v908_v30  ;;  %v990_v35 = vrot.slane %v2282_v33, %v2357_v14  ;;  %v961_v26 = vadd.f32 %v945_v28, %v909_v43  ;;  %v962_v36 = vadd.f32 %v946_v62, %v910_v60  ;;  %v2034_v30 = vld [vmem:[%s2332_s20 + $0x80] sm:$0xf]  ;;  %v2038_v60 = vld [vmem:[%s2332_s20 + $0xb0] sm:$0xf] }
  0x8a   : > { %v963_v21 = vadd.f32 %v947_v57, %v911_v59  ;;  %v964_v39 = vadd.f32 %v948_v54, %v912_v10  ;;  %v965_v11 = vadd.f32 %v949_v51, %v913_v19  ;;  %v966_v12 = vadd.f32 %v950_v45, %v914_v8  ;;  %v3474_v10 = vld [vmem:[#allocation2_spill] sm:$0xff]  ;;  %v3475_v19 = vld [vmem:[#allocation3_spill] sm:$0xff]  ;;  %v2040_v8 = vld [vmem:[%s2332_s20 + $0xd0] sm:$0xf] }
  0x8b   : > { %v967_v4 = vadd.f32 %v951_v20, %v915_v32  ;;  %v968_v63 = vadd.f32 %v952_v38, %v916_v13  ;;  %v969_v43 = vadd.f32 %v953_v42, %v917_v17  ;;  %v2893_v59 = vrot.slane %v2873_v47, %v2327_v2  ;;  %v2041_v32 = vld [vmem:[%s2332_s20 + $0xd8] sm:$0xf]  ;;  %v2042_v13 = vld [vmem:[%s2332_s20 + $0xe0] sm:$0xf] }
  0x8c   : > { %v2897_v58 = vrot.slane %v2873_v47, %v3474_v10  ;;  %v2901_v44 = vrot.slane %v2873_v47, %v3475_v19  ;;  %v991_v5 = vmul.f32 %v2028_v1, %v990_v35  ;;  %v992_v17 = vmul.f32 %v2029_v29, %v990_v35  ;;  %v2044_v42 = vld [vmem:[%s2332_s20 + $0x41] sm:$0xf]  ;;  %v2045_v1 = vld [vmem:[%s2332_s20 + $0x49] sm:$0xf]  ;;  %v2046_v29 = vld [vmem:[%s2332_s20 + $0x51] sm:$0xf] }
  0x8d   : > { %v993_v31 = vmul.f32 %v2030_v37, %v990_v35  ;;  %v2908_v53 = vrot.slane %v2873_v47, %v3476_v40  ;;  %v994_v15 = vmul.f32 %v2031_v46, %v990_v35  ;;  %v995_v9 = vmul.f32 %v2032_v52, %v990_v35 }
  0x8e   : > { %v996_v48 = vmul.f32 %v2033_v3, %v990_v35  ;;  %v997_v49 = vmul.f32 %v2034_v30, %v990_v35  ;;  %v998_v41 = vmul.f32 %v2035_v7, %v990_v35  ;;  %v999_v24 = vmul.f32 %v2036_v25, %v990_v35  ;;  %v2047_v3 = vld [vmem:[%s2332_s20 + $0x59] sm:$0xf]  ;;  %v2048_v30 = vld [vmem:[%s2332_s20 + $0x71] sm:$0xf]  ;;  %v2050_v25 = vld [vmem:[%s2332_s20 + $0x81] sm:$0xf] }
  0x8f   : > { %v1000_v6 = vmul.f32 %v2037_v18, %v990_v35  ;;  %v1001_v34 = vmul.f32 %v2038_v60, %v990_v35  ;;  %v1002_v28 = vmul.f32 %v2039_v23, %v990_v35  ;;  %v1003_v62 = vmul.f32 %v2040_v8, %v990_v35  ;;  %v2049_v7 = vld [vmem:[%s2332_s20 + $0x79] sm:$0xf]  ;;  %v2051_v18 = vld [vmem:[%s2332_s20 + $0x89] sm:$0xf]  ;;  %v2054_v8 = vld [vmem:[%s2332_s20 + $0xb1] sm:$0xf] }
  0x90   : > { %v1004_v57 = vmul.f32 %v2041_v32, %v990_v35  ;;  %v1005_v54 = vmul.f32 %v2042_v13, %v990_v35  ;;  %v1006_v51 = vmul.f32 %v2043_v0, %v990_v35  ;;  %v1007_v45 = vadd.f32 %v991_v5, %v954_v27  ;;  %v2053_v23 = vld [vmem:[%s2332_s20 + $0xa9] sm:$0xf]  ;;  %v2055_v32 = vld [vmem:[%s2332_s20 + $0xb9] sm:$0xf]  ;;  %v2056_v5 = vld [vmem:[%s2332_s20 + $0xd1] sm:$0xf] }
  0x91   : > { %v1008_v20 = vadd.f32 %v992_v17, %v955_v55  ;;  %v1009_v38 = vadd.f32 %v993_v31, %v956_v61  ;;  %v1010_v37 = vadd.f32 %v994_v15, %v957_v56  ;;  %v1011_v33 = vadd.f32 %v995_v9, %v958_v50  ;;  %v2052_v56 = vld [vmem:[%s2332_s20 + $0xa1] sm:$0xf]  ;;  %v2057_v17 = vld [vmem:[%s2332_s20 + $0xd9] sm:$0xf]  ;;  %v2059_v31 = vld [vmem:[%s2332_s20 + $0xe9] sm:$0xf] }
  0x92   : > { %v1012_v46 = vadd.f32 %v996_v48, %v959_v16  ;;  %v1013_v52 = vadd.f32 %v997_v49, %v960_v22  ;;  %v1014_v27 = vadd.f32 %v998_v41, %v961_v26  ;;  %v1015_v55 = vadd.f32 %v999_v24, %v962_v36  ;;  %v2058_v26 = vld [vmem:[%s2332_s20 + $0xe1] sm:$0xf] }
  0x93   : > { %v1016_v61 = vadd.f32 %v1000_v6, %v963_v21  ;;  %v1017_v35 = vadd.f32 %v1001_v34, %v964_v39  ;;  %v1018_v50 = vadd.f32 %v1002_v28, %v965_v11  ;;  %v1019_v16 = vadd.f32 %v1003_v62, %v966_v12  ;;  %v2060_v62 = vld [vmem:[%s2332_s20 + $0x42] sm:$0xf] }
  0x94   : > { %v1020_v60 = vadd.f32 %v1004_v57, %v967_v4  ;;  %v1021_v22 = vadd.f32 %v1005_v54, %v968_v63  ;;  %v1022_v13 = vadd.f32 %v1006_v51, %v969_v43  ;;  %v1043_v36 = vmul.f32 %v2044_v42, %v2893_v59  ;;  %v2061_v57 = vld [vmem:[%s2332_s20 + $0x4a] sm:$0xf]  ;;  %v2062_v54 = vld [vmem:[%s2332_s20 + $0x52] sm:$0xf] }
  0x95   : > { %v1044_v21 = vmul.f32 %v2045_v1, %v2893_v59  ;;  %v1045_v39 = vmul.f32 %v2046_v29, %v2893_v59  ;;  %v1046_v40 = vmul.f32 %v2047_v3, %v2893_v59  ;;  %v1047_v11 = vmul.f32 %v2048_v30, %v2893_v59  ;;  %v2063_v3 = vld [vmem:[%s2332_s20 + $0x5a] sm:$0xf]  ;;  %v2064_v30 = vld [vmem:[%s2332_s20 + $0x72] sm:$0xf] }
  0x96   : > { %v1048_v12 = vmul.f32 %v2049_v7, %v2893_v59  ;;  %v1049_v4 = vmul.f32 %v2050_v25, %v2893_v59  ;;  %v1050_v63 = vmul.f32 %v2051_v18, %v2893_v59  ;;  %v1051_v43 = vmul.f32 %v2052_v56, %v2893_v59  ;;  %v2065_v7 = vld [vmem:[%s2332_s20 + $0x7a] sm:$0xf]  ;;  %v2066_v25 = vld [vmem:[%s2332_s20 + $0x82] sm:$0xf]  ;;  %v2067_v18 = vld [vmem:[%s2332_s20 + $0x8a] sm:$0xf] }
  0x97   : > { %v1052_v0 = vmul.f32 %v2053_v23, %v2893_v59  ;;  %v1053_v15 = vmul.f32 %v2054_v8, %v2893_v59  ;;  %v1054_v9 = vmul.f32 %v2055_v32, %v2893_v59  ;;  %v1055_v48 = vmul.f32 %v2056_v5, %v2893_v59  ;;  %v2069_v23 = vld [vmem:[%s2332_s20 + $0xaa] sm:$0xf]  ;;  %v2070_v8 = vld [vmem:[%s2332_s20 + $0xb2] sm:$0xf]  ;;  %v2071_v32 = vld [vmem:[%s2332_s20 + $0xba] sm:$0xf] }
  0x98   : > { %v1056_v49 = vmul.f32 %v2057_v17, %v2893_v59  ;;  %v1057_v41 = vmul.f32 %v2058_v26, %v2893_v59  ;;  %v1058_v24 = vmul.f32 %v2059_v31, %v2893_v59  ;;  %v1059_v6 = vadd.f32 %v1043_v36, %v1007_v45  ;;  %v2072_v17 = vld [vmem:[%s2332_s20 + $0xd2] sm:$0xf]  ;;  %v2073_v26 = vld [vmem:[%s2332_s20 + $0xda] sm:$0xf]  ;;  %v2075_v36 = vld [vmem:[%s2332_s20 + $0xea] sm:$0xf] }
  0x99   : > { %v1060_v34 = vadd.f32 %v1044_v21, %v1008_v20  ;;  %v1061_v28 = vadd.f32 %v1045_v39, %v1009_v38  ;;  %v1062_v51 = vadd.f32 %v1046_v40, %v1010_v37  ;;  %v1063_v42 = vadd.f32 %v1047_v11, %v1011_v33  ;;  %v2068_v37 = vld [vmem:[%s2332_s20 + $0xa2] sm:$0xf] }
  0x9a   : > { %v1064_v1 = vadd.f32 %v1048_v12, %v1012_v46  ;;  %v1065_v29 = vadd.f32 %v1049_v4, %v1013_v52  ;;  %v1066_v59 = vadd.f32 %v1050_v63, %v1014_v27  ;;  %v1067_v45 = vadd.f32 %v1051_v43, %v1015_v55  ;;  %v2074_v27 = vld [vmem:[%s2332_s20 + $0xe2] sm:$0xf] }
  0x9b   : > { %v1068_v20 = vadd.f32 %v1052_v0, %v1016_v61  ;;  %v1069_v38 = vadd.f32 %v1053_v15, %v1017_v35  ;;  %v1070_v33 = vadd.f32 %v1054_v9, %v1018_v50  ;;  %v1071_v46 = vadd.f32 %v1055_v48, %v1019_v16  ;;  %v2076_v9 = vld [vmem:[%s2332_s20 + $0x60] sm:$0xf]  ;;  %v2077_v48 = vld [vmem:[%s2332_s20 + $0x68] sm:$0xf] }
  0x9c   : > { %v1072_v56 = vadd.f32 %v1056_v49, %v1020_v60  ;;  %v1073_v52 = vadd.f32 %v1057_v41, %v1021_v22  ;;  %v1074_v5 = vadd.f32 %v1058_v24, %v1022_v13  ;;  %v1095_v55 = vmul.f32 %v2060_v62, %v2897_v58  ;;  %v2078_v49 = vld [vmem:[%s2332_s20 + $0x70] sm:$0xf] }
  0x9d   : > { %v1096_v61 = vmul.f32 %v2061_v57, %v2897_v58  ;;  %v1097_v35 = vmul.f32 %v2062_v54, %v2897_v58  ;;  %v1098_v21 = vmul.f32 %v2063_v3, %v2897_v58  ;;  %v1099_v50 = vmul.f32 %v2064_v30, %v2897_v58  ;;  %v2079_v54 = vld [vmem:[%s2332_s20 + $0x78] sm:$0xf]  ;;  %v2080_v3 = vld [vmem:[%s2332_s20 + $0x90] sm:$0xf] }
  0x9e   : > { %v1100_v16 = vmul.f32 %v2065_v7, %v2897_v58  ;;  %v1101_v60 = vmul.f32 %v2066_v25, %v2897_v58  ;;  %v1102_v22 = vmul.f32 %v2067_v18, %v2897_v58  ;;  %v1103_v13 = vmul.f32 %v2068_v37, %v2897_v58  ;;  %v2081_v30 = vld [vmem:[%s2332_s20 + $0x98] sm:$0xf]  ;;  %v2082_v7 = vld [vmem:[%s2332_s20 + $0xa0] sm:$0xf]  ;;  %v2083_v25 = vld [vmem:[%s2332_s20 + $0xa8] sm:$0xf] }
  0x9f   : > { %v1104_v39 = vmul.f32 %v2069_v23, %v2897_v58  ;;  %v1105_v31 = vmul.f32 %v2070_v8, %v2897_v58  ;;  %v1106_v40 = vmul.f32 %v2071_v32, %v2897_v58  ;;  %v1107_v11 = vmul.f32 %v2072_v17, %v2897_v58  ;;  %v2085_v37 = vld [vmem:[%s2332_s20 + $0xc8] sm:$0xf]  ;;  %v2086_v23 = vld [vmem:[%s2332_s20 + $0xd0] sm:$0xf]  ;;  %v2087_v8 = vld [vmem:[%s2332_s20 + $0xd8] sm:$0xf] }
  0xa0   : > { %v1108_v12 = vmul.f32 %v2073_v26, %v2897_v58  ;;  %v1109_v4 = vmul.f32 %v2074_v27, %v2897_v58  ;;  %v1110_v63 = vmul.f32 %v2075_v36, %v2897_v58  ;;  %v1111_v43 = vadd.f32 %v1095_v55, %v1059_v6  ;;  %v2088_v17 = vld [vmem:[%s2332_s20 + $0xf0] sm:$0xf]  ;;  %v2089_v26 = vld [vmem:[%s2332_s20 + $0xf8] sm:$0xf]  ;;  %v2091_v27 = vld [vmem:[%s2332_s20 + $0x108] sm:$0xf] }
  0xa1   : > { %v1112_v0 = vadd.f32 %v1096_v61, %v1060_v34  ;;  %v1113_v15 = vadd.f32 %v1097_v35, %v1061_v28  ;;  %v1114_v41 = vadd.f32 %v1098_v21, %v1062_v51  ;;  %v1115_v24 = vadd.f32 %v1099_v50, %v1063_v42  ;;  %v2084_v51 = vld [vmem:[%s2332_s20 + $0xc0] sm:$0xf] }
  0xa2   : > { %v1116_v62 = vadd.f32 %v1100_v16, %v1064_v1  ;;  %v1117_v57 = vadd.f32 %v1101_v60, %v1065_v29  ;;  %v1118_v58 = vadd.f32 %v1102_v22, %v1066_v59  ;;  %v1119_v6 = vadd.f32 %v1103_v13, %v1067_v45  ;;  %v2090_v59 = vld [vmem:[%s2332_s20 + $0x100] sm:$0xf] }
  0xa3   : > { %v1120_v34 = vadd.f32 %v1104_v39, %v1068_v20  ;;  %v1121_v28 = vadd.f32 %v1105_v31, %v1069_v38  ;;  %v1122_v42 = vadd.f32 %v1106_v40, %v1070_v33  ;;  %v1123_v1 = vadd.f32 %v1107_v11, %v1071_v46  ;;  %v2092_v31 = vld [vmem:[%s2332_s20 + $0x61] sm:$0xf]  ;;  %v2093_v40 = vld [vmem:[%s2332_s20 + $0x69] sm:$0xf]  ;;  %v2094_v11 = vld [vmem:[%s2332_s20 + $0x71] sm:$0xf] }
  0xa4   : > { %v1124_v18 = vadd.f32 %v1108_v12, %v1072_v56  ;;  %v1125_v29 = vadd.f32 %v1109_v4, %v1073_v52  ;;  %v1126_v32 = vadd.f32 %v1110_v63, %v1074_v5  ;;  %v1148_v45 = vmul.f32 %v2076_v9, %v2901_v44 }
  0xa5   : > { %v1149_v20 = vmul.f32 %v2077_v48, %v2901_v44  ;;  %v1150_v38 = vmul.f32 %v2078_v49, %v2901_v44  ;;  %v1151_v55 = vmul.f32 %v2079_v54, %v2901_v44  ;;  %v1152_v33 = vmul.f32 %v2080_v3, %v2901_v44  ;;  %v2095_v48 = vld [vmem:[%s2332_s20 + $0x79] sm:$0xf]  ;;  %v2096_v49 = vld [vmem:[%s2332_s20 + $0x91] sm:$0xf]  ;;  %v2098_v3 = vld [vmem:[%s2332_s20 + $0xa1] sm:$0xf] }
  0xa6   : > { %v1153_v46 = vmul.f32 %v2081_v30, %v2901_v44  ;;  %v1154_v56 = vmul.f32 %v2082_v7, %v2901_v44  ;;  %v1155_v52 = vmul.f32 %v2083_v25, %v2901_v44  ;;  %v1156_v5 = vmul.f32 %v2084_v51, %v2901_v44  ;;  %v2097_v54 = vld [vmem:[%s2332_s20 + $0x99] sm:$0xf]  ;;  %v2099_v30 = vld [vmem:[%s2332_s20 + $0xa9] sm:$0xf]  ;;  %v2102_v51 = vld [vmem:[%s2332_s20 + $0xd1] sm:$0xf] }
  0xa7   : > { %v1157_v61 = vmul.f32 %v2085_v37, %v2901_v44  ;;  %v1158_v35 = vmul.f32 %v2086_v23, %v2901_v44  ;;  %v1159_v36 = vmul.f32 %v2087_v8, %v2901_v44  ;;  %v1160_v21 = vmul.f32 %v2088_v17, %v2901_v44  ;;  %v2101_v25 = vld [vmem:[%s2332_s20 + $0xc9] sm:$0xf]  ;;  %v2103_v37 = vld [vmem:[%s2332_s20 + $0xd9] sm:$0xf]  ;;  %v2104_v8 = vld [vmem:[%s2332_s20 + $0xf1] sm:$0xf] }
  0xa8   : > { %v1161_v50 = vmul.f32 %v2089_v26, %v2901_v44  ;;  %v1162_v16 = vmul.f32 %v2090_v59, %v2901_v44  ;;  %v1163_v60 = vmul.f32 %v2091_v27, %v2901_v44  ;;  %v1164_v22 = vadd.f32 %v1148_v45, %v1111_v43  ;;  %v2105_v17 = vld [vmem:[%s2332_s20 + $0xf9] sm:$0xf]  ;;  %v2107_v26 = vld [vmem:[%s2332_s20 + $0x109] sm:$0xf] }
  0xa9   : > { %v1165_v13 = vadd.f32 %v1149_v20, %v1112_v0  ;;  %v1166_v39 = vadd.f32 %v1150_v38, %v1113_v15  ;;  %v1167_v12 = vadd.f32 %v1151_v55, %v1114_v41  ;;  %v1168_v4 = vadd.f32 %v1152_v33, %v1115_v24  ;;  %v2100_v41 = vld [vmem:[%s2332_s20 + $0xc1] sm:$0xf] }
  0xaa   : > { %v1169_v63 = vadd.f32 %v1153_v46, %v1116_v62  ;;  %v1170_v9 = vadd.f32 %v1154_v56, %v1117_v57  ;;  %v1171_v44 = vadd.f32 %v1155_v52, %v1118_v58  ;;  %v1172_v43 = vadd.f32 %v1156_v5, %v1119_v6  ;;  %v2106_v58 = vld [vmem:[%s2332_s20 + $0x101] sm:$0xf] }
  0xab   : > { %v1173_v0 = vadd.f32 %v1157_v61, %v1120_v34  ;;  %v1174_v15 = vadd.f32 %v1158_v35, %v1121_v28  ;;  %v1175_v24 = vadd.f32 %v1159_v36, %v1122_v42  ;;  %v1176_v62 = vadd.f32 %v1160_v21, %v1123_v1  ;;  %v201_v61 = vld [vmem:[%s3456_s1 + $0x18] sm:$0x7] }
  0xac   : > { %v1177_v7 = vadd.f32 %v1161_v50, %v1124_v18  ;;  %v1178_v57 = vadd.f32 %v1162_v16, %v1125_v29  ;;  %v1179_v23 = vadd.f32 %v1163_v60, %v1126_v32  ;;  %v1200_v6 = vmul.f32 %v2092_v31, %v2908_v53  ;;  %v2108_v16 = vld [vmem:[%s2332_s20 + $0x62] sm:$0xf] }
  0xad   : > { %v1201_v34 = vmul.f32 %v2093_v40, %v2908_v53  ;;  %v1202_v28 = vmul.f32 %v2094_v11, %v2908_v53  ;;  %v1203_v59 = vmul.f32 %v2095_v48, %v2908_v53  ;;  %v1204_v42 = vmul.f32 %v2096_v49, %v2908_v53  ;;  %v3477_v40 = vld [vmem:[#allocation5_spill] sm:$0xff]  ;;  %v2112_v48 = vld [vmem:[%s2332_s20 + $0x92] sm:$0xf] }
  0xae   : > { %v1205_v1 = vmul.f32 %v2097_v54, %v2908_v53  ;;  %v1206_v18 = vmul.f32 %v2098_v3, %v2908_v53  ;;  %v1207_v29 = vmul.f32 %v2099_v30, %v2908_v53  ;;  %v1208_v32 = vmul.f32 %v2100_v41, %v2908_v53  ;;  %v2113_v49 = vld [vmem:[%s2332_s20 + $0x9a] sm:$0xf]  ;;  %v2114_v54 = vld [vmem:[%s2332_s20 + $0xa2] sm:$0xf]  ;;  %v2117_v30 = vld [vmem:[%s2332_s20 + $0xca] sm:$0xf] }
  0xaf   : > { %v1209_v45 = vmul.f32 %v2101_v25, %v2908_v53  ;;  %v1210_v20 = vmul.f32 %v2102_v51, %v2908_v53  ;;  %v1211_v38 = vmul.f32 %v2103_v37, %v2908_v53  ;;  %v1212_v27 = vmul.f32 %v2104_v8, %v2908_v53  ;;  %v2116_v3 = vld [vmem:[%s2332_s20 + $0xc2] sm:$0xf]  ;;  %v2120_v51 = vld [vmem:[%s2332_s20 + $0xf2] sm:$0xf] }
  0xb0   : > { %v1213_v55 = vmul.f32 %v2105_v17, %v2908_v53  ;;  %v1214_v33 = vmul.f32 %v2106_v58, %v2908_v53  ;;  %v1215_v46 = vmul.f32 %v2107_v26, %v2908_v53  ;;  %v1216_v56 = vadd.f32 %v1200_v6, %v1164_v22  ;;  %v2109_v22 = vld [vmem:[%s2332_s20 + $0x6a] sm:$0xf]  ;;  %v3478_v41 = vld [vmem:[#allocation6_spill] sm:$0xff]  ;;  %v2121_v17 = vld [vmem:[%s2332_s20 + $0xfa] sm:$0xf] }
  0xb1   : > { %v1217_v52 = vadd.f32 %v1201_v34, %v1165_v13  ;;  %v1218_v5 = vadd.f32 %v1202_v28, %v1166_v39  ;;  %v1219_v35 = vadd.f32 %v1203_v59, %v1167_v12  ;;  %v1220_v36 = vadd.f32 %v1204_v42, %v1168_v4  ;;  %v2110_v13 = vld [vmem:[%s2332_s20 + $0x72] sm:$0xf]  ;;  %v2111_v39 = vld [vmem:[%s2332_s20 + $0x7a] sm:$0xf]  ;;  %v2122_v58 = vld [vmem:[%s2332_s20 + $0x102] sm:$0xf] }
  0xb2   : > { %v1221_v21 = vadd.f32 %v1205_v1, %v1169_v63  ;;  %v1222_v50 = vadd.f32 %v1206_v18, %v1170_v9  ;;  %v1223_v60 = vadd.f32 %v1207_v29, %v1171_v44  ;;  %v1224_v31 = vadd.f32 %v1208_v32, %v1172_v43  ;;  %v2123_v6 = vld [vmem:[%s2332_s20 + $0x10a] sm:$0xf] }
  0xb3   : > { %v1225_v53 = vadd.f32 %v1209_v45, %v1173_v0  ;;  %v1251_v11 = vrot.slane %v2873_v47, %v3477_v40  ;;  %v1226_v12 = vadd.f32 %v1210_v20, %v1174_v15  ;;  %v1227_v4 = vadd.f32 %v1211_v38, %v1175_v24  ;;  %v2115_v0 = vld [vmem:[%s2332_s20 + $0xaa] sm:$0xf] }
  0xb4   : > { %v1228_v63 = vadd.f32 %v1212_v27, %v1176_v62  ;;  %v1229_v9 = vadd.f32 %v1213_v55, %v1177_v7  ;;  %v1230_v44 = vadd.f32 %v1214_v33, %v1178_v57  ;;  %v1231_v43 = vadd.f32 %v1215_v46, %v1179_v23  ;;  %v3479_v15 = vld [vmem:[#allocation7_spill] sm:$0xff]  ;;  %v2118_v62 = vld [vmem:[%s2332_s20 + $0xd2] sm:$0xf]  ;;  %v2119_v7 = vld [vmem:[%s2332_s20 + $0xda] sm:$0xf] }
  0xb5   : > { %v3056_v25 = vrot.slane %v2873_v47, %v3478_v41  ;;  %v3060_v24 = vrot.slane %v2873_v47, %v3479_v15  ;;  %v3067_v37 = vrot.slane %v2873_v47, %v2357_v14  ;;  %v3070_v57 = vrot.slane %v201_v61, %v2327_v2  ;;  %v2124_v38 = vld [vmem:[%s2332_s20 + $0x68] sm:$0xf]  ;;  %v2135_v15 = vld [vmem:[%s2332_s20 + $0xe0] sm:$0xf] }
  0xb6   : > { %v3073_v23 = vrot.slane %v201_v61, %v3474_v10  ;;  %v3076_v8 = vrot.slane %v201_v61, %v3475_v19  ;;  %v1252_v34 = vmul.f32 %v2108_v16, %v1251_v11  ;;  %v1253_v28 = vmul.f32 %v2109_v22, %v1251_v11  ;;  %v2125_v61 = vld [vmem:[%s2332_s20 + $0x70] sm:$0xf]  ;;  %v2126_v16 = vld [vmem:[%s2332_s20 + $0x78] sm:$0xf]  ;;  %v2127_v22 = vld [vmem:[%s2332_s20 + $0x80] sm:$0xf] }
  0xb7   : > { %v1254_v26 = vmul.f32 %v2110_v13, %v1251_v11  ;;  %v1255_v59 = vmul.f32 %v2111_v39, %v1251_v11  ;;  %v1256_v42 = vmul.f32 %v2112_v48, %v1251_v11  ;;  %v1257_v14 = vmul.f32 %v2113_v49, %v1251_v11  ;;  %v2128_v49 = vld [vmem:[%s2332_s20 + $0x98] sm:$0xf] }
  0xb8   : > { %v1258_v47 = vmul.f32 %v2114_v54, %v1251_v11  ;;  %v1259_v2 = vmul.f32 %v2115_v0, %v1251_v11  ;;  %v1260_v10 = vmul.f32 %v2116_v3, %v1251_v11  ;;  %v1261_v1 = vmul.f32 %v2117_v30, %v1251_v11  ;;  %v2131_v0 = vld [vmem:[%s2332_s20 + $0xb0] sm:$0xf]  ;;  %v2132_v3 = vld [vmem:[%s2332_s20 + $0xc8] sm:$0xf] }
  0xb9   : > { %v1262_v18 = vmul.f32 %v2118_v62, %v1251_v11  ;;  %v1263_v19 = vmul.f32 %v2119_v7, %v1251_v11  ;;  %v1264_v29 = vmul.f32 %v2120_v51, %v1251_v11  ;;  %v1265_v32 = vmul.f32 %v2121_v17, %v1251_v11  ;;  %v2133_v30 = vld [vmem:[%s2332_s20 + $0xd0] sm:$0xf]  ;;  %v2136_v62 = vld [vmem:[%s2332_s20 + $0xf8] sm:$0xf]  ;;  %v2137_v7 = vld [vmem:[%s2332_s20 + $0x100] sm:$0xf] }
  0xba   : > { %v1266_v45 = vmul.f32 %v2122_v58, %v1251_v11  ;;  %v1267_v20 = vmul.f32 %v2123_v6, %v1251_v11  ;;  %v1268_v27 = vadd.f32 %v1252_v34, %v1216_v56  ;;  %v1269_v55 = vadd.f32 %v1253_v28, %v1217_v52  ;;  %v2129_v11 = vld [vmem:[%s2332_s20 + $0xa0] sm:$0xf]  ;;  %v2130_v56 = vld [vmem:[%s2332_s20 + $0xa8] sm:$0xf]  ;;  %v2139_v17 = vld [vmem:[%s2332_s20 + $0x110] sm:$0xf] }
  0xbb   : > { %v1270_v33 = vadd.f32 %v1254_v26, %v1218_v5  ;;  %v1271_v46 = vadd.f32 %v1255_v59, %v1219_v35  ;;  %v1272_v13 = vadd.f32 %v1256_v42, %v1220_v36  ;;  %v1273_v39 = vadd.f32 %v1257_v14, %v1221_v21  ;;  %v2138_v51 = vld [vmem:[%s2332_s20 + $0x108] sm:$0xf] }
  0xbc   : > { %v1274_v40 = vadd.f32 %v1258_v47, %v1222_v50  ;;  %v1275_v48 = vadd.f32 %v1259_v2, %v1223_v60  ;;  %v1276_v52 = vadd.f32 %v1260_v10, %v1224_v31  ;;  %v1277_v5 = vadd.f32 %v1261_v1, %v1225_v53  ;;  %v2134_v60 = vld [vmem:[%s2332_s20 + $0xd8] sm:$0xf]  ;;  %v2140_v47 = vld [vmem:[%s2332_s20 + $0x69] sm:$0xf] }
  0xbd   : > { %v1278_v35 = vadd.f32 %v1262_v18, %v1226_v12  ;;  %v1279_v54 = vadd.f32 %v1263_v19, %v1227_v4  ;;  %v1280_v36 = vadd.f32 %v1264_v29, %v1228_v63  ;;  %v1281_v21 = vadd.f32 %v1265_v32, %v1229_v9  ;;  %v2141_v19 = vld [vmem:[%s2332_s20 + $0x71] sm:$0xf]  ;;  %v2142_v29 = vld [vmem:[%s2332_s20 + $0x79] sm:$0xf]  ;;  %v2143_v32 = vld [vmem:[%s2332_s20 + $0x81] sm:$0xf] }
  0xbe   : > { %v1282_v50 = vadd.f32 %v1266_v45, %v1230_v44  ;;  %v1283_v41 = vadd.f32 %v1267_v20, %v1231_v43  ;;  %v1305_v58 = vmul.f32 %v2124_v38, %v3056_v25  ;;  %v1306_v31 = vmul.f32 %v2125_v61, %v3056_v25 }
  0xbf   : > { %v1307_v53 = vmul.f32 %v2126_v16, %v3056_v25  ;;  %v1308_v12 = vmul.f32 %v2127_v22, %v3056_v25  ;;  %v1309_v4 = vmul.f32 %v2128_v49, %v3056_v25  ;;  %v1310_v63 = vmul.f32 %v2129_v11, %v3056_v25  ;;  %v2144_v16 = vld [vmem:[%s2332_s20 + $0x99] sm:$0xf]  ;;  %v2147_v49 = vld [vmem:[%s2332_s20 + $0xb1] sm:$0xf]  ;;  %v2148_v11 = vld [vmem:[%s2332_s20 + $0xc9] sm:$0xf] }
  0xc0   : > { %v1311_v9 = vmul.f32 %v2130_v56, %v3056_v25  ;;  %v1312_v44 = vmul.f32 %v2131_v0, %v3056_v25  ;;  %v1313_v43 = vmul.f32 %v2132_v3, %v3056_v25  ;;  %v1314_v6 = vmul.f32 %v2133_v30, %v3056_v25  ;;  %v2149_v56 = vld [vmem:[%s2332_s20 + $0xd1] sm:$0xf]  ;;  %v2151_v3 = vld [vmem:[%s2332_s20 + $0xe1] sm:$0xf]  ;;  %v2152_v30 = vld [vmem:[%s2332_s20 + $0xf9] sm:$0xf] }
  0xc1   : > { %v1315_v34 = vmul.f32 %v2134_v60, %v3056_v25  ;;  %v1316_v28 = vmul.f32 %v2135_v15, %v3056_v25  ;;  %v1317_v26 = vmul.f32 %v2136_v62, %v3056_v25  ;;  %v1318_v59 = vmul.f32 %v2137_v7, %v3056_v25  ;;  %v2153_v60 = vld [vmem:[%s2332_s20 + $0x101] sm:$0xf]  ;;  %v2154_v15 = vld [vmem:[%s2332_s20 + $0x109] sm:$0xf]  ;;  %v2155_v62 = vld [vmem:[%s2332_s20 + $0x111] sm:$0xf] }
  0xc2   : > { %v1319_v42 = vmul.f32 %v2138_v51, %v3056_v25  ;;  %v1320_v14 = vmul.f32 %v2139_v17, %v3056_v25  ;;  %v1321_v2 = vadd.f32 %v1305_v58, %v1268_v27  ;;  %v1322_v10 = vadd.f32 %v1306_v31, %v1269_v55  ;;  %v2145_v25 = vld [vmem:[%s2332_s20 + $0xa1] sm:$0xf]  ;;  %v2146_v27 = vld [vmem:[%s2332_s20 + $0xa9] sm:$0xf] }
  0xc3   : > { %v1323_v1 = vadd.f32 %v1307_v53, %v1270_v33  ;;  %v1324_v18 = vadd.f32 %v1308_v12, %v1271_v46  ;;  %v1325_v45 = vadd.f32 %v1309_v4, %v1272_v13  ;;  %v1326_v20 = vadd.f32 %v1310_v63, %v1273_v39  ;;  %v2156_v63 = vld [vmem:[%s2332_s20 + $0x6a] sm:$0xf] }
  0xc4   : > { %v1327_v38 = vadd.f32 %v1311_v9, %v1274_v40  ;;  %v1328_v61 = vadd.f32 %v1312_v44, %v1275_v48  ;;  %v1329_v55 = vadd.f32 %v1313_v43, %v1276_v52  ;;  %v1330_v33 = vadd.f32 %v1314_v6, %v1277_v5  ;;  %v2150_v48 = vld [vmem:[%s2332_s20 + $0xd9] sm:$0xf] }
  0xc5   : > { %v1331_v46 = vadd.f32 %v1315_v34, %v1278_v35  ;;  %v1332_v22 = vadd.f32 %v1316_v28, %v1279_v54  ;;  %v1333_v13 = vadd.f32 %v1317_v26, %v1280_v36  ;;  %v1334_v39 = vadd.f32 %v1318_v59, %v1281_v21  ;;  %v2157_v34 = vld [vmem:[%s2332_s20 + $0x72] sm:$0xf]  ;;  %v2158_v28 = vld [vmem:[%s2332_s20 + $0x7a] sm:$0xf]  ;;  %v2159_v26 = vld [vmem:[%s2332_s20 + $0x82] sm:$0xf] }
  0xc6   : > { %v1335_v40 = vadd.f32 %v1319_v42, %v1282_v50  ;;  %v1336_v0 = vadd.f32 %v1320_v14, %v1283_v41  ;;  %v1357_v7 = vmul.f32 %v2140_v47, %v3060_v24  ;;  %v1358_v52 = vmul.f32 %v2141_v19, %v3060_v24  ;;  %v2160_v19 = vld [vmem:[%s2332_s20 + $0x9a] sm:$0xf] }
  0xc7   : > { %v1359_v5 = vmul.f32 %v2142_v29, %v3060_v24  ;;  %v1360_v35 = vmul.f32 %v2143_v32, %v3060_v24  ;;  %v1361_v54 = vmul.f32 %v2144_v16, %v3060_v24  ;;  %v1362_v36 = vmul.f32 %v2145_v25, %v3060_v24  ;;  %v2163_v32 = vld [vmem:[%s2332_s20 + $0xb2] sm:$0xf]  ;;  %v2164_v16 = vld [vmem:[%s2332_s20 + $0xca] sm:$0xf] }
  0xc8   : > { %v1363_v21 = vmul.f32 %v2146_v27, %v3060_v24  ;;  %v1364_v50 = vmul.f32 %v2147_v49, %v3060_v24  ;;  %v1365_v41 = vmul.f32 %v2148_v11, %v3060_v24  ;;  %v1366_v51 = vmul.f32 %v2149_v56, %v3060_v24  ;;  %v2165_v25 = vld [vmem:[%s2332_s20 + $0xd2] sm:$0xf]  ;;  %v2167_v49 = vld [vmem:[%s2332_s20 + $0xe2] sm:$0xf]  ;;  %v2168_v11 = vld [vmem:[%s2332_s20 + $0xfa] sm:$0xf] }
  0xc9   : > { %v1367_v17 = vmul.f32 %v2150_v48, %v3060_v24  ;;  %v1368_v58 = vmul.f32 %v2151_v3, %v3060_v24  ;;  %v1369_v31 = vmul.f32 %v2152_v30, %v3060_v24  ;;  %v1370_v53 = vmul.f32 %v2153_v60, %v3060_v24  ;;  %v2169_v56 = vld [vmem:[%s2332_s20 + $0x102] sm:$0xf]  ;;  %v2170_v48 = vld [vmem:[%s2332_s20 + $0x10a] sm:$0xf]  ;;  %v2171_v3 = vld [vmem:[%s2332_s20 + $0x112] sm:$0xf] }
  0xca   : > { %v1371_v12 = vmul.f32 %v2154_v15, %v3060_v24  ;;  %v1372_v4 = vmul.f32 %v2155_v62, %v3060_v24  ;;  %v1373_v9 = vadd.f32 %v1357_v7, %v1321_v2  ;;  %v1374_v44 = vadd.f32 %v1358_v52, %v1322_v10  ;;  %v2161_v24 = vld [vmem:[%s2332_s20 + $0xa2] sm:$0xf]  ;;  %v2162_v2 = vld [vmem:[%s2332_s20 + $0xaa] sm:$0xf] }
  0xcb   : > { %v1375_v43 = vadd.f32 %v1359_v5, %v1323_v1  ;;  %v1376_v6 = vadd.f32 %v1360_v35, %v1324_v18  ;;  %v1377_v59 = vadd.f32 %v1361_v54, %v1325_v45  ;;  %v1378_v42 = vadd.f32 %v1362_v36, %v1326_v20  ;;  %v2172_v54 = vld [vmem:[%s2332_s20 + $0x70] sm:$0xf] }
  0xcc   : > { %v1379_v14 = vadd.f32 %v1363_v21, %v1327_v38  ;;  %v1380_v47 = vadd.f32 %v1364_v50, %v1328_v61  ;;  %v1381_v10 = vadd.f32 %v1365_v41, %v1329_v55  ;;  %v1382_v1 = vadd.f32 %v1366_v51, %v1330_v33  ;;  %v2166_v61 = vld [vmem:[%s2332_s20 + $0xda] sm:$0xf] }
  0xcd   : > { %v1383_v18 = vadd.f32 %v1367_v17, %v1331_v46  ;;  %v1384_v29 = vadd.f32 %v1368_v58, %v1332_v22  ;;  %v1385_v45 = vadd.f32 %v1369_v31, %v1333_v13  ;;  %v1386_v20 = vadd.f32 %v1370_v53, %v1334_v39  ;;  %v2173_v51 = vld [vmem:[%s2332_s20 + $0x78] sm:$0xf]  ;;  %v2174_v17 = vld [vmem:[%s2332_s20 + $0x80] sm:$0xf]  ;;  %v2175_v58 = vld [vmem:[%s2332_s20 + $0x88] sm:$0xf] }
  0xce   : > { %v1387_v38 = vadd.f32 %v1371_v12, %v1335_v40  ;;  %v1388_v27 = vadd.f32 %v1372_v4, %v1336_v0  ;;  %v1409_v30 = vmul.f32 %v2156_v63, %v3067_v37  ;;  %v1410_v55 = vmul.f32 %v2157_v34, %v3067_v37  ;;  %v2176_v63 = vld [vmem:[%s2332_s20 + $0xa0] sm:$0xf] }
  0xcf   : > { %v1411_v33 = vmul.f32 %v2158_v28, %v3067_v37  ;;  %v1412_v46 = vmul.f32 %v2159_v26, %v3067_v37  ;;  %v1413_v22 = vmul.f32 %v2160_v19, %v3067_v37  ;;  %v1414_v13 = vmul.f32 %v2161_v24, %v3067_v37  ;;  %v2179_v28 = vld [vmem:[%s2332_s20 + $0xb8] sm:$0xf]  ;;  %v2180_v26 = vld [vmem:[%s2332_s20 + $0xd0] sm:$0xf] }
  0xd0   : > { %v1415_v39 = vmul.f32 %v2162_v2, %v3067_v37  ;;  %v1416_v40 = vmul.f32 %v2163_v32, %v3067_v37  ;;  %v1417_v0 = vmul.f32 %v2164_v16, %v3067_v37  ;;  %v1418_v60 = vmul.f32 %v2165_v25, %v3067_v37  ;;  %v2181_v19 = vld [vmem:[%s2332_s20 + $0xd8] sm:$0xf]  ;;  %v2183_v2 = vld [vmem:[%s2332_s20 + $0xe8] sm:$0xf]  ;;  %v2184_v32 = vld [vmem:[%s2332_s20 + $0x100] sm:$0xf] }
  0xd1   : > { %v1419_v15 = vmul.f32 %v2166_v61, %v3067_v37  ;;  %v1420_v62 = vmul.f32 %v2167_v49, %v3067_v37  ;;  %v1421_v7 = vmul.f32 %v2168_v11, %v3067_v37  ;;  %v1422_v52 = vmul.f32 %v2169_v56, %v3067_v37  ;;  %v2185_v16 = vld [vmem:[%s2332_s20 + $0x108] sm:$0xf]  ;;  %v2186_v25 = vld [vmem:[%s2332_s20 + $0x110] sm:$0xf]  ;;  %v2187_v61 = vld [vmem:[%s2332_s20 + $0x118] sm:$0xf] }
  0xd2   : > { %v1423_v5 = vmul.f32 %v2170_v48, %v3067_v37  ;;  %v1424_v35 = vmul.f32 %v2171_v3, %v3067_v37  ;;  %v1425_v36 = vadd.f32 %v1409_v30, %v1373_v9  ;;  %v1426_v21 = vadd.f32 %v1410_v55, %v1374_v44  ;;  %v2177_v37 = vld [vmem:[%s2332_s20 + $0xa8] sm:$0xf]  ;;  %v2178_v9 = vld [vmem:[%s2332_s20 + $0xb0] sm:$0xf] }
  0xd3   : > { %v1427_v50 = vadd.f32 %v1411_v33, %v1375_v43  ;;  %v1428_v41 = vadd.f32 %v1412_v46, %v1376_v6  ;;  %v1429_v31 = vadd.f32 %v1413_v22, %v1377_v59  ;;  %v1430_v53 = vadd.f32 %v1414_v13, %v1378_v42 }
  0xd4   : > { %v1431_v12 = vadd.f32 %v1415_v39, %v1379_v14  ;;  %v1432_v4 = vadd.f32 %v1416_v40, %v1380_v47  ;;  %v1433_v44 = vadd.f32 %v1417_v0, %v1381_v10  ;;  %v1434_v43 = vadd.f32 %v1418_v60, %v1382_v1  ;;  %v2182_v47 = vld [vmem:[%s2332_s20 + $0xe0] sm:$0xf]  ;;  %v2188_v40 = vld [vmem:[%s2332_s20 + $0x71] sm:$0xf]  ;;  %v2189_v0 = vld [vmem:[%s2332_s20 + $0x79] sm:$0xf] }
  0xd5   : > { %v1435_v6 = vadd.f32 %v1419_v15, %v1383_v18  ;;  %v1436_v34 = vadd.f32 %v1420_v62, %v1384_v29  ;;  %v1437_v59 = vadd.f32 %v1421_v7, %v1385_v45  ;;  %v1438_v42 = vadd.f32 %v1422_v52, %v1386_v20  ;;  %v2190_v60 = vld [vmem:[%s2332_s20 + $0x81] sm:$0xf] }
  0xd6   : > { %v1439_v14 = vadd.f32 %v1423_v5, %v1387_v38  ;;  %v1440_v24 = vadd.f32 %v1424_v35, %v1388_v27  ;;  %v1462_v49 = vmul.f32 %v2172_v54, %v3070_v57  ;;  %v1463_v10 = vmul.f32 %v2173_v51, %v3070_v57  ;;  %v2191_v5 = vld [vmem:[%s2332_s20 + $0x89] sm:$0xf]  ;;  %v2192_v35 = vld [vmem:[%s2332_s20 + $0xa1] sm:$0xf]  ;;  %v2195_v51 = vld [vmem:[%s2332_s20 + $0xb9] sm:$0xf] }
  0xd7   : > { %v1464_v1 = vmul.f32 %v2174_v17, %v3070_v57  ;;  %v1465_v18 = vmul.f32 %v2175_v58, %v3070_v57  ;;  %v1466_v29 = vmul.f32 %v2176_v63, %v3070_v57  ;;  %v1467_v45 = vmul.f32 %v2177_v37, %v3070_v57  ;;  %v2196_v17 = vld [vmem:[%s2332_s20 + $0xd1] sm:$0xf] }
  0xd8   : > { %v1468_v20 = vmul.f32 %v2178_v9, %v3070_v57  ;;  %v1469_v38 = vmul.f32 %v2179_v28, %v3070_v57  ;;  %v1470_v27 = vmul.f32 %v2180_v26, %v3070_v57  ;;  %v1471_v11 = vmul.f32 %v2181_v19, %v3070_v57 }
  0xd9   : > { %v1472_v56 = vmul.f32 %v2182_v47, %v3070_v57  ;;  %v1473_v48 = vmul.f32 %v2183_v2, %v3070_v57  ;;  %v1474_v3 = vmul.f32 %v2184_v32, %v3070_v57  ;;  %v1475_v30 = vmul.f32 %v2185_v16, %v3070_v57  ;;  %v2204_v47 = vld [vmem:[%s2332_s20 + $0x72] sm:$0xf]  ;;  %v2203_v32 = vld [vmem:[%s2332_s20 + $0x119] sm:$0xf] }
  0xda   : > { %v1476_v55 = vmul.f32 %v2186_v25, %v3070_v57  ;;  %v1477_v33 = vmul.f32 %v2187_v61, %v3070_v57  ;;  %v1478_v46 = vadd.f32 %v1462_v49, %v1425_v36  ;;  %v1479_v22 = vadd.f32 %v1463_v10, %v1426_v21  ;;  %v2193_v57 = vld [vmem:[%s2332_s20 + $0xa9] sm:$0xf]  ;;  %v2202_v2 = vld [vmem:[%s2332_s20 + $0x111] sm:$0xf] }
  0xdb   : > { %v1480_v13 = vadd.f32 %v1464_v1, %v1427_v50  ;;  %v1481_v39 = vadd.f32 %v1465_v18, %v1428_v41  ;;  %v1482_v15 = vadd.f32 %v1466_v29, %v1429_v31  ;;  %v1483_v62 = vadd.f32 %v1467_v45, %v1430_v53  ;;  %v2194_v41 = vld [vmem:[%s2332_s20 + $0xb1] sm:$0xf]  ;;  %v2197_v53 = vld [vmem:[%s2332_s20 + $0xd9] sm:$0xf]  ;;  %v2207_v10 = vld [vmem:[%s2332_s20 + $0x8a] sm:$0xf] }
  0xdc   : > { %v1484_v7 = vadd.f32 %v1468_v20, %v1431_v12  ;;  %v1485_v52 = vadd.f32 %v1469_v38, %v1432_v4  ;;  %v1486_v54 = vadd.f32 %v1470_v27, %v1433_v44  ;;  %v1487_v36 = vadd.f32 %v1471_v11, %v1434_v43  ;;  %v2198_v12 = vld [vmem:[%s2332_s20 + $0xe1] sm:$0xf]  ;;  %v2199_v4 = vld [vmem:[%s2332_s20 + $0xe9] sm:$0xf]  ;;  %v2210_v11 = vld [vmem:[%s2332_s20 + $0xb2] sm:$0xf] }
  0xdd   : > { %v1488_v21 = vadd.f32 %v1472_v56, %v1435_v6  ;;  %v1489_v50 = vadd.f32 %v1473_v48, %v1436_v34  ;;  %v3218_v58 = vadd.f32 %v1474_v3, %v1437_v59  ;;  %v3220_v31 = vadd.f32 %v1475_v30, %v1438_v42  ;;  %v2200_v43 = vld [vmem:[%s2332_s20 + $0x101] sm:$0xf]  ;;  %v2201_v6 = vld [vmem:[%s2332_s20 + $0x109] sm:$0xf] }
  0xde   : > { %v1514_v63 = vmul.f32 %v2188_v40, %v3073_v23  ;;  %v1515_v37 = vmul.f32 %v2189_v0, %v3073_v23  ;;  %v1492_v9 = vadd.f32 %v1476_v55, %v1439_v14  ;;  %v3227_v44 = vadd.f32 %v1477_v33, %v1440_v24  ;;  %v2205_v14 = vld [vmem:[%s2332_s20 + $0x7a] sm:$0xf]  ;;  %v2206_v24 = vld [vmem:[%s2332_s20 + $0x82] sm:$0xf]  ;;  %v2209_v27 = vld [vmem:[%s2332_s20 + $0xaa] sm:$0xf] }
  0xdf   : > { %v1516_v34 = vmul.f32 %v2190_v60, %v3073_v23  ;;  %v1517_v28 = vmul.f32 %v2191_v5, %v3073_v23  ;;  %v1518_v26 = vmul.f32 %v2192_v35, %v3073_v23  ;;  %v1519_v19 = vmul.f32 %v2193_v57, %v3073_v23  ;;  %v2208_v20 = vld [vmem:[%s2332_s20 + $0xa2] sm:$0xf]  ;;  %v2211_v0 = vld [vmem:[%s2332_s20 + $0xba] sm:$0xf]  ;;  %v2212_v57 = vld [vmem:[%s2332_s20 + $0xd2] sm:$0xf] }
  0xe0   : > { %v1520_v59 = vmul.f32 %v2194_v41, %v3073_v23  ;;  %v1521_v42 = vmul.f32 %v2195_v51, %v3073_v23  ;;  %v1522_v16 = vmul.f32 %v2196_v17, %v3073_v23  ;;  %v1523_v25 = vmul.f32 %v2197_v53, %v3073_v23 }
  0xe1   : > { %v1524_v61 = vmul.f32 %v2198_v12, %v3073_v23  ;;  %v1525_v49 = vmul.f32 %v2199_v4, %v3073_v23  ;;  %v1526_v1 = vmul.f32 %v2200_v43, %v3073_v23  ;;  %v1527_v18 = vmul.f32 %v2201_v6, %v3073_v23  ;;  %v2214_v12 = vld [vmem:[%s2332_s20 + $0xe2] sm:$0xf]  ;;  %v3269_v4 = vld [vmem:[%s3457_s2] ss:$0 sm:$0xff] }
  0xe2   : > { %v1530_v29 = vadd.f32 %v1514_v63, %v1478_v46  ;;  %v1531_v45 = vadd.f32 %v1515_v37, %v1479_v22  ;;  %v1532_v38 = vadd.f32 %v1516_v34, %v1480_v13  ;;  %v1566_v56 = vmul.f32 %v2204_v47, %v3076_v8  ;;  %v2215_v37 = vld [vmem:[%s2332_s20 + $0xea] sm:$0xf] }
  0xe3   : > { %v1567_v48 = vmul.f32 %v2205_v14, %v3076_v8  ;;  %v1568_v3 = vmul.f32 %v2206_v24, %v3076_v8  ;;  %v1528_v30 = vmul.f32 %v2202_v2, %v3073_v23  ;;  %v1529_v55 = vmul.f32 %v2203_v32, %v3073_v23  ;;  %v2213_v23 = vld [vmem:[%s2332_s20 + $0xda] sm:$0xf]  ;;  %v2217_v34 = vld [vmem:[%s2332_s20 + $0x10a] sm:$0xf]  ;;  %v2221_v32 = vld [vmem:[%s3458_s3] ss:$0 sm:$0xff] }
  0xe4   : > { %v1533_v33 = vadd.f32 %v1517_v28, %v1481_v39  ;;  %v1569_v46 = vmul.f32 %v2207_v10, %v3076_v8  ;;  %v1534_v22 = vadd.f32 %v1518_v26, %v1482_v15  ;;  %v1535_v40 = vadd.f32 %v1519_v19, %v1483_v62 }
  0xe5   : > { %v1536_v13 = vadd.f32 %v1520_v59, %v1484_v7  ;;  %v1570_v60 = vmul.f32 %v2208_v20, %v3076_v8  ;;  %v1537_v5 = vadd.f32 %v1521_v42, %v1485_v52  ;;  %v1538_v35 = vadd.f32 %v1522_v16, %v1486_v54  ;;  %v2218_v59 = vld [vmem:[%s2332_s20 + $0x112] sm:$0xf]  ;;  %v2219_v16 = vld [vmem:[%s2332_s20 + $0x11a] sm:$0xf] }
  0xe6   : > { %v1571_v41 = vmul.f32 %v2209_v27, %v3076_v8  ;;  %v1572_v51 = vmul.f32 %v2210_v11, %v3076_v8  ;;  %v1539_v17 = vadd.f32 %v1523_v25, %v1487_v36  ;;  %v1582_v39 = vadd.f32 %v1566_v56, %v1530_v29 }
  0xe7   : > { %v1583_v15 = vadd.f32 %v1567_v48, %v1531_v45  ;;  %v1584_v62 = vadd.f32 %v1568_v3, %v1532_v38  ;;  %v1540_v53 = vadd.f32 %v1524_v61, %v1488_v21  ;;  %v1541_v7 = vadd.f32 %v1525_v49, %v1489_v50  ;;  %v2216_v50 = vld [vmem:[%s2332_s20 + $0x102] sm:$0xf] }
  0xe8   : > { %v1573_v52 = vmul.f32 %v2211_v0, %v3076_v8  ;;  %v1585_v54 = vadd.f32 %v1569_v46, %v1533_v33  ;;  %v1542_v36 = vadd.f32 %v1526_v1, %v3218_v58  ;;  %v1543_v63 = vadd.f32 %v1527_v18, %v3220_v31 }
  0xe9   : > { %v1574_v43 = vmul.f32 %v2212_v57, %v3076_v8  ;;  %v1586_v6 = vadd.f32 %v1570_v60, %v1534_v22  ;;  %v1544_v21 = vadd.f32 %v1528_v30, %v1492_v9  ;;  %v1575_v28 = vmul.f32 %v2213_v23, %v3076_v8 }
  0xea   : > { %v1587_v26 = vadd.f32 %v1571_v41, %v1535_v40  ;;  %v1588_v19 = vadd.f32 %v1572_v51, %v1536_v13  ;;  %v1576_v42 = vmul.f32 %v2214_v12, %v3076_v8  ;;  %v1605_v47 = vmul.f32 %v3269_v4, %v1582_v39 }
  0xeb   : > { %v1606_v58 = vmul.f32 %v3269_v4, %v1583_v15  ;;  %v1607_v31 = vmul.f32 %v3269_v4, %v1584_v62  ;;  %v1545_v14 = vadd.f32 %v1529_v55, %v3227_v44  ;;  %v1577_v9 = vmul.f32 %v2215_v37, %v3076_v8 }
  0xec   : > { %v1589_v24 = vadd.f32 %v1573_v52, %v1537_v5  ;;  %v1608_v2 = vmul.f32 %v3269_v4, %v1585_v54  ;;  %v1578_v25 = vmul.f32 %v2216_v50, %v3076_v8  ;;  %v1579_v61 = vmul.f32 %v2217_v34, %v3076_v8 }
  0xed   : > { %v1590_v49 = vadd.f32 %v1574_v43, %v1538_v35  ;;  %v1609_v10 = vmul.f32 %v3269_v4, %v1586_v6  ;;  %v1580_v1 = vmul.f32 %v2218_v59, %v3076_v8  ;;  %v1591_v44 = vadd.f32 %v1575_v28, %v1539_v17 }
  0xee   : > { %v1610_v18 = vmul.f32 %v3269_v4, %v1587_v26  ;;  %v1611_v29 = vmul.f32 %v3269_v4, %v1588_v19  ;;  %v1592_v45 = vadd.f32 %v1576_v42, %v1540_v53  ;;  %v3296_v20 = vadd.f32 %v2221_v32, %v1605_v47 }
  0xef   : > { %v3298_v38 = vadd.f32 %v2221_v32, %v1606_v58  ;;  %v3300_v27 = vadd.f32 %v2221_v32, %v1607_v31  ;;  %v1581_v11 = vmul.f32 %v2219_v16, %v3076_v8  ;;  %v1593_v56 = vadd.f32 %v1577_v9, %v1541_v7 }
  0xf0   : > { %v1612_v48 = vmul.f32 %v3269_v4, %v1589_v24  ;;  %v3304_v3 = vadd.f32 %v2221_v32, %v1608_v2  ;;  %v1594_v30 = vadd.f32 %v1578_v25, %v1542_v36  ;;  %v1595_v55 = vadd.f32 %v1579_v61, %v1543_v63 }
  0xf1   : > { %v1613_v33 = vmul.f32 %v3269_v4, %v1590_v49  ;;  %v3307_v46 = vadd.f32 %v2221_v32, %v1609_v10  ;;  %v1596_v22 = vadd.f32 %v1580_v1, %v1544_v21  ;;  %v1614_v40 = vmul.f32 %v3269_v4, %v1591_v44 }
  0xf2   : > { %v3310_v13 = vadd.f32 %v2221_v32, %v1610_v18  ;;  %v3312_v0 = vadd.f32 %v2221_v32, %v1611_v29  ;;  %v1615_v8 = vmul.f32 %v3269_v4, %v1592_v45  ;;  %v1660_v60 = vmin.f32 %v3296_v20, 0.0 }
  0xf3   : > { %v1661_v5 = vmin.f32 %v3298_v38, 0.0  ;;  %v1662_v35 = vmin.f32 %v3300_v27, 0.0  ;;  %v1597_v57 = vadd.f32 %v1581_v11, %v1545_v14  ;;  %v1616_v41 = vmul.f32 %v3269_v4, %v1593_v56 }
  0xf4   : > { %v3319_v51 = vadd.f32 %v2221_v32, %v1612_v48  ;;  %v1663_v17 = vmin.f32 %v3304_v3, 0.0  ;;  %v1617_v23 = vmul.f32 %v3269_v4, %v1594_v30  ;;  %v1618_v39 = vmul.f32 %v3269_v4, %v1595_v55 }
  0xf5   : > { %v3324_v15 = vadd.f32 %v2221_v32, %v1613_v33  ;;  %v1664_v62 = vmin.f32 %v3307_v46, 0.0  ;;  %v1619_v53 = vmul.f32 %v3269_v4, %v1596_v22  ;;  %v3328_v7 = vadd.f32 %v2221_v32, %v1614_v40 }
  0xf6   : > { %v1665_v12 = vmin.f32 %v3310_v13, 0.0  ;;  %v1666_v52 = vmin.f32 %v3312_v0, 0.0  ;;  %v3332_v54 = vadd.f32 %v2221_v32, %v1615_v8  ;;  %v1676_v36 = vmul.f32 1.442695, %v1660_v60 }
  0xf7   : > { %v1678_v63 = vmul.f32 1.442695, %v1661_v5  ;;  %v1680_v37 = vmul.f32 1.442695, %v1662_v35  ;;  %v1620_v43 = vmul.f32 %v3269_v4, %v1597_v57  ;;  %v3335_v6 = vadd.f32 %v2221_v32, %v1616_v41 }
  0xf8   : > { %v1667_v21 = vmin.f32 %v3319_v51, 0.0  ;;  %v1682_v50 = vmul.f32 1.442695, %v1663_v17  ;;  %v3338_v34 = vadd.f32 %v2221_v32, %v1617_v23  ;;  %v1668_v28 = vmin.f32 %v3324_v15, 0.0 }
  0xf9   : > { %2250 = vpow2.f32 %v1676_v36  ;;  %v1684_v26 = vmul.f32 1.442695, %v1664_v62  ;;  %v3341_v19 = vadd.f32 %v2221_v32, %v1618_v39  ;;  %v1669_v59 = vmin.f32 %v3328_v7, 0.0 }
  0xfa   : > { %2252 = vpow2.f32 %v1678_v63  ;;  %v1686_v42 = vmul.f32 1.442695, %v1665_v12  ;;  %v3344_v47 = vadd.f32 %v2221_v32, %v1619_v53  ;;  %v1670_v4 = vmin.f32 %v3332_v54, 0.0 }
  0xfb   : > { %2254 = vpow2.f32 %v1680_v37  ;;  %v1688_v58 = vmul.f32 1.442695, %v1666_v52  ;;  %v3347_v31 = vadd.f32 %v2221_v32, %v1620_v43  ;;  %v1671_v14 = vmin.f32 %v3335_v6, 0.0 }
  0xfc   : > { %2256 = vpow2.f32 %v1682_v50  ;;  %v1690_v9 = vmul.f32 1.442695, %v1667_v21  ;;  %v1672_v24 = vmin.f32 %v3338_v34, 0.0  ;;  %v1692_v2 = vmul.f32 1.442695, %v1668_v28 }
  0xfd   : > { %2258 = vpow2.f32 %v1684_v26  ;;  %v1673_v16 = vmin.f32 %v3341_v19, 0.0  ;;  %v1694_v25 = vmul.f32 1.442695, %v1669_v59  ;;  %v1674_v61 = vmin.f32 %v3344_v47, 0.0 }
  0xfe   : > { %2260 = vpow2.f32 %v1686_v42  ;;  %v1696_v49 = vmul.f32 1.442695, %v1670_v4  ;;  %v1675_v32 = vmin.f32 %v3347_v31, 0.0  ;;  %v1698_v10 = vmul.f32 1.442695, %v1671_v14 }
  0xff   : > { %2262 = vpow2.f32 %v1688_v58  ;;  %v1700_v1 = vmul.f32 1.442695, %v1672_v24  ;;  %v1702_v44 = vmul.f32 1.442695, %v1673_v16  ;;  %vm1644_vm1 = vcmp.gt.f32.partialorder %v3296_v20, 0.0 }
 0x100   : > { %2264 = vpow2.f32 %v1690_v9  ;;  %vm1645_vm2 = vcmp.gt.f32.partialorder %v3298_v38, 0.0  ;;  %v1704_v29 = vmul.f32 1.442695, %v1674_v61  ;;  %vm1646_vm3 = vcmp.gt.f32.partialorder %v3300_v27, 0.0 }
 0x101   : > { %2266 = vpow2.f32 %v1692_v2  ;;  %v1706_v11 = vmul.f32 1.442695, %v1675_v32  ;;  %vm1647_vm4 = vcmp.gt.f32.partialorder %v3304_v3, 0.0  ;;  %vm1648_vm5 = vcmp.gt.f32.partialorder %v3307_v46, 0.0 }
 0x102   : > { %2268 = vpow2.f32 %v1694_v25  ;;  %vm1649_vm6 = vcmp.gt.f32.partialorder %v3310_v13, 0.0  ;;  %vm1650_vm7 = vcmp.gt.f32.partialorder %v3312_v0, 0.0  ;;  %vm1651_vm8 = vcmp.gt.f32.partialorder %v3319_v51, 0.0 }
 0x103   : > { %v2251_v18 = vpop.eup %2250  ;;  %2270 = vpow2.f32 %v1696_v49  ;;  %vm1652_vm9 = vcmp.gt.f32.partialorder %v3324_v15, 0.0  ;;  %vm1653_vm10 = vcmp.gt.f32.partialorder %v3328_v7, 0.0  ;;  %vm1654_vm11 = vcmp.gt.f32.partialorder %v3332_v54, 0.0 }
 0x104   : > { %v2253_v45 = vpop.eup %2252  ;;  %2272 = vpow2.f32 %v1698_v10  ;;  %v2222_v56 = vadd.f32 -1.0, %v2251_v18  ;;  %vm1655_vm12 = vcmp.gt.f32.partialorder %v3335_v6, 0.0  ;;  %vm1656_vm13 = vcmp.gt.f32.partialorder %v3338_v34, 0.0 }
 0x105   : > { %v2255_v48 = vpop.eup %2254  ;;  %2274 = vpow2.f32 %v1700_v1  ;;  %v2223_v30 = vadd.f32 -1.0, %v2253_v45  ;;  %vm1657_vm14 = vcmp.gt.f32.partialorder %v3341_v19, 0.0  ;;  %vm1658_vm15 = vcmp.gt.f32.partialorder %v3344_v47, 0.0 }
 0x106   : > { %v2257_v55 = vpop.eup %2256  ;;  %2276 = vpow2.f32 %v1702_v44  ;;  %v2224_v33 = vadd.f32 -1.0, %v2255_v48  ;;  %v1724_v22 = vsel %vm1644_vm1, %v3296_v20, %v2222_v56  ;;  %vm1659_vm1 = vcmp.gt.f32.partialorder %v3347_v31, 0.0 }
 0x107   : > { %v2259_v40 = vpop.eup %2258  ;;  %2278 = vpow2.f32 %v1704_v29  ;;  %v2225_v8 = vadd.f32 -1.0, %v2257_v55  ;;  %v1725_v60 = vsel %vm1645_vm2, %v3298_v38, %v2223_v30  ;;  %v1740_v5 = vpack.c.bf16 %v1724_v22, %v1724_v22 }
 0x108   : > { %v2261_v35 = vpop.eup %2260  ;;  %2280 = vpow2.f32 %v1706_v11  ;;  %v2226_v57 = vadd.f32 -1.0, %v2259_v40  ;;  %v1726_v41 = vsel %vm1646_vm3, %v3300_v27, %v2224_v33  ;;  %v1741_v17 = vpack.c.bf16 %v1725_v60, %v1725_v60 }
 0x109   : > { %v2263_v23 = vpop.eup %2262  ;;  %v2227_v20 = vadd.f32 -1.0, %v2261_v35  ;;  %v1727_v39 = vsel %vm1647_vm4, %v3304_v3, %v2225_v8  ;;  %v1742_v38 = vpack.c.bf16 %v1726_v41, %v1726_v41  ;;  %1757 = vst.msk [vmem:[%s3363_s12] sm:$0x3] %vm1756_vm0, %v1740_v5 }
 0x10a   : > { %v2265_v62 = vpop.eup %2264  ;;  %v2228_v53 = vadd.f32 -1.0, %v2263_v23  ;;  %v1728_v27 = vsel %vm1648_vm5, %v3307_v46, %v2226_v57  ;;  %v1743_v12 = vpack.c.bf16 %v1727_v39, %v1727_v39  ;;  %1758 = vst.msk [vmem:[%s3363_s12 + $0x2] sm:$0x3] %vm1756_vm0, %v1741_v17 }
 0x10b   : > { %v2267_v52 = vpop.eup %2266  ;;  %v2229_v3 = vadd.f32 -1.0, %v2265_v62  ;;  %v1729_v36 = vsel %vm1649_vm6, %v3310_v13, %v2227_v20  ;;  %v1744_v63 = vpack.c.bf16 %v1728_v27, %v1728_v27  ;;  %1759 = vst.msk [vmem:[%s3363_s12 + $0x4] sm:$0x3] %vm1756_vm0, %v1742_v38 }
 0x10c   : > { %v2269_v37 = vpop.eup %2268  ;;  %v2230_v46 = vadd.f32 -1.0, %v2267_v52  ;;  %v1730_v43 = vsel %vm1650_vm7, %v3312_v0, %v2228_v53  ;;  %v1745_v21 = vpack.c.bf16 %v1729_v36, %v1729_v36  ;;  %1760 = vst.msk [vmem:[%s3363_s12 + $0x6] sm:$0x3] %vm1756_vm0, %v1743_v12 }
 0x10d   : > { %v2271_v50 = vpop.eup %2270  ;;  %v2231_v13 = vadd.f32 -1.0, %v2269_v37  ;;  %v1731_v28 = vsel %vm1651_vm8, %v3319_v51, %v2229_v3  ;;  %v1746_v26 = vpack.c.bf16 %v1730_v43, %v1730_v43  ;;  %1761 = vst.msk [vmem:[%s3363_s12 + $0x8] sm:$0x3] %vm1756_vm0, %v1744_v63 }
 0x10e   : > { %v2273_v59 = vpop.eup %2272  ;;  %v2232_v0 = vadd.f32 -1.0, %v2271_v50  ;;  %v1732_v42 = vsel %vm1652_vm9, %v3324_v15, %v2230_v46  ;;  %v1747_v4 = vpack.c.bf16 %v1731_v28, %v1731_v28  ;;  %1762 = vst.msk [vmem:[%s3363_s12 + $0xa] sm:$0x3] %vm1756_vm0, %v1745_v21 }
 0x10f   : > { %v2275_v58 = vpop.eup %2274  ;;  %v2233_v51 = vadd.f32 -1.0, %v2273_v59  ;;  %v1733_v14 = vsel %vm1653_vm10, %v3328_v7, %v2231_v13  ;;  %v1748_v9 = vpack.c.bf16 %v1732_v42, %v1732_v42  ;;  %1763 = vst.msk [vmem:[%s3363_s12 + $0xc] sm:$0x3] %vm1756_vm0, %v1746_v26 }
 0x110   : > { %v2277_v24 = vpop.eup %2276  ;;  %v2234_v15 = vadd.f32 -1.0, %v2275_v58  ;;  %v1734_v2 = vsel %vm1654_vm11, %v3332_v54, %v2232_v0  ;;  %v1749_v16 = vpack.c.bf16 %v1733_v14, %v1733_v14  ;;  %1764 = vst.msk [vmem:[%s3363_s12 + $0xe] sm:$0x3] %vm1756_vm0, %v1747_v4 }
 0x111   : > { %v2279_v25 = vpop.eup %2278  ;;  %v2235_v7 = vadd.f32 -1.0, %v2277_v24  ;;  %v1735_v61 = vsel %vm1655_vm12, %v3335_v6, %v2233_v51  ;;  %v1750_v49 = vpack.c.bf16 %v1734_v2, %v1734_v2  ;;  %1765 = vst.msk [vmem:[%s3363_s12 + $0x10] sm:$0x3] %vm1756_vm0, %v1748_v9 }
 0x112   : > { %v2281_v32 = vpop.eup %2280  ;;  %v2236_v54 = vadd.f32 -1.0, %v2279_v25  ;;  %v1736_v10 = vsel %vm1656_vm13, %v3338_v34, %v2234_v15  ;;  %v1751_v1 = vpack.c.bf16 %v1735_v61, %v1735_v61  ;;  %1766 = vst.msk [vmem:[%s3363_s12 + $0x12] sm:$0x3] %vm1756_vm0, %v1749_v16 }
 0x113   : > { %v2237_v44 = vadd.f32 -1.0, %v2281_v32  ;;  %v1737_v6 = vsel %vm1657_vm14, %v3341_v19, %v2235_v7  ;;  %v1752_v18 = vpack.c.bf16 %v1736_v10, %v1736_v10  ;;  %1767 = vst.msk [vmem:[%s3363_s12 + $0x14] sm:$0x3] %vm1756_vm0, %v1750_v49 }
 0x114   : > { %v1738_v29 = vsel %vm1658_vm15, %v3344_v47, %v2236_v54  ;;  %v1753_v45 = vpack.c.bf16 %v1737_v6, %v1737_v6  ;;  %1768 = vst.msk [vmem:[%s3363_s12 + $0x16] sm:$0x3] %vm1756_vm0, %v1751_v1 }
 0x115   : > { %v1739_v11 = vsel %vm1659_vm1, %v3347_v31, %v2237_v44  ;;  %v1754_v34 = vpack.c.bf16 %v1738_v29, %v1738_v29  ;;  %1769 = vst.msk [vmem:[%s3363_s12 + $0x18] sm:$0x3] %vm1756_vm0, %v1752_v18 }
 0x116   : > { %v1755_v56 = vpack.c.bf16 %v1739_v11, %v1739_v11  ;;  %1770 = vst.msk [vmem:[%s3363_s12 + $0x1a] sm:$0x3] %vm1756_vm0, %v1753_v45 }
 0x117   : > { %1771 = vst.msk [vmem:[%s3363_s12 + $0x1c] sm:$0x3] %vm1756_vm0, %v1754_v34 }
 0x118   : > { %1772 = vst.msk [vmem:[%s3363_s12 + $0x1e] sm:$0x3] %vm1756_vm0, %v1755_v56 }
 0x119 PF: > { %s14_s15 = sadd.s32 1, %s2289_s15  }
 0x11a   : > { %p11_p4 = scmp.ge.s32.totalorder %s14_s15, 4  }
 0x11c   :  { %13 = sbr.rel (!%p11_p4) target bundleno = 1 (0x1), region = 74 }

</bundles_post_ra>
